<compile_context>
chip_gen: v5e
topology: v5e:2x2
jax: 0.10.0
libtpu: 0.0.40
codegen_flags: <defaults>
</compile_context>

<pallas_src>
import jax
import jax.numpy as jnp
from jax.experimental import pallas as pl
from jax.experimental.pallas import tpu as pltpu

H = W = 8
HW = H * W            # 64 spatial positions
C1 = 32               # conv1 out channels
C2 = 64               # conv2 out channels
FC1 = 128             # fc1 width
NSCALAR = 6
GRP = 4               # fc1 positions per MXU dot (K = GRP * C2 = 256)

# Tap order matches PyTorch kernel index t = kh*3 + kw with (dh, dw) = (kh-1, kw-1).
TAPS = tuple((dh, dw) for dh in (-1, 0, 1) for dw in (-1, 0, 1))


# ----------------------------------------------------------------------------
# Fused kernel
# ----------------------------------------------------------------------------
def _fused_kernel(board_ref, scalar_ref, masks_ref,
                  w1k_ref, b1_ref,
                  w2k_ref, b2_ref,
                  w1a_ref, w1b_ref, fc1b_ref,
                  fc2w_ref, fc2b_ref,
                  out_ref,
                  board_ext, y1_ext, y2_scr):
    BHW = board_ref.shape[0]                      # B * 64 rows (row = p*B + b)
    B = BHW // HW
    PAD = (board_ext.shape[0] - BHW) // 2         # zero rows above/below

    # ---------------- conv1: 1 -> 32, 3x3 "same" (9 VPU broadcast MACs) ------
    board_ext[...] = jnp.zeros(board_ext.shape, board_ext.dtype)
    board_ext[pl.ds(PAD, BHW), :] = board_ref[...]            # (BHW, 1)

    acc1 = jnp.zeros((BHW, C1), jnp.float32)
    for t, (dh, dw) in enumerate(TAPS):
        shift = (dh * W + dw) * B
        tap = board_ext[pl.ds(PAD + shift, BHW), :]            # (BHW, 1)
        m = masks_ref[t]                                       # (BHW, 1)
        acc1 = acc1 + (tap * m) * w1k_ref[pl.ds(t, 1), :]      # * (1, 32)
    y1 = jnp.maximum(acc1 + b1_ref[...], 0.0)                  # (BHW, 32)

    # ---------------- conv2: 32 -> 64, 3x3 "same" (9 MXU dots) ---------------
    y1_ext[...] = jnp.zeros(y1_ext.shape, y1_ext.dtype)
    y1_ext[pl.ds(PAD, BHW), :] = y1

    acc2 = jnp.zeros((BHW, C2), jnp.float32)
    for t, (dh, dw) in enumerate(TAPS):
        shift = (dh * W + dw) * B
        tap = y1_ext[pl.ds(PAD + shift, BHW), :]               # (BHW, 32)
        m = masks_ref[t]                                       # (BHW, 1)
        acc2 = acc2 + jnp.dot(tap * m, w2k_ref[t],             # (32, 64)
                              preferred_element_type=jnp.float32)
    y2_scr[...] = jnp.maximum(acc2 + b2_ref[...], 0.0)         # (BHW, 64)

    # ---------------- fc1: (4096 board + 6 scalar) -> 128, ReLU --------------
    # scalar branch (tiny K=6 correction term)
    h = jnp.dot(scalar_ref[...], w1b_ref[...],
                preferred_element_type=jnp.float32)            # (B, 128)
    # board branch: w1a is pre-permuted so K index = p*64 + co; batch rows of
    # the same position are contiguous, so each K=256 chunk is 4 contiguous
    # (B, 64) blocks lane-concatenated.
    for g in range(HW // GRP):
        pieces = [y2_scr[pl.ds((g * GRP + j) * B, B), :] for j in range(GRP)]
        lhs = jnp.concatenate(pieces, axis=1)                  # (B, 256)
        wblk = w1a_ref[pl.ds(g * GRP * C2, GRP * C2), :]       # (256, 128)
        h = h + jnp.dot(lhs, wblk, preferred_element_type=jnp.float32)
    h = jnp.maximum(h + fc1b_ref[...], 0.0)                    # (B, 128)

    # ---------------- fc2: 128 -> 1 (VPU multiply + lane reduction) ----------
    out = jnp.sum(h * fc2w_ref[...], axis=1, keepdims=True) + fc2b_ref[...]
    out_ref[...] = out.astype(out_ref.dtype)                   # (B, 1)


def _fused_forward(board_rows, scalars, masks, p):
    BHW = board_rows.shape[0]
    B = BHW // HW
    pad = ((9 * B + 7) // 8) * 8                 # >= max row shift, 8-aligned
    vmem = pl.BlockSpec(memory_space=pltpu.MemorySpace.VMEM)
    return pl.pallas_call(
        _fused_kernel,
        out_shape=jax.ShapeDtypeStruct((B, 1), jnp.float32),
        in_specs=[vmem] * 12,
        out_specs=vmem,
        scratch_shapes=[
            pltpu.VMEM((BHW + 2 * pad, 1), jnp.float32),       # zero-padded board rows
            pltpu.VMEM((BHW + 2 * pad, C1), jnp.float32),      # zero-padded conv1 act
            pltpu.VMEM((BHW, C2), jnp.float32),                # conv2 act
        ],
    )(board_rows, scalars, masks,
      p["w1k"], p["b1"], p["w2k"], p["b2"],
      p["w1a"], p["w1b"], p["fc1b"], p["fc2w"], p["fc2b"])


# ----------------------------------------------------------------------------
# Parameters (PyTorch layout) + one-time kernel-layout preparation
# ----------------------------------------------------------------------------
def init_params(key):
    ks = jax.random.split(key, 8)

    def uni(k, shape, fan_in):
        bound = 1.0 / jnp.sqrt(jnp.float32(fan_in))
        return jax.random.uniform(k, shape, jnp.float32, -bound, bound)

    return {
        "conv1_w": uni(ks[0], (C1, 1, 3, 3), 1 * 9),
        "conv1_b": uni(ks[1], (C1,), 1 * 9),
        "conv2_w": uni(ks[2], (C2, C1, 3, 3), C1 * 9),
        "conv2_b": uni(ks[3], (C2,), C1 * 9),
        "fc1_w": uni(ks[4], (FC1, C2 * HW + NSCALAR), C2 * HW + NSCALAR),
        "fc1_b": uni(ks[5], (FC1,), C2 * HW + NSCALAR),
        "fc2_w": uni(ks[6], (1, FC1), FC1),
        "fc2_b": uni(ks[7], (1,), FC1),
    }


def prepare_params(params):
    """One-time re-layout of PyTorch-style weights into kernel-friendly form."""
    w1 = params["conv1_w"]                      # (32, 1, 3, 3)
    w2 = params["conv2_w"]                      # (64, 32, 3, 3)
    fc1w = params["fc1_w"]                      # (128, 4102)
    return {
        # conv1 tap weights: [t = kh*3+kw, co]
        "w1k": w1.reshape(C1, 9).T,                                  # (9, 32)
        "b1": params["conv1_b"].reshape(1, C1),
        # conv2 tap weights: [t, ci, co]
        "w2k": w2.transpose(2, 3, 1, 0).reshape(9, C1, C2),          # (9, 32, 64)
        "b2": params["conv2_b"].reshape(1, C2),
        # fc1 board weight permuted so K index = p*64 + co (position-major)
        "w1a": fc1w[:, :C2 * HW].reshape(FC1, C2, HW)
                    .transpose(2, 1, 0).reshape(HW * C2, FC1),       # (4096, 128)
        # fc1 scalar-feature weight
        "w1b": fc1w[:, C2 * HW:].T,                                  # (6, 128)
        "fc1b": params["fc1_b"].reshape(1, FC1),
        "fc2w": params["fc2_w"].reshape(1, FC1),
        "fc2b": params["fc2_b"].reshape(1, 1),
    }


def _make_masks(B):
    """Per-tap validity masks, shape (9, B*HW, 1); row = position*B + batch."""
    hw = jnp.arange(HW, dtype=jnp.int32)
    h, w = hw // W, hw % W
    cols = []
    for dh, dw in TAPS:
        ok = (h + dh >= 0) & (h + dh < H) & (w + dw >= 0) & (w + dw < W)
        cols.append(jnp.repeat(ok, B))
    return jnp.stack(cols).astype(jnp.float32).reshape(9, B * HW, 1)


@jax.jit
def chess_conv_forward(prepped, board, scalar_features):
    # board: (B, 1, 8, 8) NCHW float32 ; scalar_features: (B, 6) float32
    B = board.shape[0]
    # rows = position*B + batch : positions contiguous in the sublane dim.
    board_rows = board.astype(jnp.float32).reshape(B, HW).T.reshape(B * HW, 1)
    masks = _make_masks(B)
    return _fused_forward(board_rows, scalar_features.astype(jnp.float32),
                          masks, prepped)


# ----------------------------------------------------------------------------
# Pure-JAX reference (for a one-shot numerical sanity check)
# ----------------------------------------------------------------------------
def _reference_forward(params, board, scalar_features):
    x = jax.lax.conv_general_dilated(
        board, params["conv1_w"], window_strides=(1, 1), padding="SAME",
        dimension_numbers=("NCHW", "OIHW", "NCHW"))
    x = jax.nn.relu(x + params["conv1_b"].reshape(1, C1, 1, 1))
    x = jax.lax.conv_general_dilated(
        x, params["conv2_w"], window_strides=(1, 1), padding="SAME",
        dimension_numbers=("NCHW", "OIHW", "NCHW"))
    x = jax.nn.relu(x + params["conv2_b"].reshape(1, C2, 1, 1))
    flat = x.reshape(x.shape[0], -1)                           # NCHW flatten
    xcat = jnp.concatenate([flat, scalar_features], axis=1)
    hfc = jax.nn.relu(xcat @ params["fc1_w"].T + params["fc1_b"])
    return hfc @ params["fc2_w"].T + params["fc2_b"]


if __name__ == "__main__":
    key = jax.random.PRNGKey(0)
    kp, kb, ks = jax.random.split(key, 3)

    params = init_params(kp)
    prepped = prepare_params(params)

    # Chess board: batch=2, 1 channel, 8x8 spatial (spatial size fixed by fc1).
    board = jax.random.normal(kb, (2, 1, 8, 8), jnp.float32)
    scalar_features = jax.random.normal(ks, (2, 6), jnp.float32)

    out = chess_conv_forward(prepped, board, scalar_features)
    jax.block_until_ready(out)
    assert out.shape == (2, 1) and out.dtype == jnp.float32

    ref = _reference_forward(params, board, scalar_features)
    assert jnp.allclose(out, ref, atol=1e-3, rtol=1e-3), (out, ref)

    print("KERNEL_OK")
</pallas_src>

<mosaic_0001>
module attributes {stable_mosaic.version = 11 : i64} {
  func.func @_fused_kernel(%arg0: memref<128x1xf32, #tpu.memory_space<vmem>>, %arg1: memref<2x6xf32, #tpu.memory_space<vmem>>, %arg2: memref<9x128x1xf32, #tpu.memory_space<vmem>>, %arg3: memref<9x32xf32, #tpu.memory_space<vmem>>, %arg4: memref<1x32xf32, #tpu.memory_space<vmem>>, %arg5: memref<9x32x64xf32, #tpu.memory_space<vmem>>, %arg6: memref<1x64xf32, #tpu.memory_space<vmem>>, %arg7: memref<4096x128xf32, #tpu.memory_space<vmem>>, %arg8: memref<6x128xf32, #tpu.memory_space<vmem>>, %arg9: memref<1x128xf32, #tpu.memory_space<vmem>>, %arg10: memref<1x128xf32, #tpu.memory_space<vmem>>, %arg11: memref<1x1xf32, #tpu.memory_space<vmem>>, %arg12: memref<2x1xf32, #tpu.memory_space<vmem>>, %arg13: memref<176x1xf32, #tpu.memory_space<vmem>>, %arg14: memref<176x32xf32, #tpu.memory_space<vmem>>, %arg15: memref<128x64xf32, #tpu.memory_space<vmem>>) attributes {dimension_semantics = [], scalar_prefetch = 0 : i64, scratch_operands = 3 : i64, tpu.core_type = #tpu.core_type<tc>} {
    %cst = arith.constant 0.000000e+00 : f32
    %0 = vector.broadcast %cst : f32 to vector<176x1xf32>
    %c0 = arith.constant 0 : index
    %c0_0 = arith.constant 0 : index
    %1 = vector.load %arg13[%c0, %c0_0] : memref<176x1xf32, #tpu.memory_space<vmem>>, vector<176x1xf32>
    tpu.vector_store %arg13[%c0, %c0_0], %0 {strides = array<i32>} : memref<176x1xf32, #tpu.memory_space<vmem>>, vector<176x1xf32>,
    %c0_1 = arith.constant 0 : index
    %c0_2 = arith.constant 0 : index
    %2 = vector.load %arg0[%c0_1, %c0_2] : memref<128x1xf32, #tpu.memory_space<vmem>>, vector<128x1xf32>
    %c24 = arith.constant 24 : index
    %c0_3 = arith.constant 0 : index
    %3 = vector.load %arg13[%c24, %c0_3] : memref<176x1xf32, #tpu.memory_space<vmem>>, vector<128x1xf32>
    tpu.vector_store %arg13[%c24, %c0_3], %2 {strides = array<i32>} : memref<176x1xf32, #tpu.memory_space<vmem>>, vector<128x1xf32>,
    %cst_4 = arith.constant 0.000000e+00 : f32
    %4 = vector.broadcast %cst_4 : f32 to vector<128x32xf32>
    %c6 = arith.constant 6 : index
    %c0_5 = arith.constant 0 : index
    %5 = vector.load %arg13[%c6, %c0_5] : memref<176x1xf32, #tpu.memory_space<vmem>>, vector<128x1xf32>
    %c0_6 = arith.constant 0 : index
    %c0_7 = arith.constant 0 : index
    %c0_8 = arith.constant 0 : index
    %6 = vector.load %arg2[%c0_6, %c0_7, %c0_8] : memref<9x128x1xf32, #tpu.memory_space<vmem>>, vector<1x128x1xf32>
    %7 = vector.shape_cast %6 : vector<1x128x1xf32> to vector<128x1xf32>
    %8 = arith.mulf %5, %7 : vector<128x1xf32>
    %c0_9 = arith.constant 0 : index
    %c0_10 = arith.constant 0 : index
    %9 = vector.load %arg3[%c0_9, %c0_10] : memref<9x32xf32, #tpu.memory_space<vmem>>, vector<1x32xf32>
    %10 = vector.broadcast %8 : vector<128x1xf32> to vector<128x32xf32>
    %11 = vector.broadcast %9 : vector<1x32xf32> to vector<128x32xf32>
    %12 = arith.mulf %10, %11 : vector<128x32xf32>
    %13 = arith.addf %4, %12 : vector<128x32xf32>
    %c8 = arith.constant 8 : index
    %c0_11 = arith.constant 0 : index
    %14 = vector.load %arg13[%c8, %c0_11] : memref<176x1xf32, #tpu.memory_space<vmem>>, vector<128x1xf32>
    %c1 = arith.constant 1 : index
    %c0_12 = arith.constant 0 : index
    %c0_13 = arith.constant 0 : index
    %15 = vector.load %arg2[%c1, %c0_12, %c0_13] : memref<9x128x1xf32, #tpu.memory_space<vmem>>, vector<1x128x1xf32>
    %16 = vector.shape_cast %15 : vector<1x128x1xf32> to vector<128x1xf32>
    %17 = arith.mulf %14, %16 : vector<128x1xf32>
    %c1_14 = arith.constant 1 : index
    %c0_15 = arith.constant 0 : index
    %18 = vector.load %arg3[%c1_14, %c0_15] : memref<9x32xf32, #tpu.memory_space<vmem>>, vector<1x32xf32>
    %19 = vector.broadcast %17 : vector<128x1xf32> to vector<128x32xf32>
    %20 = vector.broadcast %18 : vector<1x32xf32> to vector<128x32xf32>
    %21 = arith.mulf %19, %20 : vector<128x32xf32>
    %22 = arith.addf %13, %21 : vector<128x32xf32>
    %c10 = arith.constant 10 : index
    %c0_16 = arith.constant 0 : index
    %23 = vector.load %arg13[%c10, %c0_16] : memref<176x1xf32, #tpu.memory_space<vmem>>, vector<128x1xf32>
    %c2 = arith.constant 2 : index
    %c0_17 = arith.constant 0 : index
    %c0_18 = arith.constant 0 : index
    %24 = vector.load %arg2[%c2, %c0_17, %c0_18] : memref<9x128x1xf32, #tpu.memory_space<vmem>>, vector<1x128x1xf32>
    %25 = vector.shape_cast %24 : vector<1x128x1xf32> to vector<128x1xf32>
    %26 = arith.mulf %23, %25 : vector<128x1xf32>
    %c2_19 = arith.constant 2 : index
    %c0_20 = arith.constant 0 : index
    %27 = vector.load %arg3[%c2_19, %c0_20] : memref<9x32xf32, #tpu.memory_space<vmem>>, vector<1x32xf32>
    %28 = vector.broadcast %26 : vector<128x1xf32> to vector<128x32xf32>
    %29 = vector.broadcast %27 : vector<1x32xf32> to vector<128x32xf32>
    %30 = arith.mulf %28, %29 : vector<128x32xf32>
    %31 = arith.addf %22, %30 : vector<128x32xf32>
    %c22 = arith.constant 22 : index
    %c0_21 = arith.constant 0 : index
    %32 = vector.load %arg13[%c22, %c0_21] : memref<176x1xf32, #tpu.memory_space<vmem>>, vector<128x1xf32>
    %c3 = arith.constant 3 : index
    %c0_22 = arith.constant 0 : index
    %c0_23 = arith.constant 0 : index
    %33 = vector.load %arg2[%c3, %c0_22, %c0_23] : memref<9x128x1xf32, #tpu.memory_space<vmem>>, vector<1x128x1xf32>
    %34 = vector.shape_cast %33 : vector<1x128x1xf32> to vector<128x1xf32>
    %35 = arith.mulf %32, %34 : vector<128x1xf32>
    %c3_24 = arith.constant 3 : index
    %c0_25 = arith.constant 0 : index
    %36 = vector.load %arg3[%c3_24, %c0_25] : memref<9x32xf32, #tpu.memory_space<vmem>>, vector<1x32xf32>
    %37 = vector.broadcast %35 : vector<128x1xf32> to vector<128x32xf32>
    %38 = vector.broadcast %36 : vector<1x32xf32> to vector<128x32xf32>
    %39 = arith.mulf %37, %38 : vector<128x32xf32>
    %40 = arith.addf %31, %39 : vector<128x32xf32>
    %c24_26 = arith.constant 24 : index
    %c0_27 = arith.constant 0 : index
    %41 = vector.load %arg13[%c24_26, %c0_27] : memref<176x1xf32, #tpu.memory_space<vmem>>, vector<128x1xf32>
    %c4 = arith.constant 4 : index
    %c0_28 = arith.constant 0 : index
    %c0_29 = arith.constant 0 : index
    %42 = vector.load %arg2[%c4, %c0_28, %c0_29] : memref<9x128x1xf32, #tpu.memory_space<vmem>>, vector<1x128x1xf32>
    %43 = vector.shape_cast %42 : vector<1x128x1xf32> to vector<128x1xf32>
    %44 = arith.mulf %41, %43 : vector<128x1xf32>
    %c4_30 = arith.constant 4 : index
    %c0_31 = arith.constant 0 : index
    %45 = vector.load %arg3[%c4_30, %c0_31] : memref<9x32xf32, #tpu.memory_space<vmem>>, vector<1x32xf32>
    %46 = vector.broadcast %44 : vector<128x1xf32> to vector<128x32xf32>
    %47 = vector.broadcast %45 : vector<1x32xf32> to vector<128x32xf32>
    %48 = arith.mulf %46, %47 : vector<128x32xf32>
    %49 = arith.addf %40, %48 : vector<128x32xf32>
    %c26 = arith.constant 26 : index
    %c0_32 = arith.constant 0 : index
    %50 = vector.load %arg13[%c26, %c0_32] : memref<176x1xf32, #tpu.memory_space<vmem>>, vector<128x1xf32>
    %c5 = arith.constant 5 : index
    %c0_33 = arith.constant 0 : index
    %c0_34 = arith.constant 0 : index
    %51 = vector.load %arg2[%c5, %c0_33, %c0_34] : memref<9x128x1xf32, #tpu.memory_space<vmem>>, vector<1x128x1xf32>
    %52 = vector.shape_cast %51 : vector<1x128x1xf32> to vector<128x1xf32>
    %53 = arith.mulf %50, %52 : vector<128x1xf32>
    %c5_35 = arith.constant 5 : index
    %c0_36 = arith.constant 0 : index
    %54 = vector.load %arg3[%c5_35, %c0_36] : memref<9x32xf32, #tpu.memory_space<vmem>>, vector<1x32xf32>
    %55 = vector.broadcast %53 : vector<128x1xf32> to vector<128x32xf32>
    %56 = vector.broadcast %54 : vector<1x32xf32> to vector<128x32xf32>
    %57 = arith.mulf %55, %56 : vector<128x32xf32>
    %58 = arith.addf %49, %57 : vector<128x32xf32>
    %c38 = arith.constant 38 : index
    %c0_37 = arith.constant 0 : index
    %59 = vector.load %arg13[%c38, %c0_37] : memref<176x1xf32, #tpu.memory_space<vmem>>, vector<128x1xf32>
    %c6_38 = arith.constant 6 : index
    %c0_39 = arith.constant 0 : index
    %c0_40 = arith.constant 0 : index
    %60 = vector.load %arg2[%c6_38, %c0_39, %c0_40] : memref<9x128x1xf32, #tpu.memory_space<vmem>>, vector<1x128x1xf32>
    %61 = vector.shape_cast %60 : vector<1x128x1xf32> to vector<128x1xf32>
    %62 = arith.mulf %59, %61 : vector<128x1xf32>
    %c6_41 = arith.constant 6 : index
    %c0_42 = arith.constant 0 : index
    %63 = vector.load %arg3[%c6_41, %c0_42] : memref<9x32xf32, #tpu.memory_space<vmem>>, vector<1x32xf32>
    %64 = vector.broadcast %62 : vector<128x1xf32> to vector<128x32xf32>
    %65 = vector.broadcast %63 : vector<1x32xf32> to vector<128x32xf32>
    %66 = arith.mulf %64, %65 : vector<128x32xf32>
    %67 = arith.addf %58, %66 : vector<128x32xf32>
    %c40 = arith.constant 40 : index
    %c0_43 = arith.constant 0 : index
    %68 = vector.load %arg13[%c40, %c0_43] : memref<176x1xf32, #tpu.memory_space<vmem>>, vector<128x1xf32>
    %c7 = arith.constant 7 : index
    %c0_44 = arith.constant 0 : index
    %c0_45 = arith.constant 0 : index
    %69 = vector.load %arg2[%c7, %c0_44, %c0_45] : memref<9x128x1xf32, #tpu.memory_space<vmem>>, vector<1x128x1xf32>
    %70 = vector.shape_cast %69 : vector<1x128x1xf32> to vector<128x1xf32>
    %71 = arith.mulf %68, %70 : vector<128x1xf32>
    %c7_46 = arith.constant 7 : index
    %c0_47 = arith.constant 0 : index
    %72 = vector.load %arg3[%c7_46, %c0_47] : memref<9x32xf32, #tpu.memory_space<vmem>>, vector<1x32xf32>
    %73 = vector.broadcast %71 : vector<128x1xf32> to vector<128x32xf32>
    %74 = vector.broadcast %72 : vector<1x32xf32> to vector<128x32xf32>
    %75 = arith.mulf %73, %74 : vector<128x32xf32>
    %76 = arith.addf %67, %75 : vector<128x32xf32>
    %c42 = arith.constant 42 : index
    %c0_48 = arith.constant 0 : index
    %77 = vector.load %arg13[%c42, %c0_48] : memref<176x1xf32, #tpu.memory_space<vmem>>, vector<128x1xf32>
    %c8_49 = arith.constant 8 : index
    %c0_50 = arith.constant 0 : index
    %c0_51 = arith.constant 0 : index
    %78 = vector.load %arg2[%c8_49, %c0_50, %c0_51] : memref<9x128x1xf32, #tpu.memory_space<vmem>>, vector<1x128x1xf32>
    %79 = vector.shape_cast %78 : vector<1x128x1xf32> to vector<128x1xf32>
    %80 = arith.mulf %77, %79 : vector<128x1xf32>
    %c8_52 = arith.constant 8 : index
    %c0_53 = arith.constant 0 : index
    %81 = vector.load %arg3[%c8_52, %c0_53] : memref<9x32xf32, #tpu.memory_space<vmem>>, vector<1x32xf32>
    %82 = vector.broadcast %80 : vector<128x1xf32> to vector<128x32xf32>
    %83 = vector.broadcast %81 : vector<1x32xf32> to vector<128x32xf32>
    %84 = arith.mulf %82, %83 : vector<128x32xf32>
    %85 = arith.addf %76, %84 : vector<128x32xf32>
    %c0_54 = arith.constant 0 : index
    %c0_55 = arith.constant 0 : index
    %86 = vector.load %arg4[%c0_54, %c0_55] : memref<1x32xf32, #tpu.memory_space<vmem>>, vector<1x32xf32>
    %87 = vector.broadcast %86 : vector<1x32xf32> to vector<128x32xf32>
    %88 = arith.addf %85, %87 : vector<128x32xf32>
    %cst_56 = arith.constant 0.000000e+00 : f32
    %89 = vector.broadcast %cst_56 : f32 to vector<128x32xf32>
    %90 = arith.maximumf %88, %89 : vector<128x32xf32>
    %cst_57 = arith.constant 0.000000e+00 : f32
    %91 = vector.broadcast %cst_57 : f32 to vector<176x32xf32>
    %c0_58 = arith.constant 0 : index
    %c0_59 = arith.constant 0 : index
    %92 = vector.load %arg14[%c0_58, %c0_59] : memref<176x32xf32, #tpu.memory_space<vmem>>, vector<176x32xf32>
    tpu.vector_store %arg14[%c0_58, %c0_59], %91 {strides = array<i32>} : memref<176x32xf32, #tpu.memory_space<vmem>>, vector<176x32xf32>,
    %c24_60 = arith.constant 24 : index
    %c0_61 = arith.constant 0 : index
    %93 = vector.load %arg14[%c24_60, %c0_61] : memref<176x32xf32, #tpu.memory_space<vmem>>, vector<128x32xf32>
    tpu.vector_store %arg14[%c24_60, %c0_61], %90 {strides = array<i32>} : memref<176x32xf32, #tpu.memory_space<vmem>>, vector<128x32xf32>,
    %cst_62 = arith.constant 0.000000e+00 : f32
    %94 = vector.broadcast %cst_62 : f32 to vector<128x64xf32>
    %c6_63 = arith.constant 6 : index
    %c0_64 = arith.constant 0 : index
    %95 = vector.load %arg14[%c6_63, %c0_64] : memref<176x32xf32, #tpu.memory_space<vmem>>, vector<128x32xf32>
    %c0_65 = arith.constant 0 : index
    %c0_66 = arith.constant 0 : index
    %c0_67 = arith.constant 0 : index
    %96 = vector.load %arg2[%c0_65, %c0_66, %c0_67] : memref<9x128x1xf32, #tpu.memory_space<vmem>>, vector<1x128x1xf32>
    %97 = vector.shape_cast %96 : vector<1x128x1xf32> to vector<128x1xf32>
    %98 = vector.broadcast %97 : vector<128x1xf32> to vector<128x32xf32>
    %99 = arith.mulf %95, %98 : vector<128x32xf32>
    %c0_68 = arith.constant 0 : index
    %c0_69 = arith.constant 0 : index
    %c0_70 = arith.constant 0 : index
    %100 = vector.load %arg5[%c0_68, %c0_69, %c0_70] : memref<9x32x64xf32, #tpu.memory_space<vmem>>, vector<1x32x64xf32>
    %101 = vector.shape_cast %100 : vector<1x32x64xf32> to vector<32x64xf32>
    %cst_71 = arith.constant dense<0.000000e+00> : vector<128x64xf32>
    %102 = tpu.matmul %99, %101, %cst_71 {dimension_numbers = #tpu.dot_dimension_numbers<[1], [0], [0], [1], [0, 0, 1, 1], [], []>} : vector<128x32xf32>, vector<32x64xf32>, vector<128x64xf32> -> vector<128x64xf32>
    %103 = arith.addf %94, %102 : vector<128x64xf32>
    %c8_72 = arith.constant 8 : index
    %c0_73 = arith.constant 0 : index
    %104 = vector.load %arg14[%c8_72, %c0_73] : memref<176x32xf32, #tpu.memory_space<vmem>>, vector<128x32xf32>
    %c1_74 = arith.constant 1 : index
    %c0_75 = arith.constant 0 : index
    %c0_76 = arith.constant 0 : index
    %105 = vector.load %arg2[%c1_74, %c0_75, %c0_76] : memref<9x128x1xf32, #tpu.memory_space<vmem>>, vector<1x128x1xf32>
    %106 = vector.shape_cast %105 : vector<1x128x1xf32> to vector<128x1xf32>
    %107 = vector.broadcast %106 : vector<128x1xf32> to vector<128x32xf32>
    %108 = arith.mulf %104, %107 : vector<128x32xf32>
    %c1_77 = arith.constant 1 : index
    %c0_78 = arith.constant 0 : index
    %c0_79 = arith.constant 0 : index
    %109 = vector.load %arg5[%c1_77, %c0_78, %c0_79] : memref<9x32x64xf32, #tpu.memory_space<vmem>>, vector<1x32x64xf32>
    %110 = vector.shape_cast %109 : vector<1x32x64xf32> to vector<32x64xf32>
    %cst_80 = arith.constant dense<0.000000e+00> : vector<128x64xf32>
    %111 = tpu.matmul %108, %110, %cst_80 {dimension_numbers = #tpu.dot_dimension_numbers<[1], [0], [0], [1], [0, 0, 1, 1], [], []>} : vector<128x32xf32>, vector<32x64xf32>, vector<128x64xf32> -> vector<128x64xf32>
    %112 = arith.addf %103, %111 : vector<128x64xf32>
    %c10_81 = arith.constant 10 : index
    %c0_82 = arith.constant 0 : index
    %113 = vector.load %arg14[%c10_81, %c0_82] : memref<176x32xf32, #tpu.memory_space<vmem>>, vector<128x32xf32>
    %c2_83 = arith.constant 2 : index
    %c0_84 = arith.constant 0 : index
    %c0_85 = arith.constant 0 : index
    %114 = vector.load %arg2[%c2_83, %c0_84, %c0_85] : memref<9x128x1xf32, #tpu.memory_space<vmem>>, vector<1x128x1xf32>
    %115 = vector.shape_cast %114 : vector<1x128x1xf32> to vector<128x1xf32>
    %116 = vector.broadcast %115 : vector<128x1xf32> to vector<128x32xf32>
    %117 = arith.mulf %113, %116 : vector<128x32xf32>
    %c2_86 = arith.constant 2 : index
    %c0_87 = arith.constant 0 : index
    %c0_88 = arith.constant 0 : index
    %118 = vector.load %arg5[%c2_86, %c0_87, %c0_88] : memref<9x32x64xf32, #tpu.memory_space<vmem>>, vector<1x32x64xf32>
    %119 = vector.shape_cast %118 : vector<1x32x64xf32> to vector<32x64xf32>
    %cst_89 = arith.constant dense<0.000000e+00> : vector<128x64xf32>
    %120 = tpu.matmul %117, %119, %cst_89 {dimension_numbers = #tpu.dot_dimension_numbers<[1], [0], [0], [1], [0, 0, 1, 1], [], []>} : vector<128x32xf32>, vector<32x64xf32>, vector<128x64xf32> -> vector<128x64xf32>
    %121 = arith.addf %112, %120 : vector<128x64xf32>
    %c22_90 = arith.constant 22 : index
    %c0_91 = arith.constant 0 : index
    %122 = vector.load %arg14[%c22_90, %c0_91] : memref<176x32xf32, #tpu.memory_space<vmem>>, vector<128x32xf32>
    %c3_92 = arith.constant 3 : index
    %c0_93 = arith.constant 0 : index
    %c0_94 = arith.constant 0 : index
    %123 = vector.load %arg2[%c3_92, %c0_93, %c0_94] : memref<9x128x1xf32, #tpu.memory_space<vmem>>, vector<1x128x1xf32>
    %124 = vector.shape_cast %123 : vector<1x128x1xf32> to vector<128x1xf32>
    %125 = vector.broadcast %124 : vector<128x1xf32> to vector<128x32xf32>
    %126 = arith.mulf %122, %125 : vector<128x32xf32>
    %c3_95 = arith.constant 3 : index
    %c0_96 = arith.constant 0 : index
    %c0_97 = arith.constant 0 : index
    %127 = vector.load %arg5[%c3_95, %c0_96, %c0_97] : memref<9x32x64xf32, #tpu.memory_space<vmem>>, vector<1x32x64xf32>
    %128 = vector.shape_cast %127 : vector<1x32x64xf32> to vector<32x64xf32>
    %cst_98 = arith.constant dense<0.000000e+00> : vector<128x64xf32>
    %129 = tpu.matmul %126, %128, %cst_98 {dimension_numbers = #tpu.dot_dimension_numbers<[1], [0], [0], [1], [0, 0, 1, 1], [], []>} : vector<128x32xf32>, vector<32x64xf32>, vector<128x64xf32> -> vector<128x64xf32>
    %130 = arith.addf %121, %129 : vector<128x64xf32>
    %c24_99 = arith.constant 24 : index
    %c0_100 = arith.constant 0 : index
    %131 = vector.load %arg14[%c24_99, %c0_100] : memref<176x32xf32, #tpu.memory_space<vmem>>, vector<128x32xf32>
    %c4_101 = arith.constant 4 : index
    %c0_102 = arith.constant 0 : index
    %c0_103 = arith.constant 0 : index
    %132 = vector.load %arg2[%c4_101, %c0_102, %c0_103] : memref<9x128x1xf32, #tpu.memory_space<vmem>>, vector<1x128x1xf32>
    %133 = vector.shape_cast %132 : vector<1x128x1xf32> to vector<128x1xf32>
    %134 = vector.broadcast %133 : vector<128x1xf32> to vector<128x32xf32>
    %135 = arith.mulf %131, %134 : vector<128x32xf32>
    %c4_104 = arith.constant 4 : index
    %c0_105 = arith.constant 0 : index
    %c0_106 = arith.constant 0 : index
    %136 = vector.load %arg5[%c4_104, %c0_105, %c0_106] : memref<9x32x64xf32, #tpu.memory_space<vmem>>, vector<1x32x64xf32>
    %137 = vector.shape_cast %136 : vector<1x32x64xf32> to vector<32x64xf32>
    %cst_107 = arith.constant dense<0.000000e+00> : vector<128x64xf32>
    %138 = tpu.matmul %135, %137, %cst_107 {dimension_numbers = #tpu.dot_dimension_numbers<[1], [0], [0], [1], [0, 0, 1, 1], [], []>} : vector<128x32xf32>, vector<32x64xf32>, vector<128x64xf32> -> vector<128x64xf32>
    %139 = arith.addf %130, %138 : vector<128x64xf32>
    %c26_108 = arith.constant 26 : index
    %c0_109 = arith.constant 0 : index
    %140 = vector.load %arg14[%c26_108, %c0_109] : memref<176x32xf32, #tpu.memory_space<vmem>>, vector<128x32xf32>
    %c5_110 = arith.constant 5 : index
    %c0_111 = arith.constant 0 : index
    %c0_112 = arith.constant 0 : index
    %141 = vector.load %arg2[%c5_110, %c0_111, %c0_112] : memref<9x128x1xf32, #tpu.memory_space<vmem>>, vector<1x128x1xf32>
    %142 = vector.shape_cast %141 : vector<1x128x1xf32> to vector<128x1xf32>
    %143 = vector.broadcast %142 : vector<128x1xf32> to vector<128x32xf32>
    %144 = arith.mulf %140, %143 : vector<128x32xf32>
    %c5_113 = arith.constant 5 : index
    %c0_114 = arith.constant 0 : index
    %c0_115 = arith.constant 0 : index
    %145 = vector.load %arg5[%c5_113, %c0_114, %c0_115] : memref<9x32x64xf32, #tpu.memory_space<vmem>>, vector<1x32x64xf32>
    %146 = vector.shape_cast %145 : vector<1x32x64xf32> to vector<32x64xf32>
    %cst_116 = arith.constant dense<0.000000e+00> : vector<128x64xf32>
    %147 = tpu.matmul %144, %146, %cst_116 {dimension_numbers = #tpu.dot_dimension_numbers<[1], [0], [0], [1], [0, 0, 1, 1], [], []>} : vector<128x32xf32>, vector<32x64xf32>, vector<128x64xf32> -> vector<128x64xf32>
    %148 = arith.addf %139, %147 : vector<128x64xf32>
    %c38_117 = arith.constant 38 : index
    %c0_118 = arith.constant 0 : index
    %149 = vector.load %arg14[%c38_117, %c0_118] : memref<176x32xf32, #tpu.memory_space<vmem>>, vector<128x32xf32>
    %c6_119 = arith.constant 6 : index
    %c0_120 = arith.constant 0 : index
    %c0_121 = arith.constant 0 : index
    %150 = vector.load %arg2[%c6_119, %c0_120, %c0_121] : memref<9x128x1xf32, #tpu.memory_space<vmem>>, vector<1x128x1xf32>
    %151 = vector.shape_cast %150 : vector<1x128x1xf32> to vector<128x1xf32>
    %152 = vector.broadcast %151 : vector<128x1xf32> to vector<128x32xf32>
    %153 = arith.mulf %149, %152 : vector<128x32xf32>
    %c6_122 = arith.constant 6 : index
    %c0_123 = arith.constant 0 : index
    %c0_124 = arith.constant 0 : index
    %154 = vector.load %arg5[%c6_122, %c0_123, %c0_124] : memref<9x32x64xf32, #tpu.memory_space<vmem>>, vector<1x32x64xf32>
    %155 = vector.shape_cast %154 : vector<1x32x64xf32> to vector<32x64xf32>
    %cst_125 = arith.constant dense<0.000000e+00> : vector<128x64xf32>
    %156 = tpu.matmul %153, %155, %cst_125 {dimension_numbers = #tpu.dot_dimension_numbers<[1], [0], [0], [1], [0, 0, 1, 1], [], []>} : vector<128x32xf32>, vector<32x64xf32>, vector<128x64xf32> -> vector<128x64xf32>
    %157 = arith.addf %148, %156 : vector<128x64xf32>
    %c40_126 = arith.constant 40 : index
    %c0_127 = arith.constant 0 : index
    %158 = vector.load %arg14[%c40_126, %c0_127] : memref<176x32xf32, #tpu.memory_space<vmem>>, vector<128x32xf32>
    %c7_128 = arith.constant 7 : index
    %c0_129 = arith.constant 0 : index
    %c0_130 = arith.constant 0 : index
    %159 = vector.load %arg2[%c7_128, %c0_129, %c0_130] : memref<9x128x1xf32, #tpu.memory_space<vmem>>, vector<1x128x1xf32>
    %160 = vector.shape_cast %159 : vector<1x128x1xf32> to vector<128x1xf32>
    %161 = vector.broadcast %160 : vector<128x1xf32> to vector<128x32xf32>
    %162 = arith.mulf %158, %161 : vector<128x32xf32>
    %c7_131 = arith.constant 7 : index
    %c0_132 = arith.constant 0 : index
    %c0_133 = arith.constant 0 : index
    %163 = vector.load %arg5[%c7_131, %c0_132, %c0_133] : memref<9x32x64xf32, #tpu.memory_space<vmem>>, vector<1x32x64xf32>
    %164 = vector.shape_cast %163 : vector<1x32x64xf32> to vector<32x64xf32>
    %cst_134 = arith.constant dense<0.000000e+00> : vector<128x64xf32>
    %165 = tpu.matmul %162, %164, %cst_134 {dimension_numbers = #tpu.dot_dimension_numbers<[1], [0], [0], [1], [0, 0, 1, 1], [], []>} : vector<128x32xf32>, vector<32x64xf32>, vector<128x64xf32> -> vector<128x64xf32>
    %166 = arith.addf %157, %165 : vector<128x64xf32>
    %c42_135 = arith.constant 42 : index
    %c0_136 = arith.constant 0 : index
    %167 = vector.load %arg14[%c42_135, %c0_136] : memref<176x32xf32, #tpu.memory_space<vmem>>, vector<128x32xf32>
    %c8_137 = arith.constant 8 : index
    %c0_138 = arith.constant 0 : index
    %c0_139 = arith.constant 0 : index
    %168 = vector.load %arg2[%c8_137, %c0_138, %c0_139] : memref<9x128x1xf32, #tpu.memory_space<vmem>>, vector<1x128x1xf32>
    %169 = vector.shape_cast %168 : vector<1x128x1xf32> to vector<128x1xf32>
    %170 = vector.broadcast %169 : vector<128x1xf32> to vector<128x32xf32>
    %171 = arith.mulf %167, %170 : vector<128x32xf32>
    %c8_140 = arith.constant 8 : index
    %c0_141 = arith.constant 0 : index
    %c0_142 = arith.constant 0 : index
    %172 = vector.load %arg5[%c8_140, %c0_141, %c0_142] : memref<9x32x64xf32, #tpu.memory_space<vmem>>, vector<1x32x64xf32>
    %173 = vector.shape_cast %172 : vector<1x32x64xf32> to vector<32x64xf32>
    %cst_143 = arith.constant dense<0.000000e+00> : vector<128x64xf32>
    %174 = tpu.matmul %171, %173, %cst_143 {dimension_numbers = #tpu.dot_dimension_numbers<[1], [0], [0], [1], [0, 0, 1, 1], [], []>} : vector<128x32xf32>, vector<32x64xf32>, vector<128x64xf32> -> vector<128x64xf32>
    %175 = arith.addf %166, %174 : vector<128x64xf32>
    %c0_144 = arith.constant 0 : index
    %c0_145 = arith.constant 0 : index
    %176 = vector.load %arg6[%c0_144, %c0_145] : memref<1x64xf32, #tpu.memory_space<vmem>>, vector<1x64xf32>
    %177 = vector.broadcast %176 : vector<1x64xf32> to vector<128x64xf32>
    %178 = arith.addf %175, %177 : vector<128x64xf32>
    %cst_146 = arith.constant 0.000000e+00 : f32
    %179 = vector.broadcast %cst_146 : f32 to vector<128x64xf32>
    %180 = arith.maximumf %178, %179 : vector<128x64xf32>
    %c0_147 = arith.constant 0 : index
    %c0_148 = arith.constant 0 : index
    %181 = vector.load %arg15[%c0_147, %c0_148] : memref<128x64xf32, #tpu.memory_space<vmem>>, vector<128x64xf32>
    tpu.vector_store %arg15[%c0_147, %c0_148], %180 {strides = array<i32>} : memref<128x64xf32, #tpu.memory_space<vmem>>, vector<128x64xf32>,
    %c0_149 = arith.constant 0 : index
    %c0_150 = arith.constant 0 : index
    %182 = vector.load %arg1[%c0_149, %c0_150] : memref<2x6xf32, #tpu.memory_space<vmem>>, vector<2x6xf32>
    %c0_151 = arith.constant 0 : index
    %c0_152 = arith.constant 0 : index
    %183 = vector.load %arg8[%c0_151, %c0_152] : memref<6x128xf32, #tpu.memory_space<vmem>>, vector<6x128xf32>
    %cst_153 = arith.constant dense<0.000000e+00> : vector<2x128xf32>
    %184 = tpu.matmul %182, %183, %cst_153 {dimension_numbers = #tpu.dot_dimension_numbers<[1], [0], [0], [1], [0, 0, 1, 1], [], []>} : vector<2x6xf32>, vector<6x128xf32>, vector<2x128xf32> -> vector<2x128xf32>
    %c0_154 = arith.constant 0 : index
    %c0_155 = arith.constant 0 : index
    %185 = vector.load %arg15[%c0_154, %c0_155] : memref<128x64xf32, #tpu.memory_space<vmem>>, vector<2x64xf32>
    %c2_156 = arith.constant 2 : index
    %c0_157 = arith.constant 0 : index
    %186 = vector.load %arg15[%c2_156, %c0_157] : memref<128x64xf32, #tpu.memory_space<vmem>>, vector<2x64xf32>
    %c4_158 = arith.constant 4 : index
    %c0_159 = arith.constant 0 : index
    %187 = vector.load %arg15[%c4_158, %c0_159] : memref<128x64xf32, #tpu.memory_space<vmem>>, vector<2x64xf32>
    %c6_160 = arith.constant 6 : index
    %c0_161 = arith.constant 0 : index
    %188 = vector.load %arg15[%c6_160, %c0_161] : memref<128x64xf32, #tpu.memory_space<vmem>>, vector<2x64xf32>
    %189 = tpu.concatenate %185, %186, %187, %188 in 1 : vector<2x64xf32>, vector<2x64xf32>, vector<2x64xf32>, vector<2x64xf32> -> vector<2x256xf32>
    %c0_162 = arith.constant 0 : index
    %c0_163 = arith.constant 0 : index
    %190 = vector.load %arg7[%c0_162, %c0_163] : memref<4096x128xf32, #tpu.memory_space<vmem>>, vector<256x128xf32>
    %cst_164 = arith.constant dense<0.000000e+00> : vector<2x128xf32>
    %191 = tpu.matmul %189, %190, %cst_164 {dimension_numbers = #tpu.dot_dimension_numbers<[1], [0], [0], [1], [0, 0, 1, 1], [], []>} : vector<2x256xf32>, vector<256x128xf32>, vector<2x128xf32> -> vector<2x128xf32>
    %192 = arith.addf %184, %191 : vector<2x128xf32>
    %c8_165 = arith.constant 8 : index
    %c0_166 = arith.constant 0 : index
    %193 = vector.load %arg15[%c8_165, %c0_166] : memref<128x64xf32, #tpu.memory_space<vmem>>, vector<2x64xf32>
    %c10_167 = arith.constant 10 : index
    %c0_168 = arith.constant 0 : index
    %194 = vector.load %arg15[%c10_167, %c0_168] : memref<128x64xf32, #tpu.memory_space<vmem>>, vector<2x64xf32>
    %c12 = arith.constant 12 : index
    %c0_169 = arith.constant 0 : index
    %195 = vector.load %arg15[%c12, %c0_169] : memref<128x64xf32, #tpu.memory_space<vmem>>, vector<2x64xf32>
    %c14 = arith.constant 14 : index
    %c0_170 = arith.constant 0 : index
    %196 = vector.load %arg15[%c14, %c0_170] : memref<128x64xf32, #tpu.memory_space<vmem>>, vector<2x64xf32>
    %197 = tpu.concatenate %193, %194, %195, %196 in 1 : vector<2x64xf32>, vector<2x64xf32>, vector<2x64xf32>, vector<2x64xf32> -> vector<2x256xf32>
    %c256 = arith.constant 256 : index
    %c0_171 = arith.constant 0 : index
    %198 = vector.load %arg7[%c256, %c0_171] : memref<4096x128xf32, #tpu.memory_space<vmem>>, vector<256x128xf32>
    %cst_172 = arith.constant dense<0.000000e+00> : vector<2x128xf32>
    %199 = tpu.matmul %197, %198, %cst_172 {dimension_numbers = #tpu.dot_dimension_numbers<[1], [0], [0], [1], [0, 0, 1, 1], [], []>} : vector<2x256xf32>, vector<256x128xf32>, vector<2x128xf32> -> vector<2x128xf32>
    %200 = arith.addf %192, %199 : vector<2x128xf32>
    %c16 = arith.constant 16 : index
    %c0_173 = arith.constant 0 : index
    %201 = vector.load %arg15[%c16, %c0_173] : memref<128x64xf32, #tpu.memory_space<vmem>>, vector<2x64xf32>
    %c18 = arith.constant 18 : index
    %c0_174 = arith.constant 0 : index
    %202 = vector.load %arg15[%c18, %c0_174] : memref<128x64xf32, #tpu.memory_space<vmem>>, vector<2x64xf32>
    %c20 = arith.constant 20 : index
    %c0_175 = arith.constant 0 : index
    %203 = vector.load %arg15[%c20, %c0_175] : memref<128x64xf32, #tpu.memory_space<vmem>>, vector<2x64xf32>
    %c22_176 = arith.constant 22 : index
    %c0_177 = arith.constant 0 : index
    %204 = vector.load %arg15[%c22_176, %c0_177] : memref<128x64xf32, #tpu.memory_space<vmem>>, vector<2x64xf32>
    %205 = tpu.concatenate %201, %202, %203, %204 in 1 : vector<2x64xf32>, vector<2x64xf32>, vector<2x64xf32>, vector<2x64xf32> -> vector<2x256xf32>
    %c512 = arith.constant 512 : index
    %c0_178 = arith.constant 0 : index
    %206 = vector.load %arg7[%c512, %c0_178] : memref<4096x128xf32, #tpu.memory_space<vmem>>, vector<256x128xf32>
    %cst_179 = arith.constant dense<0.000000e+00> : vector<2x128xf32>
    %207 = tpu.matmul %205, %206, %cst_179 {dimension_numbers = #tpu.dot_dimension_numbers<[1], [0], [0], [1], [0, 0, 1, 1], [], []>} : vector<2x256xf32>, vector<256x128xf32>, vector<2x128xf32> -> vector<2x128xf32>
    %208 = arith.addf %200, %207 : vector<2x128xf32>
    %c24_180 = arith.constant 24 : index
    %c0_181 = arith.constant 0 : index
    %209 = vector.load %arg15[%c24_180, %c0_181] : memref<128x64xf32, #tpu.memory_space<vmem>>, vector<2x64xf32>
    %c26_182 = arith.constant 26 : index
    %c0_183 = arith.constant 0 : index
    %210 = vector.load %arg15[%c26_182, %c0_183] : memref<128x64xf32, #tpu.memory_space<vmem>>, vector<2x64xf32>
    %c28 = arith.constant 28 : index
    %c0_184 = arith.constant 0 : index
    %211 = vector.load %arg15[%c28, %c0_184] : memref<128x64xf32, #tpu.memory_space<vmem>>, vector<2x64xf32>
    %c30 = arith.constant 30 : index
    %c0_185 = arith.constant 0 : index
    %212 = vector.load %arg15[%c30, %c0_185] : memref<128x64xf32, #tpu.memory_space<vmem>>, vector<2x64xf32>
    %213 = tpu.concatenate %209, %210, %211, %212 in 1 : vector<2x64xf32>, vector<2x64xf32>, vector<2x64xf32>, vector<2x64xf32> -> vector<2x256xf32>
    %c768 = arith.constant 768 : index
    %c0_186 = arith.constant 0 : index
    %214 = vector.load %arg7[%c768, %c0_186] : memref<4096x128xf32, #tpu.memory_space<vmem>>, vector<256x128xf32>
    %cst_187 = arith.constant dense<0.000000e+00> : vector<2x128xf32>
    %215 = tpu.matmul %213, %214, %cst_187 {dimension_numbers = #tpu.dot_dimension_numbers<[1], [0], [0], [1], [0, 0, 1, 1], [], []>} : vector<2x256xf32>, vector<256x128xf32>, vector<2x128xf32> -> vector<2x128xf32>
    %216 = arith.addf %208, %215 : vector<2x128xf32>
    %c32 = arith.constant 32 : index
    %c0_188 = arith.constant 0 : index
    %217 = vector.load %arg15[%c32, %c0_188] : memref<128x64xf32, #tpu.memory_space<vmem>>, vector<2x64xf32>
    %c34 = arith.constant 34 : index
    %c0_189 = arith.constant 0 : index
    %218 = vector.load %arg15[%c34, %c0_189] : memref<128x64xf32, #tpu.memory_space<vmem>>, vector<2x64xf32>
    %c36 = arith.constant 36 : index
    %c0_190 = arith.constant 0 : index
    %219 = vector.load %arg15[%c36, %c0_190] : memref<128x64xf32, #tpu.memory_space<vmem>>, vector<2x64xf32>
    %c38_191 = arith.constant 38 : index
    %c0_192 = arith.constant 0 : index
    %220 = vector.load %arg15[%c38_191, %c0_192] : memref<128x64xf32, #tpu.memory_space<vmem>>, vector<2x64xf32>
    %221 = tpu.concatenate %217, %218, %219, %220 in 1 : vector<2x64xf32>, vector<2x64xf32>, vector<2x64xf32>, vector<2x64xf32> -> vector<2x256xf32>
    %c1024 = arith.constant 1024 : index
    %c0_193 = arith.constant 0 : index
    %222 = vector.load %arg7[%c1024, %c0_193] : memref<4096x128xf32, #tpu.memory_space<vmem>>, vector<256x128xf32>
    %cst_194 = arith.constant dense<0.000000e+00> : vector<2x128xf32>
    %223 = tpu.matmul %221, %222, %cst_194 {dimension_numbers = #tpu.dot_dimension_numbers<[1], [0], [0], [1], [0, 0, 1, 1], [], []>} : vector<2x256xf32>, vector<256x128xf32>, vector<2x128xf32> -> vector<2x128xf32>
    %224 = arith.addf %216, %223 : vector<2x128xf32>
    %c40_195 = arith.constant 40 : index
    %c0_196 = arith.constant 0 : index
    %225 = vector.load %arg15[%c40_195, %c0_196] : memref<128x64xf32, #tpu.memory_space<vmem>>, vector<2x64xf32>
    %c42_197 = arith.constant 42 : index
    %c0_198 = arith.constant 0 : index
    %226 = vector.load %arg15[%c42_197, %c0_198] : memref<128x64xf32, #tpu.memory_space<vmem>>, vector<2x64xf32>
    %c44 = arith.constant 44 : index
    %c0_199 = arith.constant 0 : index
    %227 = vector.load %arg15[%c44, %c0_199] : memref<128x64xf32, #tpu.memory_space<vmem>>, vector<2x64xf32>
    %c46 = arith.constant 46 : index
    %c0_200 = arith.constant 0 : index
    %228 = vector.load %arg15[%c46, %c0_200] : memref<128x64xf32, #tpu.memory_space<vmem>>, vector<2x64xf32>
    %229 = tpu.concatenate %225, %226, %227, %228 in 1 : vector<2x64xf32>, vector<2x64xf32>, vector<2x64xf32>, vector<2x64xf32> -> vector<2x256xf32>
    %c1280 = arith.constant 1280 : index
    %c0_201 = arith.constant 0 : index
    %230 = vector.load %arg7[%c1280, %c0_201] : memref<4096x128xf32, #tpu.memory_space<vmem>>, vector<256x128xf32>
    %cst_202 = arith.constant dense<0.000000e+00> : vector<2x128xf32>
    %231 = tpu.matmul %229, %230, %cst_202 {dimension_numbers = #tpu.dot_dimension_numbers<[1], [0], [0], [1], [0, 0, 1, 1], [], []>} : vector<2x256xf32>, vector<256x128xf32>, vector<2x128xf32> -> vector<2x128xf32>
    %232 = arith.addf %224, %231 : vector<2x128xf32>
    %c48 = arith.constant 48 : index
    %c0_203 = arith.constant 0 : index
    %233 = vector.load %arg15[%c48, %c0_203] : memref<128x64xf32, #tpu.memory_space<vmem>>, vector<2x64xf32>
    %c50 = arith.constant 50 : index
    %c0_204 = arith.constant 0 : index
    %234 = vector.load %arg15[%c50, %c0_204] : memref<128x64xf32, #tpu.memory_space<vmem>>, vector<2x64xf32>
    %c52 = arith.constant 52 : index
    %c0_205 = arith.constant 0 : index
    %235 = vector.load %arg15[%c52, %c0_205] : memref<128x64xf32, #tpu.memory_space<vmem>>, vector<2x64xf32>
    %c54 = arith.constant 54 : index
    %c0_206 = arith.constant 0 : index
    %236 = vector.load %arg15[%c54, %c0_206] : memref<128x64xf32, #tpu.memory_space<vmem>>, vector<2x64xf32>
    %237 = tpu.concatenate %233, %234, %235, %236 in 1 : vector<2x64xf32>, vector<2x64xf32>, vector<2x64xf32>, vector<2x64xf32> -> vector<2x256xf32>
    %c1536 = arith.constant 1536 : index
    %c0_207 = arith.constant 0 : index
    %238 = vector.load %arg7[%c1536, %c0_207] : memref<4096x128xf32, #tpu.memory_space<vmem>>, vector<256x128xf32>
    %cst_208 = arith.constant dense<0.000000e+00> : vector<2x128xf32>
    %239 = tpu.matmul %237, %238, %cst_208 {dimension_numbers = #tpu.dot_dimension_numbers<[1], [0], [0], [1], [0, 0, 1, 1], [], []>} : vector<2x256xf32>, vector<256x128xf32>, vector<2x128xf32> -> vector<2x128xf32>
    %240 = arith.addf %232, %239 : vector<2x128xf32>
    %c56 = arith.constant 56 : index
    %c0_209 = arith.constant 0 : index
    %241 = vector.load %arg15[%c56, %c0_209] : memref<128x64xf32, #tpu.memory_space<vmem>>, vector<2x64xf32>
    %c58 = arith.constant 58 : index
    %c0_210 = arith.constant 0 : index
    %242 = vector.load %arg15[%c58, %c0_210] : memref<128x64xf32, #tpu.memory_space<vmem>>, vector<2x64xf32>
    %c60 = arith.constant 60 : index
    %c0_211 = arith.constant 0 : index
    %243 = vector.load %arg15[%c60, %c0_211] : memref<128x64xf32, #tpu.memory_space<vmem>>, vector<2x64xf32>
    %c62 = arith.constant 62 : index
    %c0_212 = arith.constant 0 : index
    %244 = vector.load %arg15[%c62, %c0_212] : memref<128x64xf32, #tpu.memory_space<vmem>>, vector<2x64xf32>
    %245 = tpu.concatenate %241, %242, %243, %244 in 1 : vector<2x64xf32>, vector<2x64xf32>, vector<2x64xf32>, vector<2x64xf32> -> vector<2x256xf32>
    %c1792 = arith.constant 1792 : index
    %c0_213 = arith.constant 0 : index
    %246 = vector.load %arg7[%c1792, %c0_213] : memref<4096x128xf32, #tpu.memory_space<vmem>>, vector<256x128xf32>
    %cst_214 = arith.constant dense<0.000000e+00> : vector<2x128xf32>
    %247 = tpu.matmul %245, %246, %cst_214 {dimension_numbers = #tpu.dot_dimension_numbers<[1], [0], [0], [1], [0, 0, 1, 1], [], []>} : vector<2x256xf32>, vector<256x128xf32>, vector<2x128xf32> -> vector<2x128xf32>
    %248 = arith.addf %240, %247 : vector<2x128xf32>
    %c64 = arith.constant 64 : index
    %c0_215 = arith.constant 0 : index
    %249 = vector.load %arg15[%c64, %c0_215] : memref<128x64xf32, #tpu.memory_space<vmem>>, vector<2x64xf32>
    %c66 = arith.constant 66 : index
    %c0_216 = arith.constant 0 : index
    %250 = vector.load %arg15[%c66, %c0_216] : memref<128x64xf32, #tpu.memory_space<vmem>>, vector<2x64xf32>
    %c68 = arith.constant 68 : index
    %c0_217 = arith.constant 0 : index
    %251 = vector.load %arg15[%c68, %c0_217] : memref<128x64xf32, #tpu.memory_space<vmem>>, vector<2x64xf32>
    %c70 = arith.constant 70 : index
    %c0_218 = arith.constant 0 : index
    %252 = vector.load %arg15[%c70, %c0_218] : memref<128x64xf32, #tpu.memory_space<vmem>>, vector<2x64xf32>
    %253 = tpu.concatenate %249, %250, %251, %252 in 1 : vector<2x64xf32>, vector<2x64xf32>, vector<2x64xf32>, vector<2x64xf32> -> vector<2x256xf32>
    %c2048 = arith.constant 2048 : index
    %c0_219 = arith.constant 0 : index
    %254 = vector.load %arg7[%c2048, %c0_219] : memref<4096x128xf32, #tpu.memory_space<vmem>>, vector<256x128xf32>
    %cst_220 = arith.constant dense<0.000000e+00> : vector<2x128xf32>
    %255 = tpu.matmul %253, %254, %cst_220 {dimension_numbers = #tpu.dot_dimension_numbers<[1], [0], [0], [1], [0, 0, 1, 1], [], []>} : vector<2x256xf32>, vector<256x128xf32>, vector<2x128xf32> -> vector<2x128xf32>
    %256 = arith.addf %248, %255 : vector<2x128xf32>
    %c72 = arith.constant 72 : index
    %c0_221 = arith.constant 0 : index
    %257 = vector.load %arg15[%c72, %c0_221] : memref<128x64xf32, #tpu.memory_space<vmem>>, vector<2x64xf32>
    %c74 = arith.constant 74 : index
    %c0_222 = arith.constant 0 : index
    %258 = vector.load %arg15[%c74, %c0_222] : memref<128x64xf32, #tpu.memory_space<vmem>>, vector<2x64xf32>
    %c76 = arith.constant 76 : index
    %c0_223 = arith.constant 0 : index
    %259 = vector.load %arg15[%c76, %c0_223] : memref<128x64xf32, #tpu.memory_space<vmem>>, vector<2x64xf32>
    %c78 = arith.constant 78 : index
    %c0_224 = arith.constant 0 : index
    %260 = vector.load %arg15[%c78, %c0_224] : memref<128x64xf32, #tpu.memory_space<vmem>>, vector<2x64xf32>
    %261 = tpu.concatenate %257, %258, %259, %260 in 1 : vector<2x64xf32>, vector<2x64xf32>, vector<2x64xf32>, vector<2x64xf32> -> vector<2x256xf32>
    %c2304 = arith.constant 2304 : index
    %c0_225 = arith.constant 0 : index
    %262 = vector.load %arg7[%c2304, %c0_225] : memref<4096x128xf32, #tpu.memory_space<vmem>>, vector<256x128xf32>
    %cst_226 = arith.constant dense<0.000000e+00> : vector<2x128xf32>
    %263 = tpu.matmul %261, %262, %cst_226 {dimension_numbers = #tpu.dot_dimension_numbers<[1], [0], [0], [1], [0, 0, 1, 1], [], []>} : vector<2x256xf32>, vector<256x128xf32>, vector<2x128xf32> -> vector<2x128xf32>
    %264 = arith.addf %256, %263 : vector<2x128xf32>
    %c80 = arith.constant 80 : index
    %c0_227 = arith.constant 0 : index
    %265 = vector.load %arg15[%c80, %c0_227] : memref<128x64xf32, #tpu.memory_space<vmem>>, vector<2x64xf32>
    %c82 = arith.constant 82 : index
    %c0_228 = arith.constant 0 : index
    %266 = vector.load %arg15[%c82, %c0_228] : memref<128x64xf32, #tpu.memory_space<vmem>>, vector<2x64xf32>
    %c84 = arith.constant 84 : index
    %c0_229 = arith.constant 0 : index
    %267 = vector.load %arg15[%c84, %c0_229] : memref<128x64xf32, #tpu.memory_space<vmem>>, vector<2x64xf32>
    %c86 = arith.constant 86 : index
    %c0_230 = arith.constant 0 : index
    %268 = vector.load %arg15[%c86, %c0_230] : memref<128x64xf32, #tpu.memory_space<vmem>>, vector<2x64xf32>
    %269 = tpu.concatenate %265, %266, %267, %268 in 1 : vector<2x64xf32>, vector<2x64xf32>, vector<2x64xf32>, vector<2x64xf32> -> vector<2x256xf32>
    %c2560 = arith.constant 2560 : index
    %c0_231 = arith.constant 0 : index
    %270 = vector.load %arg7[%c2560, %c0_231] : memref<4096x128xf32, #tpu.memory_space<vmem>>, vector<256x128xf32>
    %cst_232 = arith.constant dense<0.000000e+00> : vector<2x128xf32>
    %271 = tpu.matmul %269, %270, %cst_232 {dimension_numbers = #tpu.dot_dimension_numbers<[1], [0], [0], [1], [0, 0, 1, 1], [], []>} : vector<2x256xf32>, vector<256x128xf32>, vector<2x128xf32> -> vector<2x128xf32>
    %272 = arith.addf %264, %271 : vector<2x128xf32>
    %c88 = arith.constant 88 : index
    %c0_233 = arith.constant 0 : index
    %273 = vector.load %arg15[%c88, %c0_233] : memref<128x64xf32, #tpu.memory_space<vmem>>, vector<2x64xf32>
    %c90 = arith.constant 90 : index
    %c0_234 = arith.constant 0 : index
    %274 = vector.load %arg15[%c90, %c0_234] : memref<128x64xf32, #tpu.memory_space<vmem>>, vector<2x64xf32>
    %c92 = arith.constant 92 : index
    %c0_235 = arith.constant 0 : index
    %275 = vector.load %arg15[%c92, %c0_235] : memref<128x64xf32, #tpu.memory_space<vmem>>, vector<2x64xf32>
    %c94 = arith.constant 94 : index
    %c0_236 = arith.constant 0 : index
    %276 = vector.load %arg15[%c94, %c0_236] : memref<128x64xf32, #tpu.memory_space<vmem>>, vector<2x64xf32>
    %277 = tpu.concatenate %273, %274, %275, %276 in 1 : vector<2x64xf32>, vector<2x64xf32>, vector<2x64xf32>, vector<2x64xf32> -> vector<2x256xf32>
    %c2816 = arith.constant 2816 : index
    %c0_237 = arith.constant 0 : index
    %278 = vector.load %arg7[%c2816, %c0_237] : memref<4096x128xf32, #tpu.memory_space<vmem>>, vector<256x128xf32>
    %cst_238 = arith.constant dense<0.000000e+00> : vector<2x128xf32>
    %279 = tpu.matmul %277, %278, %cst_238 {dimension_numbers = #tpu.dot_dimension_numbers<[1], [0], [0], [1], [0, 0, 1, 1], [], []>} : vector<2x256xf32>, vector<256x128xf32>, vector<2x128xf32> -> vector<2x128xf32>
    %280 = arith.addf %272, %279 : vector<2x128xf32>
    %c96 = arith.constant 96 : index
    %c0_239 = arith.constant 0 : index
    %281 = vector.load %arg15[%c96, %c0_239] : memref<128x64xf32, #tpu.memory_space<vmem>>, vector<2x64xf32>
    %c98 = arith.constant 98 : index
    %c0_240 = arith.constant 0 : index
    %282 = vector.load %arg15[%c98, %c0_240] : memref<128x64xf32, #tpu.memory_space<vmem>>, vector<2x64xf32>
    %c100 = arith.constant 100 : index
    %c0_241 = arith.constant 0 : index
    %283 = vector.load %arg15[%c100, %c0_241] : memref<128x64xf32, #tpu.memory_space<vmem>>, vector<2x64xf32>
    %c102 = arith.constant 102 : index
    %c0_242 = arith.constant 0 : index
    %284 = vector.load %arg15[%c102, %c0_242] : memref<128x64xf32, #tpu.memory_space<vmem>>, vector<2x64xf32>
    %285 = tpu.concatenate %281, %282, %283, %284 in 1 : vector<2x64xf32>, vector<2x64xf32>, vector<2x64xf32>, vector<2x64xf32> -> vector<2x256xf32>
    %c3072 = arith.constant 3072 : index
    %c0_243 = arith.constant 0 : index
    %286 = vector.load %arg7[%c3072, %c0_243] : memref<4096x128xf32, #tpu.memory_space<vmem>>, vector<256x128xf32>
    %cst_244 = arith.constant dense<0.000000e+00> : vector<2x128xf32>
    %287 = tpu.matmul %285, %286, %cst_244 {dimension_numbers = #tpu.dot_dimension_numbers<[1], [0], [0], [1], [0, 0, 1, 1], [], []>} : vector<2x256xf32>, vector<256x128xf32>, vector<2x128xf32> -> vector<2x128xf32>
    %288 = arith.addf %280, %287 : vector<2x128xf32>
    %c104 = arith.constant 104 : index
    %c0_245 = arith.constant 0 : index
    %289 = vector.load %arg15[%c104, %c0_245] : memref<128x64xf32, #tpu.memory_space<vmem>>, vector<2x64xf32>
    %c106 = arith.constant 106 : index
    %c0_246 = arith.constant 0 : index
    %290 = vector.load %arg15[%c106, %c0_246] : memref<128x64xf32, #tpu.memory_space<vmem>>, vector<2x64xf32>
    %c108 = arith.constant 108 : index
    %c0_247 = arith.constant 0 : index
    %291 = vector.load %arg15[%c108, %c0_247] : memref<128x64xf32, #tpu.memory_space<vmem>>, vector<2x64xf32>
    %c110 = arith.constant 110 : index
    %c0_248 = arith.constant 0 : index
    %292 = vector.load %arg15[%c110, %c0_248] : memref<128x64xf32, #tpu.memory_space<vmem>>, vector<2x64xf32>
    %293 = tpu.concatenate %289, %290, %291, %292 in 1 : vector<2x64xf32>, vector<2x64xf32>, vector<2x64xf32>, vector<2x64xf32> -> vector<2x256xf32>
    %c3328 = arith.constant 3328 : index
    %c0_249 = arith.constant 0 : index
    %294 = vector.load %arg7[%c3328, %c0_249] : memref<4096x128xf32, #tpu.memory_space<vmem>>, vector<256x128xf32>
    %cst_250 = arith.constant dense<0.000000e+00> : vector<2x128xf32>
    %295 = tpu.matmul %293, %294, %cst_250 {dimension_numbers = #tpu.dot_dimension_numbers<[1], [0], [0], [1], [0, 0, 1, 1], [], []>} : vector<2x256xf32>, vector<256x128xf32>, vector<2x128xf32> -> vector<2x128xf32>
    %296 = arith.addf %288, %295 : vector<2x128xf32>
    %c112 = arith.constant 112 : index
    %c0_251 = arith.constant 0 : index
    %297 = vector.load %arg15[%c112, %c0_251] : memref<128x64xf32, #tpu.memory_space<vmem>>, vector<2x64xf32>
    %c114 = arith.constant 114 : index
    %c0_252 = arith.constant 0 : index
    %298 = vector.load %arg15[%c114, %c0_252] : memref<128x64xf32, #tpu.memory_space<vmem>>, vector<2x64xf32>
    %c116 = arith.constant 116 : index
    %c0_253 = arith.constant 0 : index
    %299 = vector.load %arg15[%c116, %c0_253] : memref<128x64xf32, #tpu.memory_space<vmem>>, vector<2x64xf32>
    %c118 = arith.constant 118 : index
    %c0_254 = arith.constant 0 : index
    %300 = vector.load %arg15[%c118, %c0_254] : memref<128x64xf32, #tpu.memory_space<vmem>>, vector<2x64xf32>
    %301 = tpu.concatenate %297, %298, %299, %300 in 1 : vector<2x64xf32>, vector<2x64xf32>, vector<2x64xf32>, vector<2x64xf32> -> vector<2x256xf32>
    %c3584 = arith.constant 3584 : index
    %c0_255 = arith.constant 0 : index
    %302 = vector.load %arg7[%c3584, %c0_255] : memref<4096x128xf32, #tpu.memory_space<vmem>>, vector<256x128xf32>
    %cst_256 = arith.constant dense<0.000000e+00> : vector<2x128xf32>
    %303 = tpu.matmul %301, %302, %cst_256 {dimension_numbers = #tpu.dot_dimension_numbers<[1], [0], [0], [1], [0, 0, 1, 1], [], []>} : vector<2x256xf32>, vector<256x128xf32>, vector<2x128xf32> -> vector<2x128xf32>
    %304 = arith.addf %296, %303 : vector<2x128xf32>
    %c120 = arith.constant 120 : index
    %c0_257 = arith.constant 0 : index
    %305 = vector.load %arg15[%c120, %c0_257] : memref<128x64xf32, #tpu.memory_space<vmem>>, vector<2x64xf32>
    %c122 = arith.constant 122 : index
    %c0_258 = arith.constant 0 : index
    %306 = vector.load %arg15[%c122, %c0_258] : memref<128x64xf32, #tpu.memory_space<vmem>>, vector<2x64xf32>
    %c124 = arith.constant 124 : index
    %c0_259 = arith.constant 0 : index
    %307 = vector.load %arg15[%c124, %c0_259] : memref<128x64xf32, #tpu.memory_space<vmem>>, vector<2x64xf32>
    %c126 = arith.constant 126 : index
    %c0_260 = arith.constant 0 : index
    %308 = vector.load %arg15[%c126, %c0_260] : memref<128x64xf32, #tpu.memory_space<vmem>>, vector<2x64xf32>
    %309 = tpu.concatenate %305, %306, %307, %308 in 1 : vector<2x64xf32>, vector<2x64xf32>, vector<2x64xf32>, vector<2x64xf32> -> vector<2x256xf32>
    %c3840 = arith.constant 3840 : index
    %c0_261 = arith.constant 0 : index
    %310 = vector.load %arg7[%c3840, %c0_261] : memref<4096x128xf32, #tpu.memory_space<vmem>>, vector<256x128xf32>
    %cst_262 = arith.constant dense<0.000000e+00> : vector<2x128xf32>
    %311 = tpu.matmul %309, %310, %cst_262 {dimension_numbers = #tpu.dot_dimension_numbers<[1], [0], [0], [1], [0, 0, 1, 1], [], []>} : vector<2x256xf32>, vector<256x128xf32>, vector<2x128xf32> -> vector<2x128xf32>
    %312 = arith.addf %304, %311 : vector<2x128xf32>
    %c0_263 = arith.constant 0 : index
    %c0_264 = arith.constant 0 : index
    %313 = vector.load %arg9[%c0_263, %c0_264] : memref<1x128xf32, #tpu.memory_space<vmem>>, vector<1x128xf32>
    %314 = vector.broadcast %313 : vector<1x128xf32> to vector<2x128xf32>
    %315 = arith.addf %312, %314 : vector<2x128xf32>
    %cst_265 = arith.constant 0.000000e+00 : f32
    %316 = vector.broadcast %cst_265 : f32 to vector<2x128xf32>
    %317 = arith.maximumf %315, %316 : vector<2x128xf32>
    %c0_266 = arith.constant 0 : index
    %c0_267 = arith.constant 0 : index
    %318 = vector.load %arg10[%c0_266, %c0_267] : memref<1x128xf32, #tpu.memory_space<vmem>>, vector<1x128xf32>
    %319 = vector.broadcast %318 : vector<1x128xf32> to vector<2x128xf32>
    %320 = arith.mulf %317, %319 : vector<2x128xf32>
    %cst_268 = arith.constant dense<0.000000e+00> : vector<2xf32>
    %321 = vector.multi_reduction <add>, %320, %cst_268 [1] : vector<2x128xf32> to vector<2xf32>
    %322 = vector.shape_cast %321 : vector<2xf32> to vector<2x1xf32>
    %c0_269 = arith.constant 0 : index
    %c0_270 = arith.constant 0 : index
    %323 = vector.load %arg11[%c0_269, %c0_270] : memref<1x1xf32, #tpu.memory_space<vmem>>, vector<1x1xf32>
    %324 = vector.broadcast %323 : vector<1x1xf32> to vector<2x1xf32>
    %325 = arith.addf %322, %324 : vector<2x1xf32>
    %c0_271 = arith.constant 0 : index
    %c0_272 = arith.constant 0 : index
    %326 = vector.load %arg12[%c0_271, %c0_272] : memref<2x1xf32, #tpu.memory_space<vmem>>, vector<2x1xf32>
    tpu.vector_store %arg12[%c0_271, %c0_272], %325 {strides = array<i32>} : memref<2x1xf32, #tpu.memory_space<vmem>>, vector<2x1xf32>,
    return
  }
}

</mosaic_0001>

<bundles_post_ra>
// kernel: chess_conv_forward.1
= control target key start
LH: loop header
LB: loop body
LE: loop exit
PB: predicated region body
PF: predicated region fallthrough
CT: control target
= control target key end

     0   :  { %s9244_s0 = inlined_call_operand.vmem [shape: f32[128,1], index: 0, kind: input, shape index: {}]   ;;  %s9245_s1 = inlined_call_operand.hbm [shape: f32[2,6], index: 1, kind: input, shape index: {}]   ;;  %s9246_s2 = inlined_call_operand.vmem [shape: f32[9,128,1], index: 2, kind: input, shape index: {}]   ;;  %s9247_s3 = inlined_call_operand.hbm [shape: f32[9,32], index: 3, kind: input, shape index: {}]   ;;  %s9248_s4 = inlined_call_operand.hbm [shape: f32[1,32], index: 4, kind: input, shape index: {}]   ;;  %s9249_s5 = inlined_call_operand.hbm [shape: f32[9,32,64], index: 5, kind: input, shape index: {}]   ;;  %s9250_s6 = inlined_call_operand.hbm [shape: f32[1,64], index: 6, kind: input, shape index: {}]   ;;  %s9251_s7 = inlined_call_operand.hbm [shape: f32[4096,128], index: 7, kind: input, shape index: {}]   ;;  %s9252_s8 = inlined_call_operand.hbm [shape: f32[6,128], index: 8, kind: input, shape index: {}]   ;;  %s9253_s9 = inlined_call_operand.hbm [shape: f32[1,128], index: 9, kind: input, shape index: {}]   ;;  %s9254_s10 = inlined_call_operand.hbm [shape: f32[1,128], index: 10, kind: input, shape index: {}]   ;;  %s9255_s11 = inlined_call_operand.<no memory space> [shape: f32[1,1], index: 11, kind: input, shape index: {}]   ;;  %s9256_s12 = inlined_call_operand.vmem [shape: f32[2,1], index: 12, kind: output, shape index: {}]  }
   0x1   :  { %v17_v0 = vstv %s9255_s11 }
   0x2   :  { %18 = vst [vmem:[#allocation5] sm:$0x1] %v17_v0 }
   0x3   :  { %19 = vsyncpa [#allocation7], 0 }
   0x4   :  { %20 = vsyncpa [#allocation9], 0 }
   0x5   :  { %21 = vsyncpa [#allocation12], 0 }
   0x6   :  { %22 = vsyncpa [#allocation15], 0  ;;  %s43_s25 = sshll.u32 %s9247_s3, 4  ;;  %s44_s25 = int_to_ptr.hbm [resolvable:$true] %s43_s25 }
   0x7   :  { %23 = vsyncpa [#allocation18], 0  ;;  %s6339_s26 = smov [#allocation8]   ;;  %s67_s30 = sshll.u32 %s9249_s5, 4  ;;  %s68_s30 = int_to_ptr.hbm [resolvable:$true] %s67_s30 }
   0x8   :  { %s45_s27 = sshll.u32 %s6339_s26, 4  ;;  %s6340_s13 = smov 128   ;;  %s46_s27 = int_to_ptr.vmem [resolvable:$true] %s45_s27 }
   0x9   :  { %s6341_s11 = smov 8   ;;  %s6342_s14 = smov [#allocation11]  }
   0xa   :  { %51 = dma.hbm_to_vmem [thread:$0]  %s44_s25, 256, %s46_s27, [#allocation9], %s6340_s13, %s6340_s13, %s6341_s11  }
   0xb   :  { %s69_s15 = sshll.u32 %s6342_s14, 4  ;;  %s91_s18 = sshll.u32 %s9251_s7, 4  ;;  %s70_s15 = int_to_ptr.vmem [resolvable:$true] %s69_s15  ;;  %s92_s18 = int_to_ptr.hbm [resolvable:$true] %s91_s18 }
   0xc   :  { %75 = dma.hbm_to_vmem [thread:$0]  %s68_s30, 4608, %s70_s15, [#allocation12], %s6340_s13, %s6340_s13, %s6341_s11  }
   0xd   :  { %s116_s20 = sshll.u32 %s9253_s9, 4  ;;  %s6343_s21 = smov [#allocation14]   ;;  %s117_s20 = int_to_ptr.hbm [resolvable:$true] %s116_s20 }
   0xe   :  { %s93_s22 = sshll.u32 %s6343_s21, 4  ;;  %s6344_s5 = smov [#allocation17]   ;;  %s94_s22 = int_to_ptr.vmem [resolvable:$true] %s93_s22 }
   0xf   :  { %99 = dma.hbm_to_vmem [thread:$0]  %s92_s18, 65536, %s94_s22, [#allocation15], %s6340_s13, %s6340_s13, %s6341_s11  }
  0x10   :  { %s118_s23 = sshll.u32 %s6344_s5, 4  ;;  %s31_s26 = sshll.u32 %s9245_s1, 4  ;;  %s119_s23 = int_to_ptr.vmem [resolvable:$true] %s118_s23  ;;  %s32_s26 = int_to_ptr.hbm [resolvable:$true] %s31_s26 }
  0x11   :  { %121 = dma.hbm_to_vmem [thread:$0]  %s117_s20, 16, %s119_s23, [#allocation18]  }
  0x12   :  { %s57_s28 = sshll.u32 %s9248_s4, 4  ;;  %s6345_s29 = smov [#allocation6]   ;;  %s58_s28 = int_to_ptr.hbm [resolvable:$true] %s57_s28 }
  0x13   :  { %s33_s9 = sshll.u32 %s6345_s29, 4  ;;  %s6346_s30 = smov [#allocation10]   ;;  %s34_s9 = int_to_ptr.vmem [resolvable:$true] %s33_s9 }
  0x14   :  { %36 = dma.hbm_to_vmem [thread:$0]  %s32_s26, 32, %s34_s9, [#allocation7]  }
  0x15   :  { %s59_s13 = sshll.u32 %s6346_s30, 4  ;;  %s81_s15 = sshll.u32 %s9250_s6, 4  ;;  %s60_s13 = int_to_ptr.vmem [resolvable:$true] %s59_s13  ;;  %s82_s15 = int_to_ptr.hbm [resolvable:$true] %s81_s15 }
  0x16   :  { %62 = dma.hbm_to_vmem [thread:$0]  %s58_s28, 16, %s60_s13, [#allocation9]  }
  0x17   :  { %s105_s17 = sshll.u32 %s9252_s8, 4  ;;  %s6347_s18 = smov [#allocation13]   ;;  %s106_s17 = int_to_ptr.hbm [resolvable:$true] %s105_s17 }
  0x18   :  { %s83_s4 = sshll.u32 %s6347_s18, 4  ;;  %s6348_s3 = smov [#allocation16]   ;;  %s84_s4 = int_to_ptr.vmem [resolvable:$true] %s83_s4 }
  0x19   :  { %86 = dma.hbm_to_vmem [thread:$0]  %s82_s15, 16, %s84_s4, [#allocation12]  }
  0x1a   :  { %s107_s19 = sshll.u32 %s6348_s3, 4  ;;  %s127_s22 = sshll.u32 %s9254_s10, 4  ;;  %s108_s19 = int_to_ptr.vmem [resolvable:$true] %s107_s19  ;;  %s128_s22 = int_to_ptr.hbm [resolvable:$true] %s127_s22 }
  0x1b   :  { %110 = dma.hbm_to_vmem [thread:$0]  %s106_s17, 128, %s108_s19, [#allocation15]  }
  0x1c   :  { %s6349_s6 = smov [#allocation19]  }
  0x1d   :  { %s129_s5 = sshll.u32 %s6349_s6, 4  ;;  %s130_s5 = int_to_ptr.vmem [resolvable:$true] %s129_s5 }
  0x1e   :  { %132 = dma.hbm_to_vmem [thread:$0]  %s128_s22, 16, %s130_s5, [#allocation18]  }
  0x1f   :  { %6329 = dma.done.wait [#allocation7], 32  }
  0x20   :  { %6330 = vsyncadd [#allocation7], 4294967264 }
  0x21   :  { %6331 = dma.done.wait [#allocation9], 272  }
  0x22   :  { %6332 = vsyncadd [#allocation9], 4294967024 }
  0x23   :  { %6333 = dma.done.wait [#allocation12], 4624  }
  0x24   :  { %6334 = vsyncadd [#allocation12], 4294962672 }
  0x25   :  { %6335 = dma.done.wait [#allocation15], 65664  }
  0x26   :  { %6336 = vsyncadd [#allocation15], 4294901632 }
  0x27   :  { %6337 = dma.done.wait [#allocation18], 32  }
  0x28   :  { %6338 = vsyncadd [#allocation18], 4294967264  ;;  %vm171_vm0 = vcmask 7168   ;;  %v6350_v1 = vmov 0   ;;  %v9257_v2 = vmov 0.0   ;;  %v242_v3 = vld [vmem:[%s9246_s2] sm:$0xff] }
  0x29   :  { %6025 = vset.pattern.permute.xlu0 %v6350_v1  ;;  %172 = vst.msk [vmem:[#allocation2] sm:$0xff] %vm171_vm0, %v9257_v2  ;;  %6027 = vset.pattern.permute.xlu2 %v6350_v1  ;;  %v243_v6 = vld [vmem:[%s9246_s2 + $0x8] sm:$0xff]  ;;  %v196_v10 = vld [vmem:[%s9244_s0 + $0x10] sm:$0xff]  ;;  %v194_v11 = vld [vmem:[%s9244_s0] sm:$0xff]  ;;  %vm1728_vm1 = vcmask 261120   ;;  %vm4128_vm2 = vcmask 523264  }
  0x2a   :  { %173 = vst.msk [vmem:[#allocation2 + $0x8] sm:$0xff] %vm171_vm0, %v9257_v2  ;;  %6026 = vset.pattern.permute.xlu1 %v6350_v1  ;;  %v195_v9 = vld [vmem:[%s9244_s0 + $0x8] sm:$0xff]  ;;  %v197_v12 = vld [vmem:[%s9244_s0 + $0x18] sm:$0xff]  ;;  %v198_v13 = vld [vmem:[%s9244_s0 + $0x20] sm:$0xff]  ;;  %vm4237_vm3 = vcmask 1045504   ;;  %vm4233_vm4 = vcmask 48128  }
  0x2b   :  { %174 = vst.msk [vmem:[#allocation2 + $0x10] sm:$0xff] %vm171_vm0, %v9257_v2  ;;  %v199_v14 = vld [vmem:[%s9244_s0 + $0x28] sm:$0xff]  ;;  %v200_v15 = vld [vmem:[%s9244_s0 + $0x30] sm:$0xff]  ;;  %v201_v16 = vld [vmem:[%s9244_s0 + $0x38] sm:$0xff]  ;;  %vm5577_vm5 = vcmask 1041408   ;;  %vm5586_vm6 = vcmask 1024  }
  0x2c   :  { %175 = vst.msk [vmem:[#allocation2 + $0x18] sm:$0xff] %vm171_vm0, %v9257_v2  ;;  %v202_v17 = vld [vmem:[%s9244_s0 + $0x40] sm:$0xff]  ;;  %v203_v19 = vld [vmem:[%s9244_s0 + $0x48] sm:$0xff]  ;;  %v244_v20 = vld [vmem:[%s9246_s2 + $0x10] sm:$0xff] }
  0x2d   :  { %176 = vst.msk [vmem:[#allocation2 + $0x20] sm:$0xff] %vm171_vm0, %v9257_v2  ;;  %v246_v18 = vld [vmem:[%s9246_s2 + $0x20] sm:$0xff]  ;;  %v204_v21 = vld [vmem:[%s9244_s0 + $0x50] sm:$0xff]  ;;  %v205_v23 = vld [vmem:[%s9244_s0 + $0x58] sm:$0xff] }
  0x2e   :  { %177 = vst.msk [vmem:[#allocation2 + $0x28] sm:$0xff] %vm171_vm0, %v9257_v2  ;;  %v248_v26 = vld [vmem:[%s9246_s2 + $0x30] sm:$0xff]  ;;  %v206_v27 = vld [vmem:[%s9244_s0 + $0x60] sm:$0xff]  ;;  %v207_v29 = vld [vmem:[%s9244_s0 + $0x68] sm:$0xff] }
  0x2f   :  { %178 = vst.msk [vmem:[#allocation2 + $0x30] sm:$0xff] %vm171_vm0, %v9257_v2  ;;  %v247_v32 = vld [vmem:[%s9246_s2 + $0x28] sm:$0xff]  ;;  %v245_v35 = vld [vmem:[%s9246_s2 + $0x18] sm:$0xff]  ;;  %v250_v42 = vld [vmem:[%s9246_s2 + $0x40] sm:$0xff] }
  0x30   :  { %179 = vst.msk [vmem:[#allocation2 + $0x38] sm:$0xff] %vm171_vm0, %v9257_v2  ;;  %v251_v38 = vld [vmem:[%s9246_s2 + $0x48] sm:$0xff]  ;;  %v249_v44 = vld [vmem:[%s9246_s2 + $0x38] sm:$0xff]  ;;  %v254_v47 = vld [vmem:[%s9246_s2 + $0x60] sm:$0xff] }
  0x31   :  { %v226_v4 = vld [vmem:[#allocation2 + $0x6] sm:$0xff]  ;;  %180 = vst.msk [vmem:[#allocation2 + $0x40] sm:$0xff] %vm171_vm0, %v9257_v2  ;;  %v253_v51 = vld [vmem:[%s9246_s2 + $0x58] sm:$0xff]  ;;  %v252_v53 = vld [vmem:[%s9246_s2 + $0x50] sm:$0xff] }
  0x32   :  { %v258_v5 = vmul.f32 %v242_v3, %v226_v4  ;;  %181 = vst.msk [vmem:[#allocation2 + $0x48] sm:$0xff] %vm171_vm0, %v9257_v2  ;;  %v227_v7 = vld [vmem:[#allocation2 + $0xe] sm:$0xff]  ;;  %v257_v56 = vld [vmem:[%s9246_s2 + $0x78] sm:$0xff] }
  0x33   :  { %182 = vst.msk [vmem:[#allocation2 + $0x50] sm:$0xff] %vm171_vm0, %v9257_v2  ;;  %v259_v8 = vmul.f32 %v243_v6, %v227_v7  ;;  %v256_v60 = vld [vmem:[%s9246_s2 + $0x70] sm:$0xff]  ;;  %v255_v62 = vld [vmem:[%s9246_s2 + $0x68] sm:$0xff] }
  0x34   :  { %277 = vperm.xlu0 %6025, %v258_v5   ;;  %183 = vst.msk [vmem:[#allocation2 + $0x58] sm:$0xff] %vm171_vm0, %v9257_v2  ;;  %v5599_v1 = vld [vmem:[%s9246_s2 + $0x90] sm:$0xff]  ;;  %v5598_v6 = vld [vmem:[%s9246_s2 + $0x88] sm:$0xff] }
  0x35   :  { %184 = vst.msk [vmem:[#allocation2 + $0x60] sm:$0xff] %vm171_vm0, %v9257_v2  ;;  %v389_v5 = vld [vmem:[#allocation2 + $0x10] sm:$0xff]  ;;  %v388_v7 = vld [vmem:[#allocation2 + $0x8] sm:$0xff] }
  0x36   :  { %185 = vst.msk [vmem:[#allocation2 + $0x68] sm:$0xff] %vm171_vm0, %v9257_v2 }
  0x37   :  { %186 = vst.msk [vmem:[#allocation2 + $0x70] sm:$0xff] %vm171_vm0, %v9257_v2 }
  0x38   :  { %187 = vst.msk [vmem:[#allocation2 + $0x78] sm:$0xff] %vm171_vm0, %v9257_v2 }
  0x39   :  { %188 = vst.msk [vmem:[#allocation2 + $0x80] sm:$0xff] %vm171_vm0, %v9257_v2 }
  0x3a   :  { %189 = vst.msk [vmem:[#allocation2 + $0x88] sm:$0xff] %vm171_vm0, %v9257_v2 }
  0x3b   :  { %190 = vst.msk [vmem:[#allocation2 + $0x90] sm:$0xff] %vm171_vm0, %v9257_v2 }
  0x3c   :  { %191 = vst.msk [vmem:[#allocation2 + $0x98] sm:$0xff] %vm171_vm0, %v9257_v2  ;;  %282 = vperm.xlu0 %6025, %v259_v8   ;;  %v5597_v8 = vld [vmem:[%s9246_s2 + $0x80] sm:$0xff] }
  0x3d   :  { %192 = vst.msk [vmem:[#allocation2 + $0xa0] sm:$0xff] %vm171_vm0, %v9257_v2 }
  0x3e   :  { %193 = vst.msk [vmem:[#allocation2 + $0xa8] sm:$0xff] %vm171_vm0, %v9257_v2 }
  0x3f   :  { %211 = vst.msk [vmem:[#allocation2 + $0x20] sm:$0xff] %vm171_vm0, %v195_v9  ;;  %v422_v9 = vmul.f32 %v5598_v6, %v389_v5  ;;  %v5612_v5 = vld [vmem:[%s9246_s2 + $0xf8] sm:$0xff] }
  0x40   :  { %212 = vst.msk [vmem:[#allocation2 + $0x28] sm:$0xff] %vm171_vm0, %v196_v10 }
  0x41   :  { %210 = vst.msk [vmem:[#allocation2 + $0x18] sm:$0xff] %vm171_vm0, %v194_v11  ;;  %v5602_v11 = vld [vmem:[%s9246_s2 + $0xa8] sm:$0xff] }
  0x42   :  { %213 = vst.msk [vmem:[#allocation2 + $0x30] sm:$0xff] %vm171_vm0, %v197_v12  ;;  %v421_v12 = vmul.f32 %v5597_v8, %v388_v7  ;;  %v5617_v8 = vld [vmem:[%s9246_s2 + $0x120] sm:$0xff] }
  0x43   :  { %214 = vst.msk [vmem:[#allocation2 + $0x38] sm:$0xff] %vm171_vm0, %v198_v13 }
  0x44   :  { %215 = vst.msk [vmem:[#allocation2 + $0x40] sm:$0xff] %vm171_vm0, %v199_v14 }
  0x45   :  { %216 = vst.msk [vmem:[#allocation2 + $0x48] sm:$0xff] %vm171_vm0, %v200_v15  ;;  %v5601_v15 = vld [vmem:[%s9246_s2 + $0xa0] sm:$0xff] }
  0x46   :  { %217 = vst.msk [vmem:[#allocation2 + $0x50] sm:$0xff] %vm171_vm0, %v201_v16  ;;  %v6661_v16 = vld [vmem:[#allocation2 + $0x20] sm:$0xff] }
  0x47   :  { %v6545_v22 = vld [vmem:[#allocation2 + $0x26] sm:$0xff]  ;;  %218 = vst.msk [vmem:[#allocation2 + $0x58] sm:$0xff] %vm171_vm0, %v202_v17  ;;  %v5600_v17 = vld [vmem:[%s9246_s2 + $0x98] sm:$0xff] }
  0x48   :  { %v262_v24 = vmul.f32 %v246_v18, %v6545_v22  ;;  %v6552_v25 = vld [vmem:[#allocation2 + $0x16] sm:$0xff]  ;;  %219 = vst.msk [vmem:[#allocation2 + $0x60] sm:$0xff] %vm171_vm0, %v203_v19  ;;  %v6576_v34 = vld [vmem:[#allocation2 + $0x1e] sm:$0xff]  ;;  %v6656_v14 = vld [vmem:[#allocation2 + $0x28] sm:$0xff] }
  0x49   :  { %v260_v28 = vmul.f32 %v244_v20, %v6552_v25  ;;  %220 = vst.msk [vmem:[#allocation2 + $0x68] sm:$0xff] %vm171_vm0, %v204_v21  ;;  %v6569_v31 = vld [vmem:[#allocation2 + $0x2e] sm:$0xff]  ;;  %v261_v39 = vmul.f32 %v245_v35, %v6576_v34  ;;  %v6637_v0 = vld [vmem:[#allocation2 + $0x18] sm:$0xff]  ;;  %v425_v18 = vmul.f32 %v5601_v15, %v6656_v14  ;;  %v5605_v20 = vld [vmem:[%s9246_s2 + $0xc0] sm:$0xff]  ;;  %v424_v21 = vmul.f32 %v5600_v17, %v6661_v16 }
  0x4a   :  { %297 = vperm.xlu2 %6027, %v262_v24   ;;  %v6566_v30 = vld [vmem:[#allocation2 + $0x36] sm:$0xff]  ;;  %221 = vst.msk [vmem:[#allocation2 + $0x70] sm:$0xff] %vm171_vm0, %v205_v23  ;;  %v263_v36 = vmul.f32 %v247_v32, %v6569_v31  ;;  %v423_v4 = vmul.f32 %v5599_v1, %v6637_v0  ;;  %v551_v1 = vld [vmem:[#allocation2 + $0xa] sm:$0xff] }
  0x4b   :  { %287 = vperm.xlu1 %6026, %v260_v28   ;;  %v264_v33 = vmul.f32 %v248_v26, %v6566_v30  ;;  %222 = vst.msk [vmem:[#allocation2 + $0x78] sm:$0xff] %vm171_vm0, %v206_v27  ;;  %v6595_v43 = vld [vmem:[#allocation2 + $0x3e] sm:$0xff]  ;;  %v6650_v10 = vld [vmem:[#allocation2 + $0x30] sm:$0xff] }
  0x4c   :  { %223 = vst.msk [vmem:[#allocation2 + $0x80] sm:$0xff] %vm171_vm0, %v207_v29  ;;  %v6590_v41 = vld [vmem:[#allocation2 + $0x46] sm:$0xff]  ;;  %v265_v48 = vmul.f32 %v249_v44, %v6595_v43  ;;  %v426_v13 = vmul.f32 %v5602_v11, %v6650_v10  ;;  %v5604_v26 = vld [vmem:[%s9246_s2 + $0xb8] sm:$0xff]  ;;  %v5603_v28 = vld [vmem:[%s9246_s2 + $0xb0] sm:$0xff] }
  0x4d   :  { %307 = vperm.xlu0 %6025, %v264_v33   ;;  %v6583_v37 = vld [vmem:[#allocation2 + $0x4e] sm:$0xff]  ;;  %v266_v45 = vmul.f32 %v250_v42, %v6590_v41  ;;  %v6674_v24 = vld [vmem:[#allocation2 + $0x40] sm:$0xff]  ;;  %v6679_v27 = vld [vmem:[#allocation2 + $0x38] sm:$0xff] }
  0x4e   :  { %v267_v40 = vmul.f32 %v251_v38, %v6583_v37  ;;  %v6613_v52 = vld [vmem:[#allocation2 + $0x56] sm:$0xff]  ;;  %v6667_v19 = vld [vmem:[#allocation2 + $0x48] sm:$0xff]  ;;  %v428_v29 = vmul.f32 %v5604_v26, %v6674_v24  ;;  %v427_v35 = vmul.f32 %v5603_v28, %v6679_v27 }
  0x4f   :  { %v6608_v50 = vld [vmem:[#allocation2 + $0x5e] sm:$0xff]  ;;  %v268_v57 = vmul.f32 %v252_v53, %v6613_v52  ;;  %v429_v23 = vmul.f32 %v5605_v20, %v6667_v19  ;;  %v5606_v42 = vld [vmem:[%s9246_s2 + $0xc8] sm:$0xff]  ;;  %v208_v11 = vld [vmem:[%s9244_s0 + $0x70] sm:$0xff] }
  0x50   :  { %v6601_v46 = vld [vmem:[#allocation2 + $0x66] sm:$0xff]  ;;  %v269_v54 = vmul.f32 %v253_v51, %v6608_v50  ;;  %v5608_v33 = vld [vmem:[%s9246_s2 + $0xd8] sm:$0xff]  ;;  %224 = vst.msk [vmem:[#allocation2 + $0x88] sm:$0xff] %vm171_vm0, %v208_v11 }
  0x51   :  { %v270_v49 = vmul.f32 %v254_v47, %v6601_v46  ;;  %v6631_v61 = vld [vmem:[#allocation2 + $0x6e] sm:$0xff]  ;;  %v6685_v32 = vld [vmem:[#allocation2 + $0x60] sm:$0xff]  ;;  %v6692_v38 = vld [vmem:[#allocation2 + $0x58] sm:$0xff] }
  0x52   :  { %302 = vperm.xlu2 %6027, %v263_v36   ;;  %v6626_v59 = vld [vmem:[#allocation2 + $0x76] sm:$0xff]  ;;  %v271_v3 = vmul.f32 %v255_v62, %v6631_v61  ;;  %v432_v36 = vmul.f32 %v5608_v33, %v6685_v32  ;;  %v5610_v53 = vld [vmem:[%s9246_s2 + $0xe8] sm:$0xff] }
  0x53   :  { %292 = vperm.xlu1 %6026, %v261_v39   ;;  %v6619_v55 = vld [vmem:[#allocation2 + $0x7e] sm:$0xff]  ;;  %v272_v63 = vmul.f32 %v256_v60, %v6626_v59  ;;  %v5607_v39 = vld [vmem:[%s9246_s2 + $0xd0] sm:$0xff]  ;;  %v5614_v60 = vld [vmem:[%s9246_s2 + $0x108] sm:$0xff] }
  0x54   :  { %v273_v58 = vmul.f32 %v257_v56, %v6619_v55  ;;  %v431_v44 = vmul.f32 %v5607_v39, %v6692_v38  ;;  %v5611_v47 = vld [vmem:[%s9246_s2 + $0xf0] sm:$0xff]  ;;  %v5609_v56 = vld [vmem:[%s9246_s2 + $0xe0] sm:$0xff]  ;;  %v5616_v15 = vld [vmem:[%s9246_s2 + $0x118] sm:$0xff] }
  0x55   :  { %322 = vperm.xlu0 %6025, %v267_v40   ;;  %v6697_v40 = vld [vmem:[#allocation2 + $0x50] sm:$0xff]  ;;  %v6749_v17 = vld [vmem:[#allocation2 + $0x1a] sm:$0xff]  ;;  %v5618_v39 = vld [vmem:[%s9246_s2 + $0x128] sm:$0xff] }
  0x56   :  { %v6710_v51 = vld [vmem:[#allocation2 + $0x70] sm:$0xff] }
  0x57   :  { %v6733_v7 = vld [vmem:[#allocation2 + $0x2a] sm:$0xff] }
  0x58   :  { %v5619_v33 = vld [vmem:[%s9246_s2 + $0x130] sm:$0xff] }
  0x5a   :  { %317 = vperm.xlu2 %6027, %v266_v45   ;;  %v6703_v45 = vld [vmem:[#allocation2 + $0x78] sm:$0xff] }
  0x5b   :  { %312 = vperm.xlu1 %6026, %v265_v48   ;;  %v430_v48 = vmul.f32 %v5606_v42, %v6697_v40 }
  0x5d   :  { %337 = vperm.xlu0 %6025, %v270_v49   ;;  %v435_v49 = vmul.f32 %v5611_v47, %v6703_v45  ;;  %v5623_v47 = vld [vmem:[%s9246_s2 + $0x150] sm:$0xff] }
  0x62   :  { %332 = vperm.xlu2 %6027, %v269_v54   ;;  %v6715_v54 = vld [vmem:[#allocation2 + $0x68] sm:$0xff] }
  0x63   :  { %327 = vperm.xlu1 %6026, %v268_v57   ;;  %v434_v57 = vmul.f32 %v5610_v53, %v6710_v51  ;;  %v433_v62 = vmul.f32 %v5609_v56, %v6715_v54  ;;  %v6782_v53 = vld [vmem:[#allocation2 + $0x52] sm:$0xff]  ;;  %v5622_v56 = vld [vmem:[%s9246_s2 + $0x148] sm:$0xff] }
  0x65   :  { %352 = vperm.xlu0 %6025, %v273_v58   ;;  %v552_v58 = vld [vmem:[#allocation2 + $0x12] sm:$0xff] }
  0x6a   :  { %347 = vperm.xlu2 %6027, %v272_v63   ;;  %v585_v63 = vmul.f32 %v5614_v60, %v552_v58  ;;  %v6791_v60 = vld [vmem:[#allocation2 + $0x4a] sm:$0xff] }
  0x6b   :  { %342 = vperm.xlu1 %6026, %v271_v3   ;;  %v5613_v3 = vld [vmem:[%s9246_s2 + $0x100] sm:$0xff] }
  0x6c   :  { %v584_v6 = vmul.f32 %v5613_v3, %v551_v1  ;;  %v6797_v1 = vld [vmem:[#allocation2 + $0x72] sm:$0xff]  ;;  %v5626_v3 = vld [vmem:[%s9246_s2 + $0x168] sm:$0xff] }
  0x6d   :  { %450 = vperm.xlu0 %6025, %v423_v4   ;;  %v6728_v4 = vld [vmem:[#allocation2 + $0x80] sm:$0xff] }
  0x72   :  { %445 = vperm.xlu2 %6027, %v422_v9   ;;  %v436_v9 = vmul.f32 %v5612_v5, %v6728_v4 }
  0x73   :  { %440 = vperm.xlu1 %6026, %v421_v12   ;;  %v588_v12 = vmul.f32 %v5617_v8, %v6733_v7  ;;  %v6804_v8 = vld [vmem:[#allocation2 + $0x6a] sm:$0xff] }
  0x75   :  { %465 = vperm.xlu0 %6025, %v426_v13   ;;  %v6744_v13 = vld [vmem:[#allocation2 + $0x22] sm:$0xff] }
  0x76   :  { %v587_v20 = vmul.f32 %v5616_v15, %v6744_v13  ;;  %v5624_v15 = vld [vmem:[%s9246_s2 + $0x158] sm:$0xff] }
  0x7a   :  { %460 = vperm.xlu2 %6027, %v425_v18   ;;  %v5615_v18 = vld [vmem:[%s9246_s2 + $0x110] sm:$0xff] }
  0x7b   :  { %455 = vperm.xlu1 %6026, %v424_v21   ;;  %v6755_v21 = vld [vmem:[#allocation2 + $0x42] sm:$0xff]  ;;  %v586_v26 = vmul.f32 %v5615_v18, %v6749_v17 }
  0x7d   :  { %480 = vperm.xlu0 %6025, %v429_v23   ;;  %v5620_v23 = vld [vmem:[%s9246_s2 + $0x138] sm:$0xff] }
  0x7e   :  { %v591_v28 = vmul.f32 %v5620_v23, %v6755_v21  ;;  %v5629_v23 = vld [vmem:[%s9246_s2 + $0x180] sm:$0xff] }
  0x82   :  { %475 = vperm.xlu2 %6027, %v428_v29   ;;  %v6762_v29 = vld [vmem:[#allocation2 + $0x3a] sm:$0xff] }
  0x83   :  { %470 = vperm.xlu1 %6026, %v427_v35   ;;  %v590_v42 = vmul.f32 %v5619_v33, %v6762_v29  ;;  %v6824_v33 = vld [vmem:[#allocation2 + $0x82] sm:$0xff] }
  0x85   :  { %495 = vperm.xlu0 %6025, %v432_v36   ;;  %v6769_v36 = vld [vmem:[#allocation2 + $0x32] sm:$0xff] }
  0x8a   :  { %490 = vperm.xlu2 %6027, %v431_v44   ;;  %v6775_v44 = vld [vmem:[#allocation2 + $0x5a] sm:$0xff] }
  0x8b   :  { %485 = vperm.xlu1 %6026, %v430_v48   ;;  %v589_v48 = vmul.f32 %v5618_v39, %v6769_v36  ;;  %v5628_v39 = vld [vmem:[%s9246_s2 + $0x178] sm:$0xff] }
  0x8d   :  { %510 = vperm.xlu0 %6025, %v435_v49   ;;  %v594_v49 = vmul.f32 %v5623_v47, %v6775_v44  ;;  %v6831_v47 = vld [vmem:[#allocation2 + $0x7a] sm:$0xff] }
  0x92   :  { %505 = vperm.xlu2 %6027, %v434_v57  }
  0x93   :  { %500 = vperm.xlu1 %6026, %v433_v62   ;;  %v5621_v62 = vld [vmem:[%s9246_s2 + $0x140] sm:$0xff] }
  0x94   :  { %v592_v5 = vmul.f32 %v5621_v62, %v6791_v60 }
  0x95   :  { %608 = vperm.xlu0 %6025, %v585_v63   ;;  %v593_v63 = vmul.f32 %v5622_v56, %v6782_v53  ;;  %v5632_v56 = vld [vmem:[%s9246_s2 + $0x198] sm:$0xff] }
  0x9a   :  { %603 = vperm.xlu2 %6027, %v584_v6   ;;  %v597_v6 = vmul.f32 %v5626_v3, %v6797_v1  ;;  %v750_v3 = vmul.f32 %v5632_v56, %v6569_v31 }
  0x9b   :  { %515 = vperm.xlu1 %6026, %v436_v9   ;;  %v5625_v9 = vld [vmem:[%s9246_s2 + $0x160] sm:$0xff] }
  0x9d   :  { %623 = vperm.xlu0 %6025, %v588_v12   ;;  %v6811_v12 = vld [vmem:[#allocation2 + $0x62] sm:$0xff] }
  0xa2   :  { %618 = vperm.xlu2 %6027, %v587_v20   ;;  %v596_v20 = vmul.f32 %v5625_v9, %v6804_v8 }
  0xa3   :  { %613 = vperm.xlu1 %6026, %v586_v26   ;;  %v595_v26 = vmul.f32 %v5624_v15, %v6811_v12  ;;  %v5630_v15 = vld [vmem:[%s9246_s2 + $0x188] sm:$0xff] }
  0xa4   :  { %v6767_v35 = vpop.permute.xlu2 %297 }
  0xa5   :  { %638 = vperm.xlu0 %6025, %v591_v28   ;;  %v747_v28 = vmul.f32 %v5629_v23, %v6552_v25  ;;  %v599_v25 = vmul.f32 %v5628_v39, %v6824_v33  ;;  %v5635_v23 = vld [vmem:[%s9246_s2 + $0x1b0] sm:$0xff] }
  0xa6   :  { %v6787_v57 = vpop.permute.xlu0 %277  ;;  %v753_v39 = vmul.f32 %v5635_v23, %v6590_v41  ;;  %v5638_v41 = vld [vmem:[%s9246_s2 + $0x1c8] sm:$0xff] }
  0xaa   :  { %633 = vperm.xlu2 %6027, %v590_v42  }
  0xab   :  { %628 = vperm.xlu1 %6026, %v589_v48   ;;  %v5627_v48 = vld [vmem:[%s9246_s2 + $0x170] sm:$0xff] }
  0xac   :  { %v6789_v58 = vpop.permute.xlu2 %302  ;;  %v598_v62 = vmul.f32 %v5627_v48, %v6831_v47  ;;  %v5634_v48 = vld [vmem:[%s9246_s2 + $0x1a8] sm:$0xff] }
  0xad   :  { %653 = vperm.xlu0 %6025, %v594_v49  }
  0xae   :  { %v6816_v18 = vpop.permute.xlu0 %282 }
  0xb2   :  { %648 = vperm.xlu2 %6027, %v593_v63  }
  0xb3   :  { %643 = vperm.xlu1 %6026, %v592_v5   ;;  %v209_v5 = vld [vmem:[%s9244_s0 + $0x78] sm:$0xff] }
  0xb4   :  { %v6809_v11 = vpop.permute.xlu2 %317  ;;  %225 = vst.msk [vmem:[#allocation2 + $0x90] sm:$0xff] %vm171_vm0, %v209_v5  ;;  %v756_v5 = vmul.f32 %v5638_v41, %v6608_v50  ;;  %v5641_v50 = vld [vmem:[%s9246_s2 + $0x1e0] sm:$0xff] }
  0xb5   :  { %668 = vperm.xlu0 %6025, %v597_v6   ;;  %v5631_v6 = vld [vmem:[%s9246_s2 + $0x190] sm:$0xff] }
  0xb6   :  { %v749_v31 = vmul.f32 %v5631_v6, %v6545_v22  ;;  %v5633_v22 = vld [vmem:[%s9246_s2 + $0x1a0] sm:$0xff] }
  0xb7   :  { %v5637_v6 = vld [vmem:[%s9246_s2 + $0x1c0] sm:$0xff] }
  0xba   :  { %663 = vperm.xlu2 %6027, %v596_v20  }
  0xbb   :  { %658 = vperm.xlu1 %6026, %v595_v26   ;;  %v748_v26 = vmul.f32 %v5630_v15, %v6576_v34  ;;  %v752_v34 = vmul.f32 %v5634_v48, %v6595_v43  ;;  %v5636_v43 = vld [vmem:[%s9246_s2 + $0x1b8] sm:$0xff]  ;;  %v6915_v41 = vld [vmem:[#allocation2 + $0x8e] sm:$0xff] }
  0xbc   :  { %v6829_v42 = vpop.permute.xlu2 %332  ;;  %v754_v23 = vmul.f32 %v5636_v43, %v6583_v37  ;;  %v5640_v48 = vld [vmem:[%s9246_s2 + $0x1d8] sm:$0xff]  ;;  %v6924_v43 = vld [vmem:[#allocation2 + $0x86] sm:$0xff] }
  0xbd   :  { %v6836_v49 = vpop.permute.xlu1 %287  ;;  %766 = vperm.xlu0 %6025, %v747_v28   ;;  %v758_v37 = vmul.f32 %v5640_v48, %v6631_v61  ;;  %v5643_v61 = vld [vmem:[%s9246_s2 + $0x1f0] sm:$0xff] }
  0xbf   :  { %v6843_v63 = vpop.permute.xlu0 %307 }
  0xc2   :  { %678 = vperm.xlu2 %6027, %v599_v25  }
  0xc3   :  { %673 = vperm.xlu1 %6026, %v598_v62   ;;  %v751_v62 = vmul.f32 %v5633_v22, %v6566_v30  ;;  %v755_v30 = vmul.f32 %v5637_v6, %v6613_v52  ;;  %v5639_v52 = vld [vmem:[%s9246_s2 + $0x1d0] sm:$0xff] }
  0xc4   :  { %v6853_v9 = vpop.permute.xlu2 %347 }
  0xc5   :  { %v6858_v20 = vpop.permute.xlu1 %292  ;;  %781 = vperm.xlu0 %6025, %v750_v3  }
  0xc7   :  { %v6865_v28 = vpop.permute.xlu0 %322 }
  0xca   :  { %776 = vperm.xlu2 %6027, %v749_v31  }
  0xcb   :  { %771 = vperm.xlu1 %6026, %v748_v26  }
  0xcc   :  { %v6871_v25 = vpop.permute.xlu2 %445 }
  0xcd   :  { %v6876_v56 = vpop.permute.xlu1 %312  ;;  %796 = vperm.xlu0 %6025, %v753_v39   ;;  %v759_v39 = vmul.f32 %v5641_v50, %v6626_v59  ;;  %v5644_v59 = vld [vmem:[%s9246_s2 + $0x1f8] sm:$0xff]  ;;  %v5642_v50 = vld [vmem:[%s9246_s2 + $0x1e8] sm:$0xff] }
  0xce   :  { %v762_v6 = vmul.f32 %v5644_v59, %v6915_v41  ;;  %v760_v48 = vmul.f32 %v5642_v50, %v6619_v55  ;;  %v5646_v59 = vld [vmem:[%s9246_s2 + $0x208] sm:$0xff] }
  0xcf   :  { %v6883_v3 = vpop.permute.xlu0 %337  ;;  %v911_v55 = vmul.f32 %v5646_v59, %v6661_v16  ;;  %v5648_v16 = vld [vmem:[%s9246_s2 + $0x218] sm:$0xff] }
  0xd0   :  { %v913_v59 = vmul.f32 %v5648_v16, %v6650_v10 }
  0xd2   :  { %791 = vperm.xlu2 %6027, %v752_v34  }
  0xd3   :  { %786 = vperm.xlu1 %6026, %v751_v62   ;;  %v757_v62 = vmul.f32 %v5639_v52, %v6601_v46  ;;  %v761_v46 = vmul.f32 %v5643_v61, %v6924_v43 }
  0xd4   :  { %v6889_v15 = vpop.permute.xlu2 %460 }
  0xd5   :  { %v6894_v31 = vpop.permute.xlu1 %327  ;;  %811 = vperm.xlu0 %6025, %v756_v5  }
  0xd7   :  { %v6901_v26 = vpop.permute.xlu0 %352 }
  0xda   :  { %806 = vperm.xlu2 %6027, %v755_v30  }
  0xdb   :  { %801 = vperm.xlu1 %6026, %v754_v23  }
  0xdc   :  { %v6907_v22 = vpop.permute.xlu2 %475 }
  0xdd   :  { %v6912_v34 = vpop.permute.xlu1 %342  ;;  %826 = vperm.xlu0 %6025, %v759_v39   ;;  %v5647_v39 = vld [vmem:[%s9246_s2 + $0x210] sm:$0xff] }
  0xdf   :  { %v6921_v5 = vpop.permute.xlu0 %450 }
  0xe2   :  { %821 = vperm.xlu2 %6027, %v758_v37   ;;  %v912_v37 = vmul.f32 %v5647_v39, %v6656_v14  ;;  %v5650_v14 = vld [vmem:[%s9246_s2 + $0x228] sm:$0xff] }
  0xe3   :  { %816 = vperm.xlu1 %6026, %v757_v62   ;;  %v915_v39 = vmul.f32 %v5650_v14, %v6674_v24  ;;  %v5653_v24 = vld [vmem:[%s9246_s2 + $0x240] sm:$0xff]  ;;  %v5652_v14 = vld [vmem:[%s9246_s2 + $0x238] sm:$0xff] }
  0xe4   :  { %v6929_v30 = vpop.permute.xlu2 %490  ;;  %v917_v10 = vmul.f32 %v5652_v14, %v6697_v40  ;;  %v5654_v40 = vld [vmem:[%s9246_s2 + $0x248] sm:$0xff] }
  0xe5   :  { %v6934_v23 = vpop.permute.xlu1 %440  ;;  %841 = vperm.xlu0 %6025, %v762_v6   ;;  %v5645_v6 = vld [vmem:[%s9246_s2 + $0x200] sm:$0xff]  ;;  %v7009_v14 = vld [vmem:[#allocation2 + $0x88] sm:$0xff] }
  0xe6   :  { %v910_v50 = vmul.f32 %v5645_v6, %v6637_v0 }
  0xe7   :  { %v6941_v52 = vpop.permute.xlu0 %465 }
  0xea   :  { %836 = vperm.xlu2 %6027, %v761_v46  }
  0xeb   :  { %831 = vperm.xlu1 %6026, %v760_v48   ;;  %v5649_v48 = vld [vmem:[%s9246_s2 + $0x220] sm:$0xff] }
  0xec   :  { %v6947_v62 = vpop.permute.xlu2 %505  ;;  %v914_v0 = vmul.f32 %v5649_v48, %v6679_v27  ;;  %v5651_v27 = vld [vmem:[%s9246_s2 + $0x230] sm:$0xff] }
  0xed   :  { %v6952_v61 = vpop.permute.xlu1 %455  ;;  %939 = vperm.xlu0 %6025, %v912_v37   ;;  %v916_v48 = vmul.f32 %v5651_v27, %v6667_v19  ;;  %v919_v27 = vmul.f32 %v5654_v40, %v6685_v32  ;;  %v5662_v40 = vld [vmem:[%s9246_s2 + $0x288] sm:$0xff] }
  0xef   :  { %v6959_v46 = vpop.permute.xlu0 %480 }
  0xf2   :  { %934 = vperm.xlu2 %6027, %v911_v55   ;;  %v918_v55 = vmul.f32 %v5653_v24, %v6692_v38  ;;  %v5656_v38 = vld [vmem:[%s9246_s2 + $0x258] sm:$0xff]  ;;  %v5655_v24 = vld [vmem:[%s9246_s2 + $0x250] sm:$0xff] }
  0xf3   :  { %929 = vperm.xlu1 %6026, %v910_v50   ;;  %v920_v19 = vmul.f32 %v5655_v24, %v6715_v54  ;;  %v5657_v54 = vld [vmem:[%s9246_s2 + $0x260] sm:$0xff] }
  0xf4   :  { %v6965_v2 = vpop.permute.xlu2 %603 }
  0xf5   :  { %v6970_v37 = vpop.permute.xlu1 %470  ;;  %954 = vperm.xlu0 %6025, %v915_v39  }
  0xf7   :  { %v6977_v6 = vpop.permute.xlu0 %495 }
  0xfa   :  { %949 = vperm.xlu2 %6027, %v914_v0   ;;  %v921_v0 = vmul.f32 %v5656_v38, %v6710_v51  ;;  %v5659_v51 = vld [vmem:[%s9246_s2 + $0x270] sm:$0xff] }
  0xfb   :  { %944 = vperm.xlu1 %6026, %v913_v59   ;;  %v924_v38 = vmul.f32 %v5659_v51, %v7009_v14 }
  0xfc   :  { %v6983_v50 = vpop.permute.xlu2 %618 }
  0xfd   :  { %v6988_v39 = vpop.permute.xlu1 %485  ;;  %969 = vperm.xlu0 %6025, %v918_v55  }
  0xff   :  { %v6995_v16 = vpop.permute.xlu0 %510 }
 0x102   :  { %964 = vperm.xlu2 %6027, %v917_v10  }
 0x103   :  { %959 = vperm.xlu1 %6026, %v916_v48   ;;  %v5658_v48 = vld [vmem:[%s9246_s2 + $0x268] sm:$0xff] }
 0x104   :  { %v7001_v59 = vpop.permute.xlu2 %633  ;;  %v923_v32 = vmul.f32 %v5658_v48, %v6728_v4  ;;  %v5660_v4 = vld [vmem:[%s9246_s2 + $0x278] sm:$0xff] }
 0x105   :  { %v7006_v55 = vpop.permute.xlu1 %500  ;;  %984 = vperm.xlu0 %6025, %v921_v0  }
 0x107   :  { %v7015_v10 = vpop.permute.xlu0 %608 }
 0x108   :  { %9259 = vst [vmem:[#allocation25_spill] sm:$0xff] %v7015_v10  ;;  %v5661_v10 = vld [vmem:[%s9246_s2 + $0x280] sm:$0xff] }
 0x10a   :  { %979 = vperm.xlu2 %6027, %v920_v19   ;;  %v922_v19 = vmul.f32 %v5657_v54, %v6703_v45  ;;  %v1073_v45 = vmul.f32 %v5661_v10, %v6749_v17  ;;  %v5663_v17 = vld [vmem:[%s9246_s2 + $0x290] sm:$0xff] }
 0x10b   :  { %974 = vperm.xlu1 %6026, %v919_v27   ;;  %v1074_v27 = vmul.f32 %v5662_v40, %v6744_v13  ;;  %v5665_v13 = vld [vmem:[%s9246_s2 + $0x2a0] sm:$0xff] }
 0x10c   :  { %v7021_v0 = vpop.permute.xlu2 %648  ;;  %v1077_v40 = vmul.f32 %v5665_v13, %v6762_v29  ;;  %v5668_v29 = vld [vmem:[%s9246_s2 + $0x2b8] sm:$0xff] }
 0x10d   :  { %v7026_v24 = vpop.permute.xlu1 %515  ;;  %999 = vperm.xlu0 %6025, %v924_v38   ;;  %v7041_v38 = vld [vmem:[#allocation2 + $0x90] sm:$0xff]  ;;  %v1080_v13 = vmul.f32 %v5668_v29, %v6782_v53  ;;  %v5670_v29 = vld [vmem:[%s9246_s2 + $0x2c8] sm:$0xff] }
 0x10e   :  { %9260 = vst [vmem:[#allocation26_spill] sm:$0xff] %v7026_v24  ;;  %v925_v54 = vmul.f32 %v5660_v4, %v7041_v38  ;;  %v1075_v4 = vmul.f32 %v5663_v17, %v6733_v7  ;;  %v5671_v53 = vld [vmem:[%s9246_s2 + $0x2d0] sm:$0xff] }
 0x10f   :  { %v7033_v51 = vpop.permute.xlu0 %623 }
 0x112   :  { %994 = vperm.xlu2 %6027, %v923_v32  }
 0x113   :  { %989 = vperm.xlu1 %6026, %v922_v19   ;;  %v5664_v19 = vld [vmem:[%s9246_s2 + $0x298] sm:$0xff] }
 0x114   :  { %v7039_v24 = vpop.permute.xlu2 %663 }
 0x115   :  { %9261 = vst [vmem:[#allocation27_spill] sm:$0xff] %v7039_v24  ;;  %v7046_v48 = vpop.permute.xlu1 %613  ;;  %1097 = vperm.xlu0 %6025, %v1074_v27   ;;  %v1076_v27 = vmul.f32 %v5664_v19, %v6769_v36  ;;  %v5666_v36 = vld [vmem:[%s9246_s2 + $0x2a8] sm:$0xff] }
 0x116   :  { %9262 = vst [vmem:[#allocation28_spill] sm:$0xff] %v7046_v48  ;;  %v1078_v19 = vmul.f32 %v5666_v36, %v6755_v21  ;;  %v1082_v21 = vmul.f32 %v5670_v29, %v6811_v12  ;;  %v5672_v12 = vld [vmem:[%s9246_s2 + $0x2d8] sm:$0xff]  ;;  %v1203_v29 = vld [vmem:[#allocation2 + $0x26] sm:$0xff] }
 0x117   :  { %v7053_v32 = vpop.permute.xlu0 %638 }
 0x118   :  { %9263 = vst [vmem:[#allocation29_spill] sm:$0xff] %v7053_v32 }
 0x11a   :  { %1092 = vperm.xlu2 %6027, %v1073_v45  }
 0x11b   :  { %1004 = vperm.xlu1 %6026, %v925_v54   ;;  %v5667_v54 = vld [vmem:[%s9246_s2 + $0x2b0] sm:$0xff] }
 0x11c   :  { %v7059_v48 = vpop.permute.xlu2 %678  ;;  %v1079_v7 = vmul.f32 %v5667_v54, %v6791_v60  ;;  %v5669_v60 = vld [vmem:[%s9246_s2 + $0x2c0] sm:$0xff] }
 0x11d   :  { %9264 = vst [vmem:[#allocation30_spill] sm:$0xff] %v7059_v48  ;;  %v7064_v10 = vpop.permute.xlu1 %628  ;;  %1112 = vperm.xlu0 %6025, %v1077_v40   ;;  %v1081_v54 = vmul.f32 %v5669_v60, %v6775_v44  ;;  %v1084_v60 = vmul.f32 %v5672_v12, %v6797_v1  ;;  %v7137_v1 = vld [vmem:[#allocation8 + $0x1] ss:$0 sm:$0xff] }
 0x11e   :  { %9265 = vst [vmem:[#allocation31_spill] sm:$0xff] %v7064_v10 }
 0x11f   :  { %v7071_v45 = vpop.permute.xlu0 %653 }
 0x120   :  { %9266 = vst [vmem:[#allocation32_spill] sm:$0xff] %v7071_v45  ;;  %v1205_v45 = vld [vmem:[#allocation2 + $0x36] sm:$0xff] }
 0x122   :  { %1107 = vperm.xlu2 %6027, %v1076_v27   ;;  %v1083_v27 = vmul.f32 %v5671_v53, %v6804_v8  ;;  %v5674_v8 = vld [vmem:[%s9246_s2 + $0x2e8] sm:$0xff]  ;;  %v5673_v53 = vld [vmem:[%s9246_s2 + $0x2e0] sm:$0xff] }
 0x123   :  { %1102 = vperm.xlu1 %6026, %v1075_v4   ;;  %v1085_v44 = vmul.f32 %v5673_v53, %v6831_v47  ;;  %v7132_v47 = vld [vmem:[#allocation2 + $0x8a] sm:$0xff] }
 0x124   :  { %v7077_v32 = vpop.permute.xlu2 %776  ;;  %v5675_v53 = vld [vmem:[%s9246_s2 + $0x2f0] sm:$0xff] }
 0x125   :  { %9267 = vst [vmem:[#allocation33_spill] sm:$0xff] %v7077_v32  ;;  %v7082_v40 = vpop.permute.xlu1 %643  ;;  %1127 = vperm.xlu0 %6025, %v1080_v13   ;;  %v7157_v32 = vld [vmem:[#allocation8 + $0x3] ss:$0 sm:$0xff] }
 0x126   :  { %9268 = vst [vmem:[#allocation34_spill] sm:$0xff] %v7082_v40 }
 0x127   :  { %v7089_v17 = vpop.permute.xlu0 %668 }
 0x128   :  { %9269 = vst [vmem:[#allocation35_spill] sm:$0xff] %v7089_v17 }
 0x12a   :  { %1122 = vperm.xlu2 %6027, %v1079_v7   ;;  %v1086_v7 = vmul.f32 %v5674_v8, %v6824_v33  ;;  %v5677_v33 = vld [vmem:[%s9246_s2 + $0x300] sm:$0xff] }
 0x12b   :  { %1117 = vperm.xlu1 %6026, %v1078_v19   ;;  %v1236_v8 = vmul.f32 %v5677_v33, %v1203_v29  ;;  %v1206_v29 = vld [vmem:[#allocation2 + $0x3e] sm:$0xff] }
 0x12c   :  { %v7095_v4 = vpop.permute.xlu2 %791  ;;  %v5680_v33 = vld [vmem:[%s9246_s2 + $0x318] sm:$0xff] }
 0x12d   :  { %9270 = vst [vmem:[#allocation36_spill] sm:$0xff] %v7095_v4  ;;  %v7100_v13 = vpop.permute.xlu1 %658  ;;  %1142 = vperm.xlu0 %6025, %v1083_v27   ;;  %v1087_v4 = vmul.f32 %v5675_v53, %v7132_v47  ;;  %v1204_v53 = vld [vmem:[#allocation2 + $0x2e] sm:$0xff] }
 0x12e   :  { %9271 = vst [vmem:[#allocation37_spill] sm:$0xff] %v7100_v13 }
 0x12f   :  { %v7107_v36 = vpop.permute.xlu0 %766 }
 0x132   :  { %1137 = vperm.xlu2 %6027, %v1082_v21  }
 0x133   :  { %1132 = vperm.xlu1 %6026, %v1081_v54   ;;  %v7125_v54 = vld [vmem:[#allocation2 + $0x92] sm:$0xff] }
 0x134   :  { %v7113_v19 = vpop.permute.xlu2 %806 }
 0x135   :  { %9272 = vst [vmem:[#allocation38_spill] sm:$0xff] %v7113_v19  ;;  %v674_v27 = vpop.permute.xlu1 %673  ;;  %1157 = vperm.xlu0 %6025, %v1086_v7   ;;  %v5676_v7 = vld [vmem:[%s9246_s2 + $0x2f8] sm:$0xff]  ;;  %v533_v19 = vmul.f32 %v7137_v1, %v6995_v16  ;;  %v5679_v16 = vld [vmem:[%s9246_s2 + $0x310] sm:$0xff] }
 0x137   :  { %v7123_v21 = vpop.permute.xlu0 %781 }
 0x13a   :  { %1152 = vperm.xlu2 %6027, %v1085_v44   ;;  %v1088_v44 = vmul.f32 %v5676_v7, %v7125_v54 }
 0x13b   :  { %1147 = vperm.xlu1 %6026, %v1084_v60   ;;  %v7145_v60 = vld [vmem:[#allocation8] ss:$0 sm:$0xff] }
 0x13c   :  { %v7130_v13 = vpop.permute.xlu2 %821 }
 0x13d   :  { %9273 = vst [vmem:[#allocation39_spill] sm:$0xff] %v7130_v13  ;;  %v7139_v12 = vpop.permute.xlu1 %771  ;;  %1255 = vperm.xlu0 %6025, %v1236_v8   ;;  %v7147_v13 = vld [vmem:[#allocation8 + $0x2] ss:$0 sm:$0xff]  ;;  %v370_v8 = vmul.f32 %v7145_v60, %v6853_v9 }
 0x13e   :  { %9274 = vst [vmem:[#allocation40_spill] sm:$0xff] %v7139_v12  ;;  %v696_v7 = vmul.f32 %v7147_v13, %v674_v27  ;;  %v1239_v12 = vmul.f32 %v5680_v33, %v1206_v29 }
 0x13f   :  { %v7152_v17 = vpop.permute.xlu0 %796  ;;  %v549_v40 = vadd.f32 %v533_v19, %v370_v8  ;;  %v1238_v19 = vmul.f32 %v5679_v16, %v1205_v45  ;;  %v1207_v45 = vld [vmem:[#allocation2 + $0x46] sm:$0xff] }
 0x140   :  { %9275 = vst [vmem:[#allocation41_spill] sm:$0xff] %v7152_v17  ;;  %v5678_v17 = vld [vmem:[%s9246_s2 + $0x308] sm:$0xff] }
 0x141   :  { %v712_v9 = vadd.f32 %v696_v7, %v549_v40  ;;  %v1237_v8 = vmul.f32 %v5678_v17, %v1204_v53  ;;  %v1208_v40 = vld [vmem:[#allocation2 + $0x4e] sm:$0xff]  ;;  %v5681_v7 = vld [vmem:[%s9246_s2 + $0x320] sm:$0xff] }
 0x142   :  { %1167 = vperm.xlu2 %6027, %v1088_v44   ;;  %v1209_v44 = vld [vmem:[#allocation2 + $0x56] sm:$0xff]  ;;  %v1212_v53 = vld [vmem:[#allocation2 + $0x6e] sm:$0xff] }
 0x143   :  { %1162 = vperm.xlu1 %6026, %v1087_v4   ;;  %v5683_v4 = vld [vmem:[%s9246_s2 + $0x330] sm:$0xff] }
 0x144   :  { %v837_v10 = vpop.permute.xlu2 %836  ;;  %v1242_v24 = vmul.f32 %v5683_v4, %v1209_v44  ;;  %v1211_v4 = vld [vmem:[#allocation2 + $0x66] sm:$0xff] }
 0x145   :  { %v859_v27 = vmul.f32 %v7157_v32, %v837_v10  ;;  %v7166_v29 = vpop.permute.xlu1 %786  ;;  %1270 = vperm.xlu0 %6025, %v1239_v12   ;;  %v5682_v10 = vld [vmem:[%s9246_s2 + $0x328] sm:$0xff] }
 0x146   :  { %9276 = vst [vmem:[#allocation42_spill] sm:$0xff] %v7166_v29  ;;  %v1241_v17 = vmul.f32 %v5682_v10, %v1208_v40  ;;  %v5684_v40 = vld [vmem:[%s9246_s2 + $0x338] sm:$0xff]  ;;  %v5703_v29 = vld [vmem:[%s9246_s2 + $0x3d0] sm:$0xff] }
 0x147   :  { %v7171_v33 = vadd.f32 %v859_v27, %v712_v9  ;;  %v7173_v48 = vpop.permute.xlu0 %811  ;;  %v5686_v9 = vld [vmem:[%s9246_s2 + $0x348] sm:$0xff]  ;;  %v1240_v27 = vmul.f32 %v5681_v7, %v1207_v45  ;;  %v5689_v7 = vld [vmem:[%s9246_s2 + $0x360] sm:$0xff] }
 0x148   :  { %9277 = vst [vmem:[#allocation43_spill] sm:$0xff] %v7173_v48  ;;  %v1245_v44 = vmul.f32 %v5686_v9, %v1212_v53  ;;  %v1248_v9 = vmul.f32 %v5689_v7, %v6924_v43  ;;  %v5692_v43 = vld [vmem:[%s9246_s2 + $0x378] sm:$0xff] }
 0x14a   :  { %1265 = vperm.xlu2 %6027, %v1238_v19  }
 0x14b   :  { %1260 = vperm.xlu1 %6026, %v1237_v8   ;;  %v5685_v8 = vld [vmem:[%s9246_s2 + $0x340] sm:$0xff] }
 0x14c   :  { %v7178_v12 = vpop.permute.xlu2 %934  ;;  %v1244_v45 = vmul.f32 %v5685_v8, %v1211_v4  ;;  %v5687_v4 = vld [vmem:[%s9246_s2 + $0x350] sm:$0xff] }
 0x14d   :  { %9278 = vst [vmem:[#allocation44_spill] sm:$0xff] %v7178_v12  ;;  %v7183_v16 = vpop.permute.xlu1 %801  ;;  %1285 = vperm.xlu0 %6025, %v1242_v24   ;;  %v1210_v24 = vld [vmem:[#allocation2 + $0x5e] sm:$0xff] }
 0x14e   :  { %9279 = vst [vmem:[#allocation45_spill] sm:$0xff] %v7183_v16  ;;  %v5700_v16 = vld [vmem:[%s9246_s2 + $0x3b8] sm:$0xff] }
 0x14f   :  { %v7188_v19 = vpop.permute.xlu0 %826 }
 0x150   :  { %9280 = vst [vmem:[#allocation46_spill] sm:$0xff] %v7188_v19 }
 0x152   :  { %1280 = vperm.xlu2 %6027, %v1241_v17   ;;  %v1243_v17 = vmul.f32 %v5684_v40, %v1210_v24  ;;  %v1218_v40 = vld [vmem:[#allocation2 + $0x9e] sm:$0xff] }
 0x153   :  { %1275 = vperm.xlu1 %6026, %v1240_v27   ;;  %v1214_v27 = vld [vmem:[#allocation2 + $0x7e] sm:$0xff] }
 0x154   :  { %v7193_v12 = vpop.permute.xlu2 %949 }
 0x155   :  { %9281 = vst [vmem:[#allocation47_spill] sm:$0xff] %v7193_v12  ;;  %v7198_v10 = vpop.permute.xlu1 %816  ;;  %1300 = vperm.xlu0 %6025, %v1245_v44   ;;  %v5688_v12 = vld [vmem:[%s9246_s2 + $0x358] sm:$0xff] }
 0x156   :  { %9282 = vst [vmem:[#allocation48_spill] sm:$0xff] %v7198_v10  ;;  %v1213_v44 = vld [vmem:[#allocation2 + $0x76] sm:$0xff]  ;;  %v1247_v24 = vmul.f32 %v5688_v12, %v1214_v27  ;;  %v5690_v12 = vld [vmem:[%s9246_s2 + $0x368] sm:$0xff] }
 0x157   :  { %v7203_v53 = vpop.permute.xlu0 %841 }
 0x158   :  { %9283 = vst [vmem:[#allocation49_spill] sm:$0xff] %v7203_v53  ;;  %v5691_v53 = vld [vmem:[%s9246_s2 + $0x370] sm:$0xff] }
 0x15a   :  { %1295 = vperm.xlu2 %6027, %v1244_v45   ;;  %v1246_v45 = vmul.f32 %v5687_v4, %v1213_v44  ;;  %v1368_v44 = vld [vmem:[#allocation2 + $0x38] sm:$0xff]  ;;  %v5695_v4 = vld [vmem:[%s9246_s2 + $0x390] sm:$0xff] }
 0x15b   :  { %1290 = vperm.xlu1 %6026, %v1243_v17   ;;  %v1251_v17 = vmul.f32 %v5692_v43, %v1218_v40  ;;  %v1401_v43 = vmul.f32 %v5695_v4, %v1368_v44 }
 0x15c   :  { %v7209_v19 = vpop.permute.xlu2 %964 }
 0x15d   :  { %9284 = vst [vmem:[#allocation50_spill] sm:$0xff] %v7209_v19  ;;  %v7214_v8 = vpop.permute.xlu1 %831  ;;  %1315 = vperm.xlu0 %6025, %v1248_v9   ;;  %v1217_v19 = vld [vmem:[#allocation2 + $0x96] sm:$0xff] }
 0x15e   :  { %9285 = vst [vmem:[#allocation51_spill] sm:$0xff] %v7214_v8  ;;  %v1250_v27 = vmul.f32 %v5691_v53, %v1217_v19  ;;  %v1366_v19 = vld [vmem:[#allocation2 + $0x28] sm:$0xff]  ;;  %v5693_v53 = vld [vmem:[%s9246_s2 + $0x380] sm:$0xff] }
 0x15f   :  { %v7219_v7 = vpop.permute.xlu0 %939  ;;  %v1399_v44 = vmul.f32 %v5693_v53, %v1366_v19  ;;  %v1374_v53 = vld [vmem:[#allocation2 + $0x68] sm:$0xff] }
 0x160   :  { %9286 = vst [vmem:[#allocation52_spill] sm:$0xff] %v7219_v7 }
 0x162   :  { %1310 = vperm.xlu2 %6027, %v1247_v24   ;;  %v1249_v24 = vmul.f32 %v5690_v12, %v6915_v41  ;;  %v1371_v12 = vld [vmem:[#allocation2 + $0x50] sm:$0xff] }
 0x163   :  { %1305 = vperm.xlu1 %6026, %v1246_v45   ;;  %v1367_v45 = vld [vmem:[#allocation2 + $0x30] sm:$0xff] }
 0x164   :  { %v7224_v10 = vpop.permute.xlu2 %979 }
 0x165   :  { %9287 = vst [vmem:[#allocation53_spill] sm:$0xff] %v7224_v10  ;;  %v7229_v9 = vpop.permute.xlu1 %929  ;;  %1330 = vperm.xlu0 %6025, %v1251_v17   ;;  %v5694_v10 = vld [vmem:[%s9246_s2 + $0x388] sm:$0xff] }
 0x166   :  { %v1400_v41 = vmul.f32 %v5694_v10, %v1367_v45  ;;  %v5696_v10 = vld [vmem:[%s9246_s2 + $0x398] sm:$0xff] }
 0x167   :  { %v7235_v40 = vpop.permute.xlu0 %954 }
 0x168   :  { %9288 = vst [vmem:[#allocation54_spill] sm:$0xff] %v7235_v40  ;;  %v5697_v40 = vld [vmem:[%s9246_s2 + $0x3a0] sm:$0xff] }
 0x16a   :  { %1325 = vperm.xlu2 %6027, %v1250_v27   ;;  %v5698_v27 = vld [vmem:[%s9246_s2 + $0x3a8] sm:$0xff] }
 0x16b   :  { %1320 = vperm.xlu1 %6026, %v1249_v24   ;;  %v1404_v24 = vmul.f32 %v5698_v27, %v1371_v12 }
 0x16c   :  { %v7240_v8 = vpop.permute.xlu2 %994 }
 0x16d   :  { %9289 = vst [vmem:[#allocation55_spill] sm:$0xff] %v7240_v8  ;;  %v7245_v17 = vpop.permute.xlu1 %944  ;;  %1428 = vperm.xlu0 %6025, %v1401_v43   ;;  %v1370_v8 = vld [vmem:[#allocation2 + $0x48] sm:$0xff]  ;;  %v1369_v43 = vld [vmem:[#allocation2 + $0x40] sm:$0xff] }
 0x16e   :  { %v1403_v19 = vmul.f32 %v5697_v40, %v1370_v8  ;;  %v1402_v12 = vmul.f32 %v5696_v10, %v1369_v43  ;;  %v5699_v8 = vld [vmem:[%s9246_s2 + $0x3b0] sm:$0xff]  ;;  %v1377_v10 = vld [vmem:[#allocation2 + $0x80] sm:$0xff] }
 0x16f   :  { %v7250_v4 = vpop.permute.xlu0 %969 }
 0x170   :  { %9290 = vst [vmem:[#allocation56_spill] sm:$0xff] %v7250_v4  ;;  %v1373_v4 = vld [vmem:[#allocation2 + $0x60] sm:$0xff] }
 0x171   :  { %v1406_v43 = vmul.f32 %v5700_v16, %v1373_v4  ;;  %v5702_v16 = vld [vmem:[%s9246_s2 + $0x3c8] sm:$0xff] }
 0x172   :  { %1423 = vperm.xlu2 %6027, %v1400_v41   ;;  %v5701_v41 = vld [vmem:[%s9246_s2 + $0x3c0] sm:$0xff] }
 0x173   :  { %1418 = vperm.xlu1 %6026, %v1399_v44   ;;  %v1407_v44 = vmul.f32 %v5701_v41, %v1374_v53 }
 0x174   :  { %v7255_v7 = vpop.permute.xlu2 %1092 }
 0x175   :  { %v7260_v45 = vpop.permute.xlu1 %959  ;;  %1443 = vperm.xlu0 %6025, %v1404_v24   ;;  %v1372_v24 = vld [vmem:[#allocation2 + $0x58] sm:$0xff] }
 0x176   :  { %9291 = vst [vmem:[#allocation57_spill] sm:$0xff] %v7260_v45  ;;  %v1405_v53 = vmul.f32 %v5699_v8, %v1372_v24  ;;  %v1380_v8 = vld [vmem:[#allocation2 + $0x98] sm:$0xff] }
 0x177   :  { %v7265_v27 = vpop.permute.xlu0 %984 }
 0x178   :  { %9292 = vst [vmem:[#allocation58_spill] sm:$0xff] %v7265_v27  ;;  %v1376_v27 = vld [vmem:[#allocation2 + $0x78] sm:$0xff] }
 0x179   :  { %v1409_v24 = vmul.f32 %v5703_v29, %v1376_v27  ;;  %v5705_v29 = vld [vmem:[%s9246_s2 + $0x3e0] sm:$0xff] }
 0x17a   :  { %1438 = vperm.xlu2 %6027, %v1403_v19   ;;  %v5704_v19 = vld [vmem:[%s9246_s2 + $0x3d8] sm:$0xff] }
 0x17b   :  { %1433 = vperm.xlu1 %6026, %v1402_v12   ;;  %v1410_v12 = vmul.f32 %v5704_v19, %v1377_v10 }
 0x17c   :  { %v7270_v48 = vpop.permute.xlu2 %1107 }
 0x17d   :  { %v7275_v40 = vpop.permute.xlu1 %974  ;;  %1458 = vperm.xlu0 %6025, %v1407_v44   ;;  %v1375_v44 = vld [vmem:[#allocation2 + $0x70] sm:$0xff] }
 0x17e   :  { %9293 = vst [vmem:[#allocation59_spill] sm:$0xff] %v7275_v40  ;;  %v1408_v10 = vmul.f32 %v5702_v16, %v1375_v44  ;;  %v5706_v40 = vld [vmem:[%s9246_s2 + $0x3e8] sm:$0xff]  ;;  %v1530_v44 = vld [vmem:[#allocation2 + $0x32] sm:$0xff] }
 0x17f   :  { %v7280_v41 = vpop.permute.xlu0 %999  ;;  %v5710_v16 = vld [vmem:[%s9246_s2 + $0x408] sm:$0xff] }
 0x182   :  { %1453 = vperm.xlu2 %6027, %v1406_v43   ;;  %v5707_v43 = vld [vmem:[%s9246_s2 + $0x3f0] sm:$0xff] }
 0x183   :  { %1448 = vperm.xlu1 %6026, %v1405_v53   ;;  %v1413_v53 = vmul.f32 %v5707_v43, %v1380_v8  ;;  %v1563_v43 = vmul.f32 %v5710_v16, %v1530_v44 }
 0x184   :  { %v7285_v45 = vpop.permute.xlu2 %1122 }
 0x185   :  { %9294 = vst [vmem:[#allocation60_spill] sm:$0xff] %v7285_v45  ;;  %v7290_v4 = vpop.permute.xlu1 %989  ;;  %1473 = vperm.xlu0 %6025, %v1410_v12   ;;  %v1412_v12 = vmul.f32 %v5706_v40, %v7041_v38  ;;  %v1381_v38 = vld [vmem:[#allocation2 + $0xa0] sm:$0xff]  ;;  %v5708_v40 = vld [vmem:[%s9246_s2 + $0x3f8] sm:$0xff] }
 0x186   :  { %9295 = vst [vmem:[#allocation61_spill] sm:$0xff] %v7290_v4  ;;  %v1414_v44 = vmul.f32 %v5708_v40, %v1381_v38  ;;  %v1536_v40 = vld [vmem:[#allocation2 + $0x62] sm:$0xff] }
 0x187   :  { %v7295_v19 = vpop.permute.xlu0 %1097 }
 0x188   :  { %9296 = vst [vmem:[#allocation62_spill] sm:$0xff] %v7295_v19 }
 0x18a   :  { %1468 = vperm.xlu2 %6027, %v1409_v24   ;;  %v1411_v24 = vmul.f32 %v5705_v29, %v7009_v14  ;;  %v1533_v29 = vld [vmem:[#allocation2 + $0x4a] sm:$0xff] }
 0x18b   :  { %1463 = vperm.xlu1 %6026, %v1408_v10   ;;  %v1529_v10 = vld [vmem:[#allocation2 + $0x2a] sm:$0xff] }
 0x18c   :  { %v7300_v45 = vpop.permute.xlu2 %1137 }
 0x18d   :  { %9297 = vst [vmem:[#allocation63_spill] sm:$0xff] %v7300_v45  ;;  %v7305_v27 = vpop.permute.xlu1 %1004  ;;  %1488 = vperm.xlu0 %6025, %v1413_v53  }
 0x18e   :  { %9298 = vst [vmem:[#allocation64_spill] sm:$0xff] %v7305_v27  ;;  %v5709_v27 = vld [vmem:[%s9246_s2 + $0x400] sm:$0xff] }
 0x18f   :  { %v7312_v8 = vpop.permute.xlu0 %1112  ;;  %v1562_v14 = vmul.f32 %v5709_v27, %v1529_v10  ;;  %v5711_v27 = vld [vmem:[%s9246_s2 + $0x410] sm:$0xff] }
 0x190   :  { %9299 = vst [vmem:[#allocation65_spill] sm:$0xff] %v7312_v8  ;;  %v5712_v8 = vld [vmem:[%s9246_s2 + $0x418] sm:$0xff] }
 0x192   :  { %1483 = vperm.xlu2 %6027, %v1412_v12   ;;  %v5713_v12 = vld [vmem:[%s9246_s2 + $0x420] sm:$0xff] }
 0x193   :  { %1478 = vperm.xlu1 %6026, %v1411_v24   ;;  %v1566_v24 = vmul.f32 %v5713_v12, %v1533_v29 }
 0x194   :  { %v7317_v53 = vpop.permute.xlu2 %1152 }
 0x195   :  { %9300 = vst [vmem:[#allocation66_spill] sm:$0xff] %v7317_v53  ;;  %v7322_v4 = vpop.permute.xlu1 %1102  ;;  %1586 = vperm.xlu0 %6025, %v1563_v43   ;;  %v1532_v53 = vld [vmem:[#allocation2 + $0x42] sm:$0xff]  ;;  %v1531_v43 = vld [vmem:[#allocation2 + $0x3a] sm:$0xff] }
 0x196   :  { %9301 = vst [vmem:[#allocation67_spill] sm:$0xff] %v7322_v4  ;;  %v1565_v38 = vmul.f32 %v5712_v8, %v1532_v53  ;;  %v1564_v29 = vmul.f32 %v5711_v27, %v1531_v43  ;;  %v5714_v8 = vld [vmem:[%s9246_s2 + $0x428] sm:$0xff]  ;;  %v1539_v27 = vld [vmem:[#allocation2 + $0x7a] sm:$0xff] }
 0x197   :  { %v7327_v16 = vpop.permute.xlu0 %1127 }
 0x198   :  { %9302 = vst [vmem:[#allocation68_spill] sm:$0xff] %v7327_v16  ;;  %v5715_v16 = vld [vmem:[%s9246_s2 + $0x430] sm:$0xff] }
 0x19a   :  { %1581 = vperm.xlu2 %6027, %v1562_v14   ;;  %v5716_v14 = vld [vmem:[%s9246_s2 + $0x438] sm:$0xff] }
 0x19b   :  { %1493 = vperm.xlu1 %6026, %v1414_v44   ;;  %v1569_v44 = vmul.f32 %v5716_v14, %v1536_v40 }
 0x19c   :  { %v7332_v45 = vpop.permute.xlu2 %1167 }
 0x19d   :  { %9303 = vst [vmem:[#allocation69_spill] sm:$0xff] %v7332_v45  ;;  %v7337_v10 = vpop.permute.xlu1 %1117  ;;  %1601 = vperm.xlu0 %6025, %v1566_v24   ;;  %v1535_v45 = vld [vmem:[#allocation2 + $0x5a] sm:$0xff]  ;;  %v1534_v24 = vld [vmem:[#allocation2 + $0x52] sm:$0xff] }
 0x19e   :  { %9304 = vst [vmem:[#allocation70_spill] sm:$0xff] %v7337_v10  ;;  %v1568_v43 = vmul.f32 %v5715_v16, %v1535_v45  ;;  %v1567_v40 = vmul.f32 %v5714_v8, %v1534_v24  ;;  %v5718_v10 = vld [vmem:[%s9246_s2 + $0x448] sm:$0xff]  ;;  %v5717_v45 = vld [vmem:[%s9246_s2 + $0x440] sm:$0xff] }
 0x19f   :  { %v7342_v12 = vpop.permute.xlu0 %1142  ;;  %v5722_v8 = vld [vmem:[%s9246_s2 + $0x468] sm:$0xff] }
 0x1a0   :  { %9305 = vst [vmem:[#allocation71_spill] sm:$0xff] %v7342_v12  ;;  %v1538_v12 = vld [vmem:[#allocation2 + $0x72] sm:$0xff] }
 0x1a1   :  { %v1571_v24 = vmul.f32 %v5718_v10, %v1538_v12  ;;  %v5720_v10 = vld [vmem:[%s9246_s2 + $0x458] sm:$0xff] }
 0x1a2   :  { %1596 = vperm.xlu2 %6027, %v1565_v38   ;;  %v5719_v38 = vld [vmem:[%s9246_s2 + $0x450] sm:$0xff] }
 0x1a3   :  { %1591 = vperm.xlu1 %6026, %v1564_v29   ;;  %v1572_v29 = vmul.f32 %v5719_v38, %v1539_v27  ;;  %v1575_v38 = vmul.f32 %v5722_v8, %v7125_v54  ;;  %v1783_v54 = vld [vmem:[%s9246_s2] sm:$0xff]  ;;  %v5724_v8 = vld [vmem:[%s9246_s2 + $0x478] sm:$0xff] }
 0x1a4   :  { %v7347_v4 = vpop.permute.xlu2 %1265 }
 0x1a5   :  { %9306 = vst [vmem:[#allocation72_spill] sm:$0xff] %v7347_v4  ;;  %v7352_v53 = vpop.permute.xlu1 %1132  ;;  %1616 = vperm.xlu0 %6025, %v1569_v44   ;;  %v1537_v44 = vld [vmem:[#allocation2 + $0x6a] sm:$0xff] }
 0x1a6   :  { %9307 = vst [vmem:[#allocation73_spill] sm:$0xff] %v7352_v53 }
 0x1a7   :  { %v7357_v14 = vpop.permute.xlu0 %1157 }
 0x1a8   :  { %9308 = vst [vmem:[#allocation74_spill] sm:$0xff] %v7357_v14 }
 0x1aa   :  { %1611 = vperm.xlu2 %6027, %v1568_v43   ;;  %v1570_v43 = vmul.f32 %v5717_v45, %v1537_v44 }
 0x1ab   :  { %1606 = vperm.xlu1 %6026, %v1567_v40   ;;  %v5721_v40 = vld [vmem:[%s9246_s2 + $0x460] sm:$0xff] }
 0x1ac   :  { %v7362_v4 = vpop.permute.xlu2 %1280 }
 0x1ad   :  { %9309 = vst [vmem:[#allocation75_spill] sm:$0xff] %v7362_v4  ;;  %v7367_v16 = vpop.permute.xlu1 %1147  ;;  %1631 = vperm.xlu0 %6025, %v1572_v29   ;;  %v1574_v29 = vmul.f32 %v5721_v40, %v7132_v47  ;;  %v5723_v47 = vld [vmem:[%s9246_s2 + $0x470] sm:$0xff]  ;;  %v1786_v4 = vld [vmem:[%s9246_s2 + $0x18] sm:$0xff] }
 0x1ae   :  { %9310 = vst [vmem:[#allocation76_spill] sm:$0xff] %v7367_v16  ;;  %v1540_v16 = vld [vmem:[#allocation2 + $0x82] sm:$0xff] }
 0x1af   :  { %v7372_v27 = vpop.permute.xlu0 %1255  ;;  %v1573_v44 = vmul.f32 %v5720_v10, %v1540_v16  ;;  %v7397_v16 = vld [vmem:[#allocation8 + $0x4] ss:$0 sm:$0xff]  ;;  %v7401_v10 = vld [vmem:[#allocation8 + $0x5] ss:$0 sm:$0xff] }
 0x1b2   :  { %1626 = vperm.xlu2 %6027, %v1571_v24   ;;  %v1544_v24 = vld [vmem:[#allocation2 + $0xa2] sm:$0xff] }
 0x1b3   :  { %1621 = vperm.xlu1 %6026, %v1570_v43   ;;  %v1577_v40 = vmul.f32 %v5724_v8, %v1544_v24 }
 0x1b4   :  { %v7378_v14 = vpop.permute.xlu2 %1295 }
 0x1b5   :  { %9311 = vst [vmem:[#allocation77_spill] sm:$0xff] %v7378_v14  ;;  %v1163_v12 = vpop.permute.xlu1 %1162  ;;  %1646 = vperm.xlu0 %6025, %v1575_v38   ;;  %v1543_v14 = vld [vmem:[#allocation2 + $0x9a] sm:$0xff] }
 0x1b7   :  { %v7384_v45 = vpop.permute.xlu0 %1270 }
 0x1ba   :  { %1641 = vperm.xlu2 %6027, %v1574_v29   ;;  %v1022_v29 = vmul.f32 %v7397_v16, %v7280_v41 }
 0x1bb   :  { %1636 = vperm.xlu1 %6026, %v1573_v44   ;;  %v1576_v44 = vmul.f32 %v5723_v47, %v1543_v14 }
 0x1bc   :  { %v7392_v43 = vpop.permute.xlu2 %1310  ;;  %v1038_v19 = vadd.f32 %v1022_v29, %v7171_v33  ;;  %v1784_v33 = vld [vmem:[%s9246_s2 + $0x8] sm:$0xff] }
 0x1bd   :  { %9312 = vst [vmem:[#allocation78_spill] sm:$0xff] %v7392_v43  ;;  %v7399_v38 = vpop.permute.xlu1 %1260  ;;  %1801 = vperm.xlu0 %6025, %v1783_v54   ;;  %v1185_v43 = vmul.f32 %v7401_v10, %v1163_v12  ;;  %v1785_v12 = vld [vmem:[%s9246_s2 + $0x10] sm:$0xff] }
 0x1be   :  { %9313 = vst [vmem:[#allocation79_spill] sm:$0xff] %v7399_v38  ;;  %v7412_v38 = vld [vmem:[#allocation8 + $0x6] ss:$0 sm:$0xff] }
 0x1bf   :  { %v7405_v53 = vpop.permute.xlu0 %1285  ;;  %v1201_v24 = vadd.f32 %v1185_v43, %v1038_v19  ;;  %v1789_v19 = vld [vmem:[%s9246_s2 + $0x30] sm:$0xff] }
 0x1c2   :  { %1656 = vperm.xlu2 %6027, %v1577_v40   ;;  %v1788_v40 = vld [vmem:[%s9246_s2 + $0x28] sm:$0xff] }
 0x1c3   :  { %1651 = vperm.xlu1 %6026, %v1576_v44   ;;  %v1787_v44 = vld [vmem:[%s9246_s2 + $0x20] sm:$0xff] }
 0x1c4   :  { %v1326_v54 = vpop.permute.xlu2 %1325 }
 0x1c5   :  { %v1348_v8 = vmul.f32 %v7412_v38, %v1326_v54  ;;  %v7415_v41 = vpop.permute.xlu1 %1275  ;;  %1816 = vperm.xlu0 %6025, %v1786_v4   ;;  %v1792_v54 = vld [vmem:[%s9246_s2 + $0x48] sm:$0xff] }
 0x1c7   :  { %v7417_v14 = vadd.f32 %v1348_v8, %v1201_v24  ;;  %v7422_v47 = vpop.permute.xlu0 %1300  ;;  %v9316_v8 = vmov 0.0  }
 0x1c8   :  { %1732 = vst.msk [vmem:[#allocation3 + $0x18] sm:$0xff] %vm1728_vm1, %v9316_v8 }
 0x1c9   :  { %9314 = vst [vmem:[#allocation80_spill] sm:$0xff] %v7417_v14 }
 0x1ca   :  { %1811 = vperm.xlu2 %6027, %v1785_v12   ;;  %1729 = vst.msk [vmem:[#allocation3] sm:$0xff] %vm1728_vm1, %v9316_v8 }
 0x1cb   :  { %1806 = vperm.xlu1 %6026, %v1784_v33   ;;  %1730 = vst.msk [vmem:[#allocation3 + $0x8] sm:$0xff] %vm1728_vm1, %v9316_v8  ;;  %v1791_v33 = vld [vmem:[%s9246_s2 + $0x40] sm:$0xff] }
 0x1cc   :  { %v7430_v43 = vpop.permute.xlu2 %1423  ;;  %1731 = vst.msk [vmem:[#allocation3 + $0x10] sm:$0xff] %vm1728_vm1, %v9316_v8 }
 0x1cd   :  { %v7432_v4 = vpop.permute.xlu1 %1290  ;;  %1831 = vperm.xlu0 %6025, %v1789_v19   ;;  %1733 = vst.msk [vmem:[#allocation3 + $0x20] sm:$0xff] %vm1728_vm1, %v9316_v8 }
 0x1ce   :  { %9315 = vst [vmem:[#allocation81_spill] sm:$0xff] %v7432_v4 }
 0x1cf   :  { %v7437_v29 = vpop.permute.xlu0 %1315  ;;  %1734 = vst.msk [vmem:[#allocation3 + $0x28] sm:$0xff] %vm1728_vm1, %v9316_v8 }
 0x1d0   :  { %1735 = vst.msk [vmem:[#allocation3 + $0x30] sm:$0xff] %vm1728_vm1, %v9316_v8 }
 0x1d1   :  { %1736 = vst.msk [vmem:[#allocation3 + $0x38] sm:$0xff] %vm1728_vm1, %v9316_v8 }
 0x1d2   :  { %1826 = vperm.xlu2 %6027, %v1788_v40   ;;  %v1790_v40 = vld [vmem:[%s9246_s2 + $0x38] sm:$0xff]  ;;  %1737 = vst.msk [vmem:[#allocation3 + $0x40] sm:$0xff] %vm1728_vm1, %v9316_v8 }
 0x1d3   :  { %1821 = vperm.xlu1 %6026, %v1787_v44   ;;  %v1795_v44 = vld [vmem:[%s9246_s2 + $0x60] sm:$0xff]  ;;  %1738 = vst.msk [vmem:[#allocation3 + $0x48] sm:$0xff] %vm1728_vm1, %v9316_v8 }
 0x1d4   :  { %v7445_v24 = vpop.permute.xlu2 %1438  ;;  %1739 = vst.msk [vmem:[#allocation3 + $0x50] sm:$0xff] %vm1728_vm1, %v9316_v8 }
 0x1d5   :  { %v7449_v12 = vpop.permute.xlu1 %1305  ;;  %1846 = vperm.xlu0 %6025, %v1792_v54   ;;  %1740 = vst.msk [vmem:[#allocation3 + $0x58] sm:$0xff] %vm1728_vm1, %v9316_v8 }
 0x1d6   :  { %9317 = vst [vmem:[#allocation82_spill] sm:$0xff] %v7449_v12  ;;  %v361_v12 = vmul.f32 %v7145_v60, %v6789_v58  ;;  %v7519_v58 = vmul.f32 %v7145_v60, %v6829_v42  ;;  %v523_v42 = vmul.f32 %v7137_v1, %v6889_v15  ;;  %v363_v15 = vmul.f32 %v7145_v60, %v6876_v56 }
 0x1d7   :  { %v7458_v19 = vpop.permute.xlu0 %1330  ;;  %1741 = vst.msk [vmem:[#allocation3 + $0x60] sm:$0xff] %vm1728_vm1, %v9316_v8  ;;  %v682_v56 = vmul.f32 %v7147_v13, %v6965_v2  ;;  %v1796_v2 = vld [vmem:[%s9246_s2 + $0x68] sm:$0xff] }
 0x1d8   :  { %9318 = vst [vmem:[#allocation83_spill] sm:$0xff] %v7458_v19  ;;  %v356_v19 = vmul.f32 %v7145_v60, %v6787_v57  ;;  %v357_v57 = vmul.f32 %v7145_v60, %v6816_v18  ;;  %v7539_v18 = vmul.f32 %v7145_v60, %v6865_v28  ;;  %v529_v28 = vmul.f32 %v7137_v1, %v6929_v30  ;;  %v1797_v30 = vld [vmem:[%s9246_s2 + $0x70] sm:$0xff] }
 0x1d9   :  { %1742 = vst.msk [vmem:[#allocation3 + $0x68] sm:$0xff] %vm1728_vm1, %v9316_v8 }
 0x1da   :  { %1841 = vperm.xlu2 %6027, %v1791_v33   ;;  %v1794_v33 = vld [vmem:[%s9246_s2 + $0x58] sm:$0xff]  ;;  %1743 = vst.msk [vmem:[#allocation3 + $0x70] sm:$0xff] %vm1728_vm1, %v9316_v8 }
 0x1db   :  { %1836 = vperm.xlu1 %6026, %v1790_v40   ;;  %1744 = vst.msk [vmem:[#allocation3 + $0x78] sm:$0xff] %vm1728_vm1, %v9316_v8 }
 0x1dc   :  { %v7476_v54 = vpop.permute.xlu2 %1453  ;;  %1745 = vst.msk [vmem:[#allocation3 + $0x80] sm:$0xff] %vm1728_vm1, %v9316_v8 }
 0x1dd   :  { %9319 = vst [vmem:[#allocation84_spill] sm:$0xff] %v7476_v54  ;;  %v7480_v14 = vpop.permute.xlu1 %1320  ;;  %1861 = vperm.xlu0 %6025, %v1795_v44   ;;  %v360_v44 = vmul.f32 %v7145_v60, %v6767_v35  ;;  %v520_v54 = vmul.f32 %v7137_v1, %v6871_v25  ;;  %v7515_v35 = vmul.f32 %v7145_v60, %v6809_v11 }
 0x1de   :  { %9320 = vst [vmem:[#allocation85_spill] sm:$0xff] %v7480_v14  ;;  %v1793_v14 = vld [vmem:[%s9246_s2 + $0x50] sm:$0xff]  ;;  %v358_v25 = vmul.f32 %v7145_v60, %v6836_v49  ;;  %v362_v11 = vmul.f32 %v7145_v60, %v6843_v63  ;;  %v526_v49 = vmul.f32 %v7137_v1, %v6907_v22  ;;  %v521_v22 = vmul.f32 %v7137_v1, %v6921_v5 }
 0x1df   :  { %v7489_v40 = vpop.permute.xlu0 %1428  ;;  %1746 = vst.msk [vmem:[#allocation3 + $0x88] sm:$0xff] %vm1728_vm1, %v9316_v8  ;;  %v7549_v63 = vadd.f32 %v520_v54, %v357_v57  ;;  %v524_v54 = vmul.f32 %v7137_v1, %v6941_v52  ;;  %v539_v57 = vadd.f32 %v523_v42, %v360_v44  ;;  %v371_v52 = vmul.f32 %v7145_v60, %v6901_v26 }
 0x1e0   :  { %9321 = vst [vmem:[#allocation86_spill] sm:$0xff] %v7489_v40  ;;  %v1798_v40 = vld [vmem:[%s9246_s2 + $0x78] sm:$0xff]  ;;  %v522_v44 = vmul.f32 %v7137_v1, %v6952_v61  ;;  %v527_v42 = vmul.f32 %v7137_v1, %v6959_v46  ;;  %v5727_v61 = vld [vmem:[%s9246_s2 + $0x90] sm:$0xff]  ;;  %v528_v46 = vmul.f32 %v7137_v1, %v6988_v39 }
 0x1e1   :  { %1747 = vst.msk [vmem:[#allocation3 + $0x90] sm:$0xff] %vm1728_vm1, %v9316_v8 }
 0x1e2   :  { %1856 = vperm.xlu2 %6027, %v1794_v33   ;;  %v359_v33 = vmul.f32 %v7145_v60, %v6858_v20  ;;  %v519_v20 = vmul.f32 %v7137_v1, %v6934_v23  ;;  %v368_v23 = vmul.f32 %v7145_v60, %v6883_v3  ;;  %1748 = vst.msk [vmem:[#allocation3 + $0x98] sm:$0xff] %vm1728_vm1, %v9316_v8 }
 0x1e3   :  { %1851 = vperm.xlu1 %6026, %v1793_v14   ;;  %v366_v3 = vmul.f32 %v7145_v60, %v6894_v31  ;;  %1749 = vst.msk [vmem:[#allocation3 + $0xa0] sm:$0xff] %vm1728_vm1, %v9316_v8  ;;  %v845_v31 = vmul.f32 %v7157_v32, %v7107_v36  ;;  %v7606_v36 = vadd.f32 %v524_v54, %v361_v12  ;;  %v9325_v54 = vld [vmem:[#allocation26_spill] sm:$0xff] }
 0x1e4   :  { %v7533_v4 = vpop.permute.xlu2 %1468  ;;  %1750 = vst.msk [vmem:[#allocation3 + $0xa8] sm:$0xff] %vm1728_vm1, %v9316_v8  ;;  %v538_v12 = vadd.f32 %v522_v44, %v359_v33 }
 0x1e5   :  { %9322 = vst [vmem:[#allocation87_spill] sm:$0xff] %v7533_v4  ;;  %v7545_v14 = vpop.permute.xlu1 %1418  ;;  %1876 = vperm.xlu0 %6025, %v1798_v40   ;;  %v532_v40 = vmul.f32 %v7137_v1, %v6947_v62  ;;  %v369_v62 = vmul.f32 %v7145_v60, %v6912_v34  ;;  %v7585_v4 = vadd.f32 %v526_v49, %v363_v15 }
 0x1e6   :  { %v7593_v26 = vadd.f32 %v529_v28, %v366_v3  ;;  %v7595_v34 = vadd.f32 %v521_v22, %v358_v25  ;;  %v525_v60 = vmul.f32 %v7137_v1, %v6970_v37  ;;  %v1008_v25 = vmul.f32 %v7397_v16, %v7229_v9 }
 0x1e7   :  { %v7570_v5 = vpop.permute.xlu0 %1443  ;;  %v685_v37 = vmul.f32 %v7147_v13, %v6983_v50  ;;  %v530_v49 = vmul.f32 %v7137_v1, %v6977_v6  ;;  %v531_v28 = vmul.f32 %v7137_v1, %v7006_v55  ;;  %v1171_v22 = vmul.f32 %v7401_v10, %v7255_v7 }
 0x1e8   :  { %9323 = vst [vmem:[#allocation88_spill] sm:$0xff] %v7570_v5  ;;  %v535_v5 = vadd.f32 %v519_v20, %v356_v19  ;;  %v7604_v19 = vadd.f32 %v532_v40, %v369_v62  ;;  %v688_v20 = vmul.f32 %v7147_v13, %v7001_v59  ;;  %v541_v39 = vadd.f32 %v525_v60, %v362_v11  ;;  %v9324_v59 = vld [vmem:[#allocation25_spill] sm:$0xff]  ;;  %v7657_v60 = vld [vmem:[#allocation8 + $0x8] ss:$0 sm:$0xff] }
 0x1e9   :  { %v7627_v40 = vadd.f32 %v527_v42, %v7515_v35  ;;  %v691_v6 = vmul.f32 %v7147_v13, %v7021_v0  ;;  %v683_v33 = vmul.f32 %v7147_v13, %v9324_v59  ;;  %v534_v55 = vmul.f32 %v7137_v1, %v9325_v54  ;;  %v7639_v11 = vld [vmem:[#allocation8 + $0x7] ss:$0 sm:$0xff]  ;;  %v7685_v59 = vld [vmem:[#allocation10] ss:$0 sm:$0xff] }
 0x1ea   :  { %1871 = vperm.xlu2 %6027, %v1797_v30   ;;  %v698_v8 = vadd.f32 %v682_v56, %v535_v5  ;;  %v686_v56 = vmul.f32 %v7147_v13, %v7033_v51  ;;  %v1334_v30 = vmul.f32 %v7412_v38, %v7372_v27  ;;  %v5726_v35 = vld [vmem:[%s9246_s2 + $0x88] sm:$0xff]  ;;  %v701_v5 = vadd.f32 %v685_v37, %v538_v12  ;;  %v5725_v51 = vld [vmem:[%s9246_s2 + $0x80] sm:$0xff] }
 0x1eb   :  { %1866 = vperm.xlu1 %6026, %v1796_v2   ;;  %v544_v3 = vadd.f32 %v528_v46, %v7539_v18  ;;  %v7648_v1 = vadd.f32 %v530_v49, %v7519_v58  ;;  %v704_v62 = vadd.f32 %v688_v20, %v541_v39  ;;  %v547_v27 = vadd.f32 %v531_v28, %v368_v23  ;;  %v9326_v18 = vld [vmem:[#allocation27_spill] sm:$0xff]  ;;  %v9330_v28 = vld [vmem:[#allocation29_spill] sm:$0xff] }
 0x1ec   :  { %v7618_v15 = vpop.permute.xlu2 %1483  ;;  %v861_v9 = vadd.f32 %v845_v31, %v698_v8  ;;  %v848_v2 = vmul.f32 %v7157_v32, %v7123_v21  ;;  %v1497_v31 = vmul.f32 %v7639_v11, %v7545_v14  ;;  %v7662_v58 = vadd.f32 %v683_v33, %v7549_v63  ;;  %v9327_v8 = vld [vmem:[#allocation28_spill] sm:$0xff]  ;;  %v5730_v21 = vld [vmem:[%s9246_s2 + $0xa8] sm:$0xff]  ;;  %v9329_v20 = vld [vmem:[#allocation31_spill] sm:$0xff] }
 0x1ed   :  { %v7624_v50 = vpop.permute.xlu1 %1433  ;;  %1943 = vperm.xlu0 %6025, %v5727_v61   ;;  %v7659_v42 = vadd.f32 %v691_v6, %v544_v3  ;;  %v694_v61 = vmul.f32 %v7147_v13, %v9326_v18  ;;  %v684_v23 = vmul.f32 %v7147_v13, %v9327_v8  ;;  %v7671_v14 = vadd.f32 %v686_v56, %v539_v57  ;;  %v9328_v63 = vld [vmem:[#allocation30_spill] sm:$0xff]  ;;  %v9334_v3 = vld [vmem:[#allocation35_spill] sm:$0xff]  ;;  %v9335_v8 = vld [vmem:[#allocation41_spill] sm:$0xff] }
 0x1ee   :  { %v1024_v7 = vadd.f32 %v1008_v25, %v861_v9  ;;  %v550_v25 = vadd.f32 %v534_v55, %v371_v52  ;;  %v1011_v37 = vmul.f32 %v7397_v16, %v7245_v17  ;;  %v697_v49 = vmul.f32 %v7147_v13, %v9328_v63 }
 0x1ef   :  { %v7644_v0 = vpop.permute.xlu0 %1458  ;;  %v687_v12 = vmul.f32 %v7147_v13, %v9329_v20  ;;  %v689_v9 = vmul.f32 %v7147_v13, %v9330_v28  ;;  %v864_v57 = vadd.f32 %v848_v2, %v701_v5  ;;  %v1174_v6 = vmul.f32 %v7401_v10, %v7270_v48  ;;  %v9337_v20 = vld [vmem:[#allocation38_spill] sm:$0xff] }
 0x1f0   :  { %v1187_v44 = vadd.f32 %v1171_v22, %v1024_v7  ;;  %v9331_v22 = vld [vmem:[#allocation32_spill] sm:$0xff]  ;;  %v7688_v55 = vadd.f32 %v694_v61, %v547_v27  ;;  %v700_v56 = vadd.f32 %v684_v23, %v7595_v34  ;;  %v9332_v7 = vld [vmem:[#allocation33_spill] sm:$0xff]  ;;  %v695_v48 = vmul.f32 %v7147_v13, %v9334_v3 }
 0x1f1   :  { %v692_v39 = vmul.f32 %v7147_v13, %v9331_v22  ;;  %v1337_v2 = vmul.f32 %v7412_v38, %v7384_v45  ;;  %v5729_v27 = vld [vmem:[%s9246_s2 + $0xa0] sm:$0xff]  ;;  %v7704_v34 = vadd.f32 %v697_v49, %v550_v25  ;;  %v703_v18 = vadd.f32 %v687_v12, %v7606_v36  ;;  %v5728_v45 = vld [vmem:[%s9246_s2 + $0x98] sm:$0xff] }
 0x1f2   :  { %1938 = vperm.xlu2 %6027, %v5726_v35   ;;  %v1350_v46 = vadd.f32 %v1334_v30, %v1187_v44  ;;  %v847_v30 = vmul.f32 %v7157_v32, %v9332_v7  ;;  %v9333_v35 = vld [vmem:[#allocation34_spill] sm:$0xff]  ;;  %v705_v61 = vadd.f32 %v689_v9, %v7585_v4  ;;  %v851_v23 = vmul.f32 %v7157_v32, %v9335_v8  ;;  %v9336_v36 = vld [vmem:[#allocation36_spill] sm:$0xff]  ;;  %v9345_v8 = vld [vmem:[#allocation45_spill] sm:$0xff] }
 0x1f3   :  { %1933 = vperm.xlu1 %6026, %v5725_v51   ;;  %v690_v5 = vmul.f32 %v7147_v13, %v9333_v35  ;;  %v1027_v51 = vadd.f32 %v1011_v37, %v864_v57  ;;  %v850_v49 = vmul.f32 %v7157_v32, %v9336_v36  ;;  %v853_v12 = vmul.f32 %v7157_v32, %v9337_v20  ;;  %v9340_v57 = vld [vmem:[#allocation42_spill] sm:$0xff] }
 0x1f4   :  { %v1582_v52 = vpop.permute.xlu2 %1581  ;;  %v1513_v17 = vadd.f32 %v1497_v31, %v1350_v46  ;;  %v1500_v46 = vmul.f32 %v7639_v11, %v7624_v50  ;;  %v7719_v63 = vadd.f32 %v847_v30, %v700_v56  ;;  %v7730_v28 = vadd.f32 %v695_v48, %v7604_v19  ;;  %v9338_v50 = vld [vmem:[#allocation57_spill] sm:$0xff]  ;;  %v9342_v30 = vld [vmem:[#allocation60_spill] sm:$0xff]  ;;  %v9346_v36 = vld [vmem:[#allocation46_spill] sm:$0xff] }
 0x1f5   :  { %v1660_v33 = vmul.f32 %v7657_v60, %v1582_v52  ;;  %v1449_v54 = vpop.permute.xlu1 %1448  ;;  %1958 = vperm.xlu0 %6025, %v5730_v21   ;;  %v7714_v21 = vadd.f32 %v692_v39, %v7593_v26  ;;  %v1190_v37 = vadd.f32 %v1174_v6, %v1027_v51  ;;  %v706_v4 = vadd.f32 %v690_v5, %v7627_v40  ;;  %v5733_v26 = vld [vmem:[%s9246_s2 + $0xc0] sm:$0xff]  ;;  %v9347_v20 = vld [vmem:[#allocation62_spill] sm:$0xff] }
 0x1f6   :  { %v1014_v9 = vmul.f32 %v7397_v16, %v9338_v50  ;;  %v9339_v40 = vld [vmem:[#allocation40_spill] sm:$0xff]  ;;  %v849_v6 = vmul.f32 %v7157_v32, %v9340_v57  ;;  %v1177_v19 = vmul.f32 %v7401_v10, %v9342_v30  ;;  %v7744_v48 = vadd.f32 %v850_v49, %v703_v18  ;;  %v9343_v51 = vld [vmem:[#allocation37_spill] sm:$0xff]  ;;  %v9350_v57 = vld [vmem:[#allocation79_spill] sm:$0xff] }
 0x1f7   :  { %v1676_v44 = vadd.f32 %v1660_v33, %v1513_v17  ;;  %v7702_v31 = vpop.permute.xlu0 %1473  ;;  %v1353_v22 = vadd.f32 %v1337_v2, %v1190_v37  ;;  %v846_v52 = vmul.f32 %v7157_v32, %v9339_v40  ;;  %v867_v17 = vadd.f32 %v851_v23, %v704_v62  ;;  %v9341_v33 = vld [vmem:[#allocation43_spill] sm:$0xff]  ;;  %v9349_v40 = vld [vmem:[#allocation48_spill] sm:$0xff] }
 0x1f8   :  { %v854_v56 = vmul.f32 %v7157_v32, %v9341_v33  ;;  %v7748_v2 = vmul.f32 %v7147_v13, %v9343_v51  ;;  %v7750_v62 = vadd.f32 %v853_v12, %v706_v4  ;;  %v852_v23 = vmul.f32 %v7157_v32, %v9345_v8  ;;  %v5732_v18 = vld [vmem:[%s9246_s2 + $0xb8] sm:$0xff] }
 0x1f9   :  { %v1696_v25 = vadd.f32 %v7685_v59, %v1676_v44  ;;  %v1516_v35 = vadd.f32 %v1500_v46, %v1353_v22  ;;  %v9344_v44 = vld [vmem:[#allocation44_spill] sm:$0xff]  ;;  %v1340_v37 = vmul.f32 %v7412_v38, %v7405_v53  ;;  %v862_v13 = vadd.f32 %v846_v52, %v7662_v58  ;;  %v5731_v53 = vld [vmem:[%s9246_s2 + $0xb0] sm:$0xff] }
 0x1fa   :  { %1953 = vperm.xlu2 %6027, %v5729_v27   ;;  %v1009_v27 = vmul.f32 %v7397_v16, %v9344_v44  ;;  %v865_v4 = vadd.f32 %v849_v6, %v7671_v14  ;;  %v857_v49 = vmul.f32 %v7157_v32, %v9346_v36  ;;  %v1172_v12 = vmul.f32 %v7401_v10, %v9347_v20  ;;  %v9351_v33 = vld [vmem:[#allocation59_spill] sm:$0xff]  ;;  %v9355_v36 = vld [vmem:[#allocation52_spill] sm:$0xff] }
 0x1fb   :  { %v1712_v39 = vmax.f32 %v1696_v25, 0.0  ;;  %1948 = vperm.xlu1 %6026, %v5728_v45   ;;  %v1030_v45 = vadd.f32 %v1014_v9, %v867_v17  ;;  %v1503_v9 = vmul.f32 %v7639_v11, %v1449_v54  ;;  %v855_v52 = vmul.f32 %v7157_v32, %v9349_v40 }
 0x1fc   :  { %v1597_v7 = vpop.permute.xlu2 %1596  ;;  %v1025_v58 = vadd.f32 %v1009_v27, %v862_v13  ;;  %v1335_v6 = vmul.f32 %v7412_v38, %v9350_v57  ;;  %v868_v17 = vadd.f32 %v852_v23, %v705_v61  ;;  %v1017_v54 = vmul.f32 %v7397_v16, %v9351_v33  ;;  %v9353_v27 = vld [vmem:[#allocation63_spill] sm:$0xff]  ;;  %v9358_v57 = vld [vmem:[#allocation53_spill] sm:$0xff] }
 0x1fd   :  { %1751 = vst.msk [vmem:[#allocation3 + $0x18] sm:$0xff] %vm1728_vm1, %v1712_v39  ;;  %v1663_v5 = vmul.f32 %v7657_v60, %v1597_v7  ;;  %v1464_v3 = vpop.permute.xlu1 %1463  ;;  %1973 = vperm.xlu0 %6025, %v5733_v26   ;;  %v870_v26 = vadd.f32 %v854_v56, %v7659_v42  ;;  %v1193_v50 = vadd.f32 %v1177_v19, %v1030_v45  ;;  %v9348_v39 = vld [vmem:[#allocation47_spill] sm:$0xff]  ;;  %v9352_v19 = vld [vmem:[#allocation49_spill] sm:$0xff] }
 0x1fe   :  { %v1012_v14 = vmul.f32 %v7397_v16, %v9348_v39  ;;  %v5736_v42 = vld [vmem:[%s9246_s2 + $0xd8] sm:$0xff]  ;;  %v873_v30 = vadd.f32 %v857_v49, %v7688_v55  ;;  %v1498_v51 = vmul.f32 %v7639_v11, %v7430_v43  ;;  %v1180_v8 = vmul.f32 %v7401_v10, %v9353_v27  ;;  %v9361_v27 = vld [vmem:[#allocation66_spill] sm:$0xff] }
 0x1ff   :  { %v1679_v46 = vadd.f32 %v1663_v5, %v1516_v35  ;;  %v7761_v25 = vpop.permute.xlu0 %1488  ;;  %v1356_v56 = vadd.f32 %v1340_v37, %v1193_v50  ;;  %v860_v35 = vmul.f32 %v7157_v32, %v9352_v19  ;;  %v1188_v5 = vadd.f32 %v1172_v12, %v1025_v58 }
 0x200   :  { %v1028_v37 = vadd.f32 %v1012_v14, %v865_v4  ;;  %v871_v55 = vadd.f32 %v855_v52, %v7714_v21  ;;  %v1010_v43 = vmul.f32 %v7397_v16, %v9355_v36  ;;  %v1033_v49 = vadd.f32 %v1017_v54, %v870_v26  ;;  %v9356_v21 = vld [vmem:[#allocation65_spill] sm:$0xff]  ;;  %v5739_v54 = vld [vmem:[%s9246_s2 + $0xf0] sm:$0xff] }
 0x201   :  { %v1699_v22 = vadd.f32 %v7685_v59, %v1679_v46  ;;  %v1519_v61 = vadd.f32 %v1503_v9, %v1356_v56  ;;  %v9354_v46 = vld [vmem:[#allocation50_spill] sm:$0xff]  ;;  %v1351_v13 = vadd.f32 %v1335_v6, %v1188_v5  ;;  %v1343_v20 = vmul.f32 %v7412_v38, %v7422_v47  ;;  %v9357_v47 = vld [vmem:[#allocation51_spill] sm:$0xff]  ;;  %v9359_v56 = vld [vmem:[#allocation61_spill] sm:$0xff] }
 0x202   :  { %1968 = vperm.xlu2 %6027, %v5732_v18   ;;  %v1015_v18 = vmul.f32 %v7397_v16, %v9354_v46  ;;  %v7806_v4 = vadd.f32 %v860_v35, %v7704_v34  ;;  %v1175_v9 = vmul.f32 %v7401_v10, %v9356_v21  ;;  %v5734_v26 = vld [vmem:[%s9246_s2 + $0xc8] sm:$0xff]  ;;  %v7816_v39 = vmul.f32 %v7157_v32, %v9357_v47  ;;  %v9364_v21 = vld [vmem:[#allocation72_spill] sm:$0xff] }
 0x203   :  { %v1715_v7 = vmax.f32 %v1699_v22, 0.0  ;;  %1963 = vperm.xlu1 %6026, %v5731_v53   ;;  %v5735_v53 = vld [vmem:[%s9246_s2 + $0xd0] sm:$0xff]  ;;  %v1514_v22 = vadd.f32 %v1498_v51, %v1351_v13  ;;  %v1196_v14 = vadd.f32 %v1180_v8, %v1033_v49  ;;  %v1506_v40 = vmul.f32 %v7639_v11, %v1464_v3 }
 0x204   :  { %v1612_v44 = vpop.permute.xlu2 %1611  ;;  %v1031_v52 = vadd.f32 %v1015_v18, %v868_v17  ;;  %v1018_v6 = vmul.f32 %v7397_v16, %v9358_v57  ;;  %v1026_v32 = vadd.f32 %v1010_v43, %v7719_v63  ;;  %v1020_v3 = vmul.f32 %v7397_v16, %v9359_v56  ;;  %v9360_v17 = vld [vmem:[#allocation54_spill] sm:$0xff]  ;;  %v9362_v18 = vld [vmem:[#allocation67_spill] sm:$0xff]  ;;  %v9363_v43 = vld [vmem:[#allocation68_spill] sm:$0xff] }
 0x205   :  { %1754 = vst.msk [vmem:[#allocation3 + $0x30] sm:$0xff] %vm1728_vm1, %v1715_v7  ;;  %v1666_v23 = vmul.f32 %v7657_v60, %v1612_v44  ;;  %v1479_v45 = vpop.permute.xlu1 %1478  ;;  %1988 = vperm.xlu0 %6025, %v5736_v42   ;;  %v1338_v42 = vmul.f32 %v7412_v38, %v7415_v41  ;;  %v1359_v7 = vadd.f32 %v1343_v20, %v1196_v14  ;;  %v9368_v56 = vld [vmem:[#allocation64_spill] sm:$0xff] }
 0x206   :  { %v1013_v35 = vmul.f32 %v7397_v16, %v9360_v17  ;;  %v1191_v5 = vadd.f32 %v1175_v9, %v1028_v37  ;;  %v1501_v41 = vmul.f32 %v7639_v11, %v7445_v24  ;;  %v1183_v8 = vmul.f32 %v7401_v10, %v9361_v27  ;;  %v9371_v27 = vld [vmem:[#allocation70_spill] sm:$0xff] }
 0x207   :  { %v1682_v12 = vadd.f32 %v1666_v23, %v1519_v61  ;;  %v1587_v50 = vpop.permute.xlu0 %1586  ;;  %v1522_v63 = vadd.f32 %v1506_v40, %v1359_v7  ;;  %v7839_v46 = vadd.f32 %v1018_v6, %v871_v55  ;;  %v1173_v37 = vmul.f32 %v7401_v10, %v9362_v18  ;;  %v9367_v6 = vld [vmem:[#allocation86_spill] sm:$0xff] }
 0x208   :  { %v1661_v58 = vmul.f32 %v7657_v60, %v1587_v50  ;;  %v1354_v13 = vadd.f32 %v1338_v42, %v1191_v5  ;;  %v1036_v36 = vadd.f32 %v1020_v3, %v873_v30  ;;  %v1178_v49 = vmul.f32 %v7401_v10, %v9363_v43  ;;  %v5737_v30 = vld [vmem:[%s9246_s2 + $0xe0] sm:$0xff]  ;;  %v9372_v43 = vld [vmem:[#allocation71_spill] sm:$0xff] }
 0x209   :  { %v1702_v34 = vadd.f32 %v7685_v59, %v1682_v12  ;;  %v1346_v20 = vmul.f32 %v7412_v38, %v7437_v29  ;;  %v1029_v55 = vadd.f32 %v1013_v35, %v7744_v48  ;;  %v1336_v9 = vmul.f32 %v7412_v38, %v9364_v21  ;;  %v9370_v5 = vld [vmem:[#allocation84_spill] sm:$0xff] }
 0x20a   :  { %1983 = vperm.xlu2 %6027, %v5735_v53   ;;  %v1677_v33 = vadd.f32 %v1661_v58, %v1514_v22  ;;  %v5738_v53 = vld [vmem:[%s9246_s2 + $0xe8] sm:$0xff]  ;;  %v1517_v22 = vadd.f32 %v1501_v41, %v1354_v13  ;;  %v1199_v47 = vadd.f32 %v1183_v8, %v1036_v36  ;;  %v1509_v14 = vmul.f32 %v7639_v11, %v1479_v45 }
 0x20b   :  { %v1718_v19 = vmax.f32 %v1702_v34, 0.0  ;;  %1978 = vperm.xlu1 %6026, %v5734_v26   ;;  %v9365_v26 = vld [vmem:[#allocation55_spill] sm:$0xff]  ;;  %v1189_v40 = vadd.f32 %v1173_v37, %v1026_v32  ;;  %v9366_v34 = vld [vmem:[#allocation81_spill] sm:$0xff]  ;;  %v1499_v42 = vmul.f32 %v7639_v11, %v9367_v6  ;;  %v1023_v3 = vmul.f32 %v7397_v16, %v9368_v56  ;;  %v9376_v6 = vld [vmem:[#allocation88_spill] sm:$0xff] }
 0x20c   :  { %v1627_v51 = vpop.permute.xlu2 %1626  ;;  %v1697_v44 = vadd.f32 %v7685_v59, %v1677_v33  ;;  %v7860_v58 = vmul.f32 %v7397_v16, %v9365_v26  ;;  %v1341_v57 = vmul.f32 %v7412_v38, %v9366_v34  ;;  %v1194_v7 = vadd.f32 %v1178_v49, %v1031_v52  ;;  %v9369_v32 = vld [vmem:[#allocation69_spill] sm:$0xff]  ;;  %v9375_v34 = vld [vmem:[#allocation82_spill] sm:$0xff] }
 0x20d   :  { %1757 = vst.msk [vmem:[#allocation3 + $0x48] sm:$0xff] %vm1728_vm1, %v1718_v19  ;;  %v1669_v61 = vmul.f32 %v7657_v60, %v1627_v51  ;;  %v1494_v23 = vpop.permute.xlu1 %1493  ;;  %2003 = vperm.xlu0 %6025, %v5739_v54   ;;  %v5774_v54 = vld [vmem:[%s9246_s2 + $0x108] sm:$0xff]  ;;  %v1362_v45 = vadd.f32 %v1346_v20, %v1199_v47  ;;  %v1186_v17 = vmul.f32 %v7401_v10, %v9369_v32  ;;  %v9373_v20 = vld [vmem:[#allocation83_spill] sm:$0xff]  ;;  %v5777_v56 = vld [vmem:[%s9246_s2 + $0x120] sm:$0xff] }
 0x20e   :  { %v1713_v24 = vmax.f32 %v1697_v44, 0.0  ;;  %v1352_v35 = vadd.f32 %v1336_v9, %v1189_v40  ;;  %v1504_v41 = vmul.f32 %v7639_v11, %v9370_v5  ;;  %v1176_v8 = vmul.f32 %v7401_v10, %v9371_v27  ;;  %v9374_v9 = vld [vmem:[#allocation75_spill] sm:$0xff] }
 0x20f   :  { %v1685_v12 = vadd.f32 %v1669_v61, %v1522_v63  ;;  %v1602_v50 = vpop.permute.xlu0 %1601  ;;  %v1525_v63 = vadd.f32 %v1509_v14, %v1362_v45  ;;  %v1357_v18 = vadd.f32 %v1341_v57, %v1194_v7  ;;  %v1039_v36 = vadd.f32 %v1023_v3, %v7806_v4  ;;  %v5740_v4 = vld [vmem:[%s9246_s2 + $0xf8] sm:$0xff] }
 0x210   :  { %1752 = vst.msk [vmem:[#allocation3 + $0x20] sm:$0xff] %vm1728_vm1, %v1713_v24  ;;  %v1664_v29 = vmul.f32 %v7657_v60, %v1602_v50  ;;  %v1515_v37 = vadd.f32 %v1499_v42, %v1352_v35  ;;  %v1181_v49 = vmul.f32 %v7401_v10, %v9372_v43  ;;  %v5773_v50 = vld [vmem:[%s9246_s2 + $0x100] sm:$0xff]  ;;  %v1192_v14 = vadd.f32 %v1176_v8, %v1029_v55  ;;  %v9378_v32 = vld [vmem:[#allocation87_spill] sm:$0xff] }
 0x211   :  { %v1705_v48 = vadd.f32 %v7685_v59, %v1685_v12  ;;  %v1349_v12 = vmul.f32 %v7412_v38, %v9373_v20  ;;  %v1202_v47 = vadd.f32 %v1186_v17, %v1039_v36  ;;  %v1344_v57 = vmul.f32 %v7412_v38, %v9375_v34  ;;  %v9377_v3 = vld [vmem:[#allocation56_spill] sm:$0xff] }
 0x212   :  { %1998 = vperm.xlu2 %6027, %v5738_v53   ;;  %v1680_v33 = vadd.f32 %v1664_v29, %v1517_v22  ;;  %v1339_v22 = vmul.f32 %v7412_v38, %v9374_v9  ;;  %v1502_v42 = vmul.f32 %v7639_v11, %v9376_v6  ;;  %v1016_v55 = vmul.f32 %v7397_v16, %v9377_v3  ;;  %v9382_v9 = vld [vmem:[#allocation39_spill] sm:$0xff] }
 0x213   :  { %v1721_v19 = vmax.f32 %v1705_v48, 0.0  ;;  %1993 = vperm.xlu1 %6026, %v5737_v30   ;;  %v1520_v30 = vadd.f32 %v1504_v41, %v1357_v18  ;;  %v1512_v48 = vmul.f32 %v7639_v11, %v1494_v23  ;;  %v1197_v23 = vadd.f32 %v1181_v49, %v7839_v46  ;;  %v5776_v49 = vld [vmem:[%s9246_s2 + $0x118] sm:$0xff] }
 0x214   :  { %v1642_v51 = vpop.permute.xlu2 %1641  ;;  %v1700_v44 = vadd.f32 %v7685_v59, %v1680_v33  ;;  %v1365_v7 = vadd.f32 %v1349_v12, %v1202_v47  ;;  %v1507_v17 = vmul.f32 %v7639_v11, %v9378_v32  ;;  %v9381_v12 = vld [vmem:[#allocation77_spill] sm:$0xff]  ;;  %v5780_v34 = vld [vmem:[%s9246_s2 + $0x138] sm:$0xff] }
 0x215   :  { %1760 = vst.msk [vmem:[#allocation3 + $0x60] sm:$0xff] %vm1728_vm1, %v1721_v19  ;;  %v1672_v52 = vmul.f32 %v7657_v60, %v1642_v51  ;;  %v1592_v61 = vpop.permute.xlu1 %1591  ;;  %2297 = vperm.xlu0 %6025, %v5774_v54   ;;  %v1355_v19 = vadd.f32 %v1339_v22, %v1192_v14  ;;  %v9379_v51 = vld [vmem:[#allocation73_spill] sm:$0xff]  ;;  %v1505_v14 = vmul.f32 %v7639_v11, %v7644_v0 }
 0x216   :  { %v1662_v13 = vmul.f32 %v7657_v60, %v1592_v61  ;;  %v1716_v24 = vmax.f32 %v1700_v44, 0.0  ;;  %v1179_v44 = vmul.f32 %v7401_v10, %v9379_v51  ;;  %v1528_v27 = vadd.f32 %v1512_v48, %v1365_v7  ;;  %v9385_v7 = vld [vmem:[#allocation76_spill] sm:$0xff] }
 0x217   :  { %v1688_v53 = vadd.f32 %v1672_v52, %v1525_v63  ;;  %v1617_v21 = vpop.permute.xlu0 %1616  ;;  %v1360_v63 = vadd.f32 %v1344_v57, %v1197_v23  ;;  %v1518_v52 = vadd.f32 %v1502_v42, %v1355_v19  ;;  %v9384_v57 = vld [vmem:[#allocation58_spill] sm:$0xff]  ;;  %v1510_v0 = vmul.f32 %v7639_v11, %v7618_v15 }
 0x218   :  { %v1678_v29 = vadd.f32 %v1662_v13, %v1515_v37  ;;  %1755 = vst.msk [vmem:[#allocation3 + $0x38] sm:$0xff] %vm1728_vm1, %v1716_v24  ;;  %v1667_v26 = vmul.f32 %v7657_v60, %v1617_v21  ;;  %v874_v37 = vadd.f32 %v7816_v39, %v7730_v28  ;;  %v1032_v13 = vadd.f32 %v1016_v55, %v7750_v62  ;;  %v9380_v24 = vld [vmem:[#allocation74_spill] sm:$0xff]  ;;  %v6112_v39 = vld [vmem:[#allocation8 + $0x3] ss:$0 sm:$0xff] }
 0x219   :  { %v1708_v40 = vadd.f32 %v7685_v59, %v1688_v53  ;;  %v1184_v36 = vmul.f32 %v7401_v10, %v9380_v24  ;;  %v1342_v53 = vmul.f32 %v7412_v38, %v9381_v12  ;;  %v5775_v28 = vld [vmem:[%s9246_s2 + $0x110] sm:$0xff]  ;;  %v856_v22 = vmul.f32 %v6112_v39, %v9382_v9 }
 0x21a   :  { %v1698_v33 = vadd.f32 %v7685_v59, %v1678_v29  ;;  %2292 = vperm.xlu2 %6027, %v5773_v50   ;;  %v1683_v54 = vadd.f32 %v1667_v26, %v1520_v30  ;;  %v1523_v50 = vadd.f32 %v1507_v17, %v1360_v63  ;;  %v1037_v30 = vadd.f32 %v7860_v58, %v874_v37  ;;  %v9383_v26 = vld [vmem:[#allocation85_spill] sm:$0xff]  ;;  %v5779_v17 = vld [vmem:[%s9246_s2 + $0x130] sm:$0xff] }
 0x21b   :  { %v1724_v45 = vmax.f32 %v1708_v40, 0.0  ;;  %2008 = vperm.xlu1 %6026, %v5740_v4   ;;  %v1195_v29 = vadd.f32 %v1179_v44, %v1032_v13  ;;  %v1347_v47 = vmul.f32 %v7412_v38, %v9383_v26  ;;  %v709_v58 = vadd.f32 %v7748_v2, %v7648_v1  ;;  %v5778_v44 = vld [vmem:[%s9246_s2 + $0x128] sm:$0xff]  ;;  %v5784_v26 = vld [vmem:[%s9246_s2 + $0x158] sm:$0xff] }
 0x21c   :  { %v1714_v35 = vmax.f32 %v1698_v33, 0.0  ;;  %v1657_v5 = vpop.permute.xlu2 %1656  ;;  %v1703_v41 = vadd.f32 %v7685_v59, %v1683_v54  ;;  %v1019_v6 = vmul.f32 %v7397_v16, %v9384_v57  ;;  %v1200_v42 = vadd.f32 %v1184_v36, %v1037_v30 }
 0x21d   :  { %1763 = vst.msk [vmem:[#allocation3 + $0x78] sm:$0xff] %vm1728_vm1, %v1724_v45  ;;  %v1675_v8 = vmul.f32 %v7657_v60, %v1657_v5  ;;  %v1607_v46 = vpop.permute.xlu1 %1606  ;;  %2312 = vperm.xlu0 %6025, %v5777_v56   ;;  %v1358_v54 = vadd.f32 %v1342_v53, %v1195_v29  ;;  %v872_v23 = vadd.f32 %v856_v22, %v709_v58  ;;  %v9386_v5 = vld [vmem:[#allocation78_spill] sm:$0xff]  ;;  %v5781_v53 = vld [vmem:[%s9246_s2 + $0x140] sm:$0xff] }
 0x21e   :  { %1753 = vst.msk [vmem:[#allocation3 + $0x28] sm:$0xff] %vm1728_vm1, %v1714_v35  ;;  %v1665_v61 = vmul.f32 %v7657_v60, %v1607_v46  ;;  %v1719_v18 = vmax.f32 %v1703_v41, 0.0  ;;  %v1182_v45 = vmul.f32 %v7401_v10, %v9385_v7  ;;  %v1363_v16 = vadd.f32 %v1347_v47, %v1200_v42  ;;  %v9387_v22 = vld [vmem:[#allocation80_spill] sm:$0xff]  ;;  %v2030_v58 = vld [vmem:[#allocation11 + $0x30] sm:$0xff] }
 0x21f   :  { %v1691_v43 = vadd.f32 %v1675_v8, %v1528_v27  ;;  %v1632_v20 = vpop.permute.xlu0 %1631  ;;  %v1521_v2 = vadd.f32 %v1505_v14, %v1358_v54  ;;  %v1035_v32 = vadd.f32 %v1019_v6, %v872_v23  ;;  %v1345_v10 = vmul.f32 %v7412_v38, %v9386_v5  ;;  %v5783_v38 = vld [vmem:[%s9246_s2 + $0x150] sm:$0xff]  ;;  %v5805_v14 = vld [vmem:[%s9246_s2 + $0x180] sm:$0xff]  ;;  %v5808_v42 = vld [vmem:[%s9246_s2 + $0x198] sm:$0xff] }
 0x220   :  { %v1681_v21 = vadd.f32 %v1665_v61, %v1518_v52  ;;  %1758 = vst.msk [vmem:[#allocation3 + $0x50] sm:$0xff] %vm1728_vm1, %v1719_v18  ;;  %v1670_v62 = vmul.f32 %v7657_v60, %v1632_v20  ;;  %v1526_v41 = vadd.f32 %v1510_v0, %v1363_v16  ;;  %v1508_v46 = vmul.f32 %v7639_v11, %v7702_v31  ;;  %v5787_v6 = vld [vmem:[%s9246_s2 + $0x170] sm:$0xff]  ;;  %v5806_v7 = vld [vmem:[%s9246_s2 + $0x188] sm:$0xff]  ;;  %v1896_v5 = vld [vmem:[#allocation11 + $0x8] sm:$0xff] }
 0x221   :  { %v1711_v4 = vadd.f32 %v7685_v59, %v1691_v43  ;;  %v1198_v8 = vadd.f32 %v1182_v45, %v1035_v32  ;;  %v5838_v45 = vld [vmem:[%s9246_s2 + $0x208] sm:$0xff] }
 0x222   :  { %v1701_v48 = vadd.f32 %v7685_v59, %v1681_v21  ;;  %2307 = vperm.xlu2 %6027, %v5776_v49   ;;  %v1686_v40 = vadd.f32 %v1670_v62, %v1523_v50  ;;  %v5782_v49 = vld [vmem:[%s9246_s2 + $0x148] sm:$0xff]  ;;  %v1511_v50 = vmul.f32 %v7639_v11, %v7761_v25  ;;  %v5785_v11 = vld [vmem:[%s9246_s2 + $0x160] sm:$0xff] }
 0x223   :  { %v1727_v33 = vmax.f32 %v1711_v4, 0.0  ;;  %2302 = vperm.xlu1 %6026, %v5775_v28   ;;  %v1361_v61 = vadd.f32 %v1345_v10, %v1198_v8  ;;  %v5786_v28 = vld [vmem:[%s9246_s2 + $0x168] sm:$0xff]  ;;  %v5839_v8 = vld [vmem:[%s9246_s2 + $0x210] sm:$0xff] }
 0x224   :  { %v1717_v56 = vmax.f32 %v1701_v48, 0.0  ;;  %v7952_v3 = vpop.permute.xlu2 %1811  ;;  %v1706_v55 = vadd.f32 %v7685_v59, %v1686_v40  ;;  %v1527_v30 = vadd.f32 %v1511_v50, %v9387_v22  ;;  %v1898_v32 = vld [vmem:[#allocation11 + $0x18] sm:$0xff] }
 0x225   :  { %1766 = vst.msk [vmem:[#allocation3 + $0x90] sm:$0xff] %vm1728_vm1, %v1727_v33  ;;  %v1622_v1 = vpop.permute.xlu1 %1621  ;;  %2327 = vperm.xlu0 %6025, %v5780_v34   ;;  %v1524_v36 = vadd.f32 %v1508_v46, %v1361_v61  ;;  %v2031_v34 = vld [vmem:[#allocation11 + $0x38] sm:$0xff]  ;;  %v2029_v33 = vld [vmem:[#allocation11 + $0x28] sm:$0xff] }
 0x226   :  { %1756 = vst.msk [vmem:[#allocation3 + $0x40] sm:$0xff] %vm1728_vm1, %v1717_v56  ;;  %v1668_v19 = vmul.f32 %v7657_v60, %v1622_v1  ;;  %v1722_v15 = vmax.f32 %v1706_v55, 0.0  ;;  %2092 = vmatpush.msra.mxu0 %v2031_v34  ;;  %5999 = vmatpush.msra.mxu1 %v2031_v34  ;;  %v2028_v56 = vld [vmem:[#allocation11 + $0x20] sm:$0xff]  ;;  %v5842_v46 = vld [vmem:[%s9246_s2 + $0x228] sm:$0xff] }
 0x227   :  { %v1647_v35 = vpop.permute.xlu0 %1646  ;;  %6000 = vmatpush.msra.mxu2 %v2031_v34  ;;  %6001 = vmatpush.msra.mxu3 %v2031_v34  ;;  %v5807_v55 = vld [vmem:[%s9246_s2 + $0x190] sm:$0xff] }
 0x228   :  { %v1684_v51 = vadd.f32 %v1668_v19, %v1521_v2  ;;  %1761 = vst.msk [vmem:[#allocation3 + $0x68] sm:$0xff] %vm1728_vm1, %v1722_v15  ;;  %v1673_v27 = vmul.f32 %v7657_v60, %v1647_v35  ;;  %2093 = vmatpush.msra.mxu0 %v2030_v58  ;;  %6002 = vmatpush.msra.mxu1 %v2030_v58  ;;  %v5809_v2 = vld [vmem:[%s9246_s2 + $0x1a0] sm:$0xff]  ;;  %v5810_v35 = vld [vmem:[%s9246_s2 + $0x1a8] sm:$0xff]  ;;  %v1767_v34 = vld [vmem:[#allocation3 + $0x6] sm:$0xff] }
 0x229   :  { %6003 = vmatpush.msra.mxu2 %v2030_v58  ;;  %6004 = vmatpush.msra.mxu3 %v2030_v58  ;;  %v5837_v15 = vld [vmem:[%s9246_s2 + $0x200] sm:$0xff]  ;;  %v2390_v50 = vld [vmem:[#allocation11 + $0x58] sm:$0xff]  ;;  %v5816_v58 = vld [vmem:[%s9246_s2 + $0x1d8] sm:$0xff] }
 0x22a   :  { %v1704_v63 = vadd.f32 %v7685_v59, %v1684_v51  ;;  %2322 = vperm.xlu2 %6027, %v5779_v17   ;;  %v1689_v52 = vadd.f32 %v1673_v27, %v1526_v41  ;;  %2094 = vmatpush.msra.mxu0 %v2029_v33  ;;  %v1897_v17 = vld [vmem:[#allocation11 + $0x10] sm:$0xff]  ;;  %v1895_v51 = vld [vmem:[#allocation11] sm:$0xff] }
 0x22b   :  { %2317 = vperm.xlu1 %6026, %v5778_v44   ;;  %6005 = vmatpush.msra.mxu1 %v2029_v33  ;;  %v5840_v44 = vld [vmem:[%s9246_s2 + $0x218] sm:$0xff] }
 0x22c   :  { %v1720_v18 = vmax.f32 %v1704_v63, 0.0  ;;  %v7976_v37 = vpop.permute.xlu2 %1826  ;;  %v1709_v13 = vadd.f32 %v7685_v59, %v1689_v52  ;;  %6006 = vmatpush.msra.mxu2 %v2029_v33  ;;  %6007 = vmatpush.msra.mxu3 %v2029_v33 }
 0x22d   :  { %v1637_v24 = vpop.permute.xlu1 %1636  ;;  %2342 = vperm.xlu0 %6025, %v5783_v38   ;;  %2095 = vmatpush.msra.mxu0 %v2028_v56  ;;  %v5811_v38 = vld [vmem:[%s9246_s2 + $0x1b0] sm:$0xff] }
 0x22e   :  { %1759 = vst.msk [vmem:[#allocation3 + $0x58] sm:$0xff] %vm1728_vm1, %v1720_v18  ;;  %v1671_v31 = vmul.f32 %v7657_v60, %v1637_v24  ;;  %v1725_v43 = vmax.f32 %v1709_v13, 0.0  ;;  %6008 = vmatpush.msra.mxu1 %v2028_v56  ;;  %6009 = vmatpush.msra.mxu2 %v2028_v56  ;;  %v5841_v18 = vld [vmem:[%s9246_s2 + $0x220] sm:$0xff]  ;;  %v1899_v24 = vld [vmem:[#allocation3 + $0x8] sm:$0xff] }
 0x22f   :  { %v7984_v20 = vpop.permute.xlu0 %1801  ;;  %6010 = vmatpush.msra.mxu3 %v2028_v56  ;;  %v5813_v13 = vld [vmem:[%s9246_s2 + $0x1c0] sm:$0xff] }
 0x230   :  { %v1687_v12 = vadd.f32 %v1671_v31, %v1524_v36  ;;  %1764 = vst.msk [vmem:[#allocation3 + $0x80] sm:$0xff] %vm1728_vm1, %v1725_v43  ;;  %2205 = vmatpush.msrb.mxu1 %v1898_v32  ;;  %2451 = vmatpush.msrb.mxu2 %v2390_v50  ;;  %v8137_v32 = vld [vmem:[#allocation3 + $0x20] sm:$0xff] }
 0x232   :  { %v1707_v21 = vadd.f32 %v7685_v59, %v1687_v12  ;;  %2337 = vperm.xlu2 %6027, %v5782_v49   ;;  %2206 = vmatpush.msrb.mxu1 %v1897_v17  ;;  %v5843_v49 = vld [vmem:[%s9246_s2 + $0x230] sm:$0xff] }
 0x233   :  { %2332 = vperm.xlu1 %6026, %v5781_v53   ;;  %v5812_v53 = vld [vmem:[%s9246_s2 + $0x1b8] sm:$0xff] }
 0x234   :  { %v1723_v62 = vmax.f32 %v1707_v21, 0.0  ;;  %v7996_v39 = vpop.permute.xlu2 %1841  ;;  %2207 = vmatpush.msrb.mxu1 %v1896_v5  ;;  %v5845_v21 = vld [vmem:[%s9246_s2 + $0x240] sm:$0xff] }
 0x235   :  { %v1652_v9 = vpop.permute.xlu1 %1651  ;;  %2357 = vperm.xlu0 %6025, %v5786_v28   ;;  %v1900_v28 = vld [vmem:[#allocation3 + $0x10] sm:$0xff] }
 0x236   :  { %1762 = vst.msk [vmem:[#allocation3 + $0x70] sm:$0xff] %vm1728_vm1, %v1723_v62  ;;  %v1674_v29 = vmul.f32 %v7657_v60, %v1652_v9  ;;  %2208 = vmatpush.msrb.mxu1 %v1895_v51  ;;  %v2389_v62 = vld [vmem:[#allocation11 + $0x50] sm:$0xff] }
 0x237   :  { %v8004_v25 = vpop.permute.xlu0 %1816  ;;  %2452 = vmatpush.msrb.mxu2 %v2389_v62  ;;  %v5817_v5 = vld [vmem:[%s9246_s2 + $0x1e0] sm:$0xff]  ;;  %v8146_v51 = vld [vmem:[#allocation3 + $0x78] sm:$0xff] }
 0x238   :  { %v1690_v4 = vadd.f32 %v1674_v29, %v1527_v30 }
 0x23a   :  { %v1710_v47 = vadd.f32 %v7685_v59, %v1690_v4  ;;  %2352 = vperm.xlu2 %6027, %v5785_v11   ;;  %v5788_v59 = vld [vmem:[%s9246_s2 + $0x178] sm:$0xff] }
 0x23b   :  { %2347 = vperm.xlu1 %6026, %v5784_v26   ;;  %v2388_v4 = vld [vmem:[#allocation11 + $0x48] sm:$0xff]  ;;  %v5814_v26 = vld [vmem:[%s9246_s2 + $0x1c8] sm:$0xff] }
 0x23c   :  { %v1726_v60 = vmax.f32 %v1710_v47, 0.0  ;;  %v8013_v48 = vpop.permute.xlu2 %1856  ;;  %2453 = vmatpush.msrb.mxu2 %v2388_v4 }
 0x23d   :  { %v8015_v40 = vpop.permute.xlu1 %1806  ;;  %2554 = vperm.xlu0 %6025, %v5805_v14   ;;  %v8099_v22 = vld [vmem:[#allocation3 + $0x70] sm:$0xff]  ;;  %v5844_v14 = vld [vmem:[%s9246_s2 + $0x238] sm:$0xff] }
 0x23e   :  { %1765 = vst.msk [vmem:[#allocation3 + $0x88] sm:$0xff] %vm1728_vm1, %v1726_v60  ;;  %v2387_v60 = vld [vmem:[#allocation11 + $0x40] sm:$0xff] }
 0x23f   :  { %v8021_v57 = vpop.permute.xlu0 %1831  ;;  %2454 = vmatpush.msrb.mxu2 %v2387_v60 }
 0x242   :  { %2367 = vperm.xlu2 %6027, %v5788_v59  }
 0x243   :  { %2362 = vperm.xlu1 %6026, %v5787_v6   ;;  %v1879_v6 = vmul.f32 %v7984_v20, %v1767_v34  ;;  %v5815_v20 = vld [vmem:[%s9246_s2 + $0x1d0] sm:$0xff] }
 0x244   :  { %v8029_v54 = vpop.permute.xlu2 %1871  ;;  %v2652_v34 = vld [vmem:[#allocation11 + $0x78] sm:$0xff] }
 0x245   :  { %v8031_v0 = vpop.permute.xlu1 %1821  ;;  %2569 = vperm.xlu0 %6025, %v5808_v42   ;;  %v8116_v42 = vld [vmem:[#allocation3 + $0x18] sm:$0xff]  ;;  %2713 = vmatpush.msrb.mxu3 %v2652_v34 }
 0x246   :  { %v5870_v34 = vld [vmem:[%s9246_s2 + $0x288] sm:$0xff] }
 0x247   :  { %v8036_v23 = vpop.permute.xlu0 %1846 }
 0x24a   :  { %2564 = vperm.xlu2 %6027, %v5807_v55   ;;  %v5846_v55 = vld [vmem:[%s9246_s2 + $0x248] sm:$0xff] }
 0x24b   :  { %2559 = vperm.xlu1 %6026, %v5806_v7  }
 0x24c   :  { %v1939_v1 = vpop.permute.xlu2 %1938 }
 0x24d   :  { %v8044_v16 = vpop.permute.xlu1 %1836  ;;  %2821 = vperm.xlu0 %6025, %v5838_v45   ;;  %v2012_v11 = vmul.f32 %v1939_v1, %v1900_v28  ;;  %v1768_v45 = vld [vmem:[#allocation3 + $0xe] sm:$0xff] }
 0x24e   :  { %v5848_v1 = vld [vmem:[%s9246_s2 + $0x258] sm:$0xff] }
 0x24f   :  { %v8049_v19 = vpop.permute.xlu0 %1861 }
 0x252   :  { %2574 = vperm.xlu2 %6027, %v5809_v2  }
 0x253   :  { %2816 = vperm.xlu1 %6026, %v5837_v15   ;;  %v1880_v15 = vmul.f32 %v8015_v40, %v1768_v45  ;;  %v5847_v40 = vld [vmem:[%s9246_s2 + $0x250] sm:$0xff] }
 0x254   :  { %v8057_v10 = vpop.permute.xlu2 %1953 }
 0x255   :  { %v8059_v41 = vpop.permute.xlu1 %1851  ;;  %2579 = vperm.xlu0 %6025, %v5810_v35  }
 0x257   :  { %v8064_v27 = vpop.permute.xlu0 %1876 }
 0x25a   :  { %2831 = vperm.xlu2 %6027, %v5840_v44  }
 0x25b   :  { %2826 = vperm.xlu1 %6026, %v5839_v8  }
 0x25c   :  { %v8072_v63 = vpop.permute.xlu2 %1968 }
 0x25d   :  { %v8074_v52 = vpop.permute.xlu1 %1866  ;;  %2841 = vperm.xlu0 %6025, %v5842_v46   ;;  %v5819_v46 = vld [vmem:[%s9246_s2 + $0x1f0] sm:$0xff] }
 0x25f   :  { %v1944_v61 = vpop.permute.xlu0 %1943 }
 0x260   :  { %v2013_v56 = vmul.f32 %v1944_v61, %v8116_v42 }
 0x262   :  { %2584 = vperm.xlu2 %6027, %v5811_v38   ;;  %v8157_v38 = vld [vmem:[#allocation3 + $0x16] sm:$0xff] }
 0x263   :  { %2836 = vperm.xlu1 %6026, %v5841_v18   ;;  %v1881_v18 = vmul.f32 %v7952_v3, %v8157_v38  ;;  %v5818_v3 = vld [vmem:[%s9246_s2 + $0x1e8] sm:$0xff] }
 0x264   :  { %v8085_v36 = vpop.permute.xlu2 %1983 }
 0x265   :  { %v1934_v31 = vpop.permute.xlu1 %1933  ;;  %2594 = vperm.xlu0 %6025, %v5813_v13   ;;  %v8163_v13 = vld [vmem:[#allocation3 + $0x28] sm:$0xff] }
 0x266   :  { %v2011_v43 = vmul.f32 %v1934_v31, %v1899_v24  ;;  %v2258_v24 = vld [vmem:[#allocation3 + $0xa] sm:$0xff] }
 0x267   :  { %v8090_v12 = vpop.permute.xlu0 %1958 }
 0x268   :  { %5741 = vmatmul.msk.f32.vlgmr.msra.gmra.mxu0 %vm1728_vm1, %v2011_v43  ;;  %v2015_v43 = vmul.f32 %v8057_v10, %v8163_v13  ;;  %v5851_v10 = vld [vmem:[%s9246_s2 + $0x270] sm:$0xff] }
 0x26a   :  { %2846 = vperm.xlu2 %6027, %v5843_v49   ;;  %v5849_v49 = vld [vmem:[%s9246_s2 + $0x260] sm:$0xff] }
 0x26b   :  { %2589 = vperm.xlu1 %6026, %v5812_v53  }
 0x26c   :  { %v1999_v9 = vpop.permute.xlu2 %1998 }
 0x26d   :  { %v2024_v30 = vmul.f32 %v1999_v9, %v8099_v22  ;;  %v1949_v29 = vpop.permute.xlu1 %1948  ;;  %2856 = vperm.xlu0 %6025, %v5845_v21   ;;  %v8181_v21 = vld [vmem:[#allocation3 + $0x1e] sm:$0xff]  ;;  %v8187_v9 = vld [vmem:[#allocation3 + $0x30] sm:$0xff] }
 0x26e   :  { %v2014_v35 = vmul.f32 %v1949_v29, %v8137_v32  ;;  %v1882_v62 = vmul.f32 %v8004_v25, %v8181_v21  ;;  %v8189_v29 = vld [vmem:[#allocation3 + $0x80] sm:$0xff] }
 0x26f   :  { %5754 = vmatmul.msk.f32.vlgmr.msra.gmra.mxu1 %vm1728_vm1, %v2024_v30  ;;  %v8106_v47 = vpop.permute.xlu0 %1973 }
 0x270   :  { %5742 = vmatmul.msk.f32.gmra.mxu0 %vm1728_vm1, %v2012_v11  ;;  %v2016_v11 = vmul.f32 %v8090_v12, %v8187_v9  ;;  %v5850_v12 = vld [vmem:[%s9246_s2 + $0x268] sm:$0xff] }
 0x272   :  { %2599 = vperm.xlu2 %6027, %v5814_v26   ;;  %v2259_v26 = vld [vmem:[#allocation3 + $0x12] sm:$0xff] }
 0x273   :  { %2851 = vperm.xlu1 %6026, %v5844_v14   ;;  %v5820_v14 = vld [vmem:[%s9246_s2 + $0x1f8] sm:$0xff] }
 0x274   :  { %v2293_v59 = vpop.permute.xlu2 %2292 }
 0x275   :  { %v8118_v33 = vpop.permute.xlu1 %1963  ;;  %2609 = vperm.xlu0 %6025, %v5816_v58   ;;  %v2370_v50 = vmul.f32 %v2293_v59, %v2258_v24  ;;  %v5933_v58 = vld [vmem:[%s9246_s2 + $0x380] sm:$0xff] }
 0x276   :  { %v2651_v59 = vld [vmem:[#allocation11 + $0x70] sm:$0xff] }
 0x277   :  { %5757 = vmatmul.msk.f32.vlgmr.msrb.gmra.mxu1 %vm1728_vm1, %v1879_v6  ;;  %v8125_v7 = vpop.permute.xlu0 %1988  ;;  %v8209_v6 = vld [vmem:[#allocation3 + $0x26] sm:$0xff]  ;;  %2714 = vmatpush.msrb.mxu3 %v2651_v59  ;;  %v5934_v59 = vld [vmem:[%s9246_s2 + $0x388] sm:$0xff] }
 0x278   :  { %5743 = vmatmul.msk.f32.gmra.mxu0 %vm1728_vm1, %v2013_v56 }
 0x27a   :  { %2861 = vperm.xlu2 %6027, %v5846_v55   ;;  %v1883_v55 = vmul.f32 %v8031_v0, %v8209_v6 }
 0x27b   :  { %2604 = vperm.xlu1 %6026, %v5815_v20   ;;  %v8215_v20 = vld [vmem:[#allocation3 + $0x38] sm:$0xff] }
 0x27c   :  { %v8134_v2 = vpop.permute.xlu2 %2307 }
 0x27d   :  { %v8139_v17 = vpop.permute.xlu1 %1978  ;;  %2871 = vperm.xlu0 %6025, %v5848_v1   ;;  %v2017_v1 = vmul.f32 %v8118_v33, %v8215_v20  ;;  %v5901_v33 = vld [vmem:[%s9246_s2 + $0x300] sm:$0xff] }
 0x27f   :  { %5758 = vmatmul.msk.f32.gmra.mxu1 %vm1728_vm1, %v1880_v15  ;;  %v2004_v44 = vpop.permute.xlu0 %2003  ;;  %v2650_v15 = vld [vmem:[#allocation11 + $0x68] sm:$0xff] }
 0x280   :  { %5744 = vmatmul.msk.f32.gmra.mxu0 %vm1728_vm1, %v2014_v35  ;;  %v2025_v8 = vmul.f32 %v2004_v44, %v8146_v51  ;;  %v8219_v35 = vld [vmem:[#allocation3 + $0x1a] sm:$0xff]  ;;  %2715 = vmatpush.msrb.mxu3 %v2650_v15 }
 0x282   :  { %2614 = vperm.xlu2 %6027, %v5817_v5   ;;  %5755 = vmatmul.msk.f32.vlgmr.msra.gmra.mxu2 %vm1728_vm1, %v2025_v8  ;;  %v5852_v5 = vld [vmem:[%s9246_s2 + $0x278] sm:$0xff]  ;;  %v5902_v8 = vld [vmem:[%s9246_s2 + $0x308] sm:$0xff] }
 0x283   :  { %2866 = vperm.xlu1 %6026, %v5847_v40   ;;  %v2649_v40 = vld [vmem:[#allocation11 + $0x60] sm:$0xff] }
 0x284   :  { %v8159_v61 = vpop.permute.xlu2 %2322  ;;  %2716 = vmatpush.msrb.mxu3 %v2649_v40  ;;  %v2911_v40 = vld [vmem:[#allocation11 + $0x80] sm:$0xff] }
 0x285   :  { %v8165_v31 = vpop.permute.xlu1 %1993  ;;  %2624 = vperm.xlu0 %6025, %v5819_v46   ;;  %v8236_v46 = vld [vmem:[#allocation3 + $0x2e] sm:$0xff] }
 0x286   :  { %v1884_v24 = vmul.f32 %v7976_v37, %v8236_v46 }
 0x287   :  { %5759 = vmatmul.msk.f32.gmra.mxu1 %vm1728_vm1, %v1881_v18  ;;  %v2298_v53 = vpop.permute.xlu0 %2297 }
 0x288   :  { %5745 = vmatmul.msk.f32.gmra.mxu0 %vm1728_vm1, %v2015_v43  ;;  %v2371_v25 = vmul.f32 %v2298_v53, %v2259_v26  ;;  %v8242_v43 = vld [vmem:[#allocation3 + $0x40] sm:$0xff]  ;;  %v8270_v26 = vld [vmem:[#allocation3 + $0x48] sm:$0xff] }
 0x289   :  { %v2018_v53 = vmul.f32 %v8072_v63, %v8242_v43  ;;  %v2914_v63 = vld [vmem:[#allocation11 + $0x98] sm:$0xff] }
 0x28a   :  { %2876 = vperm.xlu2 %6027, %v5849_v49   ;;  %5789 = vmatmul.msk.f32.vlgmr.msrb.gmra.mxu2 %vm1728_vm1, %v2370_v50  ;;  %v8246_v50 = vld [vmem:[#allocation3 + $0x22] sm:$0xff] }
 0x28b   :  { %2619 = vperm.xlu1 %6026, %v5818_v3   ;;  %v5965_v3 = vld [vmem:[%s9246_s2 + $0x400] sm:$0xff]  ;;  %v2373_v37 = vmul.f32 %v8134_v2, %v8246_v50  ;;  %2975 = vmatpush.msrb.mxu0 %v2914_v63 }
 0x28c   :  { %v8183_v28 = vpop.permute.xlu2 %2337 }
 0x28d   :  { %v2009_v30 = vpop.permute.xlu1 %2008  ;;  %2886 = vperm.xlu0 %6025, %v5851_v10  }
 0x28e   :  { %v2026_v4 = vmul.f32 %v2009_v30, %v8189_v29  ;;  %v5903_v30 = vld [vmem:[%s9246_s2 + $0x310] sm:$0xff] }
 0x28f   :  { %5760 = vmatmul.msk.f32.gmra.mxu1 %vm1728_vm1, %v1882_v62  ;;  %v8198_v60 = vpop.permute.xlu0 %2312  ;;  %v5869_v62 = vld [vmem:[%s9246_s2 + $0x280] sm:$0xff] }
 0x290   :  { %5746 = vmatmul.msk.f32.gmra.mxu0 %vm1728_vm1, %v2016_v11  ;;  %5756 = vmatmul.msk.f32.vlgmr.msra.gmra.mxu3 %vm1728_vm1, %v2026_v4  ;;  %v8264_v11 = vld [vmem:[#allocation3 + $0x36] sm:$0xff] }
 0x291   :  { %v1885_v2 = vmul.f32 %v8021_v57, %v8264_v11 }
 0x292   :  { %2629 = vperm.xlu2 %6027, %v5820_v14   ;;  %5790 = vmatmul.msk.f32.gmra.mxu2 %vm1728_vm1, %v2371_v25  ;;  %v2019_v25 = vmul.f32 %v8106_v47, %v8270_v26  ;;  %v2913_v47 = vld [vmem:[#allocation11 + $0x90] sm:$0xff] }
 0x293   :  { %2881 = vperm.xlu1 %6026, %v5850_v12   ;;  %v8276_v12 = vld [vmem:[#allocation3 + $0x2a] sm:$0xff]  ;;  %2976 = vmatpush.msrb.mxu0 %v2913_v47 }
 0x294   :  { %v8211_v56 = vpop.permute.xlu2 %2352  ;;  %v2374_v57 = vmul.f32 %v8198_v60, %v8276_v12  ;;  %v8351_v47 = vld [vmem:[#allocation3 + $0x4e] sm:$0xff] }
 0x295   :  { %v2303_v45 = vpop.permute.xlu1 %2302  ;;  %3602 = vperm.xlu0 %6025, %v5933_v58  }
 0x296   :  { %v2372_v0 = vmul.f32 %v2303_v45, %v8219_v35  ;;  %v2912_v45 = vld [vmem:[#allocation11 + $0x88] sm:$0xff] }
 0x297   :  { %5761 = vmatmul.msk.f32.gmra.mxu1 %vm1728_vm1, %v1883_v55  ;;  %v8225_v44 = vpop.permute.xlu0 %2327  ;;  %v5871_v55 = vld [vmem:[%s9246_s2 + $0x290] sm:$0xff]  ;;  %2977 = vmatpush.msrb.mxu0 %v2912_v45 }
 0x298   :  { %5747 = vmatmul.msk.f32.gmra.mxu0 %vm1728_vm1, %v2017_v1  ;;  %v8294_v1 = vld [vmem:[#allocation3 + $0x3e] sm:$0xff] }
 0x299   :  { %v1886_v15 = vmul.f32 %v8044_v16, %v8294_v1  ;;  %2978 = vmatpush.msrb.mxu0 %v2911_v40  ;;  %v8357_v45 = vld [vmem:[#allocation3 + $0x60] sm:$0xff] }
 0x29a   :  { %2891 = vperm.xlu2 %6027, %v5852_v5   ;;  %5791 = vmatmul.msk.f32.gmra.mxu2 %vm1728_vm1, %v2372_v0  ;;  %v8300_v5 = vld [vmem:[#allocation3 + $0x50] sm:$0xff] }
 0x29b   :  { %3340 = vperm.xlu1 %6026, %v5901_v33   ;;  %v2020_v33 = vmul.f32 %v8139_v17, %v8300_v5 }
 0x29c   :  { %v8238_v18 = vpop.permute.xlu2 %2367 }
 0x29d   :  { %v2318_v49 = vpop.permute.xlu1 %2317  ;;  %3345 = vperm.xlu0 %6025, %v5902_v8   ;;  %v8306_v8 = vld [vmem:[#allocation3 + $0x32] sm:$0xff] }
 0x29e   :  { %v2375_v16 = vmul.f32 %v2318_v49, %v8306_v8 }
 0x29f   :  { %5762 = vmatmul.msk.f32.gmra.mxu1 %vm1728_vm1, %v1884_v24  ;;  %v8252_v10 = vpop.permute.xlu0 %2342  ;;  %v5966_v24 = vld [vmem:[%s9246_s2 + $0x408] sm:$0xff] }
 0x2a0   :  { %5748 = vmatmul.msk.f32.gmra.mxu0 %vm1728_vm1, %v2018_v53 }
 0x2a2   :  { %3864 = vperm.xlu2 %6027, %v5965_v3   ;;  %5792 = vmatmul.msk.f32.gmra.mxu2 %vm1728_vm1, %v2373_v37  ;;  %v5935_v3 = vld [vmem:[%s9246_s2 + $0x390] sm:$0xff] }
 0x2a3   :  { %3078 = vperm.xlu1 %6026, %v5869_v62   ;;  %v5967_v37 = vld [vmem:[%s9246_s2 + $0x410] sm:$0xff] }
 0x2a4   :  { %v8266_v4 = vpop.permute.xlu2 %2564  ;;  %v8323_v62 = vld [vmem:[#allocation3 + $0x46] sm:$0xff] }
 0x2a5   :  { %v8272_v14 = vpop.permute.xlu1 %2332  ;;  %3350 = vperm.xlu0 %6025, %v5903_v30   ;;  %v1887_v63 = vmul.f32 %v7996_v39, %v8323_v62  ;;  %v8329_v30 = vld [vmem:[#allocation3 + $0x58] sm:$0xff] }
 0x2a7   :  { %5763 = vmatmul.msk.f32.gmra.mxu1 %vm1728_vm1, %v1885_v2  ;;  %v8282_v58 = vpop.permute.xlu0 %2357  ;;  %v2021_v2 = vmul.f32 %v8085_v36, %v8329_v30  ;;  %v5968_v36 = vld [vmem:[%s9246_s2 + $0x418] sm:$0xff] }
 0x2a8   :  { %5749 = vmatmul.msk.f32.gmra.mxu0 %vm1728_vm1, %v2019_v25  ;;  %v8335_v25 = vld [vmem:[#allocation3 + $0x3a] sm:$0xff] }
 0x2a9   :  { %v2376_v39 = vmul.f32 %v8159_v61, %v8335_v25  ;;  %v1888_v61 = vmul.f32 %v8036_v23, %v8351_v47 }
 0x2aa   :  { %3083 = vperm.xlu2 %6027, %v5870_v34   ;;  %5793 = vmatmul.msk.f32.gmra.mxu2 %vm1728_vm1, %v2374_v57  ;;  %v5936_v34 = vld [vmem:[%s9246_s2 + $0x398] sm:$0xff] }
 0x2ab   :  { %3607 = vperm.xlu1 %6026, %v5934_v59   ;;  %v5904_v59 = vld [vmem:[%s9246_s2 + $0x318] sm:$0xff] }
 0x2ac   :  { %v8296_v60 = vpop.permute.xlu2 %2574 }
 0x2ad   :  { %v8302_v0 = vpop.permute.xlu1 %2347  ;;  %3088 = vperm.xlu0 %6025, %v5871_v55  }
 0x2af   :  { %5764 = vmatmul.msk.f32.gmra.mxu1 %vm1728_vm1, %v1886_v15  ;;  %v2555_v53 = vpop.permute.xlu0 %2554 }
 0x2b0   :  { %5750 = vmatmul.msk.f32.gmra.mxu0 %vm1728_vm1, %v2020_v33  ;;  %v2632_v17 = vmul.f32 %v2555_v53, %v8157_v38  ;;  %v2022_v33 = vmul.f32 %v8125_v7, %v8357_v45  ;;  %v5905_v53 = vld [vmem:[%s9246_s2 + $0x320] sm:$0xff]  ;;  %v5872_v7 = vld [vmem:[%s9246_s2 + $0x298] sm:$0xff] }
 0x2b2   :  { %3869 = vperm.xlu2 %6027, %v5966_v24   ;;  %5794 = vmatmul.msk.f32.gmra.mxu2 %vm1728_vm1, %v2375_v16  ;;  %v8362_v24 = vld [vmem:[#allocation3 + $0x42] sm:$0xff] }
 0x2b3   :  { %3612 = vperm.xlu1 %6026, %v5935_v3   ;;  %5821 = vmatmul.msk.f32.vlgmr.msrb.gmra.mxu3 %vm1728_vm1, %v2632_v17  ;;  %v2377_v23 = vmul.f32 %v8225_v44, %v8362_v24  ;;  %v8379_v3 = vld [vmem:[#allocation3 + $0x56] sm:$0xff] }
 0x2b4   :  { %v8325_v49 = vpop.permute.xlu2 %2831  ;;  %v1889_v44 = vmul.f32 %v8059_v41, %v8379_v3 }
 0x2b5   :  { %v8331_v38 = vpop.permute.xlu1 %2362  ;;  %3874 = vperm.xlu0 %6025, %v5967_v37   ;;  %v8385_v37 = vld [vmem:[#allocation3 + $0x68] sm:$0xff] }
 0x2b7   :  { %5765 = vmatmul.msk.f32.gmra.mxu1 %vm1728_vm1, %v1887_v63  ;;  %v2570_v57 = vpop.permute.xlu0 %2569 }
 0x2b8   :  { %5751 = vmatmul.msk.f32.gmra.mxu0 %vm1728_vm1, %v2021_v2  ;;  %v2023_v2 = vmul.f32 %v8165_v31, %v8385_v37  ;;  %v5937_v31 = vld [vmem:[%s9246_s2 + $0x3a0] sm:$0xff] }
 0x2ba   :  { %3617 = vperm.xlu2 %6027, %v5936_v34   ;;  %5795 = vmatmul.msk.f32.gmra.mxu2 %vm1728_vm1, %v2376_v39  ;;  %v2634_v34 = vmul.f32 %v8266_v4, %v8209_v6  ;;  %v8391_v39 = vld [vmem:[#allocation3 + $0x4a] sm:$0xff]  ;;  %v5874_v4 = vld [vmem:[%s9246_s2 + $0x2a8] sm:$0xff] }
 0x2bb   :  { %3355 = vperm.xlu1 %6026, %v5904_v59   ;;  %v5873_v59 = vld [vmem:[%s9246_s2 + $0x2a0] sm:$0xff]  ;;  %v2378_v41 = vmul.f32 %v8272_v14, %v8391_v39 }
 0x2bc   :  { %v8353_v55 = vpop.permute.xlu2 %2584 }
 0x2bd   :  { %v2560_v15 = vpop.permute.xlu1 %2559  ;;  %3879 = vperm.xlu0 %6025, %v5968_v36  }
 0x2be   :  { %v2633_v40 = vmul.f32 %v2560_v15, %v8181_v21  ;;  %v5906_v21 = vld [vmem:[%s9246_s2 + $0x328] sm:$0xff] }
 0x2bf   :  { %5766 = vmatmul.msk.f32.gmra.mxu1 %vm1728_vm1, %v1888_v61  ;;  %v2822_v16 = vpop.permute.xlu0 %2821  ;;  %v8408_v61 = vld [vmem:[#allocation3 + $0x5e] sm:$0xff] }
 0x2c0   :  { %5752 = vmatmul.msk.f32.gmra.mxu0 %vm1728_vm1, %v2022_v33  ;;  %5822 = vmatmul.msk.f32.gmra.mxu3 %vm1728_vm1, %v2633_v40  ;;  %v1890_v14 = vmul.f32 %v8013_v48, %v8408_v61  ;;  %v2635_v40 = vmul.f32 %v2570_v57, %v8236_v46  ;;  %v5938_v48 = vld [vmem:[%s9246_s2 + $0x3a8] sm:$0xff]  ;;  %v8432_v46 = vld [vmem:[#allocation3 + $0x66] sm:$0xff] }
 0x2c2   :  { %3360 = vperm.xlu2 %6027, %v5905_v53   ;;  %5796 = vmatmul.msk.f32.gmra.mxu2 %vm1728_vm1, %v2377_v23  ;;  %v2267_v23 = vld [vmem:[#allocation3 + $0x52] sm:$0xff] }
 0x2c3   :  { %3093 = vperm.xlu1 %6026, %v5872_v7   ;;  %v5969_v7 = vld [vmem:[%s9246_s2 + $0x420] sm:$0xff] }
 0x2c4   :  { %v8381_v17 = vpop.permute.xlu2 %2846 }
 0x2c5   :  { %v2817_v63 = vpop.permute.xlu1 %2816  ;;  %3365 = vperm.xlu0 %6025, %v5906_v21  }
 0x2c6   :  { %v2894_v53 = vmul.f32 %v2817_v63, %v8116_v42  ;;  %v5970_v42 = vld [vmem:[%s9246_s2 + $0x428] sm:$0xff] }
 0x2c7   :  { %5767 = vmatmul.msk.f32.gmra.mxu1 %vm1728_vm1, %v1889_v44  ;;  %v2580_v36 = vpop.permute.xlu0 %2579  ;;  %v2379_v44 = vmul.f32 %v8183_v28, %v2267_v23  ;;  %v1891_v28 = vmul.f32 %v8049_v19, %v8432_v46  ;;  %v5907_v19 = vld [vmem:[%s9246_s2 + $0x330] sm:$0xff]  ;;  %v5908_v23 = vld [vmem:[%s9246_s2 + $0x338] sm:$0xff] }
 0x2c8   :  { %5753 = vmatmul.msk.f32.gmra.mxu0 %vm1728_vm1, %v2023_v2  ;;  %5823 = vmatmul.msk.f32.gmra.mxu3 %vm1728_vm1, %v2634_v34  ;;  %v2636_v2 = vmul.f32 %v8296_v60, %v8264_v11  ;;  %v2895_v34 = vmul.f32 %v2822_v16, %v8137_v32  ;;  %v5940_v32 = vld [vmem:[%s9246_s2 + $0x3b8] sm:$0xff] }
 0x2c9   :  { %v8459_v11 = vld [vmem:[#allocation3 + $0x6e] sm:$0xff] }
 0x2ca   :  { %3098 = vperm.xlu2 %6027, %v5873_v59   ;;  %5797 = vmatmul.msk.f32.gmra.mxu2 %vm1728_vm1, %v2378_v41  ;;  %v2268_v59 = vld [vmem:[#allocation3 + $0x5a] sm:$0xff] }
 0x2cb   :  { %3622 = vperm.xlu1 %6026, %v5937_v31   ;;  %v5939_v41 = vld [vmem:[%s9246_s2 + $0x3b0] sm:$0xff] }
 0x2cc   :  { %v8410_v15 = vpop.permute.xlu2 %2599 }
 0x2cd   :  { %v2827_v33 = vpop.permute.xlu1 %2826  ;;  %3103 = vperm.xlu0 %6025, %v5874_v4   ;;  %v2380_v4 = vmul.f32 %v8252_v10, %v2268_v59  ;;  %v1892_v10 = vmul.f32 %v8074_v52, %v8459_v11  ;;  %v5875_v52 = vld [vmem:[%s9246_s2 + $0x2b0] sm:$0xff]  ;;  %v5876_v59 = vld [vmem:[%s9246_s2 + $0x2b8] sm:$0xff] }
 0x2cf   :  { %5768 = vmatmul.msk.f32.gmra.mxu1 %vm1728_vm1, %v1890_v14  ;;  %v8420_v21 = vpop.permute.xlu0 %2841  ;;  %v2896_v14 = vmul.f32 %v2827_v33, %v8163_v13 }
 0x2d0   :  { %5853 = vmatmul.msk.f32.vlgmr.msrb.gmra.mxu0 %vm1728_vm1, %v2894_v53  ;;  %5824 = vmatmul.msk.f32.gmra.mxu3 %vm1728_vm1, %v2635_v40  ;;  %v2637_v40 = vmul.f32 %v2580_v36, %v8294_v1  ;;  %v8467_v53 = vld [vmem:[#allocation3 + $0x62] sm:$0xff]  ;;  %v5909_v1 = vld [vmem:[%s9246_s2 + $0x340] sm:$0xff] }
 0x2d1   :  { %v8486_v36 = vld [vmem:[#allocation3 + $0x76] sm:$0xff] }
 0x2d2   :  { %3884 = vperm.xlu2 %6027, %v5969_v7   ;;  %5798 = vmatmul.msk.f32.gmra.mxu2 %vm1728_vm1, %v2379_v44  ;;  %v2381_v44 = vmul.f32 %v8302_v0, %v8467_v53  ;;  %v1893_v0 = vmul.f32 %v8029_v54, %v8486_v36 }
 0x2d3   :  { %3627 = vperm.xlu1 %6026, %v5938_v48  }
 0x2d4   :  { %v8434_v57 = vpop.permute.xlu2 %2861 }
 0x2d5   :  { %v8438_v63 = vpop.permute.xlu1 %2836  ;;  %3889 = vperm.xlu0 %6025, %v5970_v42  }
 0x2d7   :  { %5769 = vmatmul.msk.f32.gmra.mxu1 %vm1728_vm1, %v1891_v28  ;;  %v8447_v31 = vpop.permute.xlu0 %2594  ;;  %v2897_v28 = vmul.f32 %v8325_v49, %v8187_v9  ;;  %v5971_v49 = vld [vmem:[%s9246_s2 + $0x430] sm:$0xff] }
 0x2d8   :  { %5854 = vmatmul.msk.f32.gmra.mxu0 %vm1728_vm1, %v2895_v34  ;;  %5825 = vmatmul.msk.f32.gmra.mxu3 %vm1728_vm1, %v2636_v2  ;;  %v2638_v2 = vmul.f32 %v8353_v55, %v8323_v62  ;;  %v2270_v34 = vld [vmem:[#allocation3 + $0x6a] sm:$0xff]  ;;  %v3438_v62 = vld [vmem:[#allocation11 + $0xd8] sm:$0xff] }
 0x2d9   :  { %v2382_v54 = vmul.f32 %v8211_v56, %v2270_v34  ;;  %3499 = vmatpush.msra.mxu2 %v3438_v62  ;;  %v5877_v55 = vld [vmem:[%s9246_s2 + $0x2c0] sm:$0xff]  ;;  %v8516_v56 = vld [vmem:[#allocation3 + $0x7e] sm:$0xff] }
 0x2da   :  { %3632 = vperm.xlu2 %6027, %v5939_v41   ;;  %5799 = vmatmul.msk.f32.gmra.mxu2 %vm1728_vm1, %v2380_v4  ;;  %v3437_v4 = vld [vmem:[#allocation11 + $0xd0] sm:$0xff]  ;;  %v3174_v62 = vld [vmem:[#allocation11 + $0xa8] sm:$0xff] }
 0x2db   :  { %3370 = vperm.xlu1 %6026, %v5907_v19   ;;  %3500 = vmatpush.msra.mxu2 %v3437_v4  ;;  %v2272_v4 = vld [vmem:[#allocation3 + $0x7a] sm:$0xff] }
 0x2dc   :  { %v8461_v60 = vpop.permute.xlu2 %2614 }
 0x2dd   :  { %v2590_v16 = vpop.permute.xlu1 %2589  ;;  %3637 = vperm.xlu0 %6025, %v5940_v32   ;;  %v1894_v32 = vmul.f32 %v8064_v27, %v8516_v56 }
 0x2df   :  { %5770 = vmatmul.msk.f32.gmra.mxu1 %vm1728_vm1, %v1892_v10  ;;  %v8473_v7 = vpop.permute.xlu0 %2856 }
 0x2e0   :  { %5855 = vmatmul.msk.f32.gmra.mxu0 %vm1728_vm1, %v2896_v14  ;;  %5826 = vmatmul.msk.f32.gmra.mxu3 %vm1728_vm1, %v2637_v40  ;;  %v2898_v40 = vmul.f32 %v8438_v63, %v8215_v20  ;;  %v3435_v63 = vld [vmem:[#allocation11 + $0xc0] sm:$0xff] }
 0x2e2   :  { %3375 = vperm.xlu2 %6027, %v5908_v23   ;;  %5800 = vmatmul.msk.f32.gmra.mxu2 %vm1728_vm1, %v2381_v44  ;;  %v2639_v23 = vmul.f32 %v2590_v16, %v8351_v47  ;;  %v3436_v44 = vld [vmem:[#allocation11 + $0xc8] sm:$0xff]  ;;  %v3176_v16 = vld [vmem:[#allocation11 + $0xb8] sm:$0xff] }
 0x2e3   :  { %3108 = vperm.xlu1 %6026, %v5875_v52   ;;  %v2271_v52 = vld [vmem:[#allocation3 + $0x72] sm:$0xff]  ;;  %3501 = vmatpush.msra.mxu2 %v3436_v44 }
 0x2e4   :  { %v8488_v33 = vpop.permute.xlu2 %2876  ;;  %v2383_v27 = vmul.f32 %v8282_v58, %v2271_v52  ;;  %v5941_v47 = vld [vmem:[%s9246_s2 + $0x3c0] sm:$0xff]  ;;  %3237 = vmatpush.msra.mxu1 %v3176_v16  ;;  %v2900_v52 = vmul.f32 %v8381_v17, %v8270_v26  ;;  %v5878_v26 = vld [vmem:[%s9246_s2 + $0x2c8] sm:$0xff] }
 0x2e5   :  { %v8492_v48 = vpop.f32.mrf.mxu0  ;;  %v8494_v42 = vpop.permute.xlu1 %2851  ;;  %3380 = vperm.xlu0 %6025, %v5909_v1   ;;  %v5972_v1 = vld [vmem:[%s9246_s2 + $0x438] sm:$0xff]  ;;  %3502 = vmatpush.msra.mxu2 %v3435_v63  ;;  %v3175_v58 = vld [vmem:[#allocation11 + $0xb0] sm:$0xff]  ;;  %v3700_v17 = vld [vmem:[#allocation11 + $0xf8] sm:$0xff] }
 0x2e6   :  { %3238 = vmatpush.msra.mxu1 %v3175_v58  ;;  %3761 = vmatpush.msra.mxu3 %v3700_v17  ;;  %v2901_v58 = vmul.f32 %v8494_v42, %v8300_v5  ;;  %v3962_v5 = vld [vmem:[#allocation11 + $0x118] sm:$0xff] }
 0x2e7   :  { %5771 = vmatmul.msk.f32.gmra.mxu1 %vm1728_vm1, %v1893_v0  ;;  %v8504_v41 = vpop.permute.xlu0 %2609  ;;  %4023 = vmatpush.msra.mxu0 %v3962_v5  ;;  %v5945_v5 = vld [vmem:[%s9246_s2 + $0x3e0] sm:$0xff] }
 0x2e8   :  { %5856 = vmatmul.msk.f32.gmra.mxu0 %vm1728_vm1, %v2897_v28  ;;  %5827 = vmatmul.msk.f32.gmra.mxu3 %vm1728_vm1, %v2638_v2  ;;  %v5973_v28 = vld [vmem:[%s9246_s2 + $0x440] sm:$0xff] }
 0x2e9   :  { %3239 = vmatpush.msra.mxu1 %v3174_v62  ;;  %v5879_v62 = vld [vmem:[%s9246_s2 + $0x2d0] sm:$0xff] }
 0x2ea   :  { %3113 = vperm.xlu2 %6027, %v5876_v59   ;;  %5801 = vmatmul.msk.f32.gmra.mxu2 %vm1728_vm1, %v2382_v54  ;;  %v2899_v54 = vmul.f32 %v8420_v21, %v8242_v43  ;;  %v5943_v21 = vld [vmem:[%s9246_s2 + $0x3d0] sm:$0xff] }
 0x2eb   :  { %3894 = vperm.xlu1 %6026, %v5971_v49   ;;  %v2640_v49 = vmul.f32 %v8447_v31, %v8379_v3  ;;  %v5910_v3 = vld [vmem:[%s9246_s2 + $0x348] sm:$0xff] }
 0x2ec   :  { %v8518_v19 = vpop.permute.xlu2 %2629 }
 0x2ed   :  { %v8522_v10 = vpop.f32.mrf.mxu0  ;;  %v8524_v14 = vpop.permute.xlu1 %2604  ;;  %3118 = vperm.xlu0 %6025, %v5877_v55   ;;  %v3173_v55 = vld [vmem:[#allocation11 + $0xa0] sm:$0xff] }
 0x2ee   :  { %3240 = vmatpush.msra.mxu1 %v3173_v55 }
 0x2ef   :  { %5772 = vmatmul.msk.f32.gmra.mxu1 %vm1728_vm1, %v1894_v32  ;;  %v8533_v0 = vpop.permute.xlu0 %2871  ;;  %v5942_v32 = vld [vmem:[%s9246_s2 + $0x3c8] sm:$0xff] }
 0x2f0   :  { %5857 = vmatmul.msk.f32.gmra.mxu0 %vm1728_vm1, %v2898_v40  ;;  %5828 = vmatmul.msk.f32.gmra.mxu3 %vm1728_vm1, %v2639_v23  ;;  %v2384_v23 = vmul.f32 %v8331_v38, %v2272_v4  ;;  %v5974_v4 = vld [vmem:[%s9246_s2 + $0x448] sm:$0xff] }
 0x2f2   :  { %3899 = vperm.xlu2 %6027, %v5972_v1   ;;  %5802 = vmatmul.msk.f32.gmra.mxu2 %vm1728_vm1, %v2383_v27  ;;  %v2641_v1 = vmul.f32 %v8410_v15, %v8408_v61  ;;  %v2273_v27 = vld [vmem:[#allocation3 + $0x82] sm:$0xff] }
 0x2f3   :  { %3642 = vperm.xlu1 %6026, %v5941_v47   ;;  %v5911_v47 = vld [vmem:[%s9246_s2 + $0x350] sm:$0xff]  ;;  %v2385_v16 = vmul.f32 %v8238_v18, %v2273_v27  ;;  %v5912_v61 = vld [vmem:[%s9246_s2 + $0x358] sm:$0xff] }
 0x2f4   :  { %v8545_v2 = vpop.permute.xlu2 %2891 }
 0x2f5   :  { %v8547_v34 = vpop.permute.xlu1 %2866  ;;  %v8549_v59 = vpop.f32.mrf.mxu0  ;;  %3904 = vperm.xlu0 %6025, %v5973_v28  }
 0x2f7   :  { %v8558_v40 = vpop.permute.xlu0 %2624 }
 0x2f8   :  { %5858 = vmatmul.msk.f32.gmra.mxu0 %vm1728_vm1, %v2899_v54  ;;  %5829 = vmatmul.msk.f32.gmra.mxu3 %vm1728_vm1, %v2640_v49  ;;  %v2642_v54 = vmul.f32 %v8524_v14, %v8432_v46  ;;  %v8605_v49 = vpop.f32.mrf.mxu1  ;;  %v5880_v46 = vld [vmem:[%s9246_s2 + $0x2d8] sm:$0xff] }
 0x2f9   :  { %9388 = vst [vmem:[#allocation25_spill] sm:$0xff] %v8605_v49 }
 0x2fa   :  { %3647 = vperm.xlu2 %6027, %v5942_v32   ;;  %5803 = vmatmul.msk.f32.gmra.mxu2 %vm1728_vm1, %v2384_v23 }
 0x2fb   :  { %3385 = vperm.xlu1 %6026, %v5910_v3   ;;  %v2902_v3 = vmul.f32 %v8473_v7, %v8329_v30  ;;  %v5944_v30 = vld [vmem:[%s9246_s2 + $0x3d8] sm:$0xff] }
 0x2fc   :  { %v8570_v31 = vpop.permute.xlu2 %3864 }
 0x2fd   :  { %v8572_v38 = vpop.permute.xlu1 %2619  ;;  %v8574_v44 = vpop.f32.mrf.mxu0  ;;  %3652 = vperm.xlu0 %6025, %v5943_v21   ;;  %v2643_v21 = vmul.f32 %v8504_v41, %v8459_v11  ;;  %v3699_v11 = vld [vmem:[#allocation11 + $0xf0] sm:$0xff] }
 0x2fe   :  { %3762 = vmatpush.msra.mxu3 %v3699_v11  ;;  %v5914_v11 = vld [vmem:[%s9246_s2 + $0x368] sm:$0xff] }
 0x2ff   :  { %v8583_v63 = vpop.permute.xlu0 %2886 }
 0x300   :  { %5859 = vmatmul.msk.f32.gmra.mxu0 %vm1728_vm1, %v2900_v52  ;;  %5830 = vmatmul.msk.f32.gmra.mxu3 %vm1728_vm1, %v2641_v1  ;;  %v5975_v1 = vld [vmem:[%s9246_s2 + $0x450] sm:$0xff] }
 0x302   :  { %3390 = vperm.xlu2 %6027, %v5911_v47   ;;  %5804 = vmatmul.msk.f32.gmra.mxu2 %vm1728_vm1, %v2385_v16  ;;  %v8634_v47 = vpop.f32.mrf.mxu1  ;;  %v3307_v16 = vld [vmem:[#allocation3 + $0x2e] sm:$0xff] }
 0x303   :  { %3123 = vperm.xlu1 %6026, %v5878_v26  }
 0x304   :  { %v8595_v15 = vpop.permute.xlu2 %3083 }
 0x305   :  { %v8597_v18 = vpop.permute.xlu1 %2881  ;;  %v8599_v28 = vpop.f32.mrf.mxu0  ;;  %3395 = vperm.xlu0 %6025, %v5912_v61  }
 0x306   :  { %v8617_v42 = vpop.f32.mrf.mxu2 }
 0x307   :  { %v8610_v55 = vpop.permute.xlu0 %3602  ;;  %9389 = vst [vmem:[#allocation26_spill] sm:$0xff] %v8617_v42 }
 0x308   :  { %5860 = vmatmul.msk.f32.gmra.mxu0 %vm1728_vm1, %v2901_v58  ;;  %5831 = vmatmul.msk.f32.gmra.mxu3 %vm1728_vm1, %v2642_v54  ;;  %v2903_v58 = vmul.f32 %v8434_v57, %v8357_v45  ;;  %v5913_v45 = vld [vmem:[%s9246_s2 + $0x360] sm:$0xff] }
 0x30a   :  { %3128 = vperm.xlu2 %6027, %v5879_v62   ;;  %v3698_v62 = vld [vmem:[#allocation11 + $0xe8] sm:$0xff]  ;;  %v8666_v57 = vpop.f32.mrf.mxu1 }
 0x30b   :  { %3909 = vperm.xlu1 %6026, %v5974_v4   ;;  %v2644_v4 = vmul.f32 %v8461_v60, %v8486_v36  ;;  %3763 = vmatpush.msra.mxu3 %v3698_v62  ;;  %v5946_v60 = vld [vmem:[%s9246_s2 + $0x3e8] sm:$0xff] }
 0x30c   :  { %v8622_v14 = vpop.permute.xlu2 %3869  ;;  %v5882_v62 = vld [vmem:[%s9246_s2 + $0x2e8] sm:$0xff] }
 0x30d   :  { %v3341_v32 = vpop.permute.xlu1 %3340  ;;  %v8624_v23 = vpop.f32.mrf.mxu0  ;;  %3133 = vperm.xlu0 %6025, %v5880_v46  }
 0x30e   :  { %v3418_v52 = vmul.f32 %v3341_v32, %v8209_v6  ;;  %v5976_v6 = vld [vmem:[%s9246_s2 + $0x458] sm:$0xff]  ;;  %v8645_v7 = vpop.f32.mrf.mxu2  ;;  %v3308_v32 = vld [vmem:[#allocation3 + $0x36] sm:$0xff] }
 0x30f   :  { %v3346_v27 = vpop.permute.xlu0 %3345 }
 0x310   :  { %5861 = vmatmul.msk.f32.gmra.mxu0 %vm1728_vm1, %v2902_v3  ;;  %5832 = vmatmul.msk.f32.gmra.mxu3 %vm1728_vm1, %v2643_v21  ;;  %v3419_v61 = vmul.f32 %v3346_v27, %v3307_v16  ;;  %v3157_v27 = vmul.f32 %v8595_v15, %v8246_v50  ;;  %v5915_v50 = vld [vmem:[%s9246_s2 + $0x370] sm:$0xff] }
 0x311   :  { %5917 = vmatmul.msk.f32.vlgmr.msra.gmra.mxu2 %vm1728_vm1, %v3418_v52 }
 0x312   :  { %3914 = vperm.xlu2 %6027, %v5975_v1   ;;  %v2904_v1 = vmul.f32 %v8547_v34, %v8385_v37  ;;  %v5881_v37 = vld [vmem:[%s9246_s2 + $0x2e0] sm:$0xff] }
 0x313   :  { %3657 = vperm.xlu1 %6026, %v5944_v30  }
 0x314   :  { %v8647_v41 = vpop.permute.xlu2 %3617 }
 0x315   :  { %v3079_v26 = vpop.permute.xlu1 %3078  ;;  %v8649_v17 = vpop.f32.mrf.mxu0  ;;  %3919 = vperm.xlu0 %6025, %v5976_v6   ;;  %v2645_v6 = vmul.f32 %v8572_v38, %v8516_v56 }
 0x316   :  { %v3156_v54 = vmul.f32 %v3079_v26, %v8219_v35  ;;  %v3697_v35 = vld [vmem:[#allocation11 + $0xe0] sm:$0xff]  ;;  %v8681_v30 = vpop.f32.mrf.mxu2  ;;  %v8698_v56 = vpop.f32.mrf.mxu1 }
 0x317   :  { %v3351_v46 = vpop.permute.xlu0 %3350  ;;  %3764 = vmatpush.msra.mxu3 %v3697_v35  ;;  %v3309_v35 = vld [vmem:[#allocation3 + $0x3e] sm:$0xff] }
 0x318   :  { %5862 = vmatmul.msk.f32.gmra.mxu0 %vm1728_vm1, %v2903_v58  ;;  %5885 = vmatmul.msk.f32.vlgmr.msra.gmra.mxu1 %vm1728_vm1, %v3156_v54  ;;  %v3420_v52 = vmul.f32 %v3351_v46, %v3308_v32  ;;  %v8709_v58 = vld [vmem:[#allocation3 + $0x86] sm:$0xff] }
 0x319   :  { %5833 = vmatmul.msk.f32.gmra.mxu3 %vm1728_vm1, %v2644_v4  ;;  %5918 = vmatmul.msk.f32.gmra.mxu2 %vm1728_vm1, %v3419_v61  ;;  %v2905_v61 = vmul.f32 %v8533_v0, %v8099_v22  ;;  %v2646_v54 = vmul.f32 %v8558_v40, %v8709_v58  ;;  %v5977_v22 = vld [vmem:[%s9246_s2 + $0x460] sm:$0xff]  ;;  %v5883_v40 = vld [vmem:[%s9246_s2 + $0x2f0] sm:$0xff] }
 0x31a   :  { %3662 = vperm.xlu2 %6027, %v5945_v5   ;;  %v3961_v0 = vld [vmem:[#allocation11 + $0x110] sm:$0xff]  ;;  %v3960_v32 = vld [vmem:[#allocation11 + $0x108] sm:$0xff] }
 0x31b   :  { %3400 = vperm.xlu1 %6026, %v5913_v45   ;;  %4024 = vmatpush.msra.mxu0 %v3961_v0  ;;  %v3310_v0 = vld [vmem:[#allocation3 + $0x46] sm:$0xff] }
 0x31c   :  { %v8671_v36 = vpop.permute.xlu2 %3360 }
 0x31d   :  { %v8673_v3 = vpop.permute.xlu1 %3607  ;;  %v8675_v21 = vpop.f32.mrf.mxu0  ;;  %3667 = vperm.xlu0 %6025, %v5946_v60   ;;  %4025 = vmatpush.msra.mxu0 %v3960_v32  ;;  %v5948_v32 = vld [vmem:[%s9246_s2 + $0x3f8] sm:$0xff] }
 0x31e   :  { %v8718_v5 = vpop.f32.mrf.mxu2 }
 0x31f   :  { %v3089_v16 = vpop.permute.xlu0 %3088 }
 0x320   :  { %5863 = vmatmul.msk.f32.gmra.mxu0 %vm1728_vm1, %v2904_v1  ;;  %5886 = vmatmul.msk.f32.gmra.mxu1 %vm1728_vm1, %v3157_v27  ;;  %v3158_v38 = vmul.f32 %v3089_v16, %v8276_v12  ;;  %v8735_v1 = vld [vmem:[#allocation3 + $0x8e] sm:$0xff]  ;;  %v8737_v27 = vpop.f32.mrf.mxu1 }
 0x321   :  { %5834 = vmatmul.msk.f32.gmra.mxu3 %vm1728_vm1, %v2645_v6  ;;  %5919 = vmatmul.msk.f32.gmra.mxu2 %vm1728_vm1, %v3420_v52  ;;  %v2906_v52 = vmul.f32 %v8488_v33, %v8146_v51  ;;  %v2647_v16 = vmul.f32 %v8518_v19, %v8735_v1  ;;  %v5947_v51 = vld [vmem:[%s9246_s2 + $0x3f0] sm:$0xff]  ;;  %v8751_v33 = vpop.f32.mrf.mxu3 }
 0x322   :  { %3405 = vperm.xlu2 %6027, %v5914_v11   ;;  %v3959_v11 = vld [vmem:[#allocation11 + $0x100] sm:$0xff] }
 0x323   :  { %3138 = vperm.xlu1 %6026, %v5881_v37   ;;  %v5978_v37 = vld [vmem:[%s9246_s2 + $0x468] sm:$0xff]  ;;  %4026 = vmatpush.msra.mxu0 %v3959_v11 }
 0x324   :  { %v8700_v34 = vpop.permute.xlu2 %3098 }
 0x325   :  { %v8703_v15 = vpop.permute.xlu1 %3612  ;;  %v8705_v26 = vpop.f32.mrf.mxu0  ;;  %3410 = vperm.xlu0 %6025, %v5915_v50  }
 0x326   :  { %v8754_v19 = vpop.f32.mrf.mxu2 }
 0x327   :  { %v8716_v4 = vpop.permute.xlu0 %3874 }
 0x328   :  { %5864 = vmatmul.msk.f32.gmra.mxu0 %vm1728_vm1, %v2905_v61  ;;  %5887 = vmatmul.msk.f32.gmra.mxu1 %vm1728_vm1, %v3158_v38  ;;  %v5979_v38 = vld [vmem:[%s9246_s2 + $0x470] sm:$0xff] }
 0x329   :  { %5835 = vmatmul.msk.f32.gmra.mxu3 %vm1728_vm1, %v2646_v54 }
 0x32a   :  { %3143 = vperm.xlu2 %6027, %v5882_v62  }
 0x32b   :  { %3924 = vperm.xlu1 %6026, %v5977_v22   ;;  %v2907_v22 = vmul.f32 %v8597_v18, %v8189_v29  ;;  %v5916_v29 = vld [vmem:[%s9246_s2 + $0x378] sm:$0xff] }
 0x32c   :  { %v8729_v46 = vpop.permute.xlu2 %3884 }
 0x32d   :  { %v3356_v45 = vpop.permute.xlu1 %3355  ;;  %v8731_v60 = vpop.f32.mrf.mxu0  ;;  %3148 = vperm.xlu0 %6025, %v5883_v40  }
 0x32e   :  { %v3421_v6 = vmul.f32 %v3356_v45, %v3309_v35  ;;  %v3680_v45 = vmul.f32 %v8610_v55, %v8163_v13  ;;  %v3422_v35 = vmul.f32 %v8671_v36, %v3310_v0  ;;  %v8783_v18 = vpop.f32.mrf.mxu2  ;;  %v3311_v55 = vld [vmem:[#allocation3 + $0x4e] sm:$0xff] }
 0x32f   :  { %v8744_v50 = vpop.permute.xlu0 %3879  ;;  %v8785_v36 = vld [vmem:[#allocation3 + $0x88] sm:$0xff] }
 0x330   :  { %5865 = vmatmul.msk.f32.gmra.mxu0 %vm1728_vm1, %v2906_v52  ;;  %5920 = vmatmul.msk.f32.gmra.mxu2 %vm1728_vm1, %v3421_v6  ;;  %v8772_v6 = vpop.f32.mrf.mxu1  ;;  %v5980_v0 = vld [vmem:[%s9246_s2 + $0x478] sm:$0xff] }
 0x331   :  { %5836 = vmatmul.msk.f32.gmra.mxu3 %vm1728_vm1, %v2647_v16 }
 0x332   :  { %3929 = vperm.xlu2 %6027, %v5978_v37  }
 0x333   :  { %3672 = vperm.xlu1 %6026, %v5947_v51   ;;  %v2908_v51 = vmul.f32 %v8583_v63, %v8785_v36  ;;  %v5884_v63 = vld [vmem:[%s9246_s2 + $0x2f8] sm:$0xff]  ;;  %s6352_s2 = smov 64  }
 0x334   :  { %v8759_v61 = vpop.permute.xlu2 %3632 }
 0x335   :  { %v3094_v54 = vpop.permute.xlu1 %3093  ;;  %v8761_v62 = vpop.f32.mrf.mxu0  ;;  %3934 = vperm.xlu0 %6025, %v5979_v38   ;;  %v3160_v38 = vmul.f32 %v8700_v34, %v8335_v25 }
 0x336   :  { %v3159_v40 = vmul.f32 %v3094_v54, %v8306_v8  ;;  %v8781_v13 = vpop.f32.mrf.mxu3 }
 0x337   :  { %v3366_v52 = vpop.permute.xlu0 %3365 }
 0x338   :  { %5866 = vmatmul.msk.f32.gmra.mxu0 %vm1728_vm1, %v2907_v22  ;;  %5888 = vmatmul.msk.f32.gmra.mxu1 %vm1728_vm1, %v3159_v40  ;;  %v3423_v37 = vmul.f32 %v3366_v52, %v3311_v55  ;;  %v3681_v22 = vmul.f32 %v8673_v3, %v8187_v9  ;;  %v8808_v3 = vpop.f32.mrf.mxu1  ;;  %v8819_v55 = vpop.f32.mrf.mxu2 }
 0x339   :  { %5921 = vmatmul.msk.f32.gmra.mxu2 %vm1728_vm1, %v3422_v35  ;;  %5949 = vmatmul.msk.f32.vlgmr.msra.gmra.mxu3 %vm1728_vm1, %v3680_v45  ;;  %v2214_v45 = vadd.f32 %v8666_v57, %v8522_v10  ;;  %v8813_v35 = vld [vmem:[#allocation3 + $0x90] sm:$0xff] }
 0x33a   :  { %3677 = vperm.xlu2 %6027, %v5948_v32  }
 0x33b   :  { %3415 = vperm.xlu1 %6026, %v5916_v29   ;;  %v2505_v9 = vadd.f32 %v8681_v30, %v2214_v45  ;;  %v2909_v29 = vmul.f32 %v8545_v2, %v8813_v35  ;;  %v3682_v30 = vmul.f32 %v8703_v15, %v8215_v20  ;;  %v3312_v15 = vld [vmem:[#allocation3 + $0x56] sm:$0xff] }
 0x33c   :  { %v3376_v54 = vpop.permute.xlu2 %3375 }
 0x33d   :  { %v3623_v11 = vpop.permute.xlu1 %3622  ;;  %v8787_v16 = vpop.f32.mrf.mxu0 }
 0x33f   :  { %v3104_v40 = vpop.permute.xlu0 %3103 }
 0x340   :  { %5867 = vmatmul.msk.f32.gmra.mxu0 %vm1728_vm1, %v2908_v51  ;;  %5889 = vmatmul.msk.f32.gmra.mxu1 %vm1728_vm1, %v3160_v38  ;;  %v3161_v57 = vmul.f32 %v3104_v40, %v8362_v24  ;;  %v2217_v51 = vadd.f32 %v8698_v56, %v8549_v59  ;;  %v3942_v59 = vmul.f32 %v8570_v31, %v8276_v12 }
 0x341   :  { %5922 = vmatmul.msk.f32.gmra.mxu2 %vm1728_vm1, %v3423_v37  ;;  %5950 = vmatmul.msk.f32.gmra.mxu3 %vm1728_vm1, %v3681_v22 }
 0x342   :  { %3939 = vperm.xlu2 %6027, %v5980_v0   ;;  %v2506_v22 = vadd.f32 %v8718_v5, %v2217_v51  ;;  %v8831_v0 = vpop.f32.mrf.mxu1  ;;  %v2220_v5 = vadd.f32 %v8737_v27, %v8574_v44  ;;  %v3572_v27 = vld [vmem:[#allocation3 + $0x48] sm:$0xff] }
 0x343   :  { %3153 = vperm.xlu1 %6026, %v5884_v63   ;;  %v2721_v34 = vpop.f32.mrf.mxu3  ;;  %v3683_v63 = vmul.f32 %v8647_v41, %v8242_v43  ;;  %v3313_v43 = vld [vmem:[#allocation3 + $0x5e] sm:$0xff] }
 0x344   :  { %v8810_v10 = vadd.f32 %v2721_v34, %v2505_v9  ;;  %v3114_v38 = vpop.permute.xlu2 %3113  ;;  %v2474_v34 = vpop.f32.mrf.mxu2  ;;  %v3425_v44 = vmul.f32 %v3376_v54, %v3313_v43  ;;  %v3944_v43 = vmul.f32 %v8716_v4, %v8335_v25 }
 0x345   :  { %v3628_v32 = vpop.permute.xlu1 %3627  ;;  %v8815_v52 = vpop.f32.mrf.mxu0 }
 0x346   :  { %9390 = vst [vmem:[#allocation27_spill] sm:$0xff] %v8815_v52 }
 0x347   :  { %v8823_v37 = vpop.permute.xlu0 %3889 }
 0x348   :  { %5868 = vmatmul.msk.f32.gmra.mxu0 %vm1728_vm1, %v2909_v29  ;;  %5890 = vmatmul.msk.f32.gmra.mxu1 %vm1728_vm1, %v3161_v57  ;;  %v2507_v57 = vadd.f32 %v8754_v19, %v2220_v5 }
 0x349   :  { %5951 = vmatmul.msk.f32.gmra.mxu3 %vm1728_vm1, %v3682_v30 }
 0x34a   :  { %v8855_v51 = vpop.f32.mrf.mxu1 }
 0x34b   :  { %v2724_v2 = vpop.f32.mrf.mxu3 }
 0x34c   :  { %v8833_v40 = vadd.f32 %v2724_v2, %v2506_v22  ;;  %v8849_v29 = vpop.permute.xlu2 %3899  ;;  %v3943_v2 = vmul.f32 %v8622_v14, %v8306_v8 }
 0x34d   :  { %v3371_v20 = vpop.permute.xlu1 %3370  ;;  %v8835_v45 = vpop.f32.mrf.mxu0 }
 0x34e   :  { %v3424_v56 = vmul.f32 %v3371_v20, %v3312_v15  ;;  %v3684_v20 = vmul.f32 %v3623_v11, %v3572_v27  ;;  %v2223_v15 = vadd.f32 %v8772_v6, %v8599_v28  ;;  %v3051_v11 = vld [vmem:[#allocation3 + $0x52] sm:$0xff] }
 0x34f   :  { %v8841_v9 = vpop.permute.xlu0 %3637 }
 0x350   :  { %5923 = vmatmul.msk.f32.gmra.mxu2 %vm1728_vm1, %v3424_v56  ;;  %5981 = vmatmul.msk.f32.vlgmr.msra.gmra.mxu0 %vm1728_vm1, %v3942_v59  ;;  %v2508_v54 = vadd.f32 %v8783_v18, %v2223_v15  ;;  %v2477_v59 = vpop.f32.mrf.mxu2 }
 0x351   :  { %5952 = vmatmul.msk.f32.gmra.mxu3 %vm1728_vm1, %v3683_v63  ;;  %v3314_v63 = vld [vmem:[#allocation3 + $0x66] sm:$0xff] }
 0x352   :  { %v8879_v27 = vpop.f32.mrf.mxu1 }
 0x353   :  { %v2727_v12 = vpop.f32.mrf.mxu3 }
 0x354   :  { %v8851_v31 = vadd.f32 %v2727_v12, %v2507_v57  ;;  %v8867_v5 = vpop.permute.xlu2 %3647  ;;  %v3163_v57 = vmul.f32 %v3114_v38, %v3051_v11  ;;  %v3573_v12 = vld [vmem:[#allocation3 + $0x50] sm:$0xff] }
 0x355   :  { %v3109_v41 = vpop.permute.xlu1 %3108  ;;  %v8853_v30 = vpop.f32.mrf.mxu0 }
 0x356   :  { %v3162_v22 = vmul.f32 %v3109_v41, %v8391_v39  ;;  %v3685_v41 = vmul.f32 %v3628_v32, %v3573_v12 }
 0x357   :  { %v3381_v19 = vpop.permute.xlu0 %3380 }
 0x358   :  { %5891 = vmatmul.msk.f32.gmra.mxu1 %vm1728_vm1, %v3162_v22  ;;  %5924 = vmatmul.msk.f32.gmra.mxu2 %vm1728_vm1, %v3425_v44  ;;  %v3426_v14 = vmul.f32 %v3381_v19, %v3314_v63  ;;  %v2226_v44 = vadd.f32 %v8808_v3, %v8624_v23  ;;  %v8886_v22 = vld [vmem:[#allocation3 + $0x5a] sm:$0xff]  ;;  %v8888_v4 = vpop.f32.mrf.mxu2 }
 0x359   :  { %5982 = vmatmul.msk.f32.gmra.mxu0 %vm1728_vm1, %v3943_v2  ;;  %5953 = vmatmul.msk.f32.gmra.mxu3 %vm1728_vm1, %v3684_v20  ;;  %v3574_v20 = vld [vmem:[#allocation3 + $0x58] sm:$0xff] }
 0x35a   :  { %v2509_v38 = vadd.f32 %v8819_v55, %v2226_v44  ;;  %v3686_v15 = vmul.f32 %v8759_v61, %v3574_v20  ;;  %v8905_v63 = vpop.f32.mrf.mxu1 }
 0x35b   :  { %v2730_v56 = vpop.f32.mrf.mxu3 }
 0x35c   :  { %v8869_v8 = vadd.f32 %v2730_v56, %v2508_v54  ;;  %v3391_v19 = vpop.permute.xlu2 %3390  ;;  %v3945_v54 = vmul.f32 %v8744_v50, %v8362_v24  ;;  %v2229_v56 = vadd.f32 %v8831_v0, %v8649_v17  ;;  %v3575_v50 = vld [vmem:[#allocation3 + $0x60] sm:$0xff]  ;;  %v3946_v0 = vmul.f32 %v8729_v46, %v8391_v39  ;;  %v3316_v39 = vld [vmem:[#allocation3 + $0x76] sm:$0xff] }
 0x35d   :  { %v8871_v28 = vpop.permute.xlu1 %3894  ;;  %v8873_v6 = vpop.f32.mrf.mxu0 }
 0x35f   :  { %v3119_v18 = vpop.permute.xlu0 %3118 }
 0x360   :  { %5892 = vmatmul.msk.f32.gmra.mxu1 %vm1728_vm1, %v3163_v57  ;;  %5925 = vmatmul.msk.f32.gmra.mxu2 %vm1728_vm1, %v3426_v14  ;;  %v3164_v23 = vmul.f32 %v8886_v22, %v3119_v18  ;;  %v2510_v14 = vadd.f32 %v2474_v34, %v2229_v56  ;;  %v3687_v18 = vmul.f32 %v8841_v9, %v3575_v50  ;;  %v3053_v9 = vld [vmem:[#allocation3 + $0x62] sm:$0xff] }
 0x361   :  { %5983 = vmatmul.msk.f32.gmra.mxu0 %vm1728_vm1, %v3944_v43  ;;  %5954 = vmatmul.msk.f32.gmra.mxu3 %vm1728_vm1, %v3685_v41  ;;  %v3315_v43 = vld [vmem:[#allocation3 + $0x6e] sm:$0xff]  ;;  %v8911_v41 = vpop.f32.mrf.mxu2  ;;  %v2232_v34 = vadd.f32 %v8855_v51, %v8675_v21  ;;  %v3428_v56 = vmul.f32 %v3391_v19, %v3316_v39  ;;  %v3317_v19 = vld [vmem:[#allocation3 + $0x7e] sm:$0xff] }
 0x362   :  { %v8921_v20 = vpop.f32.mrf.mxu1  ;;  %v3576_v21 = vld [vmem:[#allocation3 + $0x68] sm:$0xff] }
 0x363   :  { %v2733_v25 = vpop.f32.mrf.mxu3 }
 0x364   :  { %v8890_v32 = vadd.f32 %v2733_v25, %v2509_v38  ;;  %v3129_v38 = vpop.permute.xlu2 %3128  ;;  %v2511_v25 = vadd.f32 %v2477_v59, %v2232_v34 }
 0x365   :  { %v3643_v3 = vpop.permute.xlu1 %3642  ;;  %v8893_v2 = vpop.f32.mrf.mxu0 }
 0x367   :  { %v8898_v55 = vpop.permute.xlu0 %3904 }
 0x368   :  { %5893 = vmatmul.msk.f32.gmra.mxu1 %vm1728_vm1, %v3164_v23 }
 0x369   :  { %5984 = vmatmul.msk.f32.gmra.mxu0 %vm1728_vm1, %v3945_v54  ;;  %5955 = vmatmul.msk.f32.gmra.mxu3 %vm1728_vm1, %v3686_v15 }
 0x36b   :  { %v2736_v57 = vpop.f32.mrf.mxu3 }
 0x36c   :  { %v8907_v12 = vadd.f32 %v2736_v57, %v2510_v14  ;;  %v3947_v14 = vmul.f32 %v8823_v37, %v3051_v11  ;;  %v3688_v57 = vmul.f32 %v3643_v3, %v3576_v21  ;;  %v8934_v59 = vpop.permute.xlu2 %3914  ;;  %v8940_v3 = vpop.f32.mrf.mxu1 }
 0x36d   :  { %v3386_v61 = vpop.permute.xlu1 %3385  ;;  %v8909_v24 = vpop.f32.mrf.mxu0 }
 0x36e   :  { %v3427_v17 = vmul.f32 %v3386_v61, %v3315_v43  ;;  %v8928_v43 = vpop.f32.mrf.mxu2 }
 0x36f   :  { %v3653_v44 = vpop.permute.xlu0 %3652 }
 0x370   :  { %5926 = vmatmul.msk.f32.gmra.mxu2 %vm1728_vm1, %v3427_v17 }
 0x371   :  { %5985 = vmatmul.msk.f32.gmra.mxu0 %vm1728_vm1, %v3946_v0  ;;  %5956 = vmatmul.msk.f32.gmra.mxu3 %vm1728_vm1, %v3687_v18  ;;  %v3054_v0 = vld [vmem:[#allocation3 + $0x6a] sm:$0xff] }
 0x372   :  { %v3577_v18 = vld [vmem:[#allocation3 + $0x70] sm:$0xff]  ;;  %v3166_v34 = vmul.f32 %v3129_v38, %v3054_v0 }
 0x373   :  { %v2739_v23 = vpop.f32.mrf.mxu3 }
 0x374   :  { %v8923_v15 = vadd.f32 %v2739_v23, %v2511_v25  ;;  %v3689_v25 = vmul.f32 %v8867_v5, %v3577_v18  ;;  %v3948_v23 = vmul.f32 %v8871_v28, %v8886_v22  ;;  %v3663_v38 = vpop.permute.xlu2 %3662  ;;  %v3578_v28 = vld [vmem:[#allocation3 + $0x78] sm:$0xff]  ;;  %v3949_v22 = vmul.f32 %v8849_v29, %v8467_v53 }
 0x375   :  { %v3124_v46 = vpop.permute.xlu1 %3123  ;;  %v8925_v54 = vpop.f32.mrf.mxu0  ;;  %v3950_v29 = vmul.f32 %v8898_v55, %v3054_v0  ;;  %v3692_v0 = vmul.f32 %v3663_v38, %v8785_v36 }
 0x376   :  { %v3165_v51 = vmul.f32 %v3124_v46, %v3053_v9  ;;  %v8949_v46 = vpop.f32.mrf.mxu2  ;;  %v3839_v9 = vld [vmem:[#allocation3 + $0x72] sm:$0xff] }
 0x377   :  { %v3396_v61 = vpop.permute.xlu0 %3395 }
 0x378   :  { %5894 = vmatmul.msk.f32.gmra.mxu1 %vm1728_vm1, %v3165_v51  ;;  %5927 = vmatmul.msk.f32.gmra.mxu2 %vm1728_vm1, %v3428_v56  ;;  %v3429_v17 = vmul.f32 %v3396_v61, %v3317_v19  ;;  %v8957_v61 = vpop.f32.mrf.mxu1 }
 0x379   :  { %5986 = vmatmul.msk.f32.gmra.mxu0 %vm1728_vm1, %v3947_v14  ;;  %5957 = vmatmul.msk.f32.gmra.mxu3 %vm1728_vm1, %v3688_v57  ;;  %v3690_v14 = vmul.f32 %v3653_v44, %v3578_v28  ;;  %9391 = vst [vmem:[#allocation28_spill] sm:$0xff] %v8957_v61 }
 0x37b   :  { %v8936_v50 = vpop.f32.mrf.mxu3 }
 0x37d   :  { %v3910_v37 = vpop.permute.xlu1 %3909  ;;  %v8938_v11 = vpop.f32.mrf.mxu0 }
 0x37f   :  { %v3134_v39 = vpop.permute.xlu0 %3133 }
 0x380   :  { %5895 = vmatmul.msk.f32.gmra.mxu1 %vm1728_vm1, %v3166_v34  ;;  %5928 = vmatmul.msk.f32.gmra.mxu2 %vm1728_vm1, %v3429_v17  ;;  %v3167_v21 = vmul.f32 %v3839_v9, %v3134_v39  ;;  %v8964_v17 = vpop.f32.mrf.mxu2 }
 0x381   :  { %5987 = vmatmul.msk.f32.gmra.mxu0 %vm1728_vm1, %v3948_v23  ;;  %5958 = vmatmul.msk.f32.gmra.mxu3 %vm1728_vm1, %v3689_v25  ;;  %9392 = vst [vmem:[#allocation30_spill] sm:$0xff] %v8964_v17  ;;  %v3406_v25 = vpop.permute.xlu2 %3405  ;;  %v3579_v23 = vld [vmem:[#allocation3 + $0x80] sm:$0xff] }
 0x383   :  { %v8951_v56 = vpop.f32.mrf.mxu3 }
 0x385   :  { %v3658_v5 = vpop.permute.xlu1 %3657  ;;  %v8953_v51 = vpop.f32.mrf.mxu0 }
 0x386   :  { %v3691_v44 = vmul.f32 %v3658_v5, %v3579_v23  ;;  %v3951_v5 = vmul.f32 %v3910_v37, %v3839_v9 }
 0x387   :  { %v3920_v57 = vpop.permute.xlu0 %3919 }
 0x388   :  { %5896 = vmatmul.msk.f32.gmra.mxu1 %vm1728_vm1, %v3167_v21  ;;  %v8973_v21 = vpop.f32.mrf.mxu1  ;;  %v8979_v49 = vpop.f32.mrf.mxu2 }
 0x389   :  { %5988 = vmatmul.msk.f32.gmra.mxu0 %vm1728_vm1, %v3949_v22  ;;  %5959 = vmatmul.msk.f32.gmra.mxu3 %vm1728_vm1, %v3690_v14  ;;  %9393 = vst [vmem:[#allocation31_spill] sm:$0xff] %v8973_v21  ;;  %v3840_v22 = vld [vmem:[#allocation3 + $0x7a] sm:$0xff]  ;;  %v3144_v23 = vpop.permute.xlu2 %3143 }
 0x38a   :  { %9394 = vst [vmem:[#allocation29_spill] sm:$0xff] %v8979_v49  ;;  %v3952_v9 = vmul.f32 %v8934_v59, %v3840_v22 }
 0x38b   :  { %v8962_v19 = vpop.f32.mrf.mxu3 }
 0x38d   :  { %v3401_v18 = vpop.permute.xlu1 %3400  ;;  %v8966_v34 = vpop.f32.mrf.mxu0 }
 0x38e   :  { %v3430_v53 = vmul.f32 %v3401_v18, %v8709_v58  ;;  %v3431_v58 = vmul.f32 %v3406_v25, %v8735_v1  ;;  %v3057_v25 = vld [vmem:[#allocation3 + $0x82] sm:$0xff] }
 0x38f   :  { %v3668_v39 = vpop.permute.xlu0 %3667  ;;  %v3169_v36 = vmul.f32 %v3144_v23, %v3057_v25 }
 0x390   :  { %5929 = vmatmul.msk.f32.gmra.mxu2 %vm1728_vm1, %v3430_v53  ;;  %v3320_v53 = vld [vmem:[#allocation3 + $0x96] sm:$0xff]  ;;  %v3693_v38 = vmul.f32 %v3668_v39, %v8813_v35 }
 0x391   :  { %5989 = vmatmul.msk.f32.gmra.mxu0 %vm1728_vm1, %v3950_v29  ;;  %5960 = vmatmul.msk.f32.gmra.mxu3 %vm1728_vm1, %v3691_v44  ;;  %v8987_v29 = vpop.f32.mrf.mxu1 }
 0x392   :  { %9395 = vst [vmem:[#allocation32_spill] sm:$0xff] %v8987_v29 }
 0x393   :  { %v8975_v28 = vpop.f32.mrf.mxu3 }
 0x395   :  { %v3139_v14 = vpop.permute.xlu1 %3138  ;;  %v8977_v42 = vpop.f32.mrf.mxu0 }
 0x396   :  { %v3168_v55 = vmul.f32 %v3840_v22, %v3139_v14 }
 0x397   :  { %v3411_v18 = vpop.permute.xlu0 %3410 }
 0x398   :  { %5897 = vmatmul.msk.f32.gmra.mxu1 %vm1728_vm1, %v3168_v55  ;;  %5930 = vmatmul.msk.f32.gmra.mxu2 %vm1728_vm1, %v3431_v58  ;;  %v3432_v1 = vmul.f32 %v3411_v18, %v3320_v53  ;;  %v8995_v58 = vpop.f32.mrf.mxu2  ;;  %v3582_v18 = vld [vmem:[#allocation3 + $0x98] sm:$0xff] }
 0x399   :  { %5990 = vmatmul.msk.f32.gmra.mxu0 %vm1728_vm1, %v3951_v5  ;;  %5961 = vmatmul.msk.f32.gmra.mxu3 %vm1728_vm1, %v3692_v0  ;;  %9397 = vst [vmem:[#allocation34_spill] sm:$0xff] %v8995_v58  ;;  %v3930_v0 = vpop.permute.xlu2 %3929  ;;  %v3842_v5 = vld [vmem:[#allocation3 + $0x8a] sm:$0xff]  ;;  %v2255_v22 = vpop.f32.mrf.mxu1  ;;  %v3953_v58 = vmul.f32 %v3920_v57, %v3057_v25 }
 0x39c   :  { %v8989_v44 = vpop.f32.mrf.mxu3 }
 0x39d   :  { %9396 = vst [vmem:[#allocation33_spill] sm:$0xff] %v8989_v44  ;;  %v3925_v14 = vpop.permute.xlu1 %3924  ;;  %v8991_v37 = vpop.f32.mrf.mxu0 }
 0x39f   :  { %v3149_v55 = vpop.permute.xlu0 %3148 }
 0x3a0   :  { %5898 = vmatmul.msk.f32.gmra.mxu1 %vm1728_vm1, %v3169_v36  ;;  %5931 = vmatmul.msk.f32.gmra.mxu2 %vm1728_vm1, %v3432_v1  ;;  %v3170_v53 = vmul.f32 %v3842_v5, %v3149_v55  ;;  %v2501_v1 = vpop.f32.mrf.mxu2  ;;  %v3321_v36 = vld [vmem:[#allocation3 + $0x9e] sm:$0xff] }
 0x3a1   :  { %5991 = vmatmul.msk.f32.gmra.mxu0 %vm1728_vm1, %v3952_v9  ;;  %5962 = vmatmul.msk.f32.gmra.mxu3 %vm1728_vm1, %v3693_v38  ;;  %v3583_v9 = vld [vmem:[#allocation3 + $0xa0] sm:$0xff]  ;;  %v3678_v38 = vpop.permute.xlu2 %3677  ;;  %v3242_v55 = vpop.f32.mrf.mxu1 }
 0x3a4   :  { %v9001_v23 = vpop.f32.mrf.mxu3 }
 0x3a5   :  { %9398 = vst [vmem:[#allocation35_spill] sm:$0xff] %v9001_v23  ;;  %v3673_v59 = vpop.permute.xlu1 %3672  ;;  %v9003_v39 = vpop.f32.mrf.mxu0 }
 0x3a6   :  { %v3694_v35 = vmul.f32 %v3673_v59, %v3582_v18  ;;  %v3695_v18 = vmul.f32 %v3678_v38, %v3583_v9  ;;  %v3954_v59 = vmul.f32 %v3925_v14, %v3842_v5  ;;  %v3844_v14 = vld [vmem:[#allocation3 + $0x9a] sm:$0xff]  ;;  %v2211_v9 = vadd.f32 %v8634_v47, %v8492_v48 }
 0x3a7   :  { %v3935_v5 = vpop.permute.xlu0 %3934 }
 0x3a8   :  { %5899 = vmatmul.msk.f32.gmra.mxu1 %vm1728_vm1, %v3170_v53  ;;  %v3504_v57 = vpop.f32.mrf.mxu2  ;;  %v3956_v38 = vmul.f32 %v3935_v5, %v3844_v14  ;;  %v9033_v5 = vld [vmem:[#allocation13] ss:$0 sm:$0xff] }
 0x3a9   :  { %5992 = vmatmul.msk.f32.gmra.mxu0 %vm1728_vm1, %v3953_v58  ;;  %5963 = vmatmul.msk.f32.gmra.mxu3 %vm1728_vm1, %v3694_v35  ;;  %v3843_v58 = vld [vmem:[#allocation3 + $0x92] sm:$0xff]  ;;  %v3245_v17 = vpop.f32.mrf.mxu1 }
 0x3ac   :  { %v9008_v29 = vpop.f32.mrf.mxu3 }
 0x3ad   :  { %9399 = vst [vmem:[#allocation41_spill] sm:$0xff] %v9008_v29  ;;  %v3416_v23 = vpop.permute.xlu1 %3415  ;;  %v9010_v21 = vpop.f32.mrf.mxu0  ;;  %v3955_v29 = vmul.f32 %v3930_v0, %v3843_v58 }
 0x3ae   :  { %v3433_v49 = vmul.f32 %v3416_v23, %v3321_v36  ;;  %9400 = vst [vmem:[#allocation36_spill] sm:$0xff] %v9010_v21 }
 0x3b0   :  { %5932 = vmatmul.msk.f32.gmra.mxu2 %vm1728_vm1, %v3433_v49  ;;  %v3507_v23 = vpop.f32.mrf.mxu2 }
 0x3b1   :  { %5993 = vmatmul.msk.f32.gmra.mxu0 %vm1728_vm1, %v3954_v59  ;;  %5964 = vmatmul.msk.f32.gmra.mxu3 %vm1728_vm1, %v3695_v18  ;;  %v2504_v18 = vadd.f32 %v8645_v7, %v2211_v9  ;;  %v2256_v59 = vadd.f32 %v2255_v22, %v8751_v33  ;;  %v3248_v0 = vpop.f32.mrf.mxu1 }
 0x3b4   :  { %v2763_v25 = vpop.f32.mrf.mxu3 }
 0x3b5   :  { %v3154_v53 = vpop.permute.xlu1 %3153  ;;  %v9015_v44 = vpop.f32.mrf.mxu0 }
 0x3b6   :  { %v3171_v35 = vmul.f32 %v3843_v58, %v3154_v53  ;;  %9401 = vst [vmem:[#allocation38_spill] sm:$0xff] %v9015_v44  ;;  %v2766_v58 = vadd.f32 %v8781_v13, %v2504_v18  ;;  %v3845_v53 = vld [vmem:[#allocation3 + $0xa2] sm:$0xff]  ;;  %v3029_v13 = vadd.f32 %v8853_v30, %v8810_v10 }
 0x3b8   :  { %5900 = vmatmul.msk.f32.gmra.mxu1 %vm1728_vm1, %v3171_v35  ;;  %v3940_v35 = vpop.permute.xlu2 %3939  ;;  %v3028_v21 = vadd.f32 %v8835_v45, %v2766_v58  ;;  %v3510_v7 = vpop.f32.mrf.mxu2  ;;  %v3291_v45 = vadd.f32 %v3245_v17, %v3029_v13 }
 0x3b9   :  { %5994 = vmatmul.msk.f32.gmra.mxu0 %vm1728_vm1, %v3955_v29  ;;  %v2519_v29 = vadd.f32 %v2501_v1, %v2256_v59  ;;  %v3957_v48 = vmul.f32 %v3940_v35, %v3845_v53  ;;  %v3251_v33 = vpop.f32.mrf.mxu1 }
 0x3ba   :  { %v3290_v52 = vadd.f32 %v3242_v55, %v3028_v21 }
 0x3bc   :  { %v3766_v49 = vpop.f32.mrf.mxu3  ;;  %v3552_v22 = vadd.f32 %v3504_v57, %v3290_v52  ;;  %v3030_v52 = vadd.f32 %v8873_v6, %v8833_v40 }
 0x3bd   :  { %v9019_v36 = vpop.f32.mrf.mxu0 }
 0x3be   :  { %9402 = vst [vmem:[#allocation57_spill] sm:$0xff] %v9019_v36  ;;  %v2781_v36 = vadd.f32 %v2763_v25, %v2519_v29  ;;  %v3814_v1 = vadd.f32 %v3766_v49, %v3552_v22  ;;  %v3292_v30 = vadd.f32 %v3248_v0, %v3030_v52 }
 0x3c0   :  { %v3554_v58 = vadd.f32 %v3510_v7, %v3292_v30 }
 0x3c1   :  { %5995 = vmatmul.msk.f32.gmra.mxu0 %vm1728_vm1, %v3956_v38  ;;  %v3513_v38 = vpop.f32.mrf.mxu2 }
 0x3c4   :  { %v3769_v44 = vpop.f32.mrf.mxu3 }
 0x3c5   :  { %v3025_v61 = vpop.f32.mrf.mxu0 }
 0x3c6   :  { %v9028_v47 = vadd.f32 %v3025_v61, %v2781_v36  ;;  %v3553_v61 = vadd.f32 %v3507_v23, %v3291_v45  ;;  %v3254_v36 = vpop.f32.mrf.mxu1 }
 0x3c8   :  { %v3815_v57 = vadd.f32 %v3769_v44, %v3553_v61 }
 0x3c9   :  { %5996 = vmatmul.msk.f32.gmra.mxu0 %vm1728_vm1, %v3957_v48  ;;  %v3516_v59 = vpop.f32.mrf.mxu2  ;;  %v3031_v48 = vadd.f32 %v8893_v2, %v8851_v31  ;;  %v3032_v31 = vadd.f32 %v8909_v24, %v8869_v8 }
 0x3cb   :  { %v3293_v44 = vadd.f32 %v3251_v33, %v3031_v48 }
 0x3cc   :  { %v3772_v14 = vpop.f32.mrf.mxu3 }
 0x3cd   :  { %v4028_v9 = vpop.f32.mrf.mxu0  ;;  %v3816_v22 = vadd.f32 %v3772_v14, %v3554_v58  ;;  %v3555_v13 = vadd.f32 %v3513_v38, %v3293_v44 }
 0x3ce   :  { %v4076_v25 = vadd.f32 %v4028_v9, %v3814_v1  ;;  %v3257_v40 = vpop.f32.mrf.mxu1 }
 0x3d0   :  { %v4096_v21 = vadd.f32 %v9033_v5, %v4076_v25 }
 0x3d1   :  { %v3519_v9 = vpop.f32.mrf.mxu2 }
 0x3d2   :  { %v4112_v55 = vmax.f32 %v4096_v21, 0.0  ;;  %v3294_v21 = vadd.f32 %v3254_v36, %v3032_v31 }
 0x3d4   :  { %v3775_v18 = vpop.f32.mrf.mxu3  ;;  %4129 = vst.msk [vmem:[#allocation4] sm:$0xff] %vm4128_vm2, %v4112_v55  ;;  %v3556_v33 = vadd.f32 %v3516_v59, %v3294_v21  ;;  %v4146_v59 = vld [vmem:[#allocation16] sm:$0x3f]  ;;  %v4191_v21 = vld [vmem:[#allocation14 + $0xf0] sm:$0xff] }
 0x3d5   :  { %v3817_v2 = vadd.f32 %v3775_v18, %v3555_v13  ;;  %5997 = vmatpush.msk.msrb.mxu3 %vm4237_vm3, %v4146_v59  ;;  %v4192_v13 = vld [vmem:[#allocation14 + $0xf8] sm:$0xff] }
 0x3d6   :  { %v4031_v10 = vpop.f32.mrf.mxu0  ;;  %v3260_v14 = vpop.f32.mrf.mxu1  ;;  %4213 = vmatpush.msrb.mxu2 %v4192_v13  ;;  %v4188_v59 = vld [vmem:[#allocation14 + $0xd8] sm:$0xff] }
 0x3d7   :  { %v4077_v49 = vadd.f32 %v4031_v10, %v3815_v57 }
 0x3d8   :  { %4214 = vmatpush.msrb.mxu2 %v4191_v21 }
 0x3d9   :  { %v4097_v17 = vadd.f32 %v9033_v5, %v4077_v49  ;;  %v3522_v57 = vpop.f32.mrf.mxu2  ;;  %v3033_v49 = vadd.f32 %v8925_v54, %v8890_v32  ;;  %v4376_v54 = vld [vmem:[#allocation14 + $0x270] sm:$0xff] }
 0x3db   :  { %v4113_v29 = vmax.f32 %v4097_v17, 0.0  ;;  %v4150_v53 = vld [vmem:[#allocation4 + $0x6] sm:$0x3]  ;;  %v4148_v35 = vld [vmem:[#allocation4 + $0x2] sm:$0x3]  ;;  %v3295_v17 = vadd.f32 %v3257_v40, %v3033_v49  ;;  %v4173_v49 = vld [vmem:[#allocation14 + $0x60] sm:$0xff] }
 0x3dc   :  { %v3778_v23 = vpop.f32.mrf.mxu3  ;;  %4156 = vrot.lane.b32.xlu0 %v4150_v53, %s6352_s2  ;;  %4152 = vrot.lane.b32.xlu1 %v4148_v35, %s6352_s2  ;;  %v4377_v53 = vld [vmem:[#allocation14 + $0x278] sm:$0xff] }
 0x3dd   :  { %4130 = vst.msk [vmem:[#allocation4 + $0x8] sm:$0xff] %vm4128_vm2, %v4113_v29  ;;  %v3818_v8 = vadd.f32 %v3778_v23, %v3556_v33  ;;  %4394 = vmatpush.msra.mxu3 %v4377_v53  ;;  %v3557_v35 = vadd.f32 %v3519_v9, %v3295_v17  ;;  %v4190_v33 = vld [vmem:[#allocation14 + $0xe8] sm:$0xff] }
 0x3de   :  { %v4034_v6 = vpop.f32.mrf.mxu0  ;;  %v9056_v58 = vpop.f32.mrf.mxu1  ;;  %4215 = vmatpush.msrb.mxu2 %v4190_v33 }
 0x3df   :  { %v4078_v0 = vadd.f32 %v4034_v6, %v3816_v22  ;;  %4395 = vmatpush.msra.mxu3 %v4376_v54  ;;  %v3034_v6 = vadd.f32 %v8938_v11, %v8907_v12  ;;  %v4374_v12 = vld [vmem:[#allocation14 + $0x260] sm:$0xff]  ;;  %v4187_v54 = vld [vmem:[#allocation14 + $0xd0] sm:$0xff] }
 0x3e1   :  { %v4098_v7 = vadd.f32 %v9033_v5, %v4078_v0  ;;  %v3525_v9 = vpop.f32.mrf.mxu2 }
 0x3e3   :  { %v4114_v1 = vmax.f32 %v4098_v7, 0.0  ;;  %v4176_v7 = vld [vmem:[#allocation14 + $0x78] sm:$0xff] }
 0x3e4   :  { %v3781_v45 = vpop.f32.mrf.mxu3  ;;  %v4264_v38 = vld [vmem:[#allocation4 + $0xe] sm:$0x3]  ;;  %v4262_v22 = vld [vmem:[#allocation4 + $0xa] sm:$0x3]  ;;  %4193 = vmatpush.msrb.mxu1 %v4176_v7 }
 0x3e5   :  { %4131 = vst.msk [vmem:[#allocation4 + $0x10] sm:$0xff] %vm4128_vm2, %v4114_v1  ;;  %v3819_v44 = vadd.f32 %v3781_v45, %v3557_v35  ;;  %v4375_v1 = vld [vmem:[#allocation14 + $0x268] sm:$0xff] }
 0x3e6   :  { %v4037_v25 = vpop.f32.mrf.mxu0  ;;  %4396 = vmatpush.msra.mxu3 %v4375_v1  ;;  %v4174_v45 = vld [vmem:[#allocation14 + $0x68] sm:$0xff]  ;;  %v4185_v1 = vld [vmem:[#allocation14 + $0xc0] sm:$0xff] }
 0x3e7   :  { %v4079_v61 = vadd.f32 %v4037_v25, %v3817_v2  ;;  %v4175_v25 = vld [vmem:[#allocation14 + $0x70] sm:$0xff] }
 0x3e8   :  { %4194 = vmatpush.msrb.mxu1 %v4175_v25  ;;  %4397 = vmatpush.msra.mxu3 %v4374_v12 }
 0x3e9   :  { %v4099_v55 = vadd.f32 %v9033_v5, %v4079_v61  ;;  %v3296_v61 = vadd.f32 %v3260_v14, %v3034_v6  ;;  %v4369_v6 = vld [vmem:[#allocation14 + $0x238] sm:$0xff] }
 0x3ea   :  { %4195 = vmatpush.msrb.mxu1 %v4174_v45  ;;  %v4367_v45 = vld [vmem:[#allocation14 + $0x228] sm:$0xff] }
 0x3eb   :  { %v4115_v52 = vmax.f32 %v4099_v55, 0.0 }
 0x3ec   :  { %v9050_v10 = vpop.f32.mrf.mxu3  ;;  %v4349_v30 = vld [vmem:[#allocation4 + $0x12] sm:$0x3]  ;;  %v4351_v2 = vld [vmem:[#allocation4 + $0x16] sm:$0x3]  ;;  %4196 = vmatpush.msrb.mxu1 %v4173_v49 }
 0x3ed   :  { %4132 = vst.msk [vmem:[#allocation4 + $0x18] sm:$0xff] %vm4128_vm2, %v4115_v52  ;;  %v6028_v24 = vpack.i.bf16 %v4349_v30, %v4264_v38  ;;  %v4373_v52 = vld [vmem:[#allocation14 + $0x258] sm:$0xff]  ;;  %v9068_v38 = vpop.f32.mrf.mxu1  ;;  %v3558_v30 = vadd.f32 %v3522_v57, %v3296_v61  ;;  %v2235_v57 = vadd.f32 %v8879_v27, %v8705_v26  ;;  %v4170_v26 = vld [vmem:[#allocation14 + $0x48] sm:$0xff]  ;;  %v4366_v49 = vld [vmem:[#allocation14 + $0x220] sm:$0xff] }
 0x3ee   :  { %v4040_v18 = vpop.f32.mrf.mxu0  ;;  %4398 = vmatpush.msra.mxu3 %v4373_v52  ;;  %v4186_v27 = vld [vmem:[#allocation14 + $0xc8] sm:$0xff]  ;;  %v4167_v52 = vld [vmem:[#allocation14 + $0x30] sm:$0xff] }
 0x3ef   :  { %v4080_v36 = vadd.f32 %v4040_v18, %v3818_v8  ;;  %6029 = vrot.lane.b32.xlu2 %v6028_v24, %s6352_s2  ;;  %v4189_v8 = vld [vmem:[#allocation14 + $0xe0] sm:$0xff]  ;;  %v4372_v24 = vld [vmem:[#allocation14 + $0x250] sm:$0xff]  ;;  %v3035_v18 = vadd.f32 %v8953_v51, %v8923_v15  ;;  %v3820_v17 = vadd.f32 %v9050_v10, %v3558_v30 }
 0x3f0   :  { %4216 = vmatpush.msrb.mxu2 %v4189_v8  ;;  %4399 = vmatpush.msra.mxu3 %v4372_v24  ;;  %v4370_v10 = vld [vmem:[#allocation14 + $0x240] sm:$0xff] }
 0x3f1   :  { %v4100_v29 = vadd.f32 %v9033_v5, %v4080_v36  ;;  %v4172_v36 = vld [vmem:[#allocation14 + $0x58] sm:$0xff]  ;;  %v3297_v15 = vadd.f32 %v9056_v58, %v3035_v18 }
 0x3f2   :  { %4197 = vmatpush.msrb.mxu1 %v4172_v36  ;;  %4217 = vmatpush.msrb.mxu2 %v4188_v59 }
 0x3f3   :  { %v4116_v32 = vmax.f32 %v4100_v29, 0.0  ;;  %v4371_v29 = vld [vmem:[#allocation14 + $0x248] sm:$0xff]  ;;  %v3559_v58 = vadd.f32 %v3525_v9, %v3297_v15  ;;  %v4168_v9 = vld [vmem:[#allocation14 + $0x38] sm:$0xff] }
 0x3f4   :  { %v4438_v23 = vld [vmem:[#allocation4 + $0x1e] sm:$0x3]  ;;  %v9059_v48 = vpop.f32.mrf.mxu3  ;;  %v4436_v40 = vld [vmem:[#allocation4 + $0x1a] sm:$0x3]  ;;  %4400 = vmatpush.msra.mxu3 %v4371_v29  ;;  %4218 = vmatpush.msrb.mxu2 %v4187_v54 }
 0x3f5   :  { %4133 = vst.msk [vmem:[#allocation4 + $0x20] sm:$0xff] %vm4128_vm2, %v4116_v32  ;;  %4444 = vrot.lane.b32.xlu1 %v4438_v23, %s6352_s2  ;;  %v6033_v0 = vpack.i.bf16 %v4436_v40, %v4262_v22  ;;  %v4171_v32 = vld [vmem:[#allocation14 + $0x50] sm:$0xff]  ;;  %v2512_v23 = vadd.f32 %v8888_v4, %v2235_v57  ;;  %v3528_v22 = vpop.f32.mrf.mxu2  ;;  %v4169_v4 = vld [vmem:[#allocation14 + $0x40] sm:$0xff] }
 0x3f6   :  { %v4043_v31 = vpop.f32.mrf.mxu0  ;;  %4198 = vmatpush.msrb.mxu1 %v4171_v32  ;;  %4401 = vmatpush.msra.mxu3 %v4370_v10  ;;  %v4165_v57 = vld [vmem:[#allocation14 + $0x20] sm:$0xff]  ;;  %v4364_v32 = vld [vmem:[#allocation14 + $0x210] sm:$0xff]  ;;  %v4180_v10 = vld [vmem:[#allocation14 + $0x98] sm:$0xff] }
 0x3f7   :  { %v4081_v55 = vadd.f32 %v4043_v31, %v3819_v44  ;;  %4357 = vrot.lane.b32.xlu2 %v4351_v2, %s6352_s2  ;;  %6034 = vrot.lane.b32.xlu0 %v6033_v0, %s6352_s2  ;;  %v2774_v44 = vadd.f32 %v8936_v50, %v2512_v23  ;;  %v9082_v0 = vpop.f32.mrf.mxu1  ;;  %v4368_v31 = vld [vmem:[#allocation14 + $0x230] sm:$0xff]  ;;  %v3821_v50 = vadd.f32 %v9059_v48, %v3559_v58 }
 0x3f8   :  { %4199 = vmatpush.msrb.mxu1 %v4170_v26  ;;  %4219 = vmatpush.msrb.mxu2 %v4186_v27  ;;  %v4183_v48 = vld [vmem:[#allocation14 + $0xb0] sm:$0xff]  ;;  %v2241_v23 = vadd.f32 %v8921_v20, %v8761_v62  ;;  %v4162_v62 = vld [vmem:[#allocation14 + $0x8] sm:$0xff] }
 0x3f9   :  { %v4101_v11 = vadd.f32 %v9033_v5, %v4081_v55  ;;  %v3036_v2 = vadd.f32 %v8966_v34, %v2774_v44  ;;  %4402 = vmatpush.msra.mxu3 %v4369_v6  ;;  %v2238_v34 = vadd.f32 %v8905_v63, %v8731_v60  ;;  %v4166_v60 = vld [vmem:[#allocation14 + $0x28] sm:$0xff]  ;;  %v4362_v6 = vld [vmem:[#allocation14 + $0x200] sm:$0xff] }
 0x3fa   :  { %4200 = vmatpush.msrb.mxu1 %v4169_v4  ;;  %4220 = vmatpush.msrb.mxu2 %v4185_v1  ;;  %v4182_v63 = vld [vmem:[#allocation14 + $0xa8] sm:$0xff] }
 0x3fb   :  { %v4117_v14 = vmax.f32 %v4101_v11, 0.0  ;;  %v4184_v11 = vld [vmem:[#allocation14 + $0xb8] sm:$0xff]  ;;  %4403 = vmatpush.msra.mxu3 %v4368_v31  ;;  %v3298_v30 = vadd.f32 %v9068_v38, %v3036_v2  ;;  %v2513_v18 = vadd.f32 %v8911_v41, %v2238_v34  ;;  %v4145_v44 = vld [vmem:[#allocation6] sm:$0x3]  ;;  %v4479_v31 = vld [vmem:[#allocation14 + $0x3f0] sm:$0xff] }
 0x3fc   :  { %v9076_v53 = vpop.f32.mrf.mxu3  ;;  %v4523_v7 = vld [vmem:[#allocation4 + $0x22] sm:$0x3]  ;;  %v4525_v21 = vld [vmem:[#allocation4 + $0x26] sm:$0x3]  ;;  %4201 = vmatpush.msrb.mxu1 %v4168_v9  ;;  %4221 = vmatpush.msrb.mxu2 %v4184_v11  ;;  %v4365_v38 = vld [vmem:[#allocation14 + $0x218] sm:$0xff] }
 0x3fd   :  { %4134 = vst.msk [vmem:[#allocation4 + $0x28] sm:$0xff] %vm4128_vm2, %v4117_v14  ;;  %v3531_v8 = vpop.f32.mrf.mxu2  ;;  %4404 = vmatpush.msra.mxu3 %v4367_v45  ;;  %v2775_v36 = vadd.f32 %v8951_v56, %v2513_v18  ;;  %v3560_v59 = vadd.f32 %v3528_v22, %v3298_v30  ;;  %v4363_v56 = vld [vmem:[#allocation14 + $0x208] sm:$0xff]  ;;  %v4290_v9 = vld [vmem:[#allocation14 + $0x178] sm:$0xff] }
 0x3fe   :  { %v4046_v35 = vpop.f32.mrf.mxu0  ;;  %4202 = vmatpush.msrb.mxu1 %v4167_v52  ;;  %4222 = vmatpush.msrb.mxu2 %v4183_v48  ;;  %v4178_v20 = vld [vmem:[#allocation14 + $0x88] sm:$0xff] }
 0x3ff   :  { %v4082_v51 = vadd.f32 %v4046_v35, %v3820_v17  ;;  %4405 = vmatpush.msra.mxu3 %v4366_v49  ;;  %v4181_v35 = vld [vmem:[#allocation14 + $0xa0] sm:$0xff]  ;;  %v9097_v54 = vpop.f32.mrf.mxu1  ;;  %v3037_v41 = vadd.f32 %v8977_v42, %v2775_v36  ;;  %v3822_v15 = vadd.f32 %v9076_v53, %v3560_v59  ;;  %v4179_v42 = vld [vmem:[#allocation14 + $0x90] sm:$0xff]  ;;  %v2514_v53 = vadd.f32 %v8928_v43, %v2241_v23  ;;  %v4478_v52 = vld [vmem:[#allocation14 + $0x3e8] sm:$0xff] }
 0x400   :  { %4203 = vmatpush.msrb.mxu1 %v4166_v60  ;;  %4223 = vmatpush.msrb.mxu2 %v4182_v63  ;;  %v4288_v18 = vld [vmem:[#allocation14 + $0x168] sm:$0xff] }
 0x401   :  { %v4102_v40 = vadd.f32 %v9033_v5, %v4082_v51  ;;  %4406 = vmatpush.msra.mxu3 %v4365_v38  ;;  %v4164_v51 = vld [vmem:[#allocation14 + $0x18] sm:$0xff]  ;;  %v3299_v26 = vadd.f32 %v9082_v0, %v3037_v41  ;;  %v4304_v63 = vld [vmem:[#allocation14 + $0x1e8] sm:$0xff] }
 0x402   :  { %4204 = vmatpush.msrb.mxu1 %v4165_v57  ;;  %4224 = vmatpush.msrb.mxu2 %v4181_v35  ;;  %v4476_v38 = vld [vmem:[#allocation14 + $0x3d8] sm:$0xff]  ;;  %v4475_v57 = vld [vmem:[#allocation14 + $0x3d0] sm:$0xff] }
 0x403   :  { %v4118_v13 = vmax.f32 %v4102_v40, 0.0  ;;  %4407 = vmatpush.msra.mxu3 %v4364_v32  ;;  %v4163_v40 = vld [vmem:[#allocation14 + $0x10] sm:$0xff]  ;;  %v3561_v43 = vadd.f32 %v3531_v8, %v3299_v26 }
 0x404   :  { %v4612_v25 = vld [vmem:[#allocation4 + $0x2e] sm:$0x3]  ;;  %v4610_v61 = vld [vmem:[#allocation4 + $0x2a] sm:$0x3]  ;;  %v9092_v24 = vpop.f32.mrf.mxu3  ;;  %4205 = vmatpush.msrb.mxu1 %v4164_v51  ;;  %4225 = vmatpush.msrb.mxu2 %v4180_v10  ;;  %v4474_v51 = vld [vmem:[#allocation14 + $0x3c8] sm:$0xff] }
 0x405   :  { %4135 = vst.msk [vmem:[#allocation4 + $0x30] sm:$0xff] %vm4128_vm2, %v4118_v13  ;;  %v6043_v55 = vpack.i.bf16 %v4612_v25, %v4523_v7  ;;  %v6038_v12 = vpack.i.bf16 %v4610_v61, %v4525_v21  ;;  %4408 = vmatpush.msra.mxu3 %v4363_v56  ;;  %v4480_v7 = vld [vmem:[#allocation14 + $0x3f8] sm:$0xff]  ;;  %v2776_v13 = vadd.f32 %v8962_v19, %v2514_v53  ;;  %v3534_v0 = vpop.f32.mrf.mxu2  ;;  %v4161_v21 = vld [vmem:[#allocation14] sm:$0xff]  ;;  %v4305_v8 = vld [vmem:[#allocation14 + $0x1f0] sm:$0xff] }
 0x406   :  { %v4049_v33 = vpop.f32.mrf.mxu0  ;;  %4206 = vmatpush.msrb.mxu1 %v4163_v40  ;;  %5998 = vmatmul.msk.f32.vlgmr.msrb.gmra.mxu3 %vm4233_vm4, %v4145_v44  ;;  %v4177_v61 = vld [vmem:[#allocation14 + $0x80] sm:$0xff]  ;;  %v3823_v19 = vadd.f32 %v9092_v24, %v3561_v43  ;;  %v4285_v40 = vld [vmem:[#allocation14 + $0x150] sm:$0xff]  ;;  %v4284_v44 = vld [vmem:[#allocation14 + $0x148] sm:$0xff] }
 0x407   :  { %v4083_v14 = vadd.f32 %v4049_v33, %v3821_v50  ;;  %6044 = vrot.lane.b32.xlu1 %v6043_v55, %s6352_s2  ;;  %6039 = vrot.lane.b32.xlu0 %v6038_v12, %s6352_s2  ;;  %v3038_v50 = vadd.f32 %v8991_v37, %v2776_v13  ;;  %v4306_v33 = vld [vmem:[#allocation14 + $0x1f8] sm:$0xff]  ;;  %v3275_v34 = vpop.f32.mrf.mxu1  ;;  %v2244_v37 = vadd.f32 %v8940_v3, %v8787_v16  ;;  %v4477_v24 = vld [vmem:[#allocation14 + $0x3e0] sm:$0xff]  ;;  %v9406_v13 = vld [vmem:[#allocation33_spill] sm:$0xff] }
 0x408   :  { %4226 = vmatpush.msrb.mxu2 %v4179_v42  ;;  %4409 = vmatpush.msra.mxu3 %v4362_v6  ;;  %v4287_v16 = vld [vmem:[#allocation14 + $0x160] sm:$0xff]  ;;  %v4301_v42 = vld [vmem:[#allocation14 + $0x1d0] sm:$0xff] }
 0x409   :  { %v4103_v17 = vadd.f32 %v9033_v5, %v4083_v14  ;;  %4207 = vmatpush.msrb.mxu1 %v4162_v62  ;;  %v4289_v14 = vld [vmem:[#allocation14 + $0x170] sm:$0xff]  ;;  %v3300_v48 = vadd.f32 %v9097_v54, %v3038_v50  ;;  %v9403_v10 = vld [vmem:[#allocation27_spill] sm:$0xff] }
 0x40a   :  { %4501 = vmatpush.msrb.mxu3 %v4480_v7  ;;  %4227 = vmatpush.msrb.mxu2 %v4178_v20  ;;  %v4473_v6 = vld [vmem:[#allocation14 + $0x3c0] sm:$0xff]  ;;  %v4472_v62 = vld [vmem:[#allocation14 + $0x3b8] sm:$0xff] }
 0x40b   :  { %v4119_v29 = vmax.f32 %v4103_v17, 0.0  ;;  %4208 = vmatpush.msrb.mxu1 %v4161_v21  ;;  %v2515_v17 = vadd.f32 %v8949_v46, %v2244_v37  ;;  %v3562_v36 = vadd.f32 %v3534_v0, %v3300_v48  ;;  %v4286_v46 = vld [vmem:[#allocation14 + $0x158] sm:$0xff]  ;;  %v4653_v21 = vld [vmem:[#allocation14 + $0x5f0] sm:$0xff]  ;;  %v4470_v37 = vld [vmem:[#allocation14 + $0x3a8] sm:$0xff] }
 0x40c   :  { %v3796_v4 = vpop.f32.mrf.mxu3  ;;  %v4697_v1 = vld [vmem:[#allocation4 + $0x32] sm:$0x3]  ;;  %v4699_v25 = vld [vmem:[#allocation4 + $0x36] sm:$0x3]  ;;  %4502 = vmatpush.msrb.mxu3 %v4479_v31  ;;  %4228 = vmatpush.msrb.mxu2 %v4177_v61  ;;  %v9407_v61 = vld [vmem:[#allocation36_spill] sm:$0xff] }
 0x40d   :  { %4136 = vst.msk [vmem:[#allocation4 + $0x38] sm:$0xff] %vm4128_vm2, %v4119_v29  ;;  %4307 = vmatpush.msra.mxu1 %v4290_v9  ;;  %v2777_v3 = vadd.f32 %v8975_v28, %v2515_v17  ;;  %v4303_v29 = vld [vmem:[#allocation14 + $0x1e0] sm:$0xff]  ;;  %v3537_v35 = vpop.f32.mrf.mxu2  ;;  %v3824_v41 = vadd.f32 %v3796_v4, %v3562_v36  ;;  %v4654_v20 = vld [vmem:[#allocation14 + $0x5f8] sm:$0xff]  ;;  %v4652_v48 = vld [vmem:[#allocation14 + $0x5e8] sm:$0xff] }
 0x40e   :  { %v4052_v22 = vpop.f32.mrf.mxu0  ;;  %4327 = vmatpush.msra.mxu2 %v4306_v33  ;;  %4503 = vmatpush.msrb.mxu3 %v4478_v52  ;;  %v9404_v28 = vld [vmem:[#allocation28_spill] sm:$0xff]  ;;  %v4282_v52 = vld [vmem:[#allocation14 + $0x138] sm:$0xff]  ;;  %v9410_v36 = vld [vmem:[#allocation29_spill] sm:$0xff] }
 0x40f   :  { %v4084_v27 = vadd.f32 %v4052_v22, %v3822_v15  ;;  %4308 = vmatpush.msra.mxu1 %v4289_v14  ;;  %v3039_v54 = vadd.f32 %v9003_v39, %v2777_v3  ;;  %v4302_v15 = vld [vmem:[#allocation14 + $0x1d8] sm:$0xff]  ;;  %v2247_v56 = vadd.f32 %v9404_v28, %v9403_v10  ;;  %4675 = vmatpush.msrb.mxu0 %v4654_v20  ;;  %v4651_v3 = vld [vmem:[#allocation14 + $0x5e0] sm:$0xff] }
 0x410   :  { %4328 = vmatpush.msra.mxu2 %v4305_v8  ;;  %4504 = vmatpush.msrb.mxu3 %v4477_v24  ;;  %v9405_v39 = vld [vmem:[#allocation30_spill] sm:$0xff]  ;;  %v9409_v8 = vld [vmem:[#allocation31_spill] sm:$0xff] }
 0x411   :  { %v4104_v58 = vadd.f32 %v9033_v5, %v4084_v27  ;;  %4309 = vmatpush.msra.mxu1 %v4288_v18  ;;  %v3301_v26 = vadd.f32 %v3275_v34, %v3039_v54  ;;  %v2516_v53 = vadd.f32 %v9405_v39, %v2247_v56  ;;  %4676 = vmatpush.msrb.mxu0 %v4653_v21  ;;  %v4298_v34 = vld [vmem:[#allocation14 + $0x1b8] sm:$0xff]  ;;  %v4279_v10 = vld [vmem:[#allocation14 + $0x120] sm:$0xff]  ;;  %v4467_v56 = vld [vmem:[#allocation14 + $0x390] sm:$0xff] }
 0x412   :  { %4329 = vmatpush.msra.mxu2 %v4304_v63  ;;  %4505 = vmatpush.msrb.mxu3 %v4476_v38  ;;  %v4297_v63 = vld [vmem:[#allocation14 + $0x1b0] sm:$0xff]  ;;  %v9411_v54 = vld [vmem:[#allocation35_spill] sm:$0xff]  ;;  %v9414_v39 = vld [vmem:[#allocation32_spill] sm:$0xff] }
 0x413   :  { %v4120_v2 = vmax.f32 %v4104_v58, 0.0  ;;  %4310 = vmatpush.msra.mxu1 %v4287_v16  ;;  %v4300_v58 = vld [vmem:[#allocation14 + $0x1c8] sm:$0xff]  ;;  %v2778_v0 = vadd.f32 %v9406_v13, %v2516_v53  ;;  %v3563_v31 = vadd.f32 %v3537_v35, %v3301_v26  ;;  %v4469_v16 = vld [vmem:[#allocation14 + $0x3a0] sm:$0xff]  ;;  %4677 = vmatpush.msrb.mxu0 %v4652_v48 }
 0x414   :  { %v4786_v55 = vld [vmem:[#allocation4 + $0x3e] sm:$0x3]  ;;  %v4784_v12 = vld [vmem:[#allocation4 + $0x3a] sm:$0x3]  ;;  %v3799_v32 = vpop.f32.mrf.mxu3  ;;  %4330 = vmatpush.msra.mxu2 %v4303_v29  ;;  %4506 = vmatpush.msrb.mxu3 %v4475_v57 }
 0x415   :  { %4137 = vst.msk [vmem:[#allocation4 + $0x40] sm:$0xff] %vm4128_vm2, %v4120_v2  ;;  %v6053_v11 = vpack.i.bf16 %v4786_v55, %v4697_v1  ;;  %v6048_v45 = vpack.i.bf16 %v4784_v12, %v4699_v25  ;;  %v3278_v23 = vpop.f32.mrf.mxu1  ;;  %4311 = vmatpush.msra.mxu1 %v4286_v46  ;;  %v4283_v1 = vld [vmem:[#allocation14 + $0x140] sm:$0xff]  ;;  %v4471_v25 = vld [vmem:[#allocation14 + $0x3b0] sm:$0xff]  ;;  %v3040_v50 = vadd.f32 %v9407_v61, %v2778_v0  ;;  %v3540_v55 = vpop.f32.mrf.mxu2  ;;  %v4280_v57 = vld [vmem:[#allocation14 + $0x128] sm:$0xff] }
 0x416   :  { %v4055_v30 = vpop.f32.mrf.mxu0  ;;  %4331 = vmatpush.msra.mxu2 %v4302_v15  ;;  %4507 = vmatpush.msrb.mxu3 %v4474_v51  ;;  %v4299_v2 = vld [vmem:[#allocation14 + $0x1c0] sm:$0xff]  ;;  %v4296_v35 = vld [vmem:[#allocation14 + $0x1a8] sm:$0xff]  ;;  %v4650_v46 = vld [vmem:[#allocation14 + $0x5d8] sm:$0xff] }
 0x417   :  { %v4085_v49 = vadd.f32 %v4055_v30, %v3823_v19  ;;  %6054 = vrot.lane.b32.xlu0 %v6053_v11, %s6352_s2  ;;  %6049 = vrot.lane.b32.xlu2 %v6048_v45, %s6352_s2  ;;  %v3825_v11 = vadd.f32 %v3799_v32, %v3563_v31  ;;  %v3302_v18 = vadd.f32 %v3278_v23, %v3040_v50  ;;  %v4468_v32 = vld [vmem:[#allocation14 + $0x398] sm:$0xff]  ;;  %v4295_v28 = vld [vmem:[#allocation14 + $0x1a0] sm:$0xff]  ;;  %v4649_v23 = vld [vmem:[#allocation14 + $0x5d0] sm:$0xff] }
 0x418   :  { %4312 = vmatpush.msra.mxu1 %v4285_v40  ;;  %4332 = vmatpush.msra.mxu2 %v4301_v42  ;;  %v4294_v42 = vld [vmem:[#allocation14 + $0x198] sm:$0xff]  ;;  %v4277_v0 = vld [vmem:[#allocation14 + $0x110] sm:$0xff]  ;;  %v4276_v61 = vld [vmem:[#allocation14 + $0x108] sm:$0xff] }
 0x419   :  { %v4105_v60 = vadd.f32 %v9033_v5, %v4085_v49  ;;  %4508 = vmatpush.msrb.mxu3 %v4473_v6  ;;  %v9408_v49 = vld [vmem:[#allocation25_spill] sm:$0xff]  ;;  %v3564_v15 = vadd.f32 %v3540_v55, %v3302_v18  ;;  %4678 = vmatpush.msrb.mxu0 %v4651_v3  ;;  %v9413_v6 = vld [vmem:[#allocation26_spill] sm:$0xff] }
 0x41a   :  { %4313 = vmatpush.msra.mxu1 %v4284_v44  ;;  %4333 = vmatpush.msra.mxu2 %v4300_v58  ;;  %v2250_v24 = vadd.f32 %v9409_v8, %v9408_v49  ;;  %v2253_v53 = vadd.f32 %v9414_v39, %v9413_v6  ;;  %v4466_v58 = vld [vmem:[#allocation14 + $0x388] sm:$0xff] }
 0x41b   :  { %v4121_v59 = vmax.f32 %v4105_v60, 0.0  ;;  %4509 = vmatpush.msrb.mxu3 %v4472_v62  ;;  %v4281_v60 = vld [vmem:[#allocation14 + $0x130] sm:$0xff]  ;;  %4679 = vmatpush.msrb.mxu0 %v4650_v46  ;;  %v4648_v62 = vld [vmem:[#allocation14 + $0x5c8] sm:$0xff]  ;;  %v4642_v46 = vld [vmem:[#allocation14 + $0x598] sm:$0xff] }
 0x41c   :  { %v4871_v4 = vld [vmem:[#allocation4 + $0x42] sm:$0x3]  ;;  %v4873_v9 = vld [vmem:[#allocation4 + $0x46] sm:$0x3]  ;;  %4314 = vmatpush.msra.mxu1 %v4283_v1  ;;  %v3802_v30 = vpop.f32.mrf.mxu3  ;;  %4334 = vmatpush.msra.mxu2 %v4299_v2  ;;  %v9415_v1 = vld [vmem:[#allocation34_spill] sm:$0xff] }
 0x41d   :  { %4138 = vst.msk [vmem:[#allocation4 + $0x48] sm:$0xff] %vm4128_vm2, %v4121_v59  ;;  %4510 = vmatpush.msrb.mxu3 %v4471_v25  ;;  %v3281_v38 = vpop.f32.mrf.mxu1  ;;  %v2517_v59 = vadd.f32 %v9410_v36, %v2250_v24  ;;  %v3826_v26 = vadd.f32 %v3802_v30, %v3564_v15  ;;  %v3543_v44 = vpop.f32.mrf.mxu2  ;;  %4680 = vmatpush.msrb.mxu0 %v4649_v23  ;;  %v4465_v2 = vld [vmem:[#allocation14 + $0x380] sm:$0xff]  ;;  %v4292_v50 = vld [vmem:[#allocation14 + $0x188] sm:$0xff]  ;;  %v4641_v15 = vld [vmem:[#allocation14 + $0x590] sm:$0xff] }
 0x41e   :  { %v4058_v22 = vpop.f32.mrf.mxu0  ;;  %4315 = vmatpush.msra.mxu1 %v4282_v52  ;;  %4335 = vmatpush.msra.mxu2 %v4298_v34  ;;  %v2518_v31 = vadd.f32 %v9415_v1, %v2253_v53  ;;  %v4647_v25 = vld [vmem:[#allocation14 + $0x5c0] sm:$0xff]  ;;  %v9416_v55 = vld [vmem:[#allocation41_spill] sm:$0xff] }
 0x41f   :  { %v4086_v27 = vadd.f32 %v4058_v22, %v3824_v41  ;;  %4511 = vmatpush.msrb.mxu3 %v4470_v37  ;;  %v2779_v41 = vadd.f32 %v9411_v54, %v2517_v59  ;;  %v9412_v22 = vld [vmem:[#allocation38_spill] sm:$0xff]  ;;  %4681 = vmatpush.msrb.mxu0 %v4648_v62  ;;  %v4275_v52 = vld [vmem:[#allocation14 + $0x100] sm:$0xff]  ;;  %v9417_v30 = vld [vmem:[#allocation57_spill] sm:$0xff] }
 0x420   :  { %4316 = vmatpush.msra.mxu1 %v4281_v60  ;;  %4336 = vmatpush.msra.mxu2 %v4297_v63  ;;  %v4291_v34 = vld [vmem:[#allocation14 + $0x180] sm:$0xff]  ;;  %v4827_v62 = vld [vmem:[#allocation14 + $0x7f0] sm:$0xff] }
 0x421   :  { %v4106_v7 = vadd.f32 %v9033_v5, %v4086_v27  ;;  %4512 = vmatpush.msrb.mxu3 %v4469_v16  ;;  %v3041_v40 = vadd.f32 %v9412_v22, %v2779_v41  ;;  %v4278_v27 = vld [vmem:[#allocation14 + $0x118] sm:$0xff]  ;;  %4682 = vmatpush.msrb.mxu0 %v4647_v25  ;;  %v4644_v16 = vld [vmem:[#allocation14 + $0x5a8] sm:$0xff]  ;;  %v4643_v59 = vld [vmem:[#allocation14 + $0x5a0] sm:$0xff] }
 0x422   :  { %4317 = vmatpush.msra.mxu1 %v4280_v57  ;;  %4337 = vmatpush.msra.mxu2 %v4296_v35  ;;  %v4348_v25 = vld [vmem:[#allocation4 + $0x10] sm:$0x3] }
 0x423   :  { %v4122_v43 = vmax.f32 %v4106_v7, 0.0  ;;  %4513 = vmatpush.msrb.mxu3 %v4468_v32  ;;  %v3303_v20 = vadd.f32 %v3281_v38, %v3041_v40  ;;  %v4639_v40 = vld [vmem:[#allocation14 + $0x580] sm:$0xff] }
 0x424   :  { %v4960_v12 = vld [vmem:[#allocation4 + $0x4e] sm:$0x3]  ;;  %v4958_v19 = vld [vmem:[#allocation4 + $0x4a] sm:$0x3]  ;;  %4318 = vmatpush.msra.mxu1 %v4279_v10  ;;  %4338 = vmatpush.msra.mxu2 %v4295_v28  ;;  %v4640_v28 = vld [vmem:[#allocation14 + $0x588] sm:$0xff] }
 0x425   :  { %4139 = vst.msk [vmem:[#allocation4 + $0x50] sm:$0xff] %vm4128_vm2, %v4122_v43  ;;  %v6063_v45 = vpack.i.bf16 %v4960_v12, %v4871_v4  ;;  %v6058_v33 = vpack.i.bf16 %v4958_v19, %v4873_v9  ;;  %4514 = vmatpush.msrb.mxu3 %v4467_v56  ;;  %v4293_v4 = vld [vmem:[#allocation14 + $0x190] sm:$0xff]  ;;  %v3805_v43 = vpop.f32.mrf.mxu3  ;;  %v2780_v12 = vadd.f32 %v9416_v55, %v2518_v31  ;;  %v3284_v9 = vpop.f32.mrf.mxu1  ;;  %v4646_v19 = vld [vmem:[#allocation14 + $0x5b8] sm:$0xff]  ;;  %v4825_v31 = vld [vmem:[#allocation14 + $0x7e0] sm:$0xff] }
 0x426   :  { %v4061_v14 = vpop.f32.mrf.mxu0  ;;  %4319 = vmatpush.msra.mxu1 %v4278_v27  ;;  %4339 = vmatpush.msra.mxu2 %v4294_v42  ;;  %v3546_v3 = vpop.f32.mrf.mxu2  ;;  %v4637_v55 = vld [vmem:[#allocation14 + $0x570] sm:$0xff] }
 0x427   :  { %v4087_v17 = vadd.f32 %v4061_v14, %v3825_v11  ;;  %6064 = vrot.lane.b32.xlu2 %v6063_v45, %s6352_s2  ;;  %6059 = vrot.lane.b32.xlu1 %v6058_v33, %s6352_s2  ;;  %v3565_v11 = vadd.f32 %v3543_v44, %v3303_v20  ;;  %v3042_v14 = vadd.f32 %v9417_v30, %v2780_v12  ;;  %v4823_v12 = vld [vmem:[#allocation14 + $0x7d0] sm:$0xff]  ;;  %v4636_v30 = vld [vmem:[#allocation14 + $0x568] sm:$0xff] }
 0x428   :  { %4515 = vmatpush.msrb.mxu3 %v4466_v58  ;;  %4320 = vmatpush.msra.mxu1 %v4277_v0  ;;  %v4826_v0 = vld [vmem:[#allocation14 + $0x7e8] sm:$0xff] }
 0x429   :  { %v4107_v29 = vadd.f32 %v9033_v5, %v4087_v17  ;;  %4340 = vmatpush.msra.mxu2 %v4293_v4  ;;  %v3827_v8 = vadd.f32 %v3805_v43, %v3565_v11  ;;  %4683 = vmatpush.msrb.mxu0 %v4646_v19  ;;  %v4645_v17 = vld [vmem:[#allocation14 + $0x5b0] sm:$0xff]  ;;  %v3304_v63 = vadd.f32 %v3284_v9, %v3042_v14  ;;  %v4149_v19 = vld [vmem:[#allocation4 + $0x4] sm:$0x3] }
 0x42a   :  { %4516 = vmatpush.msrb.mxu3 %v4465_v2  ;;  %4321 = vmatpush.msra.mxu1 %v4276_v61  ;;  %v4824_v61 = vld [vmem:[#allocation14 + $0x7d8] sm:$0xff]  ;;  %v4822_v14 = vld [vmem:[#allocation14 + $0x7c8] sm:$0xff] }
 0x42b   :  { %v4123_v51 = vmax.f32 %v4107_v29, 0.0  ;;  %4341 = vmatpush.msra.mxu2 %v4292_v50  ;;  %4684 = vmatpush.msrb.mxu0 %v4645_v17  ;;  %v3566_v35 = vadd.f32 %v3546_v3, %v3304_v63  ;;  %v4634_v17 = vld [vmem:[#allocation14 + $0x558] sm:$0xff] }
 0x42c   :  { %v5045_v33 = vld [vmem:[#allocation4 + $0x52] sm:$0x3]  ;;  %v5047_v48 = vld [vmem:[#allocation4 + $0x56] sm:$0x3]  ;;  %4322 = vmatpush.msra.mxu1 %v4275_v52 }
 0x42d   :  { %4140 = vst.msk [vmem:[#allocation4 + $0x58] sm:$0xff] %vm4128_vm2, %v4123_v51  ;;  %4342 = vmatpush.msra.mxu2 %v4291_v34  ;;  %v3808_v29 = vpop.f32.mrf.mxu3  ;;  %4685 = vmatpush.msrb.mxu0 %v4644_v16 }
 0x42e   :  { %v4064_v7 = vpop.f32.mrf.mxu0  ;;  %v3828_v54 = vadd.f32 %v3808_v29, %v3566_v35  ;;  %v4461_v35 = vld [vmem:[#allocation14 + $0x360] sm:$0xff] }
 0x42f   :  { %v4088_v13 = vadd.f32 %v4064_v7, %v3826_v26  ;;  %4686 = vmatpush.msrb.mxu0 %v4643_v59  ;;  %v4828_v26 = vld [vmem:[#allocation14 + $0x7f8] sm:$0xff] }
 0x431   :  { %v4108_v21 = vadd.f32 %v9033_v5, %v4088_v13  ;;  %4687 = vmatpush.msrb.mxu0 %v4642_v46  ;;  %v4263_v46 = vld [vmem:[#allocation4 + $0xc] sm:$0x3] }
 0x433   :  { %v4124_v45 = vmax.f32 %v4108_v21, 0.0  ;;  %v3549_v56 = vpop.f32.mrf.mxu2  ;;  %4688 = vmatpush.msrb.mxu0 %v4641_v15  ;;  %v4638_v21 = vld [vmem:[#allocation14 + $0x578] sm:$0xff] }
 0x434   :  { %v5134_v37 = vld [vmem:[#allocation4 + $0x5e] sm:$0x3]  ;;  %v5132_v49 = vld [vmem:[#allocation4 + $0x5a] sm:$0x3] }
 0x435   :  { %4141 = vst.msk [vmem:[#allocation4 + $0x60] sm:$0xff] %vm4128_vm2, %v4124_v45  ;;  %v6073_v24 = vpack.i.bf16 %v5134_v37, %v5045_v33  ;;  %v6068_v18 = vpack.i.bf16 %v5132_v49, %v5047_v48  ;;  %v3287_v57 = vpop.f32.mrf.mxu1  ;;  %4689 = vmatpush.msrb.mxu0 %v4640_v28  ;;  %v3811_v6 = vpop.f32.mrf.mxu3  ;;  %v4393_v45 = vld [vmem:[#allocation14 + $0x2f8] sm:$0xff]  ;;  %v4392_v37 = vld [vmem:[#allocation14 + $0x2f0] sm:$0xff]  ;;  %v4635_v49 = vld [vmem:[#allocation14 + $0x560] sm:$0xff] }
 0x436   :  { %v4067_v60 = vpop.f32.mrf.mxu0  ;;  %v3305_v41 = vadd.f32 %v3287_v57, %v9028_v47  ;;  %v4464_v33 = vld [vmem:[#allocation14 + $0x378] sm:$0xff]  ;;  %v4463_v48 = vld [vmem:[#allocation14 + $0x370] sm:$0xff] }
 0x437   :  { %v4089_v38 = vadd.f32 %v4067_v60, %v3827_v8  ;;  %6074 = vrot.lane.b32.xlu1 %v6073_v24, %s6352_s2  ;;  %6069 = vrot.lane.b32.xlu0 %v6068_v18, %s6352_s2  ;;  %v4391_v8 = vld [vmem:[#allocation14 + $0x2e8] sm:$0xff]  ;;  %v4821_v24 = vld [vmem:[#allocation14 + $0x7c0] sm:$0xff]  ;;  %v4633_v57 = vld [vmem:[#allocation14 + $0x550] sm:$0xff] }
 0x438   :  { %v3567_v23 = vadd.f32 %v3549_v56, %v3305_v41  ;;  %4690 = vmatpush.msrb.mxu0 %v4639_v40  ;;  %v4462_v18 = vld [vmem:[#allocation14 + $0x368] sm:$0xff]  ;;  %v4459_v28 = vld [vmem:[#allocation14 + $0x350] sm:$0xff]  ;;  %v4631_v56 = vld [vmem:[#allocation14 + $0x540] sm:$0xff] }
 0x439   :  { %v4109_v36 = vadd.f32 %v9033_v5, %v4089_v38  ;;  %v4632_v41 = vld [vmem:[#allocation14 + $0x548] sm:$0xff] }
 0x43a   :  { %v3829_v44 = vadd.f32 %v3811_v6, %v3567_v23  ;;  %4849 = vmatpush.msra.mxu0 %v4828_v26  ;;  %v4387_v23 = vld [vmem:[#allocation14 + $0x2c8] sm:$0xff]  ;;  %v4630_v26 = vld [vmem:[#allocation14 + $0x538] sm:$0xff]  ;;  %v4457_v6 = vld [vmem:[#allocation14 + $0x340] sm:$0xff] }
 0x43b   :  { %v4125_v32 = vmax.f32 %v4109_v36, 0.0  ;;  %v4390_v36 = vld [vmem:[#allocation14 + $0x2e0] sm:$0xff]  ;;  %v4458_v40 = vld [vmem:[#allocation14 + $0x348] sm:$0xff] }
 0x43c   :  { %v5219_v42 = vld [vmem:[#allocation4 + $0x62] sm:$0x3]  ;;  %v5221_v47 = vld [vmem:[#allocation4 + $0x66] sm:$0x3]  ;;  %4850 = vmatpush.msra.mxu0 %v4827_v62  ;;  %v4816_v62 = vld [vmem:[#allocation14 + $0x798] sm:$0xff] }
 0x43d   :  { %4142 = vst.msk [vmem:[#allocation4 + $0x68] sm:$0xff] %vm4128_vm2, %v4125_v32  ;;  %v4389_v32 = vld [vmem:[#allocation14 + $0x2d8] sm:$0xff] }
 0x43e   :  { %v4070_v51 = vpop.f32.mrf.mxu0  ;;  %4851 = vmatpush.msra.mxu0 %v4826_v0  ;;  %v4383_v0 = vld [vmem:[#allocation14 + $0x2a8] sm:$0xff] }
 0x43f   :  { %v4090_v10 = vadd.f32 %v4070_v51, %v3828_v54  ;;  %v4460_v54 = vld [vmem:[#allocation14 + $0x358] sm:$0xff]  ;;  %v4388_v51 = vld [vmem:[#allocation14 + $0x2d0] sm:$0xff] }
 0x440   :  { %4852 = vmatpush.msra.mxu0 %v4825_v31  ;;  %v4626_v31 = vld [vmem:[#allocation14 + $0x518] sm:$0xff] }
 0x441   :  { %v4110_v22 = vadd.f32 %v9033_v5, %v4090_v10  ;;  %v4820_v10 = vld [vmem:[#allocation14 + $0x7b8] sm:$0xff] }
 0x442   :  { %4853 = vmatpush.msra.mxu0 %v4824_v61 }
 0x443   :  { %v4126_v27 = vmax.f32 %v4110_v22, 0.0  ;;  %v4819_v22 = vld [vmem:[#allocation14 + $0x7b0] sm:$0xff] }
 0x444   :  { %v5308_v39 = vld [vmem:[#allocation4 + $0x6e] sm:$0x3]  ;;  %v5306_v53 = vld [vmem:[#allocation4 + $0x6a] sm:$0x3]  ;;  %4854 = vmatpush.msra.mxu0 %v4823_v12 }
 0x445   :  { %4143 = vst.msk [vmem:[#allocation4 + $0x70] sm:$0xff] %vm4128_vm2, %v4126_v27  ;;  %v6083_v7 = vpack.i.bf16 %v5308_v39, %v5219_v42  ;;  %v6078_v58 = vpack.i.bf16 %v5306_v53, %v5221_v47  ;;  %v4386_v27 = vld [vmem:[#allocation14 + $0x2c0] sm:$0xff]  ;;  %v4818_v42 = vld [vmem:[#allocation14 + $0x7a8] sm:$0xff]  ;;  %v4629_v39 = vld [vmem:[#allocation14 + $0x530] sm:$0xff] }
 0x446   :  { %v4073_v20 = vpop.f32.mrf.mxu0  ;;  %4855 = vmatpush.msra.mxu0 %v4822_v14  ;;  %v4385_v47 = vld [vmem:[#allocation14 + $0x2b8] sm:$0xff]  ;;  %v4817_v53 = vld [vmem:[#allocation14 + $0x7a0] sm:$0xff]  ;;  %v4261_v14 = vld [vmem:[#allocation4 + $0x8] sm:$0x3] }
 0x447   :  { %v4091_v13 = vadd.f32 %v4073_v20, %v3829_v44  ;;  %6084 = vrot.lane.b32.xlu0 %v6083_v7, %s6352_s2  ;;  %6079 = vrot.lane.b32.xlu2 %v6078_v58, %s6352_s2  ;;  %v4456_v44 = vld [vmem:[#allocation14 + $0x338] sm:$0xff]  ;;  %v4628_v7 = vld [vmem:[#allocation14 + $0x528] sm:$0xff]  ;;  %v4384_v58 = vld [vmem:[#allocation14 + $0x2b0] sm:$0xff] }
 0x448   :  { %4856 = vmatpush.msra.mxu0 %v4821_v24  ;;  %v4455_v20 = vld [vmem:[#allocation14 + $0x330] sm:$0xff] }
 0x449   :  { %v4111_v4 = vadd.f32 %v9033_v5, %v4091_v13  ;;  %v9154_v1 = vpop.permute.xlu2 %6029  ;;  %v4147_v5 = vld [vmem:[#allocation4] sm:$0x3]  ;;  %v4627_v13 = vld [vmem:[#allocation14 + $0x520] sm:$0xff]  ;;  %v4811_v24 = vld [vmem:[#allocation14 + $0x770] sm:$0xff] }
 0x44a   :  { %v6032_v43 = vunpack.i.h.bf16 %v9154_v1  ;;  %v6031_v3 = vunpack.i.l.bf16 %v9154_v1  ;;  %4857 = vmatpush.msra.mxu0 %v4820_v10  ;;  %v4454_v1 = vld [vmem:[#allocation14 + $0x328] sm:$0xff]  ;;  %v4807_v10 = vld [vmem:[#allocation14 + $0x750] sm:$0xff] }
 0x44b   :  { %v4127_v2 = vmax.f32 %v4111_v4, 0.0  ;;  %v4815_v4 = vld [vmem:[#allocation14 + $0x790] sm:$0xff] }
 0x44c   :  { %v4360_v50 = vsel %vm4128_vm2, %v4348_v25, %v6032_v43  ;;  %v5393_v60 = vld [vmem:[#allocation4 + $0x72] sm:$0x3]  ;;  %v5395_v38 = vld [vmem:[#allocation4 + $0x76] sm:$0x3]  ;;  %v4274_v15 = vsel %vm4128_vm2, %v4263_v46, %v6031_v3  ;;  %4858 = vmatpush.msra.mxu0 %v4819_v22 }
 0x44d   :  { %4144 = vst.msk [vmem:[#allocation4 + $0x78] sm:$0xff] %vm4128_vm2, %v4127_v2  ;;  %4410 = vmatmul.f32.vlgmr.msra.gmra.mxu3 %v4360_v50  ;;  %v4382_v43 = vld [vmem:[#allocation14 + $0x2a0] sm:$0xff]  ;;  %v4814_v2 = vld [vmem:[#allocation14 + $0x788] sm:$0xff]  ;;  %v4808_v46 = vld [vmem:[#allocation14 + $0x758] sm:$0xff] }
 0x44e   :  { %4655 = vmatpush.msra.mxu3 %v4638_v21  ;;  %v4153_v9 = vpop.permute.xlu1 %4152  ;;  %v4157_v11 = vpop.permute.xlu0 %4156  ;;  %4859 = vmatpush.msra.mxu0 %v4818_v42  ;;  %v4453_v25 = vld [vmem:[#allocation14 + $0x320] sm:$0xff]  ;;  %v4625_v21 = vld [vmem:[#allocation14 + $0x510] sm:$0xff] }
 0x44f   :  { %v4159_v52 = vsel %vm4128_vm2, %v4147_v5, %v4153_v9  ;;  %v4160_v34 = vsel %vm4128_vm2, %v4149_v19, %v4157_v11  ;;  %v4437_v50 = vld [vmem:[#allocation4 + $0x1c] sm:$0x3]  ;;  %v4452_v5 = vld [vmem:[#allocation14 + $0x318] sm:$0xff]  ;;  %v4624_v9 = vld [vmem:[#allocation14 + $0x508] sm:$0xff] }
 0x450   :  { %4656 = vmatpush.msra.mxu3 %v4637_v55  ;;  %4209 = vmatmul.f32.vlgmr.msrb.gmra.mxu1 %v4159_v52  ;;  %v4381_v55 = vld [vmem:[#allocation14 + $0x298] sm:$0xff]  ;;  %v4380_v11 = vld [vmem:[#allocation14 + $0x290] sm:$0xff] }
 0x451   :  { %4229 = vmatmul.f32.vlgmr.msrb.gmra.mxu2 %v4160_v34  ;;  %4414 = vmatpush.msrb.mxu1 %v4393_v45  ;;  %v4813_v45 = vld [vmem:[#allocation14 + $0x780] sm:$0xff]  ;;  %v4451_v52 = vld [vmem:[#allocation14 + $0x310] sm:$0xff] }
 0x452   :  { %4481 = vmatpush.msrb.mxu2 %v4464_v33  ;;  %4657 = vmatpush.msra.mxu3 %v4636_v30  ;;  %v4623_v34 = vld [vmem:[#allocation14 + $0x500] sm:$0xff]  ;;  %v4812_v30 = vld [vmem:[#allocation14 + $0x778] sm:$0xff]  ;;  %v4546_v42 = vld [vmem:[#allocation14 + $0x450] sm:$0xff] }
 0x453   :  { %4415 = vmatpush.msrb.mxu1 %v4392_v37  ;;  %4860 = vmatpush.msra.mxu0 %v4817_v53  ;;  %v4545_v53 = vld [vmem:[#allocation14 + $0x448] sm:$0xff] }
 0x454   :  { %4482 = vmatpush.msrb.mxu2 %v4463_v48  ;;  %v5482_v63 = vld [vmem:[#allocation4 + $0x7e] sm:$0x3]  ;;  %v5480_v16 = vld [vmem:[#allocation4 + $0x7a] sm:$0x3]  ;;  %4658 = vmatpush.msra.mxu3 %v4635_v49 }
 0x455   :  { %v6093_v59 = vpack.i.bf16 %v5482_v63, %v5393_v60  ;;  %v6088_v29 = vpack.i.bf16 %v5480_v16, %v5395_v38  ;;  %4416 = vmatpush.msrb.mxu1 %v4391_v8  ;;  %4861 = vmatpush.msra.mxu0 %v4816_v62  ;;  %v4379_v48 = vld [vmem:[#allocation14 + $0x288] sm:$0xff]  ;;  %v4551_v60 = vld [vmem:[#allocation14 + $0x478] sm:$0xff]  ;;  %v4435_v63 = vld [vmem:[#allocation4 + $0x18] sm:$0x3] }
 0x456   :  { %4483 = vmatpush.msrb.mxu2 %v4462_v18  ;;  %4659 = vmatpush.msra.mxu3 %v4634_v17  ;;  %v4450_v49 = vld [vmem:[#allocation14 + $0x308] sm:$0xff]  ;;  %v4378_v18 = vld [vmem:[#allocation14 + $0x280] sm:$0xff]  ;;  %v4567_v38 = vld [vmem:[#allocation14 + $0x4f8] sm:$0xff] }
 0x457   :  { %6094 = vrot.lane.b32.xlu2 %v6093_v59, %s6352_s2  ;;  %4417 = vmatpush.msrb.mxu1 %v4390_v36  ;;  %v4449_v17 = vld [vmem:[#allocation14 + $0x300] sm:$0xff]  ;;  %v4810_v16 = vld [vmem:[#allocation14 + $0x768] sm:$0xff]  ;;  %v4550_v36 = vld [vmem:[#allocation14 + $0x470] sm:$0xff] }
 0x458   :  { %6089 = vrot.lane.b32.xlu1 %v6088_v29, %s6352_s2  ;;  %4660 = vmatpush.msra.mxu3 %v4633_v57  ;;  %v4566_v59 = vld [vmem:[#allocation14 + $0x4f0] sm:$0xff]  ;;  %v4809_v29 = vld [vmem:[#allocation14 + $0x760] sm:$0xff]  ;;  %v4549_v57 = vld [vmem:[#allocation14 + $0x468] sm:$0xff] }
 0x459   :  { %4484 = vmatpush.msrb.mxu2 %v4461_v35  ;;  %4418 = vmatpush.msrb.mxu1 %v4389_v32  ;;  %v4358_v35 = vpop.permute.xlu2 %4357  ;;  %v4565_v32 = vld [vmem:[#allocation14 + $0x4e8] sm:$0xff]  ;;  %v4609_v62 = vld [vmem:[#allocation4 + $0x28] sm:$0x3] }
 0x45a   :  { %4343 = vmatmul.f32.vlgmr.msra.gmra.mxu2 %v4274_v15  ;;  %4661 = vmatpush.msra.mxu3 %v4632_v41  ;;  %v4548_v41 = vld [vmem:[#allocation14 + $0x460] sm:$0xff] }
 0x45b   :  { %4485 = vmatpush.msrb.mxu2 %v4460_v54  ;;  %4419 = vmatpush.msrb.mxu1 %v4388_v51  ;;  %v4350_v54 = vld [vmem:[#allocation4 + $0x14] sm:$0x3]  ;;  %v4564_v15 = vld [vmem:[#allocation14 + $0x4e0] sm:$0xff] }
 0x45c   :  { %4662 = vmatpush.msra.mxu3 %v4631_v56  ;;  %4862 = vmatpush.msra.mxu0 %v4815_v4  ;;  %v4361_v51 = vsel %vm4128_vm2, %v4350_v54, %v4358_v35  ;;  %v4563_v56 = vld [vmem:[#allocation14 + $0x4d8] sm:$0xff]  ;;  %v4560_v4 = vld [vmem:[#allocation14 + $0x4c0] sm:$0xff]  ;;  %v4985_v54 = vld [vmem:[#allocation14 + $0x970] sm:$0xff] }
 0x45d   :  { %4486 = vmatpush.msrb.mxu2 %v4459_v28  ;;  %4420 = vmatpush.msrb.mxu1 %v4387_v23  ;;  %v4547_v28 = vld [vmem:[#allocation14 + $0x458] sm:$0xff]  ;;  %v4806_v23 = vld [vmem:[#allocation14 + $0x748] sm:$0xff] }
 0x45e   :  { %4663 = vmatpush.msra.mxu3 %v4630_v26  ;;  %4863 = vmatpush.msra.mxu0 %v4814_v2  ;;  %v4559_v2 = vld [vmem:[#allocation14 + $0x4b8] sm:$0xff] }
 0x45f   :  { %4487 = vmatpush.msrb.mxu2 %v4458_v40  ;;  %4421 = vmatpush.msrb.mxu1 %v4386_v27 }
 0x460   :  { %4664 = vmatpush.msra.mxu3 %v4629_v39  ;;  %4864 = vmatpush.msra.mxu0 %v4813_v45  ;;  %v4805_v39 = vld [vmem:[#allocation14 + $0x740] sm:$0xff] }
 0x461   :  { %4488 = vmatpush.msrb.mxu2 %v4457_v6  ;;  %4422 = vmatpush.msrb.mxu1 %v4385_v47  ;;  %v4562_v6 = vld [vmem:[#allocation14 + $0x4d0] sm:$0xff]  ;;  %v4540_v45 = vld [vmem:[#allocation14 + $0x420] sm:$0xff] }
 0x462   :  { %4665 = vmatpush.msra.mxu3 %v4628_v7  ;;  %v4611_v47 = vld [vmem:[#allocation4 + $0x2c] sm:$0x3] }
 0x463   :  { %4489 = vmatpush.msrb.mxu2 %v4456_v44  ;;  %4423 = vmatpush.msrb.mxu1 %v4384_v58  ;;  %v4561_v44 = vld [vmem:[#allocation14 + $0x4c8] sm:$0xff]  ;;  %v4804_v58 = vld [vmem:[#allocation14 + $0x738] sm:$0xff] }
 0x464   :  { %4666 = vmatpush.msra.mxu3 %v4627_v13 }
 0x465   :  { %4490 = vmatpush.msrb.mxu2 %v4455_v20  ;;  %4424 = vmatpush.msrb.mxu1 %v4383_v0  ;;  %v5002_v20 = vld [vmem:[#allocation14 + $0x9f8] sm:$0xff]  ;;  %v4544_v0 = vld [vmem:[#allocation14 + $0x440] sm:$0xff] }
 0x466   :  { %4667 = vmatpush.msra.mxu3 %v4626_v31  ;;  %v5001_v31 = vld [vmem:[#allocation14 + $0x9f0] sm:$0xff] }
 0x467   :  { %4491 = vmatpush.msrb.mxu2 %v4454_v1  ;;  %v4445_v61 = vpop.permute.xlu1 %4444  ;;  %4425 = vmatpush.msrb.mxu1 %v4382_v43  ;;  %v4803_v1 = vld [vmem:[#allocation14 + $0x730] sm:$0xff]  ;;  %v4543_v43 = vld [vmem:[#allocation14 + $0x438] sm:$0xff] }
 0x468   :  { %v4448_v12 = vsel %vm4128_vm2, %v4437_v50, %v4445_v61  ;;  %4668 = vmatpush.msra.mxu3 %v4625_v21  ;;  %v5000_v21 = vld [vmem:[#allocation14 + $0x9e8] sm:$0xff]  ;;  %v4542_v61 = vld [vmem:[#allocation14 + $0x430] sm:$0xff] }
 0x469   :  { %4492 = vmatpush.msrb.mxu2 %v4453_v25  ;;  %v6035_v19 = vpop.permute.xlu0 %6034  ;;  %4426 = vmatpush.msrb.mxu1 %v4381_v55  ;;  %v4802_v25 = vld [vmem:[#allocation14 + $0x728] sm:$0xff]  ;;  %v4558_v50 = vld [vmem:[#allocation14 + $0x4b0] sm:$0xff]  ;;  %v4801_v55 = vld [vmem:[#allocation14 + $0x720] sm:$0xff] }
 0x46a   :  { %4517 = vmatmul.f32.vlgmr.msrb.gmra.mxu3 %v4448_v12  ;;  %v6036_v33 = vunpack.i.l.bf16 %v6035_v19  ;;  %v6037_v8 = vunpack.i.h.bf16 %v6035_v19  ;;  %v4999_v12 = vld [vmem:[#allocation14 + $0x9e0] sm:$0xff]  ;;  %v4800_v19 = vld [vmem:[#allocation14 + $0x718] sm:$0xff] }
 0x46b   :  { %4493 = vmatpush.msrb.mxu2 %v4452_v5  ;;  %4669 = vmatpush.msra.mxu3 %v4624_v9  ;;  %v4541_v5 = vld [vmem:[#allocation14 + $0x428] sm:$0xff] }
 0x46c   :  { %4427 = vmatpush.msrb.mxu1 %v4380_v11  ;;  %v4273_v37 = vsel %vm4128_vm2, %v4261_v14, %v6036_v33  ;;  %v4447_v3 = vsel %vm4128_vm2, %v4435_v63, %v6037_v8  ;;  %v4557_v9 = vld [vmem:[#allocation14 + $0x4a8] sm:$0xff]  ;;  %v4998_v11 = vld [vmem:[#allocation14 + $0x9d8] sm:$0xff]  ;;  %v4797_v63 = vld [vmem:[#allocation14 + $0x700] sm:$0xff] }
 0x46d   :  { %4494 = vmatpush.msrb.mxu2 %v4451_v52  ;;  %4670 = vmatpush.msra.mxu3 %v4623_v34  ;;  %v4556_v52 = vld [vmem:[#allocation14 + $0x4a0] sm:$0xff]  ;;  %v4799_v34 = vld [vmem:[#allocation14 + $0x710] sm:$0xff]  ;;  %v4539_v14 = vld [vmem:[#allocation14 + $0x418] sm:$0xff] }
 0x46e   :  { %4323 = vmatmul.f32.vlgmr.msra.gmra.mxu1 %v4273_v37  ;;  %v4555_v37 = vld [vmem:[#allocation14 + $0x498] sm:$0xff] }
 0x46f   :  { %4829 = vmatpush.msrb.mxu3 %v4812_v30  ;;  %4428 = vmatpush.msrb.mxu1 %v4379_v48  ;;  %v4997_v30 = vld [vmem:[#allocation14 + $0x9d0] sm:$0xff]  ;;  %v4798_v48 = vld [vmem:[#allocation14 + $0x708] sm:$0xff] }
 0x470   :  { %4495 = vmatpush.msrb.mxu2 %v4450_v49 }
 0x471   :  { %4830 = vmatpush.msrb.mxu3 %v4811_v24  ;;  %4429 = vmatpush.msrb.mxu1 %v4378_v18  ;;  %v9177_v33 = vpop.permute.xlu2 %6049  ;;  %v4996_v24 = vld [vmem:[#allocation14 + $0x9c8] sm:$0xff] }
 0x472   :  { %4496 = vmatpush.msrb.mxu2 %v4449_v17  ;;  %v6052_v8 = vunpack.i.h.bf16 %v9177_v33  ;;  %v4538_v17 = vld [vmem:[#allocation14 + $0x410] sm:$0xff] }
 0x473   :  { %4497 = vmatmul.f32.vlgmr.msrb.gmra.mxu2 %v4447_v3  ;;  %4568 = vmatpush.msra.mxu1 %v4551_v60  ;;  %v4554_v60 = vld [vmem:[#allocation14 + $0x490] sm:$0xff]  ;;  %v4986_v3 = vld [vmem:[#allocation14 + $0x978] sm:$0xff] }
 0x474   :  { %4588 = vmatpush.msra.mxu2 %v4567_v38  ;;  %4831 = vmatpush.msrb.mxu3 %v4810_v16  ;;  %v4783_v38 = vld [vmem:[#allocation4 + $0x38] sm:$0x3] }
 0x475   :  { %4569 = vmatpush.msra.mxu1 %v4550_v36  ;;  %v4995_v16 = vld [vmem:[#allocation14 + $0x9c0] sm:$0xff]  ;;  %v4537_v36 = vld [vmem:[#allocation14 + $0x408] sm:$0xff] }
 0x476   :  { %4589 = vmatpush.msra.mxu2 %v4566_v59  ;;  %4832 = vmatpush.msrb.mxu3 %v4809_v29  ;;  %v4785_v59 = vld [vmem:[#allocation4 + $0x3c] sm:$0x3]  ;;  %v4795_v29 = vsel %vm4128_vm2, %v4783_v38, %v6052_v8  ;;  %v4733_v8 = vld [vmem:[#allocation14 + $0x6b8] sm:$0xff]  ;;  %v4715_v38 = vld [vmem:[#allocation14 + $0x628] sm:$0xff] }
 0x477   :  { %4570 = vmatpush.msra.mxu1 %v4549_v57  ;;  %v4553_v57 = vld [vmem:[#allocation14 + $0x488] sm:$0xff] }
 0x478   :  { %4590 = vmatpush.msra.mxu2 %v4565_v32  ;;  %4833 = vmatpush.msrb.mxu3 %v4808_v46 }
 0x479   :  { %4430 = vmatmul.f32.vlgmr.msrb.gmra.mxu1 %v4361_v51  ;;  %v9169_v22 = vpop.permute.xlu1 %6044  ;;  %v9171_v40 = vpop.permute.xlu0 %6039  ;;  %v4552_v51 = vld [vmem:[#allocation14 + $0x480] sm:$0xff] }
 0x47a   :  { %4571 = vmatpush.msra.mxu1 %v4548_v41  ;;  %4591 = vmatpush.msra.mxu2 %v4564_v15  ;;  %v6047_v26 = vunpack.i.h.bf16 %v9169_v22  ;;  %v6042_v27 = vunpack.i.h.bf16 %v9171_v40  ;;  %v6046_v32 = vunpack.i.l.bf16 %v9169_v22  ;;  %v6041_v46 = vunpack.i.l.bf16 %v9171_v40  ;;  %v4994_v41 = vld [vmem:[#allocation14 + $0x9b8] sm:$0xff]  ;;  %v4536_v15 = vld [vmem:[#allocation14 + $0x400] sm:$0xff] }
 0x47b   :  { %4834 = vmatpush.msrb.mxu3 %v4807_v10  ;;  %v4522_v10 = vld [vmem:[#allocation4 + $0x20] sm:$0x3] }
 0x47c   :  { %4572 = vmatpush.msra.mxu1 %v4547_v28  ;;  %4592 = vmatpush.msra.mxu2 %v4563_v56  ;;  %v4622_v7 = vsel %vm4128_vm2, %v4611_v47, %v6047_v26  ;;  %v4621_v13 = vsel %vm4128_vm2, %v4609_v62, %v6042_v27  ;;  %v4524_v28 = vld [vmem:[#allocation4 + $0x24] sm:$0x3]  ;;  %v4725_v56 = vld [vmem:[#allocation14 + $0x678] sm:$0xff]  ;;  %v4534_v22 = vsel %vm4128_vm2, %v4522_v10, %v6046_v32  ;;  %v4993_v27 = vld [vmem:[#allocation14 + $0x9b0] sm:$0xff] }
 0x47d   :  { %4835 = vmatpush.msrb.mxu3 %v4806_v23  ;;  %4691 = vmatmul.f32.vlgmr.msrb.gmra.mxu0 %v4622_v7  ;;  %v4741_v23 = vld [vmem:[#allocation14 + $0x6f8] sm:$0xff]  ;;  %v4535_v40 = vsel %vm4128_vm2, %v4524_v28, %v6041_v46  ;;  %v4984_v26 = vld [vmem:[#allocation14 + $0x968] sm:$0xff]  ;;  %v4722_v62 = vld [vmem:[#allocation14 + $0x660] sm:$0xff] }
 0x47e   :  { %4573 = vmatpush.msra.mxu1 %v4546_v42  ;;  %4593 = vmatpush.msra.mxu2 %v4562_v6  ;;  %v4724_v42 = vld [vmem:[#allocation14 + $0x670] sm:$0xff]  ;;  %v4992_v47 = vld [vmem:[#allocation14 + $0x9a8] sm:$0xff]  ;;  %v4982_v7 = vld [vmem:[#allocation14 + $0x958] sm:$0xff] }
 0x47f   :  { %4836 = vmatpush.msrb.mxu3 %v4805_v39  ;;  %5023 = vmatpush.msrb.mxu0 %v5002_v20  ;;  %v4740_v6 = vld [vmem:[#allocation14 + $0x6f0] sm:$0xff]  ;;  %v4983_v39 = vld [vmem:[#allocation14 + $0x960] sm:$0xff]  ;;  %v4713_v46 = vld [vmem:[#allocation14 + $0x618] sm:$0xff] }
 0x480   :  { %4574 = vmatpush.msra.mxu1 %v4545_v53  ;;  %4594 = vmatpush.msra.mxu2 %v4561_v44  ;;  %v4723_v53 = vld [vmem:[#allocation14 + $0x668] sm:$0xff]  ;;  %v4738_v20 = vld [vmem:[#allocation14 + $0x6e0] sm:$0xff]  ;;  %v4973_v32 = vld [vmem:[#allocation14 + $0x910] sm:$0xff] }
 0x481   :  { %4837 = vmatpush.msrb.mxu3 %v4804_v58  ;;  %5024 = vmatpush.msrb.mxu0 %v5001_v31  ;;  %v4739_v44 = vld [vmem:[#allocation14 + $0x6e8] sm:$0xff]  ;;  %v4991_v58 = vld [vmem:[#allocation14 + $0x9a0] sm:$0xff]  ;;  %v9189_v31 = vpop.permute.xlu2 %6064 }
 0x482   :  { %4671 = vmatmul.f32.vlgmr.msra.gmra.mxu3 %v4621_v13  ;;  %4575 = vmatpush.msra.mxu1 %v4544_v0  ;;  %v4981_v13 = vld [vmem:[#allocation14 + $0x950] sm:$0xff]  ;;  %v4990_v0 = vld [vmem:[#allocation14 + $0x998] sm:$0xff]  ;;  %v5170_v28 = vld [vmem:[#allocation14 + $0xbc8] sm:$0xff] }
 0x483   :  { %4595 = vmatpush.msra.mxu2 %v4560_v4  ;;  %4838 = vmatpush.msrb.mxu3 %v4803_v1  ;;  %v4721_v4 = vld [vmem:[#allocation14 + $0x658] sm:$0xff] }
 0x484   :  { %4576 = vmatpush.msra.mxu1 %v4543_v43  ;;  %5025 = vmatpush.msrb.mxu0 %v5000_v21  ;;  %v4737_v1 = vld [vmem:[#allocation14 + $0x6d8] sm:$0xff]  ;;  %v4980_v43 = vld [vmem:[#allocation14 + $0x948] sm:$0xff]  ;;  %v4736_v21 = vld [vmem:[#allocation14 + $0x6d0] sm:$0xff] }
 0x485   :  { %4596 = vmatpush.msra.mxu2 %v4559_v2  ;;  %4839 = vmatpush.msrb.mxu3 %v4802_v25  ;;  %v4989_v2 = vld [vmem:[#allocation14 + $0x990] sm:$0xff] }
 0x486   :  { %4577 = vmatpush.msra.mxu1 %v4542_v61  ;;  %5026 = vmatpush.msrb.mxu0 %v4999_v12  ;;  %v4720_v25 = vld [vmem:[#allocation14 + $0x650] sm:$0xff]  ;;  %v4979_v61 = vld [vmem:[#allocation14 + $0x940] sm:$0xff]  ;;  %v4719_v12 = vld [vmem:[#allocation14 + $0x648] sm:$0xff] }
 0x487   :  { %4597 = vmatpush.msra.mxu2 %v4558_v50  ;;  %4840 = vmatpush.msrb.mxu3 %v4801_v55  ;;  %v4988_v50 = vld [vmem:[#allocation14 + $0x988] sm:$0xff]  ;;  %v6067_v55 = vunpack.i.h.bf16 %v9189_v31 }
 0x488   :  { %4578 = vmatpush.msra.mxu1 %v4541_v5  ;;  %5027 = vmatpush.msrb.mxu0 %v4998_v11  ;;  %v4735_v5 = vld [vmem:[#allocation14 + $0x6c8] sm:$0xff]  ;;  %v4718_v11 = vld [vmem:[#allocation14 + $0x640] sm:$0xff] }
 0x489   :  { %4598 = vmatpush.msra.mxu2 %v4557_v9  ;;  %4841 = vmatpush.msrb.mxu3 %v4800_v19  ;;  %v9179_v49 = vpop.permute.xlu0 %6054  ;;  %v4978_v9 = vld [vmem:[#allocation14 + $0x938] sm:$0xff]  ;;  %v4987_v19 = vld [vmem:[#allocation14 + $0x980] sm:$0xff] }
 0x48a   :  { %4579 = vmatpush.msra.mxu1 %v4540_v45  ;;  %v6057_v18 = vunpack.i.h.bf16 %v9179_v49  ;;  %5028 = vmatpush.msrb.mxu0 %v4997_v30  ;;  %v4959_v45 = vld [vmem:[#allocation4 + $0x4c] sm:$0x3] }
 0x48b   :  { %4599 = vmatpush.msra.mxu2 %v4556_v52  ;;  %4842 = vmatpush.msrb.mxu3 %v4799_v34  ;;  %v5176_v52 = vld [vmem:[#allocation14 + $0xbf8] sm:$0xff]  ;;  %v4734_v34 = vld [vmem:[#allocation14 + $0x6c0] sm:$0xff]  ;;  %v4970_v30 = vsel %vm4128_vm2, %v4959_v45, %v6067_v55 }
 0x48c   :  { %4580 = vmatpush.msra.mxu1 %v4539_v14  ;;  %5029 = vmatpush.msrb.mxu0 %v4996_v24  ;;  %v4796_v35 = vsel %vm4128_vm2, %v4785_v59, %v6057_v18  ;;  %v4977_v14 = vld [vmem:[#allocation14 + $0x930] sm:$0xff]  ;;  %v4976_v24 = vld [vmem:[#allocation14 + $0x928] sm:$0xff]  ;;  %v4714_v59 = vld [vmem:[#allocation14 + $0x620] sm:$0xff] }
 0x48d   :  { %4600 = vmatpush.msra.mxu2 %v4555_v37  ;;  %4843 = vmatpush.msrb.mxu3 %v4798_v48  ;;  %v4717_v37 = vld [vmem:[#allocation14 + $0x638] sm:$0xff]  ;;  %v5175_v48 = vld [vmem:[#allocation14 + $0xbf0] sm:$0xff] }
 0x48e   :  { %4581 = vmatpush.msra.mxu1 %v4538_v17  ;;  %5030 = vmatpush.msrb.mxu0 %v4995_v16  ;;  %v4716_v18 = vld [vmem:[#allocation14 + $0x630] sm:$0xff]  ;;  %v5174_v17 = vld [vmem:[#allocation14 + $0xbe8] sm:$0xff]  ;;  %v5173_v16 = vld [vmem:[#allocation14 + $0xbe0] sm:$0xff] }
 0x48f   :  { %4601 = vmatpush.msra.mxu2 %v4554_v60  ;;  %4844 = vmatpush.msrb.mxu3 %v4797_v63  ;;  %v4732_v60 = vld [vmem:[#allocation14 + $0x6b0] sm:$0xff]  ;;  %v4975_v63 = vld [vmem:[#allocation14 + $0x920] sm:$0xff]  ;;  %v5156_v55 = vld [vmem:[#allocation14 + $0xb58] sm:$0xff] }
 0x490   :  { %4845 = vmatmul.f32.vlgmr.msrb.gmra.mxu3 %v4795_v29  ;;  %4582 = vmatpush.msra.mxu1 %v4537_v36  ;;  %v4974_v36 = vld [vmem:[#allocation14 + $0x918] sm:$0xff] }
 0x491   :  { %5003 = vmatpush.msra.mxu3 %v4986_v3  ;;  %4602 = vmatpush.msra.mxu2 %v4553_v57  ;;  %v4731_v3 = vld [vmem:[#allocation14 + $0x6a8] sm:$0xff]  ;;  %v5172_v29 = vld [vmem:[#allocation14 + $0xbd8] sm:$0xff]  ;;  %v4730_v57 = vld [vmem:[#allocation14 + $0x6a0] sm:$0xff] }
 0x492   :  { %4865 = vmatmul.f32.vlgmr.msra.gmra.mxu0 %v4796_v35  ;;  %4583 = vmatpush.msra.mxu1 %v4536_v15  ;;  %v4972_v15 = vld [vmem:[#allocation14 + $0x908] sm:$0xff]  ;;  %v4895_v45 = vld [vmem:[#allocation14 + $0x858] sm:$0xff] }
 0x493   :  { %5004 = vmatpush.msra.mxu3 %v4985_v54  ;;  %5031 = vmatpush.msrb.mxu0 %v4994_v41  ;;  %v5171_v54 = vld [vmem:[#allocation14 + $0xbd0] sm:$0xff]  ;;  %v4729_v41 = vld [vmem:[#allocation14 + $0x698] sm:$0xff] }
 0x494   :  { %4603 = vmatpush.msra.mxu2 %v4552_v51  ;;  %4584 = vmatmul.f32.vlgmr.msra.gmra.mxu1 %v4534_v22  ;;  %v4712_v51 = vld [vmem:[#allocation14 + $0x610] sm:$0xff]  ;;  %v4711_v22 = vld [vmem:[#allocation14 + $0x608] sm:$0xff] }
 0x495   :  { %4604 = vmatmul.f32.vlgmr.msra.gmra.mxu2 %v4535_v40  ;;  %4742 = vmatpush.msrb.mxu1 %v4725_v56  ;;  %v4728_v56 = vld [vmem:[#allocation14 + $0x690] sm:$0xff]  ;;  %v5169_v40 = vld [vmem:[#allocation14 + $0xbc0] sm:$0xff] }
 0x496   :  { %4762 = vmatpush.msrb.mxu2 %v4741_v23  ;;  %5005 = vmatpush.msra.mxu3 %v4984_v26  ;;  %v4971_v23 = vld [vmem:[#allocation14 + $0x900] sm:$0xff]  ;;  %v4957_v26 = vld [vmem:[#allocation4 + $0x48] sm:$0x3] }
 0x497   :  { %5032 = vmatpush.msrb.mxu0 %v4993_v27  ;;  %4743 = vmatpush.msrb.mxu1 %v4724_v42  ;;  %v5160_v27 = vld [vmem:[#allocation14 + $0xb78] sm:$0xff]  ;;  %v4727_v42 = vld [vmem:[#allocation14 + $0x688] sm:$0xff] }
 0x498   :  { %4763 = vmatpush.msrb.mxu2 %v4740_v6  ;;  %5006 = vmatpush.msra.mxu3 %v4983_v39  ;;  %v6051_v6 = vunpack.i.l.bf16 %v9177_v33  ;;  %v6056_v39 = vunpack.i.l.bf16 %v9179_v49  ;;  %v4915_v33 = vld [vmem:[#allocation14 + $0x8f8] sm:$0xff] }
 0x499   :  { %5033 = vmatpush.msrb.mxu0 %v4992_v47  ;;  %4744 = vmatpush.msrb.mxu1 %v4723_v53  ;;  %v9193_v35 = vpop.permute.xlu1 %6059  ;;  %v5168_v53 = vld [vmem:[#allocation14 + $0xbb8] sm:$0xff] }
 0x49a   :  { %4764 = vmatpush.msrb.mxu2 %v4739_v44  ;;  %5007 = vmatpush.msra.mxu3 %v4982_v7  ;;  %v6062_v10 = vunpack.i.h.bf16 %v9193_v35  ;;  %v4710_v44 = vld [vmem:[#allocation14 + $0x600] sm:$0xff]  ;;  %v5159_v7 = vld [vmem:[#allocation14 + $0xb70] sm:$0xff] }
 0x49b   :  { %5034 = vmatpush.msrb.mxu0 %v4991_v58  ;;  %4745 = vmatpush.msrb.mxu1 %v4722_v62  ;;  %v4726_v58 = vld [vmem:[#allocation14 + $0x680] sm:$0xff]  ;;  %v4696_v62 = vld [vmem:[#allocation4 + $0x30] sm:$0x3] }
 0x49c   :  { %4765 = vmatpush.msrb.mxu2 %v4738_v20  ;;  %5008 = vmatpush.msra.mxu3 %v4981_v13  ;;  %v4969_v47 = vsel %vm4128_vm2, %v4957_v26, %v6062_v10  ;;  %v4698_v20 = vld [vmem:[#allocation4 + $0x34] sm:$0x3]  ;;  %v4708_v49 = vsel %vm4128_vm2, %v4696_v62, %v6056_v39  ;;  %v4906_v10 = vld [vmem:[#allocation14 + $0x8b0] sm:$0xff]  ;;  %v4888_v26 = vld [vmem:[#allocation14 + $0x820] sm:$0xff] }
 0x49d   :  { %5035 = vmatpush.msrb.mxu0 %v4990_v0  ;;  %4746 = vmatpush.msrb.mxu1 %v4721_v4  ;;  %v4899_v13 = vld [vmem:[#allocation14 + $0x878] sm:$0xff]  ;;  %v4709_v0 = vsel %vm4128_vm2, %v4698_v20, %v6051_v6  ;;  %v5158_v4 = vld [vmem:[#allocation14 + $0xb68] sm:$0xff]  ;;  %v5147_v39 = vld [vmem:[#allocation14 + $0xb10] sm:$0xff] }
 0x49e   :  { %4766 = vmatpush.msrb.mxu2 %v4737_v1  ;;  %5009 = vmatpush.msra.mxu3 %v4980_v43  ;;  %v5167_v1 = vld [vmem:[#allocation14 + $0xbb0] sm:$0xff]  ;;  %v5344_v20 = vld [vmem:[#allocation14 + $0xdc8] sm:$0xff] }
 0x49f   :  { %5036 = vmatpush.msrb.mxu0 %v4989_v2  ;;  %4747 = vmatpush.msrb.mxu1 %v4720_v25  ;;  %v4898_v43 = vld [vmem:[#allocation14 + $0x870] sm:$0xff]  ;;  %v5157_v25 = vld [vmem:[#allocation14 + $0xb60] sm:$0xff] }
 0x4a0   :  { %4767 = vmatpush.msrb.mxu2 %v4736_v21  ;;  %5010 = vmatpush.msra.mxu3 %v4979_v61  ;;  %v4914_v2 = vld [vmem:[#allocation14 + $0x8f0] sm:$0xff]  ;;  %v5166_v21 = vld [vmem:[#allocation14 + $0xba8] sm:$0xff] }
 0x4a1   :  { %5037 = vmatpush.msrb.mxu0 %v4988_v50  ;;  %4748 = vmatpush.msrb.mxu1 %v4719_v12  ;;  %v4897_v61 = vld [vmem:[#allocation14 + $0x868] sm:$0xff]  ;;  %v5165_v12 = vld [vmem:[#allocation14 + $0xba0] sm:$0xff] }
 0x4a2   :  { %4768 = vmatpush.msrb.mxu2 %v4735_v5  ;;  %5011 = vmatpush.msra.mxu3 %v4978_v9  ;;  %v4913_v50 = vld [vmem:[#allocation14 + $0x8e8] sm:$0xff]  ;;  %v4896_v5 = vld [vmem:[#allocation14 + $0x860] sm:$0xff] }
 0x4a3   :  { %5038 = vmatpush.msrb.mxu0 %v4987_v19  ;;  %4749 = vmatpush.msrb.mxu1 %v4718_v11  ;;  %v4912_v9 = vld [vmem:[#allocation14 + $0x8e0] sm:$0xff]  ;;  %v5155_v19 = vld [vmem:[#allocation14 + $0xb50] sm:$0xff]  ;;  %v5164_v11 = vld [vmem:[#allocation14 + $0xb98] sm:$0xff] }
 0x4a4   :  { %5039 = vmatmul.f32.vlgmr.msrb.gmra.mxu0 %v4970_v30  ;;  %4769 = vmatpush.msrb.mxu2 %v4734_v34  ;;  %v5154_v30 = vld [vmem:[#allocation14 + $0xb48] sm:$0xff] }
 0x4a5   :  { %5197 = vmatpush.msra.mxu0 %v5176_v52  ;;  %5012 = vmatpush.msra.mxu3 %v4977_v14  ;;  %v4911_v52 = vld [vmem:[#allocation14 + $0x8d8] sm:$0xff]  ;;  %v5163_v14 = vld [vmem:[#allocation14 + $0xb90] sm:$0xff] }
 0x4a6   :  { %4750 = vmatpush.msrb.mxu1 %v4717_v37  ;;  %4770 = vmatpush.msrb.mxu2 %v4733_v8  ;;  %v4894_v37 = vld [vmem:[#allocation14 + $0x850] sm:$0xff]  ;;  %v5153_v8 = vld [vmem:[#allocation14 + $0xb40] sm:$0xff] }
 0x4a7   :  { %5198 = vmatpush.msra.mxu0 %v5175_v48  ;;  %5013 = vmatpush.msra.mxu3 %v4976_v24  ;;  %v4910_v48 = vld [vmem:[#allocation14 + $0x8d0] sm:$0xff]  ;;  %v5162_v24 = vld [vmem:[#allocation14 + $0xb88] sm:$0xff] }
 0x4a8   :  { %4751 = vmatpush.msrb.mxu1 %v4716_v18  ;;  %4771 = vmatpush.msrb.mxu2 %v4732_v60  ;;  %v4909_v60 = vld [vmem:[#allocation14 + $0x8c8] sm:$0xff] }
 0x4a9   :  { %5199 = vmatpush.msra.mxu0 %v5174_v17  ;;  %5014 = vmatpush.msra.mxu3 %v4975_v63  ;;  %v9201_v34 = vpop.permute.xlu1 %6074  ;;  %v4893_v17 = vld [vmem:[#allocation14 + $0x848] sm:$0xff]  ;;  %v5152_v63 = vld [vmem:[#allocation14 + $0xb38] sm:$0xff]  ;;  %v9205_v6 = vpop.permute.xlu0 %6069 }
 0x4aa   :  { %4752 = vmatpush.msrb.mxu1 %v4715_v38  ;;  %4772 = vmatpush.msrb.mxu2 %v4731_v3  ;;  %v6077_v18 = vunpack.i.h.bf16 %v9201_v34  ;;  %v5161_v38 = vld [vmem:[#allocation14 + $0xb80] sm:$0xff]  ;;  %v6072_v62 = vunpack.i.h.bf16 %v9205_v6 }
 0x4ab   :  { %5200 = vmatpush.msra.mxu0 %v5173_v16  ;;  %5015 = vmatpush.msra.mxu3 %v4974_v36  ;;  %v4892_v16 = vld [vmem:[#allocation14 + $0x840] sm:$0xff]  ;;  %v5350_v36 = vld [vmem:[#allocation14 + $0xdf8] sm:$0xff] }
 0x4ac   :  { %4753 = vmatpush.msrb.mxu1 %v4714_v59  ;;  %4773 = vmatpush.msrb.mxu2 %v4730_v57  ;;  %v5133_v3 = vld [vmem:[#allocation4 + $0x5c] sm:$0x3]  ;;  %v5151_v57 = vld [vmem:[#allocation14 + $0xb30] sm:$0xff] }
 0x4ad   :  { %5201 = vmatpush.msra.mxu0 %v5172_v29  ;;  %5016 = vmatpush.msra.mxu3 %v4973_v32  ;;  %v4908_v59 = vld [vmem:[#allocation14 + $0x8c0] sm:$0xff]  ;;  %v5144_v29 = vsel %vm4128_vm2, %v5133_v3, %v6077_v18  ;;  %v4891_v32 = vld [vmem:[#allocation14 + $0x838] sm:$0xff] }
 0x4ae   :  { %4754 = vmatpush.msrb.mxu1 %v4713_v46  ;;  %4774 = vmatpush.msrb.mxu2 %v4729_v41  ;;  %v5349_v46 = vld [vmem:[#allocation14 + $0xdf0] sm:$0xff]  ;;  %v5150_v41 = vld [vmem:[#allocation14 + $0xb28] sm:$0xff]  ;;  %v5330_v18 = vld [vmem:[#allocation14 + $0xd58] sm:$0xff] }
 0x4af   :  { %5202 = vmatpush.msra.mxu0 %v5171_v54  ;;  %5017 = vmatpush.msra.mxu3 %v4972_v15  ;;  %v4907_v54 = vld [vmem:[#allocation14 + $0x8b8] sm:$0xff]  ;;  %v4890_v15 = vld [vmem:[#allocation14 + $0x830] sm:$0xff] }
 0x4b0   :  { %4755 = vmatpush.msrb.mxu1 %v4712_v51  ;;  %4775 = vmatpush.msrb.mxu2 %v4728_v56  ;;  %v5348_v51 = vld [vmem:[#allocation14 + $0xde8] sm:$0xff]  ;;  %v5069_v3 = vld [vmem:[#allocation14 + $0xa58] sm:$0xff] }
 0x4b1   :  { %5203 = vmatpush.msra.mxu0 %v5170_v28  ;;  %5018 = vmatpush.msra.mxu3 %v4971_v23  ;;  %v5149_v28 = vld [vmem:[#allocation14 + $0xb20] sm:$0xff]  ;;  %v4889_v56 = vld [vmem:[#allocation14 + $0x828] sm:$0xff] }
 0x4b2   :  { %4756 = vmatpush.msrb.mxu1 %v4711_v22  ;;  %5019 = vmatmul.f32.vlgmr.msra.gmra.mxu3 %v4969_v47  ;;  %v5347_v23 = vld [vmem:[#allocation14 + $0xde0] sm:$0xff]  ;;  %v4905_v22 = vld [vmem:[#allocation14 + $0x8a8] sm:$0xff]  ;;  %v4887_v47 = vld [vmem:[#allocation14 + $0x818] sm:$0xff] }
 0x4b3   :  { %5204 = vmatpush.msra.mxu0 %v5169_v40  ;;  %5177 = vmatpush.msrb.mxu3 %v5160_v27  ;;  %v5148_v40 = vld [vmem:[#allocation14 + $0xb18] sm:$0xff] }
 0x4b4   :  { %4776 = vmatpush.msrb.mxu2 %v4727_v42  ;;  %4757 = vmatpush.msrb.mxu1 %v4710_v44  ;;  %v5346_v27 = vld [vmem:[#allocation14 + $0xdd8] sm:$0xff]  ;;  %v4904_v42 = vld [vmem:[#allocation14 + $0x8a0] sm:$0xff] }
 0x4b5   :  { %5205 = vmatpush.msra.mxu0 %v5168_v53  ;;  %5178 = vmatpush.msrb.mxu3 %v5159_v7  ;;  %v5345_v53 = vld [vmem:[#allocation14 + $0xdd0] sm:$0xff]  ;;  %v4903_v44 = vld [vmem:[#allocation14 + $0x898] sm:$0xff]  ;;  %v5146_v7 = vld [vmem:[#allocation14 + $0xb08] sm:$0xff] }
 0x4b6   :  { %4777 = vmatpush.msrb.mxu2 %v4726_v58  ;;  %4758 = vmatmul.f32.vlgmr.msrb.gmra.mxu1 %v4708_v49  ;;  %v4886_v58 = vld [vmem:[#allocation14 + $0x810] sm:$0xff]  ;;  %v4885_v49 = vld [vmem:[#allocation14 + $0x808] sm:$0xff] }
 0x4b7   :  { %4778 = vmatmul.f32.vlgmr.msrb.gmra.mxu2 %v4709_v0  ;;  %4916 = vmatpush.msra.mxu1 %v4899_v13  ;;  %v4902_v13 = vld [vmem:[#allocation14 + $0x890] sm:$0xff]  ;;  %v5343_v0 = vld [vmem:[#allocation14 + $0xdc0] sm:$0xff] }
 0x4b8   :  { %4936 = vmatpush.msra.mxu2 %v4915_v33  ;;  %5179 = vmatpush.msrb.mxu3 %v5158_v4  ;;  %v5145_v33 = vld [vmem:[#allocation14 + $0xb00] sm:$0xff] }
 0x4b9   :  { %5206 = vmatpush.msra.mxu0 %v5167_v1  ;;  %4917 = vmatpush.msra.mxu1 %v4898_v43  ;;  %v5131_v4 = vld [vmem:[#allocation4 + $0x58] sm:$0x3]  ;;  %v5334_v1 = vld [vmem:[#allocation14 + $0xd78] sm:$0xff]  ;;  %v4901_v43 = vld [vmem:[#allocation14 + $0x888] sm:$0xff] }
 0x4ba   :  { %4937 = vmatpush.msra.mxu2 %v4914_v2  ;;  %5180 = vmatpush.msrb.mxu3 %v5157_v25  ;;  %v6066_v2 = vunpack.i.l.bf16 %v9189_v31  ;;  %v6061_v25 = vunpack.i.l.bf16 %v9193_v35  ;;  %v5089_v31 = vld [vmem:[#allocation14 + $0xaf8] sm:$0xff] }
 0x4bb   :  { %5207 = vmatpush.msra.mxu0 %v5166_v21  ;;  %4918 = vmatpush.msra.mxu1 %v4897_v61  ;;  %v5143_v21 = vsel %vm4128_vm2, %v5131_v4, %v6072_v62  ;;  %v5342_v61 = vld [vmem:[#allocation14 + $0xdb8] sm:$0xff]  ;;  %v5080_v62 = vld [vmem:[#allocation14 + $0xab0] sm:$0xff]  ;;  %v5062_v4 = vld [vmem:[#allocation14 + $0xa20] sm:$0xff] }
 0x4bc   :  { %4938 = vmatpush.msra.mxu2 %v4913_v50  ;;  %5181 = vmatpush.msrb.mxu3 %v5156_v55  ;;  %v4884_v50 = vld [vmem:[#allocation14 + $0x800] sm:$0xff]  ;;  %v5333_v55 = vld [vmem:[#allocation14 + $0xd70] sm:$0xff] }
 0x4bd   :  { %5208 = vmatpush.msra.mxu0 %v5165_v12  ;;  %4919 = vmatpush.msra.mxu1 %v4896_v5  ;;  %v4900_v12 = vld [vmem:[#allocation14 + $0x880] sm:$0xff]  ;;  %v4870_v5 = vld [vmem:[#allocation4 + $0x40] sm:$0x3] }
 0x4be   :  { %4939 = vmatpush.msra.mxu2 %v4912_v9  ;;  %5182 = vmatpush.msrb.mxu3 %v5155_v19  ;;  %v4872_v9 = vld [vmem:[#allocation4 + $0x44] sm:$0x3]  ;;  %v5073_v19 = vld [vmem:[#allocation14 + $0xa78] sm:$0xff]  ;;  %v4882_v35 = vsel %vm4128_vm2, %v4870_v5, %v6066_v2  ;;  %v9217_v2 = vpop.permute.xlu2 %6079 }
 0x4bf   :  { %5209 = vmatpush.msra.mxu0 %v5164_v11  ;;  %4920 = vmatpush.msra.mxu1 %v4895_v45  ;;  %v4883_v11 = vsel %vm4128_vm2, %v4872_v9, %v6061_v25  ;;  %v5332_v45 = vld [vmem:[#allocation14 + $0xd68] sm:$0xff]  ;;  %v5321_v25 = vld [vmem:[#allocation14 + $0xd10] sm:$0xff]  ;;  %v6082_v5 = vunpack.i.h.bf16 %v9217_v2 }
 0x4c0   :  { %4940 = vmatpush.msra.mxu2 %v4911_v52  ;;  %5183 = vmatpush.msrb.mxu3 %v5154_v30  ;;  %v5341_v52 = vld [vmem:[#allocation14 + $0xdb0] sm:$0xff]  ;;  %v5518_v9 = vld [vmem:[#allocation14 + $0xfc8] sm:$0xff] }
 0x4c1   :  { %5210 = vmatpush.msra.mxu0 %v5163_v14  ;;  %4921 = vmatpush.msra.mxu1 %v4894_v37  ;;  %v5072_v30 = vld [vmem:[#allocation14 + $0xa70] sm:$0xff]  ;;  %v5331_v37 = vld [vmem:[#allocation14 + $0xd60] sm:$0xff] }
 0x4c2   :  { %4941 = vmatpush.msra.mxu2 %v4910_v48  ;;  %5184 = vmatpush.msrb.mxu3 %v5153_v8  ;;  %v5088_v14 = vld [vmem:[#allocation14 + $0xaf0] sm:$0xff]  ;;  %v5340_v48 = vld [vmem:[#allocation14 + $0xda8] sm:$0xff] }
 0x4c3   :  { %5211 = vmatpush.msra.mxu0 %v5162_v24  ;;  %4922 = vmatpush.msra.mxu1 %v4893_v17  ;;  %v5071_v8 = vld [vmem:[#allocation14 + $0xa68] sm:$0xff]  ;;  %v5339_v17 = vld [vmem:[#allocation14 + $0xda0] sm:$0xff] }
 0x4c4   :  { %4942 = vmatpush.msra.mxu2 %v4909_v60  ;;  %5185 = vmatpush.msrb.mxu3 %v5152_v63  ;;  %v5087_v24 = vld [vmem:[#allocation14 + $0xae8] sm:$0xff]  ;;  %v5070_v60 = vld [vmem:[#allocation14 + $0xa60] sm:$0xff] }
 0x4c5   :  { %5212 = vmatpush.msra.mxu0 %v5161_v38  ;;  %4923 = vmatpush.msra.mxu1 %v4892_v16  ;;  %v5086_v63 = vld [vmem:[#allocation14 + $0xae0] sm:$0xff]  ;;  %v5329_v38 = vld [vmem:[#allocation14 + $0xd50] sm:$0xff]  ;;  %v5338_v16 = vld [vmem:[#allocation14 + $0xd98] sm:$0xff] }
 0x4c6   :  { %5213 = vmatmul.f32.vlgmr.msra.gmra.mxu0 %v5144_v29  ;;  %4943 = vmatpush.msra.mxu2 %v4908_v59  ;;  %v9213_v59 = vpop.permute.xlu0 %6084  ;;  %v5328_v29 = vld [vmem:[#allocation14 + $0xd48] sm:$0xff] }
 0x4c7   :  { %5371 = vmatpush.msrb.mxu0 %v5350_v36  ;;  %5186 = vmatpush.msrb.mxu3 %v5151_v57  ;;  %v5085_v36 = vld [vmem:[#allocation14 + $0xad8] sm:$0xff]  ;;  %v5337_v57 = vld [vmem:[#allocation14 + $0xd90] sm:$0xff] }
 0x4c8   :  { %4924 = vmatpush.msra.mxu1 %v4891_v32  ;;  %4944 = vmatpush.msra.mxu2 %v4907_v54  ;;  %v5068_v32 = vld [vmem:[#allocation14 + $0xa50] sm:$0xff]  ;;  %v5327_v54 = vld [vmem:[#allocation14 + $0xd40] sm:$0xff] }
 0x4c9   :  { %5372 = vmatpush.msrb.mxu0 %v5349_v46  ;;  %5187 = vmatpush.msrb.mxu3 %v5150_v41  ;;  %v5084_v46 = vld [vmem:[#allocation14 + $0xad0] sm:$0xff]  ;;  %v5336_v41 = vld [vmem:[#allocation14 + $0xd88] sm:$0xff] }
 0x4ca   :  { %4925 = vmatpush.msra.mxu1 %v4890_v15  ;;  %4945 = vmatpush.msra.mxu2 %v4906_v10  ;;  %v6087_v15 = vunpack.i.h.bf16 %v9213_v59  ;;  %v5083_v10 = vld [vmem:[#allocation14 + $0xac8] sm:$0xff] }
 0x4cb   :  { %5373 = vmatpush.msrb.mxu0 %v5348_v51  ;;  %5188 = vmatpush.msrb.mxu3 %v5149_v28  ;;  %v5067_v51 = vld [vmem:[#allocation14 + $0xa48] sm:$0xff]  ;;  %v5326_v28 = vld [vmem:[#allocation14 + $0xd38] sm:$0xff] }
 0x4cc   :  { %4926 = vmatpush.msra.mxu1 %v4889_v56  ;;  %4946 = vmatpush.msra.mxu2 %v4905_v22  ;;  %v5335_v56 = vld [vmem:[#allocation14 + $0xd80] sm:$0xff]  ;;  %v5307_v22 = vld [vmem:[#allocation4 + $0x6c] sm:$0x3] }
 0x4cd   :  { %5374 = vmatpush.msrb.mxu0 %v5347_v23  ;;  %5189 = vmatpush.msrb.mxu3 %v5148_v40  ;;  %v5066_v23 = vld [vmem:[#allocation14 + $0xa40] sm:$0xff]  ;;  %v5524_v40 = vld [vmem:[#allocation14 + $0xff8] sm:$0xff] }
 0x4ce   :  { %4927 = vmatpush.msra.mxu1 %v4888_v26  ;;  %4947 = vmatpush.msra.mxu2 %v4904_v42  ;;  %v5082_v26 = vld [vmem:[#allocation14 + $0xac0] sm:$0xff]  ;;  %v5325_v42 = vld [vmem:[#allocation14 + $0xd30] sm:$0xff] }
 0x4cf   :  { %5375 = vmatpush.msrb.mxu0 %v5346_v27  ;;  %5190 = vmatpush.msrb.mxu3 %v5147_v39  ;;  %v5318_v27 = vsel %vm4128_vm2, %v5307_v22, %v6087_v15  ;;  %v5065_v39 = vld [vmem:[#allocation14 + $0xa38] sm:$0xff] }
 0x4d0   :  { %4928 = vmatpush.msra.mxu1 %v4887_v47  ;;  %4948 = vmatpush.msra.mxu2 %v4903_v44  ;;  %v5523_v47 = vld [vmem:[#allocation14 + $0xff0] sm:$0xff]  ;;  %v5324_v44 = vld [vmem:[#allocation14 + $0xd28] sm:$0xff]  ;;  %v5504_v15 = vld [vmem:[#allocation14 + $0xf58] sm:$0xff] }
 0x4d1   :  { %5376 = vmatpush.msrb.mxu0 %v5345_v53  ;;  %5191 = vmatpush.msrb.mxu3 %v5146_v7  ;;  %v5081_v53 = vld [vmem:[#allocation14 + $0xab8] sm:$0xff]  ;;  %v5064_v7 = vld [vmem:[#allocation14 + $0xa30] sm:$0xff] }
 0x4d2   :  { %4929 = vmatpush.msra.mxu1 %v4886_v58  ;;  %4949 = vmatpush.msra.mxu2 %v4902_v13  ;;  %v5522_v58 = vld [vmem:[#allocation14 + $0xfe8] sm:$0xff]  ;;  %v5243_v22 = vld [vmem:[#allocation14 + $0xc58] sm:$0xff] }
 0x4d3   :  { %5377 = vmatpush.msrb.mxu0 %v5344_v20  ;;  %5192 = vmatpush.msrb.mxu3 %v5145_v33  ;;  %v5323_v20 = vld [vmem:[#allocation14 + $0xd20] sm:$0xff]  ;;  %v5063_v13 = vld [vmem:[#allocation14 + $0xa28] sm:$0xff] }
 0x4d4   :  { %4930 = vmatpush.msra.mxu1 %v4885_v49  ;;  %5193 = vmatmul.f32.vlgmr.msrb.gmra.mxu3 %v5143_v21  ;;  %v5521_v33 = vld [vmem:[#allocation14 + $0xfe0] sm:$0xff]  ;;  %v5079_v49 = vld [vmem:[#allocation14 + $0xaa8] sm:$0xff]  ;;  %v5061_v21 = vld [vmem:[#allocation14 + $0xa18] sm:$0xff] }
 0x4d5   :  { %5378 = vmatpush.msrb.mxu0 %v5343_v0  ;;  %5351 = vmatpush.msra.mxu3 %v5334_v1  ;;  %v5322_v0 = vld [vmem:[#allocation14 + $0xd18] sm:$0xff] }
 0x4d6   :  { %4950 = vmatpush.msra.mxu2 %v4901_v43  ;;  %4931 = vmatpush.msra.mxu1 %v4884_v50  ;;  %v5520_v1 = vld [vmem:[#allocation14 + $0xfd8] sm:$0xff]  ;;  %v5078_v43 = vld [vmem:[#allocation14 + $0xaa0] sm:$0xff] }
 0x4d7   :  { %5379 = vmatpush.msrb.mxu0 %v5342_v61  ;;  %5352 = vmatpush.msra.mxu3 %v5333_v55  ;;  %v5519_v61 = vld [vmem:[#allocation14 + $0xfd0] sm:$0xff]  ;;  %v5077_v50 = vld [vmem:[#allocation14 + $0xa98] sm:$0xff]  ;;  %v5320_v55 = vld [vmem:[#allocation14 + $0xd08] sm:$0xff] }
 0x4d8   :  { %4951 = vmatpush.msra.mxu2 %v4900_v12  ;;  %4932 = vmatmul.f32.vlgmr.msra.gmra.mxu1 %v4882_v35  ;;  %v5060_v12 = vld [vmem:[#allocation14 + $0xa10] sm:$0xff]  ;;  %v5059_v35 = vld [vmem:[#allocation14 + $0xa08] sm:$0xff] }
 0x4d9   :  { %4952 = vmatmul.f32.vlgmr.msra.gmra.mxu2 %v4883_v11  ;;  %5090 = vmatpush.msrb.mxu1 %v5073_v19  ;;  %v5076_v19 = vld [vmem:[#allocation14 + $0xa90] sm:$0xff]  ;;  %v5517_v11 = vld [vmem:[#allocation14 + $0xfc0] sm:$0xff] }
 0x4da   :  { %5110 = vmatpush.msrb.mxu2 %v5089_v31  ;;  %5353 = vmatpush.msra.mxu3 %v5332_v45  ;;  %v5319_v31 = vld [vmem:[#allocation14 + $0xd00] sm:$0xff]  ;;  %v5305_v45 = vld [vmem:[#allocation4 + $0x68] sm:$0x3] }
 0x4db   :  { %5380 = vmatpush.msrb.mxu0 %v5341_v52  ;;  %5091 = vmatpush.msrb.mxu1 %v5072_v30  ;;  %v5508_v52 = vld [vmem:[#allocation14 + $0xf78] sm:$0xff]  ;;  %v5075_v30 = vld [vmem:[#allocation14 + $0xa88] sm:$0xff] }
 0x4dc   :  { %5111 = vmatpush.msrb.mxu2 %v5088_v14  ;;  %5354 = vmatpush.msra.mxu3 %v5331_v37  ;;  %v6076_v14 = vunpack.i.l.bf16 %v9201_v34  ;;  %v6071_v37 = vunpack.i.l.bf16 %v9205_v6  ;;  %v5263_v34 = vld [vmem:[#allocation14 + $0xcf8] sm:$0xff] }
 0x4dd   :  { %5381 = vmatpush.msrb.mxu0 %v5340_v48  ;;  %5092 = vmatpush.msrb.mxu1 %v5071_v8  ;;  %v5317_v48 = vsel %vm4128_vm2, %v5305_v45, %v6082_v5  ;;  %v5516_v8 = vld [vmem:[#allocation14 + $0xfb8] sm:$0xff]  ;;  %v5253_v5 = vld [vmem:[#allocation14 + $0xca8] sm:$0xff] }
 0x4de   :  { %5112 = vmatpush.msrb.mxu2 %v5087_v24  ;;  %5355 = vmatpush.msra.mxu3 %v5330_v18  ;;  %v5058_v24 = vld [vmem:[#allocation14 + $0xa00] sm:$0xff]  ;;  %v5507_v18 = vld [vmem:[#allocation14 + $0xf70] sm:$0xff]  ;;  %v5235_v45 = vld [vmem:[#allocation14 + $0xc18] sm:$0xff] }
 0x4df   :  { %5382 = vmatpush.msrb.mxu0 %v5339_v17  ;;  %5093 = vmatpush.msrb.mxu1 %v5070_v60  ;;  %v5074_v17 = vld [vmem:[#allocation14 + $0xa80] sm:$0xff]  ;;  %v5044_v60 = vld [vmem:[#allocation4 + $0x50] sm:$0x3] }
 0x4e0   :  { %5113 = vmatpush.msrb.mxu2 %v5086_v63  ;;  %5356 = vmatpush.msra.mxu3 %v5329_v38  ;;  %v5046_v63 = vld [vmem:[#allocation4 + $0x54] sm:$0x3]  ;;  %v5056_v6 = vsel %vm4128_vm2, %v5044_v60, %v6076_v14  ;;  %v5249_v60 = vld [vmem:[#allocation14 + $0xc88] sm:$0xff] }
 0x4e1   :  { %5383 = vmatpush.msrb.mxu0 %v5338_v16  ;;  %5094 = vmatpush.msrb.mxu1 %v5069_v3  ;;  %v5247_v38 = vld [vmem:[#allocation14 + $0xc78] sm:$0xff]  ;;  %v5057_v16 = vsel %vm4128_vm2, %v5046_v63, %v6071_v37  ;;  %v5506_v3 = vld [vmem:[#allocation14 + $0xf68] sm:$0xff]  ;;  %v5234_v37 = vld [vmem:[#allocation14 + $0xc10] sm:$0xff]  ;;  %v6081_v63 = vunpack.i.l.bf16 %v9217_v2 }
 0x4e2   :  { %5114 = vmatpush.msrb.mxu2 %v5085_v36  ;;  %5357 = vmatpush.msra.mxu3 %v5328_v29  ;;  %v5515_v36 = vld [vmem:[#allocation14 + $0xfb0] sm:$0xff] }
 0x4e3   :  { %5384 = vmatpush.msrb.mxu0 %v5337_v57  ;;  %5095 = vmatpush.msrb.mxu1 %v5068_v32  ;;  %v5246_v29 = vld [vmem:[#allocation14 + $0xc70] sm:$0xff]  ;;  %v5505_v32 = vld [vmem:[#allocation14 + $0xf60] sm:$0xff] }
 0x4e4   :  { %5115 = vmatpush.msrb.mxu2 %v5084_v46  ;;  %5358 = vmatpush.msra.mxu3 %v5327_v54  ;;  %v5262_v57 = vld [vmem:[#allocation14 + $0xcf0] sm:$0xff]  ;;  %v5514_v46 = vld [vmem:[#allocation14 + $0xfa8] sm:$0xff] }
 0x4e5   :  { %5385 = vmatpush.msrb.mxu0 %v5336_v41  ;;  %5096 = vmatpush.msrb.mxu1 %v5067_v51  ;;  %v5245_v54 = vld [vmem:[#allocation14 + $0xc68] sm:$0xff]  ;;  %v5513_v51 = vld [vmem:[#allocation14 + $0xfa0] sm:$0xff] }
 0x4e6   :  { %5116 = vmatpush.msrb.mxu2 %v5083_v10  ;;  %5359 = vmatpush.msra.mxu3 %v5326_v28  ;;  %v5261_v41 = vld [vmem:[#allocation14 + $0xce8] sm:$0xff]  ;;  %v5244_v10 = vld [vmem:[#allocation14 + $0xc60] sm:$0xff] }
 0x4e7   :  { %5386 = vmatpush.msrb.mxu0 %v5335_v56  ;;  %5097 = vmatpush.msrb.mxu1 %v5066_v23  ;;  %v5260_v28 = vld [vmem:[#allocation14 + $0xce0] sm:$0xff]  ;;  %v5503_v56 = vld [vmem:[#allocation14 + $0xf50] sm:$0xff]  ;;  %v5512_v23 = vld [vmem:[#allocation14 + $0xf98] sm:$0xff] }
 0x4e8   :  { %5387 = vmatmul.f32.vlgmr.msrb.gmra.mxu0 %v5318_v27  ;;  %5117 = vmatpush.msrb.mxu2 %v5082_v26  ;;  %v9225_v26 = vpop.permute.xlu2 %6094  ;;  %v5502_v27 = vld [vmem:[#allocation14 + $0xf48] sm:$0xff] }
 0x4e9   :  { %5545 = vmatpush.msra.mxu0 %v5524_v40  ;;  %5360 = vmatpush.msra.mxu3 %v5325_v42  ;;  %v5259_v40 = vld [vmem:[#allocation14 + $0xcd8] sm:$0xff]  ;;  %v5511_v42 = vld [vmem:[#allocation14 + $0xf90] sm:$0xff] }
 0x4ea   :  { %5098 = vmatpush.msrb.mxu1 %v5065_v39  ;;  %5118 = vmatpush.msrb.mxu2 %v5081_v53  ;;  %v5242_v39 = vld [vmem:[#allocation14 + $0xc50] sm:$0xff]  ;;  %v5501_v53 = vld [vmem:[#allocation14 + $0xf40] sm:$0xff] }
 0x4eb   :  { %5546 = vmatpush.msra.mxu0 %v5523_v47  ;;  %5361 = vmatpush.msra.mxu3 %v5324_v44  ;;  %v5258_v47 = vld [vmem:[#allocation14 + $0xcd0] sm:$0xff]  ;;  %v5510_v44 = vld [vmem:[#allocation14 + $0xf88] sm:$0xff] }
 0x4ec   :  { %5099 = vmatpush.msrb.mxu1 %v5064_v7  ;;  %5119 = vmatpush.msrb.mxu2 %v5080_v62  ;;  %v6097_v7 = vunpack.i.h.bf16 %v9225_v26  ;;  %v5257_v62 = vld [vmem:[#allocation14 + $0xcc8] sm:$0xff] }
 0x4ed   :  { %5547 = vmatpush.msra.mxu0 %v5522_v58  ;;  %5362 = vmatpush.msra.mxu3 %v5323_v20  ;;  %v5241_v58 = vld [vmem:[#allocation14 + $0xc48] sm:$0xff]  ;;  %v5500_v20 = vld [vmem:[#allocation14 + $0xf38] sm:$0xff] }
 0x4ee   :  { %5100 = vmatpush.msrb.mxu1 %v5063_v13  ;;  %5120 = vmatpush.msrb.mxu2 %v5079_v49  ;;  %v5509_v13 = vld [vmem:[#allocation14 + $0xf80] sm:$0xff] }
 0x4ef   :  { %5548 = vmatpush.msra.mxu0 %v5521_v33  ;;  %5363 = vmatpush.msra.mxu3 %v5322_v0  ;;  %v5240_v33 = vld [vmem:[#allocation14 + $0xc40] sm:$0xff] }
 0x4f0   :  { %5101 = vmatpush.msrb.mxu1 %v5062_v4  ;;  %5121 = vmatpush.msrb.mxu2 %v5078_v43  ;;  %v5481_v49 = vld [vmem:[#allocation4 + $0x7c] sm:$0x3]  ;;  %v5499_v4 = vld [vmem:[#allocation14 + $0xf30] sm:$0xff]  ;;  %v5239_v43 = vld [vmem:[#allocation14 + $0xc38] sm:$0xff] }
 0x4f1   :  { %5549 = vmatpush.msra.mxu0 %v5520_v1  ;;  %5364 = vmatpush.msra.mxu3 %v5321_v25  ;;  %v5256_v0 = vld [vmem:[#allocation14 + $0xcc0] sm:$0xff]  ;;  %v5492_v1 = vsel %vm4128_vm2, %v5481_v49, %v6097_v7  ;;  %v5255_v25 = vld [vmem:[#allocation14 + $0xcb8] sm:$0xff]  ;;  %v5427_v7 = vld [vmem:[#allocation14 + $0xea8] sm:$0xff] }
 0x4f2   :  { %5102 = vmatpush.msrb.mxu1 %v5061_v21  ;;  %5122 = vmatpush.msrb.mxu2 %v5077_v50  ;;  %v5498_v21 = vld [vmem:[#allocation14 + $0xf28] sm:$0xff]  ;;  %v5254_v50 = vld [vmem:[#allocation14 + $0xcb0] sm:$0xff] }
 0x4f3   :  { %5550 = vmatpush.msra.mxu0 %v5519_v61  ;;  %5365 = vmatpush.msra.mxu3 %v5320_v55  ;;  %v5238_v61 = vld [vmem:[#allocation14 + $0xc30] sm:$0xff]  ;;  %v5497_v55 = vld [vmem:[#allocation14 + $0xf20] sm:$0xff] }
 0x4f4   :  { %5103 = vmatpush.msrb.mxu1 %v5060_v12  ;;  %5123 = vmatpush.msrb.mxu2 %v5076_v19  ;;  %v5237_v12 = vld [vmem:[#allocation14 + $0xc28] sm:$0xff]  ;;  %v5236_v19 = vld [vmem:[#allocation14 + $0xc20] sm:$0xff]  ;;  %v5424_v49 = vld [vmem:[#allocation14 + $0xe90] sm:$0xff] }
 0x4f5   :  { %5551 = vmatpush.msra.mxu0 %v5518_v9  ;;  %5366 = vmatpush.msra.mxu3 %v5319_v31  ;;  %v5496_v9 = vld [vmem:[#allocation14 + $0xf18] sm:$0xff]  ;;  %v9229_v31 = vpop.permute.xlu1 %6089 }
 0x4f6   :  { %5104 = vmatpush.msrb.mxu1 %v5059_v35  ;;  %5367 = vmatmul.f32.vlgmr.msra.gmra.mxu3 %v5317_v48  ;;  %v5252_v35 = vld [vmem:[#allocation14 + $0xca0] sm:$0xff]  ;;  %v6092_v14 = vunpack.i.h.bf16 %v9229_v31  ;;  %v5250_v48 = vld [vmem:[#allocation14 + $0xc90] sm:$0xff] }
 0x4f7   :  { %5552 = vmatpush.msra.mxu0 %v5517_v11  ;;  %5525 = vmatpush.msrb.mxu3 %v5508_v52  ;;  %v5495_v11 = vld [vmem:[#allocation14 + $0xf10] sm:$0xff]  ;;  %v5251_v52 = vld [vmem:[#allocation14 + $0xc98] sm:$0xff] }
 0x4f8   :  { %5124 = vmatpush.msrb.mxu2 %v5075_v30  ;;  %5105 = vmatpush.msrb.mxu1 %v5058_v24  ;;  %v5494_v30 = vld [vmem:[#allocation14 + $0xf08] sm:$0xff] }
 0x4f9   :  { %5553 = vmatpush.msra.mxu0 %v5516_v8  ;;  %5526 = vmatpush.msrb.mxu3 %v5507_v18  ;;  %v5493_v8 = vld [vmem:[#allocation14 + $0xf00] sm:$0xff]  ;;  %v5233_v24 = vld [vmem:[#allocation14 + $0xc08] sm:$0xff]  ;;  %v6086_v18 = vunpack.i.l.bf16 %v9213_v59 }
 0x4fa   :  { %5125 = vmatpush.msrb.mxu2 %v5074_v17  ;;  %5106 = vmatmul.f32.vlgmr.msrb.gmra.mxu1 %v5056_v6  ;;  %v5479_v17 = vld [vmem:[#allocation4 + $0x78] sm:$0x3]  ;;  %v5220_v59 = vld [vmem:[#allocation4 + $0x64] sm:$0x3] }
 0x4fb   :  { %5126 = vmatmul.f32.vlgmr.msrb.gmra.mxu2 %v5057_v16  ;;  %5264 = vmatpush.msra.mxu1 %v5247_v38  ;;  %v5491_v38 = vsel %vm4128_vm2, %v5479_v17, %v6092_v14  ;;  %v5248_v6 = vld [vmem:[#allocation14 + $0xc80] sm:$0xff]  ;;  %v5218_v16 = vld [vmem:[#allocation4 + $0x60] sm:$0x3]  ;;  %v5231_v2 = vsel %vm4128_vm2, %v5220_v59, %v6081_v63 }
 0x4fc   :  { %5284 = vmatpush.msra.mxu2 %v5263_v34  ;;  %5527 = vmatpush.msrb.mxu3 %v5506_v3  ;;  %v5232_v34 = vld [vmem:[#allocation14 + $0xc00] sm:$0xff]  ;;  %v5421_v3 = vld [vmem:[#allocation14 + $0xe78] sm:$0xff] }
 0x4fd   :  { %5554 = vmatpush.msra.mxu0 %v5515_v36  ;;  %5265 = vmatpush.msra.mxu1 %v5246_v29  ;;  %v5230_v36 = vsel %vm4128_vm2, %v5218_v16, %v6086_v18  ;;  %v5437_v29 = vld [vmem:[#allocation14 + $0xef8] sm:$0xff] }
 0x4fe   :  { %5285 = vmatpush.msra.mxu2 %v5262_v57  ;;  %5528 = vmatpush.msrb.mxu3 %v5505_v32  ;;  %v5420_v57 = vld [vmem:[#allocation14 + $0xe70] sm:$0xff] }
 0x4ff   :  { %5555 = vmatpush.msra.mxu0 %v5514_v46  ;;  %5266 = vmatpush.msra.mxu1 %v5245_v54  ;;  %v5436_v32 = vld [vmem:[#allocation14 + $0xef0] sm:$0xff]  ;;  %v5419_v46 = vld [vmem:[#allocation14 + $0xe68] sm:$0xff] }
 0x500   :  { %5286 = vmatpush.msra.mxu2 %v5261_v41  ;;  %5529 = vmatpush.msrb.mxu3 %v5504_v15  ;;  %v5435_v54 = vld [vmem:[#allocation14 + $0xee8] sm:$0xff]  ;;  %v5418_v41 = vld [vmem:[#allocation14 + $0xe60] sm:$0xff] }
 0x501   :  { %5556 = vmatpush.msra.mxu0 %v5513_v51  ;;  %5267 = vmatpush.msra.mxu1 %v5244_v10  ;;  %v5434_v15 = vld [vmem:[#allocation14 + $0xee0] sm:$0xff]  ;;  %v5417_v51 = vld [vmem:[#allocation14 + $0xe58] sm:$0xff] }
 0x502   :  { %5287 = vmatpush.msra.mxu2 %v5260_v28  ;;  %5530 = vmatpush.msrb.mxu3 %v5503_v56  ;;  %v5433_v10 = vld [vmem:[#allocation14 + $0xed8] sm:$0xff]  ;;  %v5416_v28 = vld [vmem:[#allocation14 + $0xe50] sm:$0xff] }
 0x503   :  { %5557 = vmatpush.msra.mxu0 %v5512_v23  ;;  %5268 = vmatpush.msra.mxu1 %v5243_v22  ;;  %v5432_v56 = vld [vmem:[#allocation14 + $0xed0] sm:$0xff]  ;;  %v5415_v23 = vld [vmem:[#allocation14 + $0xe48] sm:$0xff] }
 0x504   :  { %5288 = vmatpush.msra.mxu2 %v5259_v40  ;;  %5531 = vmatpush.msrb.mxu3 %v5502_v27  ;;  %v5431_v22 = vld [vmem:[#allocation14 + $0xec8] sm:$0xff]  ;;  %v5414_v40 = vld [vmem:[#allocation14 + $0xe40] sm:$0xff] }
 0x505   :  { %5558 = vmatpush.msra.mxu0 %v5511_v42  ;;  %5269 = vmatpush.msra.mxu1 %v5242_v39  ;;  %v5430_v27 = vld [vmem:[#allocation14 + $0xec0] sm:$0xff]  ;;  %v5413_v42 = vld [vmem:[#allocation14 + $0xe38] sm:$0xff] }
 0x506   :  { %5289 = vmatpush.msra.mxu2 %v5258_v47  ;;  %5532 = vmatpush.msrb.mxu3 %v5501_v53  ;;  %v5429_v39 = vld [vmem:[#allocation14 + $0xeb8] sm:$0xff]  ;;  %v5412_v47 = vld [vmem:[#allocation14 + $0xe30] sm:$0xff] }
 0x507   :  { %5559 = vmatpush.msra.mxu0 %v5510_v44  ;;  %5270 = vmatpush.msra.mxu1 %v5241_v58  ;;  %v5428_v53 = vld [vmem:[#allocation14 + $0xeb0] sm:$0xff]  ;;  %v5411_v44 = vld [vmem:[#allocation14 + $0xe28] sm:$0xff]  ;;  %v5410_v58 = vld [vmem:[#allocation14 + $0xe20] sm:$0xff] }
 0x508   :  { %5290 = vmatpush.msra.mxu2 %v5257_v62  ;;  %5533 = vmatpush.msrb.mxu3 %v5500_v20  ;;  %v5426_v62 = vld [vmem:[#allocation14 + $0xea0] sm:$0xff]  ;;  %v5409_v20 = vld [vmem:[#allocation14 + $0xe18] sm:$0xff] }
 0x509   :  { %5560 = vmatpush.msra.mxu0 %v5509_v13  ;;  %5271 = vmatpush.msra.mxu1 %v5240_v33  ;;  %v5425_v13 = vld [vmem:[#allocation14 + $0xe98] sm:$0xff]  ;;  %v5408_v33 = vld [vmem:[#allocation14 + $0xe10] sm:$0xff] }
 0x50a   :  { %5561 = vmatmul.f32.vlgmr.msra.gmra.mxu0 %v5492_v1  ;;  %5291 = vmatpush.msra.mxu2 %v5256_v0  ;;  %v5407_v0 = vld [vmem:[#allocation14 + $0xe08] sm:$0xff] }
 0x50b   :  { %5534 = vmatpush.msrb.mxu3 %v5499_v4  ;;  %5272 = vmatpush.msra.mxu1 %v5239_v43  ;;  %v6096_v4 = vunpack.i.l.bf16 %v9225_v26  ;;  %v5423_v1 = vld [vmem:[#allocation14 + $0xe88] sm:$0xff]  ;;  %v6091_v43 = vunpack.i.l.bf16 %v9229_v31  ;;  %v4230_v26 = vpop.f32.mrf.mxu2 }
 0x50c   :  { %5292 = vmatpush.msra.mxu2 %v5255_v25  ;;  %v5406_v25 = vld [vmem:[#allocation14 + $0xe00] sm:$0xff] }
 0x50d   :  { %5535 = vmatpush.msrb.mxu3 %v5498_v21  ;;  %5273 = vmatpush.msra.mxu1 %v5238_v61  ;;  %v5422_v21 = vld [vmem:[#allocation14 + $0xe80] sm:$0xff]  ;;  %v5392_v61 = vld [vmem:[#allocation4 + $0x70] sm:$0x3] }
 0x50e   :  { %5293 = vmatpush.msra.mxu2 %v5254_v50  ;;  %v5404_v50 = vsel %vm4128_vm2, %v5392_v61, %v6096_v4 }
 0x50f   :  { %5536 = vmatpush.msrb.mxu3 %v5497_v55  ;;  %5274 = vmatpush.msra.mxu1 %v5237_v12  ;;  %v5394_v55 = vld [vmem:[#allocation4 + $0x74] sm:$0x3] }
 0x510   :  { %5294 = vmatpush.msra.mxu2 %v5253_v5  ;;  %v5405_v12 = vsel %vm4128_vm2, %v5394_v55, %v6091_v43  ;;  %v4258_v5 = vpop.f32.mrf.mxu3 }
 0x511   :  { %5537 = vmatpush.msrb.mxu3 %v5496_v9  ;;  %5275 = vmatpush.msra.mxu1 %v5236_v19  ;;  %v4210_v9 = vpop.f32.mrf.mxu1 }
 0x512   :  { %5295 = vmatpush.msra.mxu2 %v5252_v35  ;;  %v4231_v14 = vadd.f32 %v4230_v26, %v4210_v9  ;;  %v6109_v26 = vld [vmem:[#allocation17] ss:$0 sm:$0xff] }
 0x513   :  { %5538 = vmatpush.msrb.mxu3 %v5495_v11  ;;  %5276 = vmatpush.msra.mxu1 %v5235_v45  ;;  %v4344_v19 = vpop.f32.mrf.mxu2 }
 0x514   :  { %5296 = vmatpush.msra.mxu2 %v5251_v52  ;;  %v4259_v18 = vadd.f32 %v4258_v5, %v4231_v14 }
 0x515   :  { %5539 = vmatpush.msrb.mxu3 %v5494_v30  ;;  %5277 = vmatpush.msra.mxu1 %v5234_v37 }
 0x516   :  { %5297 = vmatpush.msra.mxu2 %v5250_v48 }
 0x517   :  { %5540 = vmatpush.msrb.mxu3 %v5493_v8  ;;  %5278 = vmatpush.msra.mxu1 %v5233_v24  ;;  %v4692_v24 = vpop.f32.mrf.mxu0 }
 0x518   :  { %5541 = vmatmul.f32.vlgmr.msrb.gmra.mxu3 %v5491_v38  ;;  %5298 = vmatpush.msra.mxu2 %v5249_v60  ;;  %v4411_v35 = vpop.f32.mrf.mxu3 }
 0x519   :  { %5279 = vmatpush.msra.mxu1 %v5232_v34  ;;  %v4324_v31 = vpop.f32.mrf.mxu1 }
 0x51a   :  { %5299 = vmatpush.msra.mxu2 %v5248_v6  ;;  %5280 = vmatmul.f32.vlgmr.msra.gmra.mxu1 %v5230_v36  ;;  %v4345_v8 = vadd.f32 %v4344_v19, %v4324_v31  ;;  %v6110_v19 = vld [vmem:[#allocation19] ss:$0 sm:$0xff] }
 0x51b   :  { %5300 = vmatmul.f32.vlgmr.msra.gmra.mxu2 %v5231_v2  ;;  %5438 = vmatpush.msrb.mxu1 %v5421_v3  ;;  %v4498_v11 = vpop.f32.mrf.mxu2 }
 0x51c   :  { %5458 = vmatpush.msrb.mxu2 %v5437_v29  ;;  %v4347_v60 = vadd.f32 %v4345_v8, %v4259_v18 }
 0x51d   :  { %5439 = vmatpush.msrb.mxu1 %v5420_v57 }
 0x51e   :  { %5459 = vmatpush.msrb.mxu2 %v5436_v32 }
 0x51f   :  { %5440 = vmatpush.msrb.mxu1 %v5419_v46  ;;  %v4866_v36 = vpop.f32.mrf.mxu0 }
 0x520   :  { %5460 = vmatpush.msrb.mxu2 %v5435_v54  ;;  %v4518_v45 = vpop.f32.mrf.mxu3 }
 0x521   :  { %5441 = vmatpush.msrb.mxu1 %v5418_v41  ;;  %v4431_v52 = vpop.f32.mrf.mxu1  ;;  %v4519_v34 = vadd.f32 %v4518_v45, %v4498_v11  ;;  %v6111_v45 = vld [vmem:[#allocation5] ss:$0 sm:$0xff] }
 0x522   :  { %5461 = vmatpush.msrb.mxu2 %v5434_v15  ;;  %v4432_v17 = vadd.f32 %v4431_v52, %v4411_v35 }
 0x523   :  { %5442 = vmatpush.msrb.mxu1 %v5417_v51  ;;  %v4605_v30 = vpop.f32.mrf.mxu2 }
 0x524   :  { %5462 = vmatpush.msrb.mxu2 %v5433_v10  ;;  %v4434_v38 = vadd.f32 %v4432_v17, %v4347_v60 }
 0x525   :  { %5443 = vmatpush.msrb.mxu1 %v5416_v28 }
 0x526   :  { %5463 = vmatpush.msrb.mxu2 %v5432_v56  ;;  %v4521_v59 = vadd.f32 %v4519_v34, %v4434_v38 }
 0x527   :  { %5444 = vmatpush.msrb.mxu1 %v5415_v23  ;;  %v5040_v15 = vpop.f32.mrf.mxu0 }
 0x528   :  { %5464 = vmatpush.msrb.mxu2 %v5431_v22  ;;  %v4672_v37 = vpop.f32.mrf.mxu3 }
 0x529   :  { %5445 = vmatpush.msrb.mxu1 %v5414_v40  ;;  %v4585_v48 = vpop.f32.mrf.mxu1  ;;  %v4693_v57 = vadd.f32 %v4692_v24, %v4672_v37 }
 0x52a   :  { %5465 = vmatpush.msrb.mxu2 %v5430_v27  ;;  %v4606_v3 = vadd.f32 %v4605_v30, %v4585_v48 }
 0x52b   :  { %5446 = vmatpush.msrb.mxu1 %v5413_v42 }
 0x52c   :  { %5466 = vmatpush.msrb.mxu2 %v5429_v39  ;;  %v4608_v29 = vadd.f32 %v4606_v3, %v4521_v59 }
 0x52d   :  { %5447 = vmatpush.msrb.mxu1 %v5412_v47 }
 0x52e   :  { %5467 = vmatpush.msrb.mxu2 %v5428_v53  ;;  %v4695_v41 = vadd.f32 %v4693_v57, %v4608_v29 }
 0x52f   :  { %5448 = vmatpush.msrb.mxu1 %v5411_v44 }
 0x530   :  { %5468 = vmatpush.msrb.mxu2 %v5427_v7  ;;  %v4846_v6 = vpop.f32.mrf.mxu3 }
 0x531   :  { %5449 = vmatpush.msrb.mxu1 %v5410_v58  ;;  %v4867_v10 = vadd.f32 %v4866_v36, %v4846_v6 }
 0x532   :  { %5469 = vmatpush.msrb.mxu2 %v5426_v62 }
 0x533   :  { %5450 = vmatpush.msrb.mxu1 %v5409_v20  ;;  %v4759_v16 = vpop.f32.mrf.mxu1 }
 0x534   :  { %5470 = vmatpush.msrb.mxu2 %v5425_v13 }
 0x535   :  { %5451 = vmatpush.msrb.mxu1 %v5408_v33 }
 0x536   :  { %5471 = vmatpush.msrb.mxu2 %v5424_v49 }
 0x537   :  { %5452 = vmatpush.msrb.mxu1 %v5407_v0 }
 0x538   :  { %5472 = vmatpush.msrb.mxu2 %v5423_v1  ;;  %v5020_v32 = vpop.f32.mrf.mxu3 }
 0x539   :  { %5453 = vmatpush.msrb.mxu1 %v5406_v25  ;;  %v5041_v39 = vadd.f32 %v5040_v15, %v5020_v32 }
 0x53a   :  { %5473 = vmatpush.msrb.mxu2 %v5422_v21  ;;  %5454 = vmatmul.f32.vlgmr.msrb.gmra.mxu1 %v5404_v50  ;;  %v4779_v63 = vpop.f32.mrf.mxu2 }
 0x53b   :  { %5474 = vmatmul.f32.vlgmr.msrb.gmra.mxu2 %v5405_v12  ;;  %v4780_v46 = vadd.f32 %v4779_v63, %v4759_v16 }
 0x53d   :  { %v4782_v51 = vadd.f32 %v4780_v46, %v4695_v41 }
 0x53f   :  { %v4869_v22 = vadd.f32 %v4867_v10, %v4782_v51 }
 0x543   :  { %v5214_v42 = vpop.f32.mrf.mxu0 }
 0x555   :  { %v4933_v54 = vpop.f32.mrf.mxu1 }
 0x557   :  { %v5194_v23 = vpop.f32.mrf.mxu3 }
 0x558   :  { %v5215_v20 = vadd.f32 %v5214_v42, %v5194_v23 }
 0x55c   :  { %v4953_v2 = vpop.f32.mrf.mxu2 }
 0x55d   :  { %v4954_v28 = vadd.f32 %v4953_v2, %v4933_v54 }
 0x55f   :  { %v4956_v27 = vadd.f32 %v4954_v28, %v4869_v22 }
 0x561   :  { %v5043_v53 = vadd.f32 %v5041_v39, %v4956_v27 }
 0x565   :  { %v5388_v33 = vpop.f32.mrf.mxu0 }
 0x577   :  { %v5107_v40 = vpop.f32.mrf.mxu1 }
 0x579   :  { %v5368_v7 = vpop.f32.mrf.mxu3 }
 0x57a   :  { %v5389_v4 = vadd.f32 %v5388_v33, %v5368_v7 }
 0x57e   :  { %v5127_v56 = vpop.f32.mrf.mxu2 }
 0x57f   :  { %v5128_v47 = vadd.f32 %v5127_v56, %v5107_v40 }
 0x581   :  { %v5130_v58 = vadd.f32 %v5128_v47, %v5043_v53 }
 0x583   :  { %v5217_v49 = vadd.f32 %v5215_v20, %v5130_v58 }
 0x587   :  { %v5562_v50 = vpop.f32.mrf.mxu0 }
 0x597   :  { %v5281_v62 = vpop.f32.mrf.mxu1 }
 0x59b   :  { %v5542_v1 = vpop.f32.mrf.mxu3 }
 0x59c   :  { %v5563_v55 = vadd.f32 %v5562_v50, %v5542_v1 }
 0x59e   :  { %v5301_v44 = vpop.f32.mrf.mxu2 }
 0x59f   :  { %v5302_v13 = vadd.f32 %v5301_v44, %v5281_v62 }
 0x5a1   :  { %v5304_v0 = vadd.f32 %v5302_v13, %v5217_v49 }
 0x5a3   :  { %v5391_v21 = vadd.f32 %v5389_v4, %v5304_v0 }
 0x5b7   :  { %v5455_v43 = vpop.f32.mrf.mxu1 }
 0x5be   :  { %v5475_v25 = vpop.f32.mrf.mxu2 }
 0x5bf   :  { %v5476_v61 = vadd.f32 %v5475_v25, %v5455_v43 }
 0x5c1   :  { %v5478_v12 = vadd.f32 %v5476_v61, %v5391_v21 }
 0x5c3   :  { %v5565_v5 = vadd.f32 %v5563_v55, %v5478_v12 }
 0x5c5   :  { %v5570_v9 = vadd.f32 %v6109_v26, %v5565_v5 }
 0x5c7   :  { %v5571_v31 = vmax.f32 %v5570_v9, 0.0 }
 0x5c9   :  { %v5576_v35 = vmul.f32 %v6110_v19, %v5571_v31 }
 0x5cb   :  { %v5578_v11 = vsel %vm5577_vm5, %v5576_v35, 0.0 }
 0x5cc   :  { %5579 = vadd.xlane.f32.xlu0 %v5578_v11 }
 0x63f   :  { %v5580_v52 = vpop.xlane.xlu0 %5579 }
 0x640   :  { %v5585_v30 = vadd.f32 %v6111_v45, %v5580_v52 }
 0x642   :  { %5587 = vst.msk [vmem:[%s9256_s12] sm:$0x3] %vm5586_vm6, %v5585_v30 }
 0x643   :  { %5592 = vsyncpa [#allocation7], 1 }
 0x644   :  { %5593 = vsyncpa [#allocation9], 1 }
 0x645   :  { %5594 = vsyncpa [#allocation12], 1 }
 0x646   :  { %5595 = vsyncpa [#allocation15], 1 }
 0x647   :  { %5596 = vsyncpa [#allocation18], 1 }

</bundles_post_ra>
